<compile_context>
chip_gen: v6e
topology: v6e:2x2x1
jax: 0.10.0
libtpu: 0.0.40
codegen_flags: <defaults>
</compile_context>

<pallas_src>
import jax
import jax.numpy as jnp
from jax.experimental import pallas as pl
from jax.experimental.pallas import tpu as pltpu

HIDDEN = 128    # hidden_size
EMBED = 128     # embed_size (== hidden_size, required by Ybar = Y_t + o_prev)
VOCAB = 256     # vocab.size()
BATCH = 8
T_SRC = 8
T_TGT = 6       # includes <start>; decoder runs T_TGT - 1 steps
PAD_ID = 0

NEG_BIG = -1e30  # numerically identical to -inf masked_fill for softmax, NaN-safe


def _sigmoid(x):
    return 1.0 / (1.0 + jnp.exp(-x))


def _full_spec(shape):
    # whole-array block, grid=(1,)
    return pl.BlockSpec(shape, lambda i, _n=len(shape): (0,) * _n)


# --------------------------------------------------------------------------
# Fused kernel: encoder LSTM (with pack/pad length masking) -> dec-init
# projections -> attention pre-projection -> decoder LSTMCell + attention +
# combined-output projection -> vocab projection + log_softmax + gold gather
# + masked sum over time.
# --------------------------------------------------------------------------
def _seq2seq_kernel(x_ref, srcmask_ref, encpad_ref, y_ref, onehot_ref,
                    enc_wih_ref, enc_whh_ref, enc_b_ref,
                    wh_ref, wc_ref, watt_ref, batt_ref,
                    dec_wih_ref, dec_whh_ref, dec_b_ref,
                    wcomb_a_ref, wcomb_h_ref, wv_ref, bv_ref,
                    scores_ref,
                    xih_s, ench_s, ehp_s, yih_s, comb_s):
    Tsrc, B, H = ench_s.shape
    TdB = comb_s.shape[0]
    Td = TdB // B

    # ---- hoisted encoder input projection (bias folded), one big matmul ----
    xih_s[...] = (jnp.dot(x_ref[...], enc_wih_ref[...],
                          preferred_element_type=jnp.float32)
                  + enc_b_ref[...])

    # ---- encoder LSTM; fully unrolled, state carried in registers.
    # Length masking reproduces pack_padded_sequence/pad_packed_sequence
    # (state frozen after last valid step, zero-padded enc_hiddens).
    h = jnp.zeros((B, H), jnp.float32)
    c = jnp.zeros((B, H), jnp.float32)
    for t in range(Tsrc):
        gates = (xih_s[pl.ds(t * B, B), :]
                 + jnp.dot(h, enc_whh_ref[...],
                           preferred_element_type=jnp.float32))
        i = _sigmoid(gates[:, 0:H])
        f = _sigmoid(gates[:, H:2 * H])
        g = jnp.tanh(gates[:, 2 * H:3 * H])
        o = _sigmoid(gates[:, 3 * H:4 * H])
        c_new = f * c + i * g
        h_new = o * jnp.tanh(c_new)
        msk = srcmask_ref[t]                         # (B, 1): 1.0 while valid
        h = msk * h_new + (1.0 - msk) * h
        c = msk * c_new + (1.0 - msk) * c
        ench_s[t] = msk * h_new                      # padded steps -> zeros

    # ---- dec_init_state = (h_projection(last_h), c_projection(last_c)) ----
    h_d = jnp.dot(h, wh_ref[...], preferred_element_type=jnp.float32)
    c_d = jnp.dot(c, wc_ref[...], preferred_element_type=jnp.float32)
    o_prev = jnp.zeros((B, H), jnp.float32)

    # ---- enc_hiddens_proj = att_projection(enc_hiddens), one matmul ----
    enc_flat = ench_s[...].reshape(Tsrc * B, H)
    ehp = (jnp.dot(enc_flat, watt_ref[...], preferred_element_type=jnp.float32)
           + batt_ref[...])
    ehp_s[...] = ehp.reshape(Tsrc, B, H)

    # ---- hoisted decoder input projection Y @ W_ih + b (bias folded) ----
    yih_s[...] = (jnp.dot(y_ref[...], dec_wih_ref[...],
                          preferred_element_type=jnp.float32)
                  + dec_b_ref[...])

    enc_pad = encpad_ref[...]                        # (T_src, B), 1.0 = pad

    # ---- decoder LSTMCell + attention; fully unrolled ----
    for t in range(Td):
        # gates = (Y_t + o_prev) @ W_ih + h @ W_hh + b
        gates = (yih_s[pl.ds(t * B, B), :]
                 + jnp.dot(o_prev, dec_wih_ref[...],
                           preferred_element_type=jnp.float32)
                 + jnp.dot(h_d, dec_whh_ref[...],
                           preferred_element_type=jnp.float32))
        i = _sigmoid(gates[:, 0:H])
        f = _sigmoid(gates[:, H:2 * H])
        g = jnp.tanh(gates[:, 2 * H:3 * H])
        o = _sigmoid(gates[:, 3 * H:4 * H])
        c_d = f * c_d + i * g
        h_d = o * jnp.tanh(c_d)

        # attention scores e_t (time-major, no transpose needed)
        e = jnp.sum(ehp_s[...] * h_d[None, :, :], axis=-1)        # (T_src, B)
        e = jnp.where(enc_pad > 0.0, NEG_BIG, e)                  # masked_fill_
        e_max = jnp.max(e, axis=0, keepdims=True)
        p = jnp.exp(e - e_max)
        denom = jnp.sum(p, axis=0, keepdims=True)
        alpha = p * pl.reciprocal(denom, approx=True)             # softmax
        a_t = jnp.sum(alpha[:, :, None] * ench_s[...], axis=0)    # (B, H)

        # combined_output_projection on [a_t ; h_t] without concatenation
        v_t = (jnp.dot(a_t, wcomb_a_ref[...], preferred_element_type=jnp.float32)
               + jnp.dot(h_d, wcomb_h_ref[...], preferred_element_type=jnp.float32))
        o_prev = jnp.tanh(v_t)                                    # dropout == id
        comb_s[pl.ds(t * B, B), :] = o_prev

    # ---- vocab projection + log_softmax + gold gather + masked time-sum ----
    logits = (jnp.dot(comb_s[...], wv_ref[...],
                      preferred_element_type=jnp.float32)
              + bv_ref[...])                                      # (Td*B, V)
    mx = jnp.max(logits, axis=-1, keepdims=True)
    lse = mx + jnp.log(jnp.sum(jnp.exp(logits - mx), axis=-1, keepdims=True))
    logp = logits - lse
    # onehot_ref already has the target pad mask folded in (masked rows == 0)
    gold = jnp.sum(logp * onehot_ref[...], axis=-1, keepdims=True)  # (Td*B, 1)

    acc = jnp.zeros((B, 1), jnp.float32)
    for t in range(Td):
        acc = acc + gold[t * B:(t + 1) * B, :]
    scores_ref[...] = acc


# --------------------------------------------------------------------------
# Wrapper: forward(source, target, mode='summ')
# --------------------------------------------------------------------------
def seq2seq_forward_summ(params, source_ids, source_lengths, target_ids):
    """Returns per-sentence log-likelihood scores, shape (B,)."""
    emb = params["embedding"]
    T_src, B = source_ids.shape
    T_tgt = target_ids.shape[0]
    E = emb.shape[1]
    H = params["h1_w_t"].shape[0]
    V = params["vocab1_w_t"].shape[1]
    Td = T_tgt - 1

    # ---- glue (plain JAX): embedding lookups, masks, gold one-hot ----
    x_emb = jnp.take(emb, source_ids, axis=0).astype(jnp.float32)      # (T_src, B, E)
    x_flat = x_emb.reshape(T_src * B, E)
    step = jnp.arange(T_src, dtype=jnp.int32)
    src_valid = (step[:, None] < source_lengths[None, :]
                 ).astype(jnp.float32)[:, :, None]                     # (T_src, B, 1)
    enc_pad = (step[:, None] >= source_lengths[None, :]
               ).astype(jnp.float32)                                   # (T_src, B)

    y_emb = jnp.take(emb, target_ids[:-1], axis=0).astype(jnp.float32)  # (Td, B, E)
    y_flat = y_emb.reshape(Td * B, E)

    gold_ids = target_ids[1:].astype(jnp.int32).reshape(Td * B)
    tgt_mask = (target_ids[1:] != PAD_ID).astype(jnp.float32).reshape(Td * B, 1)
    onehot_masked = jax.nn.one_hot(gold_ids, V, dtype=jnp.float32) * tgt_mask

    # split combined_output_projection weight for the [a_t ; h_t] halves
    comb_w = params["comb1_w_t"]                                       # (2H, H)
    comb_a_w = comb_w[:H]
    comb_h_w = comb_w[H:]

    scores = pl.pallas_call(
        _seq2seq_kernel,
        grid=(1,),
        in_specs=[_full_spec((T_src * B, E)), _full_spec((T_src, B, 1)),
                  _full_spec((T_src, B)), _full_spec((Td * B, E)),
                  _full_spec((Td * B, V)),
                  _full_spec((E, 4 * H)), _full_spec((H, 4 * H)), _full_spec((1, 4 * H)),
                  _full_spec((H, H)), _full_spec((H, H)),
                  _full_spec((H, H)), _full_spec((1, H)),
                  _full_spec((E, 4 * H)), _full_spec((H, 4 * H)), _full_spec((1, 4 * H)),
                  _full_spec((H, H)), _full_spec((H, H)),
                  _full_spec((H, V)), _full_spec((1, V))],
        out_specs=_full_spec((B, 1)),
        out_shape=jax.ShapeDtypeStruct((B, 1), jnp.float32),
        scratch_shapes=[pltpu.VMEM((T_src * B, 4 * H), jnp.float32),   # xih_s
                        pltpu.VMEM((T_src, B, H), jnp.float32),        # ench_s
                        pltpu.VMEM((T_src, B, H), jnp.float32),        # ehp_s
                        pltpu.VMEM((Td * B, 4 * H), jnp.float32),      # yih_s
                        pltpu.VMEM((Td * B, H), jnp.float32)],         # comb_s
        compiler_params=pltpu.CompilerParams(
            dimension_semantics=("arbitrary",)),
    )(x_flat, src_valid, enc_pad, y_flat, onehot_masked,
      params["enc_wih_t"], params["enc_whh_t"], params["enc_b"],
      params["h1_w_t"], params["c1_w_t"], params["att1_w_t"], params["att1_b"],
      params["dec_wih_t"], params["dec_whh_t"], params["dec_b"],
      comb_a_w, comb_h_w, params["vocab1_w_t"], params["vocab1_b"])

    return scores[:, 0]


# --------------------------------------------------------------------------
# Deterministic parameter initialization (shapes follow Seq2seq.__init__;
# weights stored pre-transposed for x @ W layouts, biases as (1, n)).
# --------------------------------------------------------------------------
def init_params(key, hidden=HIDDEN, embed=EMBED, vocab=VOCAB):
    ks = jax.random.split(key, 14)
    H, E, V = hidden, embed, vocab

    def u(k, shape, s=0.08):
        return jax.random.uniform(k, shape, jnp.float32, -s, s)

    return dict(
        embedding=u(ks[0], (V, E), 0.5),          # nn.Embedding(V, E)
        enc_wih_t=u(ks[1], (E, 4 * H)),           # encoder1 weight_ih_l0.T
        enc_whh_t=u(ks[2], (H, 4 * H)),           # encoder1 weight_hh_l0.T
        enc_b=u(ks[3], (1, 4 * H)),               # bias_ih_l0 + bias_hh_l0
        h1_w_t=u(ks[4], (H, H)),                  # h_projection1 (no bias)
        c1_w_t=u(ks[5], (H, H)),                  # c_projection1 (no bias)
        att1_w_t=u(ks[6], (H, H)),                # att_projection1 weight.T
        att1_b=u(ks[7], (1, H)),                  # att_projection1 bias
        dec_wih_t=u(ks[8], (E, 4 * H)),           # decoder1 (LSTMCell) weight_ih.T
        dec_whh_t=u(ks[9], (H, 4 * H)),           # decoder1 weight_hh.T
        dec_b=u(ks[10], (1, 4 * H)),              # decoder1 bias_ih + bias_hh
        comb1_w_t=u(ks[11], (2 * H, H)),          # combined_output_projection1.T
        vocab1_w_t=u(ks[12], (H, V)),             # target_vocab_projection1.T
        vocab1_b=u(ks[13], (1, V)),
    )


if __name__ == "__main__":
    key = jax.random.PRNGKey(0)
    pkey, skey, tkey = jax.random.split(key, 3)
    params = init_params(pkey)

    # source_padded: (T_src, B) int ids, with per-sentence lengths
    source_lengths = jnp.array([8, 7, 6, 8, 5, 8, 7, 8], dtype=jnp.int32)
    src = jax.random.randint(skey, (T_SRC, BATCH), 2, VOCAB, dtype=jnp.int32)
    pos = jnp.arange(T_SRC, dtype=jnp.int32)[:, None]
    src = jnp.where(pos < source_lengths[None, :], src, PAD_ID)

    # target_padded: (T_tgt, B), row 0 = <start>, trailing pads per sentence
    target_lengths = jnp.array([6, 5, 6, 4, 6, 6, 5, 6], dtype=jnp.int32)
    tgt = jax.random.randint(tkey, (T_TGT, BATCH), 2, VOCAB, dtype=jnp.int32)
    tgt = tgt.at[0, :].set(1)
    tpos = jnp.arange(T_TGT, dtype=jnp.int32)[:, None]
    tgt = jnp.where(tpos < target_lengths[None, :], tgt, PAD_ID)

    scores = seq2seq_forward_summ(params, src, source_lengths, tgt)
    scores = jax.block_until_ready(scores)

    assert scores.shape == (BATCH,)
    assert bool(jnp.all(jnp.isfinite(scores)))
    print("KERNEL_OK")
</pallas_src>

<mosaic_0001>
module attributes {stable_mosaic.version = 11 : i64} {
  func.func @_seq2seq_kernel(%arg0: i32, %arg1: memref<64x128xf32, #tpu.memory_space<vmem>>, %arg2: memref<8x8x1xf32, #tpu.memory_space<vmem>>, %arg3: memref<8x8xf32, #tpu.memory_space<vmem>>, %arg4: memref<40x128xf32, #tpu.memory_space<vmem>>, %arg5: memref<40x256xf32, #tpu.memory_space<vmem>>, %arg6: memref<128x512xf32, #tpu.memory_space<vmem>>, %arg7: memref<128x512xf32, #tpu.memory_space<vmem>>, %arg8: memref<1x512xf32, #tpu.memory_space<vmem>>, %arg9: memref<128x128xf32, #tpu.memory_space<vmem>>, %arg10: memref<128x128xf32, #tpu.memory_space<vmem>>, %arg11: memref<128x128xf32, #tpu.memory_space<vmem>>, %arg12: memref<1x128xf32, #tpu.memory_space<vmem>>, %arg13: memref<128x512xf32, #tpu.memory_space<vmem>>, %arg14: memref<128x512xf32, #tpu.memory_space<vmem>>, %arg15: memref<1x512xf32, #tpu.memory_space<vmem>>, %arg16: memref<128x128xf32, #tpu.memory_space<vmem>>, %arg17: memref<128x128xf32, #tpu.memory_space<vmem>>, %arg18: memref<128x256xf32, #tpu.memory_space<vmem>>, %arg19: memref<1x256xf32, #tpu.memory_space<vmem>>, %arg20: memref<8x1xf32, #tpu.memory_space<vmem>>, %arg21: memref<64x512xf32, #tpu.memory_space<vmem>>, %arg22: memref<8x8x128xf32, #tpu.memory_space<vmem>>, %arg23: memref<8x8x128xf32, #tpu.memory_space<vmem>>, %arg24: memref<40x512xf32, #tpu.memory_space<vmem>>, %arg25: memref<40x128xf32, #tpu.memory_space<vmem>>) attributes {dimension_semantics = [#tpu.dimension_semantics<arbitrary>], iteration_bounds = array<i64: 1>, scalar_prefetch = 0 : i64, scratch_operands = 5 : i64, tpu.core_type = #tpu.core_type<tc>, window_params = [{pipeline_mode = #tpu.pipeline_mode<synchronous>, transform_indices = @transform_0, window_bounds = array<i64: 64, 128>}, {pipeline_mode = #tpu.pipeline_mode<synchronous>, transform_indices = @transform_1, window_bounds = array<i64: 8, 8, 1>}, {pipeline_mode = #tpu.pipeline_mode<synchronous>, transform_indices = @transform_2, window_bounds = array<i64: 8, 8>}, {pipeline_mode = #tpu.pipeline_mode<synchronous>, transform_indices = @transform_3, window_bounds = array<i64: 40, 128>}, {pipeline_mode = #tpu.pipeline_mode<synchronous>, transform_indices = @transform_4, window_bounds = array<i64: 40, 256>}, {pipeline_mode = #tpu.pipeline_mode<synchronous>, transform_indices = @transform_5, window_bounds = array<i64: 128, 512>}, {pipeline_mode = #tpu.pipeline_mode<synchronous>, transform_indices = @transform_6, window_bounds = array<i64: 128, 512>}, {pipeline_mode = #tpu.pipeline_mode<synchronous>, transform_indices = @transform_7, window_bounds = array<i64: 1, 512>}, {pipeline_mode = #tpu.pipeline_mode<synchronous>, transform_indices = @transform_8, window_bounds = array<i64: 128, 128>}, {pipeline_mode = #tpu.pipeline_mode<synchronous>, transform_indices = @transform_9, window_bounds = array<i64: 128, 128>}, {pipeline_mode = #tpu.pipeline_mode<synchronous>, transform_indices = @transform_10, window_bounds = array<i64: 128, 128>}, {pipeline_mode = #tpu.pipeline_mode<synchronous>, transform_indices = @transform_11, window_bounds = array<i64: 1, 128>}, {pipeline_mode = #tpu.pipeline_mode<synchronous>, transform_indices = @transform_12, window_bounds = array<i64: 128, 512>}, {pipeline_mode = #tpu.pipeline_mode<synchronous>, transform_indices = @transform_13, window_bounds = array<i64: 128, 512>}, {pipeline_mode = #tpu.pipeline_mode<synchronous>, transform_indices = @transform_14, window_bounds = array<i64: 1, 512>}, {pipeline_mode = #tpu.pipeline_mode<synchronous>, transform_indices = @transform_15, window_bounds = array<i64: 128, 128>}, {pipeline_mode = #tpu.pipeline_mode<synchronous>, transform_indices = @transform_16, window_bounds = array<i64: 128, 128>}, {pipeline_mode = #tpu.pipeline_mode<synchronous>, transform_indices = @transform_17, window_bounds = array<i64: 128, 256>}, {pipeline_mode = #tpu.pipeline_mode<synchronous>, transform_indices = @transform_18, window_bounds = array<i64: 1, 256>}, {pipeline_mode = #tpu.pipeline_mode<synchronous>, transform_indices = @transform_19, window_bounds = array<i64: 8, 1>}]} {
    %c0 = arith.constant 0 : index
    %c0_0 = arith.constant 0 : index
    %0 = vector.load %arg1[%c0, %c0_0] : memref<64x128xf32, #tpu.memory_space<vmem>>, vector<64x128xf32>
    %c0_1 = arith.constant 0 : index
    %c0_2 = arith.constant 0 : index
    %1 = vector.load %arg6[%c0_1, %c0_2] : memref<128x512xf32, #tpu.memory_space<vmem>>, vector<128x512xf32>
    %cst = arith.constant dense<0.000000e+00> : vector<64x512xf32>
    %2 = tpu.matmul %0, %1, %cst {dimension_numbers = #tpu.dot_dimension_numbers<[1], [0], [0], [1], [0, 0, 1, 1], [], []>} : vector<64x128xf32>, vector<128x512xf32>, vector<64x512xf32> -> vector<64x512xf32>
    %c0_3 = arith.constant 0 : index
    %c0_4 = arith.constant 0 : index
    %3 = vector.load %arg8[%c0_3, %c0_4] : memref<1x512xf32, #tpu.memory_space<vmem>>, vector<1x512xf32>
    %4 = vector.broadcast %3 : vector<1x512xf32> to vector<64x512xf32>
    %5 = arith.addf %2, %4 : vector<64x512xf32>
    %c0_5 = arith.constant 0 : index
    %c0_6 = arith.constant 0 : index
    %6 = vector.load %arg21[%c0_5, %c0_6] : memref<64x512xf32, #tpu.memory_space<vmem>>, vector<64x512xf32>
    tpu.vector_store %arg21[%c0_5, %c0_6], %5 {strides = array<i32>} : memref<64x512xf32, #tpu.memory_space<vmem>>, vector<64x512xf32>,
    %cst_7 = arith.constant 0.000000e+00 : f32
    %7 = vector.broadcast %cst_7 : f32 to vector<8x128xf32>
    %cst_8 = arith.constant 0.000000e+00 : f32
    %8 = vector.broadcast %cst_8 : f32 to vector<8x128xf32>
    %c0_9 = arith.constant 0 : index
    %c0_10 = arith.constant 0 : index
    %9 = vector.load %arg21[%c0_9, %c0_10] : memref<64x512xf32, #tpu.memory_space<vmem>>, vector<8x512xf32>
    %c0_11 = arith.constant 0 : index
    %c0_12 = arith.constant 0 : index
    %10 = vector.load %arg7[%c0_11, %c0_12] : memref<128x512xf32, #tpu.memory_space<vmem>>, vector<128x512xf32>
    %cst_13 = arith.constant dense<0.000000e+00> : vector<8x512xf32>
    %11 = tpu.matmul %7, %10, %cst_13 {dimension_numbers = #tpu.dot_dimension_numbers<[1], [0], [0], [1], [0, 0, 1, 1], [], []>} : vector<8x128xf32>, vector<128x512xf32>, vector<8x512xf32> -> vector<8x512xf32>
    %12 = arith.addf %9, %11 : vector<8x512xf32>
    %13 = vector.extract_strided_slice %12 {offsets = [0, 0], sizes = [8, 128], strides = [1, 1]} : vector<8x512xf32> to vector<8x128xf32>
    %cst_14 = arith.constant 0.000000e+00 : f32
    %14 = vector.broadcast %cst_14 : f32 to vector<8x128xf32>
    %15 = arith.subf %14, %13 : vector<8x128xf32>
    %16 = math.exp %15 : vector<8x128xf32>
    %cst_15 = arith.constant 1.000000e+00 : f32
    %17 = vector.broadcast %cst_15 : f32 to vector<8x128xf32>
    %18 = arith.addf %17, %16 : vector<8x128xf32>
    %cst_16 = arith.constant 1.000000e+00 : f32
    %19 = vector.broadcast %cst_16 : f32 to vector<8x128xf32>
    %20 = arith.divf %19, %18 : vector<8x128xf32>
    %21 = vector.extract_strided_slice %12 {offsets = [0, 128], sizes = [8, 128], strides = [1, 1]} : vector<8x512xf32> to vector<8x128xf32>
    %cst_17 = arith.constant 0.000000e+00 : f32
    %22 = vector.broadcast %cst_17 : f32 to vector<8x128xf32>
    %23 = arith.subf %22, %21 : vector<8x128xf32>
    %24 = math.exp %23 : vector<8x128xf32>
    %cst_18 = arith.constant 1.000000e+00 : f32
    %25 = vector.broadcast %cst_18 : f32 to vector<8x128xf32>
    %26 = arith.addf %25, %24 : vector<8x128xf32>
    %cst_19 = arith.constant 1.000000e+00 : f32
    %27 = vector.broadcast %cst_19 : f32 to vector<8x128xf32>
    %28 = arith.divf %27, %26 : vector<8x128xf32>
    %29 = vector.extract_strided_slice %12 {offsets = [0, 256], sizes = [8, 128], strides = [1, 1]} : vector<8x512xf32> to vector<8x128xf32>
    %30 = math.tanh %29 : vector<8x128xf32>
    %31 = vector.extract_strided_slice %12 {offsets = [0, 384], sizes = [8, 128], strides = [1, 1]} : vector<8x512xf32> to vector<8x128xf32>
    %cst_20 = arith.constant 0.000000e+00 : f32
    %32 = vector.broadcast %cst_20 : f32 to vector<8x128xf32>
    %33 = arith.subf %32, %31 : vector<8x128xf32>
    %34 = math.exp %33 : vector<8x128xf32>
    %cst_21 = arith.constant 1.000000e+00 : f32
    %35 = vector.broadcast %cst_21 : f32 to vector<8x128xf32>
    %36 = arith.addf %35, %34 : vector<8x128xf32>
    %cst_22 = arith.constant 1.000000e+00 : f32
    %37 = vector.broadcast %cst_22 : f32 to vector<8x128xf32>
    %38 = arith.divf %37, %36 : vector<8x128xf32>
    %39 = arith.mulf %28, %8 : vector<8x128xf32>
    %40 = arith.mulf %20, %30 : vector<8x128xf32>
    %41 = arith.addf %39, %40 : vector<8x128xf32>
    %42 = math.tanh %41 : vector<8x128xf32>
    %43 = arith.mulf %38, %42 : vector<8x128xf32>
    %c0_23 = arith.constant 0 : index
    %c0_24 = arith.constant 0 : index
    %c0_25 = arith.constant 0 : index
    %44 = vector.load %arg2[%c0_23, %c0_24, %c0_25] : memref<8x8x1xf32, #tpu.memory_space<vmem>>, vector<1x8x1xf32>
    %45 = vector.shape_cast %44 : vector<1x8x1xf32> to vector<8x1xf32>
    %46 = vector.broadcast %45 : vector<8x1xf32> to vector<8x128xf32>
    %47 = arith.mulf %46, %43 : vector<8x128xf32>
    %cst_26 = arith.constant 1.000000e+00 : f32
    %48 = vector.broadcast %cst_26 : f32 to vector<8x1xf32>
    %49 = arith.subf %48, %45 : vector<8x1xf32>
    %50 = vector.broadcast %49 : vector<8x1xf32> to vector<8x128xf32>
    %51 = arith.mulf %50, %7 : vector<8x128xf32>
    %52 = arith.addf %47, %51 : vector<8x128xf32>
    %53 = vector.broadcast %45 : vector<8x1xf32> to vector<8x128xf32>
    %54 = arith.mulf %53, %41 : vector<8x128xf32>
    %cst_27 = arith.constant 1.000000e+00 : f32
    %55 = vector.broadcast %cst_27 : f32 to vector<8x1xf32>
    %56 = arith.subf %55, %45 : vector<8x1xf32>
    %57 = vector.broadcast %56 : vector<8x1xf32> to vector<8x128xf32>
    %58 = arith.mulf %57, %8 : vector<8x128xf32>
    %59 = arith.addf %54, %58 : vector<8x128xf32>
    %60 = vector.broadcast %45 : vector<8x1xf32> to vector<8x128xf32>
    %61 = arith.mulf %60, %43 : vector<8x128xf32>
    %c0_28 = arith.constant 0 : index
    %c0_29 = arith.constant 0 : index
    %c0_30 = arith.constant 0 : index
    %62 = vector.load %arg22[%c0_28, %c0_29, %c0_30] : memref<8x8x128xf32, #tpu.memory_space<vmem>>, vector<1x8x128xf32>
    %63 = vector.shape_cast %62 : vector<1x8x128xf32> to vector<8x128xf32>
    %64 = vector.shape_cast %61 : vector<8x128xf32> to vector<1x8x128xf32>
    tpu.vector_store %arg22[%c0_28, %c0_29, %c0_30], %64 {strides = array<i32>} : memref<8x8x128xf32, #tpu.memory_space<vmem>>, vector<1x8x128xf32>,
    %c8 = arith.constant 8 : index
    %c0_31 = arith.constant 0 : index
    %65 = vector.load %arg21[%c8, %c0_31] : memref<64x512xf32, #tpu.memory_space<vmem>>, vector<8x512xf32>
    %c0_32 = arith.constant 0 : index
    %c0_33 = arith.constant 0 : index
    %66 = vector.load %arg7[%c0_32, %c0_33] : memref<128x512xf32, #tpu.memory_space<vmem>>, vector<128x512xf32>
    %cst_34 = arith.constant dense<0.000000e+00> : vector<8x512xf32>
    %67 = tpu.matmul %52, %66, %cst_34 {dimension_numbers = #tpu.dot_dimension_numbers<[1], [0], [0], [1], [0, 0, 1, 1], [], []>} : vector<8x128xf32>, vector<128x512xf32>, vector<8x512xf32> -> vector<8x512xf32>
    %68 = arith.addf %65, %67 : vector<8x512xf32>
    %69 = vector.extract_strided_slice %68 {offsets = [0, 0], sizes = [8, 128], strides = [1, 1]} : vector<8x512xf32> to vector<8x128xf32>
    %cst_35 = arith.constant 0.000000e+00 : f32
    %70 = vector.broadcast %cst_35 : f32 to vector<8x128xf32>
    %71 = arith.subf %70, %69 : vector<8x128xf32>
    %72 = math.exp %71 : vector<8x128xf32>
    %cst_36 = arith.constant 1.000000e+00 : f32
    %73 = vector.broadcast %cst_36 : f32 to vector<8x128xf32>
    %74 = arith.addf %73, %72 : vector<8x128xf32>
    %cst_37 = arith.constant 1.000000e+00 : f32
    %75 = vector.broadcast %cst_37 : f32 to vector<8x128xf32>
    %76 = arith.divf %75, %74 : vector<8x128xf32>
    %77 = vector.extract_strided_slice %68 {offsets = [0, 128], sizes = [8, 128], strides = [1, 1]} : vector<8x512xf32> to vector<8x128xf32>
    %cst_38 = arith.constant 0.000000e+00 : f32
    %78 = vector.broadcast %cst_38 : f32 to vector<8x128xf32>
    %79 = arith.subf %78, %77 : vector<8x128xf32>
    %80 = math.exp %79 : vector<8x128xf32>
    %cst_39 = arith.constant 1.000000e+00 : f32
    %81 = vector.broadcast %cst_39 : f32 to vector<8x128xf32>
    %82 = arith.addf %81, %80 : vector<8x128xf32>
    %cst_40 = arith.constant 1.000000e+00 : f32
    %83 = vector.broadcast %cst_40 : f32 to vector<8x128xf32>
    %84 = arith.divf %83, %82 : vector<8x128xf32>
    %85 = vector.extract_strided_slice %68 {offsets = [0, 256], sizes = [8, 128], strides = [1, 1]} : vector<8x512xf32> to vector<8x128xf32>
    %86 = math.tanh %85 : vector<8x128xf32>
    %87 = vector.extract_strided_slice %68 {offsets = [0, 384], sizes = [8, 128], strides = [1, 1]} : vector<8x512xf32> to vector<8x128xf32>
    %cst_41 = arith.constant 0.000000e+00 : f32
    %88 = vector.broadcast %cst_41 : f32 to vector<8x128xf32>
    %89 = arith.subf %88, %87 : vector<8x128xf32>
    %90 = math.exp %89 : vector<8x128xf32>
    %cst_42 = arith.constant 1.000000e+00 : f32
    %91 = vector.broadcast %cst_42 : f32 to vector<8x128xf32>
    %92 = arith.addf %91, %90 : vector<8x128xf32>
    %cst_43 = arith.constant 1.000000e+00 : f32
    %93 = vector.broadcast %cst_43 : f32 to vector<8x128xf32>
    %94 = arith.divf %93, %92 : vector<8x128xf32>
    %95 = arith.mulf %84, %59 : vector<8x128xf32>
    %96 = arith.mulf %76, %86 : vector<8x128xf32>
    %97 = arith.addf %95, %96 : vector<8x128xf32>
    %98 = math.tanh %97 : vector<8x128xf32>
    %99 = arith.mulf %94, %98 : vector<8x128xf32>
    %c1 = arith.constant 1 : index
    %c0_44 = arith.constant 0 : index
    %c0_45 = arith.constant 0 : index
    %100 = vector.load %arg2[%c1, %c0_44, %c0_45] : memref<8x8x1xf32, #tpu.memory_space<vmem>>, vector<1x8x1xf32>
    %101 = vector.shape_cast %100 : vector<1x8x1xf32> to vector<8x1xf32>
    %102 = vector.broadcast %101 : vector<8x1xf32> to vector<8x128xf32>
    %103 = arith.mulf %102, %99 : vector<8x128xf32>
    %cst_46 = arith.constant 1.000000e+00 : f32
    %104 = vector.broadcast %cst_46 : f32 to vector<8x1xf32>
    %105 = arith.subf %104, %101 : vector<8x1xf32>
    %106 = vector.broadcast %105 : vector<8x1xf32> to vector<8x128xf32>
    %107 = arith.mulf %106, %52 : vector<8x128xf32>
    %108 = arith.addf %103, %107 : vector<8x128xf32>
    %109 = vector.broadcast %101 : vector<8x1xf32> to vector<8x128xf32>
    %110 = arith.mulf %109, %97 : vector<8x128xf32>
    %cst_47 = arith.constant 1.000000e+00 : f32
    %111 = vector.broadcast %cst_47 : f32 to vector<8x1xf32>
    %112 = arith.subf %111, %101 : vector<8x1xf32>
    %113 = vector.broadcast %112 : vector<8x1xf32> to vector<8x128xf32>
    %114 = arith.mulf %113, %59 : vector<8x128xf32>
    %115 = arith.addf %110, %114 : vector<8x128xf32>
    %116 = vector.broadcast %101 : vector<8x1xf32> to vector<8x128xf32>
    %117 = arith.mulf %116, %99 : vector<8x128xf32>
    %c1_48 = arith.constant 1 : index
    %c0_49 = arith.constant 0 : index
    %c0_50 = arith.constant 0 : index
    %118 = vector.load %arg22[%c1_48, %c0_49, %c0_50] : memref<8x8x128xf32, #tpu.memory_space<vmem>>, vector<1x8x128xf32>
    %119 = vector.shape_cast %118 : vector<1x8x128xf32> to vector<8x128xf32>
    %120 = vector.shape_cast %117 : vector<8x128xf32> to vector<1x8x128xf32>
    tpu.vector_store %arg22[%c1_48, %c0_49, %c0_50], %120 {strides = array<i32>} : memref<8x8x128xf32, #tpu.memory_space<vmem>>, vector<1x8x128xf32>,
    %c16 = arith.constant 16 : index
    %c0_51 = arith.constant 0 : index
    %121 = vector.load %arg21[%c16, %c0_51] : memref<64x512xf32, #tpu.memory_space<vmem>>, vector<8x512xf32>
    %c0_52 = arith.constant 0 : index
    %c0_53 = arith.constant 0 : index
    %122 = vector.load %arg7[%c0_52, %c0_53] : memref<128x512xf32, #tpu.memory_space<vmem>>, vector<128x512xf32>
    %cst_54 = arith.constant dense<0.000000e+00> : vector<8x512xf32>
    %123 = tpu.matmul %108, %122, %cst_54 {dimension_numbers = #tpu.dot_dimension_numbers<[1], [0], [0], [1], [0, 0, 1, 1], [], []>} : vector<8x128xf32>, vector<128x512xf32>, vector<8x512xf32> -> vector<8x512xf32>
    %124 = arith.addf %121, %123 : vector<8x512xf32>
    %125 = vector.extract_strided_slice %124 {offsets = [0, 0], sizes = [8, 128], strides = [1, 1]} : vector<8x512xf32> to vector<8x128xf32>
    %cst_55 = arith.constant 0.000000e+00 : f32
    %126 = vector.broadcast %cst_55 : f32 to vector<8x128xf32>
    %127 = arith.subf %126, %125 : vector<8x128xf32>
    %128 = math.exp %127 : vector<8x128xf32>
    %cst_56 = arith.constant 1.000000e+00 : f32
    %129 = vector.broadcast %cst_56 : f32 to vector<8x128xf32>
    %130 = arith.addf %129, %128 : vector<8x128xf32>
    %cst_57 = arith.constant 1.000000e+00 : f32
    %131 = vector.broadcast %cst_57 : f32 to vector<8x128xf32>
    %132 = arith.divf %131, %130 : vector<8x128xf32>
    %133 = vector.extract_strided_slice %124 {offsets = [0, 128], sizes = [8, 128], strides = [1, 1]} : vector<8x512xf32> to vector<8x128xf32>
    %cst_58 = arith.constant 0.000000e+00 : f32
    %134 = vector.broadcast %cst_58 : f32 to vector<8x128xf32>
    %135 = arith.subf %134, %133 : vector<8x128xf32>
    %136 = math.exp %135 : vector<8x128xf32>
    %cst_59 = arith.constant 1.000000e+00 : f32
    %137 = vector.broadcast %cst_59 : f32 to vector<8x128xf32>
    %138 = arith.addf %137, %136 : vector<8x128xf32>
    %cst_60 = arith.constant 1.000000e+00 : f32
    %139 = vector.broadcast %cst_60 : f32 to vector<8x128xf32>
    %140 = arith.divf %139, %138 : vector<8x128xf32>
    %141 = vector.extract_strided_slice %124 {offsets = [0, 256], sizes = [8, 128], strides = [1, 1]} : vector<8x512xf32> to vector<8x128xf32>
    %142 = math.tanh %141 : vector<8x128xf32>
    %143 = vector.extract_strided_slice %124 {offsets = [0, 384], sizes = [8, 128], strides = [1, 1]} : vector<8x512xf32> to vector<8x128xf32>
    %cst_61 = arith.constant 0.000000e+00 : f32
    %144 = vector.broadcast %cst_61 : f32 to vector<8x128xf32>
    %145 = arith.subf %144, %143 : vector<8x128xf32>
    %146 = math.exp %145 : vector<8x128xf32>
    %cst_62 = arith.constant 1.000000e+00 : f32
    %147 = vector.broadcast %cst_62 : f32 to vector<8x128xf32>
    %148 = arith.addf %147, %146 : vector<8x128xf32>
    %cst_63 = arith.constant 1.000000e+00 : f32
    %149 = vector.broadcast %cst_63 : f32 to vector<8x128xf32>
    %150 = arith.divf %149, %148 : vector<8x128xf32>
    %151 = arith.mulf %140, %115 : vector<8x128xf32>
    %152 = arith.mulf %132, %142 : vector<8x128xf32>
    %153 = arith.addf %151, %152 : vector<8x128xf32>
    %154 = math.tanh %153 : vector<8x128xf32>
    %155 = arith.mulf %150, %154 : vector<8x128xf32>
    %c2 = arith.constant 2 : index
    %c0_64 = arith.constant 0 : index
    %c0_65 = arith.constant 0 : index
    %156 = vector.load %arg2[%c2, %c0_64, %c0_65] : memref<8x8x1xf32, #tpu.memory_space<vmem>>, vector<1x8x1xf32>
    %157 = vector.shape_cast %156 : vector<1x8x1xf32> to vector<8x1xf32>
    %158 = vector.broadcast %157 : vector<8x1xf32> to vector<8x128xf32>
    %159 = arith.mulf %158, %155 : vector<8x128xf32>
    %cst_66 = arith.constant 1.000000e+00 : f32
    %160 = vector.broadcast %cst_66 : f32 to vector<8x1xf32>
    %161 = arith.subf %160, %157 : vector<8x1xf32>
    %162 = vector.broadcast %161 : vector<8x1xf32> to vector<8x128xf32>
    %163 = arith.mulf %162, %108 : vector<8x128xf32>
    %164 = arith.addf %159, %163 : vector<8x128xf32>
    %165 = vector.broadcast %157 : vector<8x1xf32> to vector<8x128xf32>
    %166 = arith.mulf %165, %153 : vector<8x128xf32>
    %cst_67 = arith.constant 1.000000e+00 : f32
    %167 = vector.broadcast %cst_67 : f32 to vector<8x1xf32>
    %168 = arith.subf %167, %157 : vector<8x1xf32>
    %169 = vector.broadcast %168 : vector<8x1xf32> to vector<8x128xf32>
    %170 = arith.mulf %169, %115 : vector<8x128xf32>
    %171 = arith.addf %166, %170 : vector<8x128xf32>
    %172 = vector.broadcast %157 : vector<8x1xf32> to vector<8x128xf32>
    %173 = arith.mulf %172, %155 : vector<8x128xf32>
    %c2_68 = arith.constant 2 : index
    %c0_69 = arith.constant 0 : index
    %c0_70 = arith.constant 0 : index
    %174 = vector.load %arg22[%c2_68, %c0_69, %c0_70] : memref<8x8x128xf32, #tpu.memory_space<vmem>>, vector<1x8x128xf32>
    %175 = vector.shape_cast %174 : vector<1x8x128xf32> to vector<8x128xf32>
    %176 = vector.shape_cast %173 : vector<8x128xf32> to vector<1x8x128xf32>
    tpu.vector_store %arg22[%c2_68, %c0_69, %c0_70], %176 {strides = array<i32>} : memref<8x8x128xf32, #tpu.memory_space<vmem>>, vector<1x8x128xf32>,
    %c24 = arith.constant 24 : index
    %c0_71 = arith.constant 0 : index
    %177 = vector.load %arg21[%c24, %c0_71] : memref<64x512xf32, #tpu.memory_space<vmem>>, vector<8x512xf32>
    %c0_72 = arith.constant 0 : index
    %c0_73 = arith.constant 0 : index
    %178 = vector.load %arg7[%c0_72, %c0_73] : memref<128x512xf32, #tpu.memory_space<vmem>>, vector<128x512xf32>
    %cst_74 = arith.constant dense<0.000000e+00> : vector<8x512xf32>
    %179 = tpu.matmul %164, %178, %cst_74 {dimension_numbers = #tpu.dot_dimension_numbers<[1], [0], [0], [1], [0, 0, 1, 1], [], []>} : vector<8x128xf32>, vector<128x512xf32>, vector<8x512xf32> -> vector<8x512xf32>
    %180 = arith.addf %177, %179 : vector<8x512xf32>
    %181 = vector.extract_strided_slice %180 {offsets = [0, 0], sizes = [8, 128], strides = [1, 1]} : vector<8x512xf32> to vector<8x128xf32>
    %cst_75 = arith.constant 0.000000e+00 : f32
    %182 = vector.broadcast %cst_75 : f32 to vector<8x128xf32>
    %183 = arith.subf %182, %181 : vector<8x128xf32>
    %184 = math.exp %183 : vector<8x128xf32>
    %cst_76 = arith.constant 1.000000e+00 : f32
    %185 = vector.broadcast %cst_76 : f32 to vector<8x128xf32>
    %186 = arith.addf %185, %184 : vector<8x128xf32>
    %cst_77 = arith.constant 1.000000e+00 : f32
    %187 = vector.broadcast %cst_77 : f32 to vector<8x128xf32>
    %188 = arith.divf %187, %186 : vector<8x128xf32>
    %189 = vector.extract_strided_slice %180 {offsets = [0, 128], sizes = [8, 128], strides = [1, 1]} : vector<8x512xf32> to vector<8x128xf32>
    %cst_78 = arith.constant 0.000000e+00 : f32
    %190 = vector.broadcast %cst_78 : f32 to vector<8x128xf32>
    %191 = arith.subf %190, %189 : vector<8x128xf32>
    %192 = math.exp %191 : vector<8x128xf32>
    %cst_79 = arith.constant 1.000000e+00 : f32
    %193 = vector.broadcast %cst_79 : f32 to vector<8x128xf32>
    %194 = arith.addf %193, %192 : vector<8x128xf32>
    %cst_80 = arith.constant 1.000000e+00 : f32
    %195 = vector.broadcast %cst_80 : f32 to vector<8x128xf32>
    %196 = arith.divf %195, %194 : vector<8x128xf32>
    %197 = vector.extract_strided_slice %180 {offsets = [0, 256], sizes = [8, 128], strides = [1, 1]} : vector<8x512xf32> to vector<8x128xf32>
    %198 = math.tanh %197 : vector<8x128xf32>
    %199 = vector.extract_strided_slice %180 {offsets = [0, 384], sizes = [8, 128], strides = [1, 1]} : vector<8x512xf32> to vector<8x128xf32>
    %cst_81 = arith.constant 0.000000e+00 : f32
    %200 = vector.broadcast %cst_81 : f32 to vector<8x128xf32>
    %201 = arith.subf %200, %199 : vector<8x128xf32>
    %202 = math.exp %201 : vector<8x128xf32>
    %cst_82 = arith.constant 1.000000e+00 : f32
    %203 = vector.broadcast %cst_82 : f32 to vector<8x128xf32>
    %204 = arith.addf %203, %202 : vector<8x128xf32>
    %cst_83 = arith.constant 1.000000e+00 : f32
    %205 = vector.broadcast %cst_83 : f32 to vector<8x128xf32>
    %206 = arith.divf %205, %204 : vector<8x128xf32>
    %207 = arith.mulf %196, %171 : vector<8x128xf32>
    %208 = arith.mulf %188, %198 : vector<8x128xf32>
    %209 = arith.addf %207, %208 : vector<8x128xf32>
    %210 = math.tanh %209 : vector<8x128xf32>
    %211 = arith.mulf %206, %210 : vector<8x128xf32>
    %c3 = arith.constant 3 : index
    %c0_84 = arith.constant 0 : index
    %c0_85 = arith.constant 0 : index
    %212 = vector.load %arg2[%c3, %c0_84, %c0_85] : memref<8x8x1xf32, #tpu.memory_space<vmem>>, vector<1x8x1xf32>
    %213 = vector.shape_cast %212 : vector<1x8x1xf32> to vector<8x1xf32>
    %214 = vector.broadcast %213 : vector<8x1xf32> to vector<8x128xf32>
    %215 = arith.mulf %214, %211 : vector<8x128xf32>
    %cst_86 = arith.constant 1.000000e+00 : f32
    %216 = vector.broadcast %cst_86 : f32 to vector<8x1xf32>
    %217 = arith.subf %216, %213 : vector<8x1xf32>
    %218 = vector.broadcast %217 : vector<8x1xf32> to vector<8x128xf32>
    %219 = arith.mulf %218, %164 : vector<8x128xf32>
    %220 = arith.addf %215, %219 : vector<8x128xf32>
    %221 = vector.broadcast %213 : vector<8x1xf32> to vector<8x128xf32>
    %222 = arith.mulf %221, %209 : vector<8x128xf32>
    %cst_87 = arith.constant 1.000000e+00 : f32
    %223 = vector.broadcast %cst_87 : f32 to vector<8x1xf32>
    %224 = arith.subf %223, %213 : vector<8x1xf32>
    %225 = vector.broadcast %224 : vector<8x1xf32> to vector<8x128xf32>
    %226 = arith.mulf %225, %171 : vector<8x128xf32>
    %227 = arith.addf %222, %226 : vector<8x128xf32>
    %228 = vector.broadcast %213 : vector<8x1xf32> to vector<8x128xf32>
    %229 = arith.mulf %228, %211 : vector<8x128xf32>
    %c3_88 = arith.constant 3 : index
    %c0_89 = arith.constant 0 : index
    %c0_90 = arith.constant 0 : index
    %230 = vector.load %arg22[%c3_88, %c0_89, %c0_90] : memref<8x8x128xf32, #tpu.memory_space<vmem>>, vector<1x8x128xf32>
    %231 = vector.shape_cast %230 : vector<1x8x128xf32> to vector<8x128xf32>
    %232 = vector.shape_cast %229 : vector<8x128xf32> to vector<1x8x128xf32>
    tpu.vector_store %arg22[%c3_88, %c0_89, %c0_90], %232 {strides = array<i32>} : memref<8x8x128xf32, #tpu.memory_space<vmem>>, vector<1x8x128xf32>,
    %c32 = arith.constant 32 : index
    %c0_91 = arith.constant 0 : index
    %233 = vector.load %arg21[%c32, %c0_91] : memref<64x512xf32, #tpu.memory_space<vmem>>, vector<8x512xf32>
    %c0_92 = arith.constant 0 : index
    %c0_93 = arith.constant 0 : index
    %234 = vector.load %arg7[%c0_92, %c0_93] : memref<128x512xf32, #tpu.memory_space<vmem>>, vector<128x512xf32>
    %cst_94 = arith.constant dense<0.000000e+00> : vector<8x512xf32>
    %235 = tpu.matmul %220, %234, %cst_94 {dimension_numbers = #tpu.dot_dimension_numbers<[1], [0], [0], [1], [0, 0, 1, 1], [], []>} : vector<8x128xf32>, vector<128x512xf32>, vector<8x512xf32> -> vector<8x512xf32>
    %236 = arith.addf %233, %235 : vector<8x512xf32>
    %237 = vector.extract_strided_slice %236 {offsets = [0, 0], sizes = [8, 128], strides = [1, 1]} : vector<8x512xf32> to vector<8x128xf32>
    %cst_95 = arith.constant 0.000000e+00 : f32
    %238 = vector.broadcast %cst_95 : f32 to vector<8x128xf32>
    %239 = arith.subf %238, %237 : vector<8x128xf32>
    %240 = math.exp %239 : vector<8x128xf32>
    %cst_96 = arith.constant 1.000000e+00 : f32
    %241 = vector.broadcast %cst_96 : f32 to vector<8x128xf32>
    %242 = arith.addf %241, %240 : vector<8x128xf32>
    %cst_97 = arith.constant 1.000000e+00 : f32
    %243 = vector.broadcast %cst_97 : f32 to vector<8x128xf32>
    %244 = arith.divf %243, %242 : vector<8x128xf32>
    %245 = vector.extract_strided_slice %236 {offsets = [0, 128], sizes = [8, 128], strides = [1, 1]} : vector<8x512xf32> to vector<8x128xf32>
    %cst_98 = arith.constant 0.000000e+00 : f32
    %246 = vector.broadcast %cst_98 : f32 to vector<8x128xf32>
    %247 = arith.subf %246, %245 : vector<8x128xf32>
    %248 = math.exp %247 : vector<8x128xf32>
    %cst_99 = arith.constant 1.000000e+00 : f32
    %249 = vector.broadcast %cst_99 : f32 to vector<8x128xf32>
    %250 = arith.addf %249, %248 : vector<8x128xf32>
    %cst_100 = arith.constant 1.000000e+00 : f32
    %251 = vector.broadcast %cst_100 : f32 to vector<8x128xf32>
    %252 = arith.divf %251, %250 : vector<8x128xf32>
    %253 = vector.extract_strided_slice %236 {offsets = [0, 256], sizes = [8, 128], strides = [1, 1]} : vector<8x512xf32> to vector<8x128xf32>
    %254 = math.tanh %253 : vector<8x128xf32>
    %255 = vector.extract_strided_slice %236 {offsets = [0, 384], sizes = [8, 128], strides = [1, 1]} : vector<8x512xf32> to vector<8x128xf32>
    %cst_101 = arith.constant 0.000000e+00 : f32
    %256 = vector.broadcast %cst_101 : f32 to vector<8x128xf32>
    %257 = arith.subf %256, %255 : vector<8x128xf32>
    %258 = math.exp %257 : vector<8x128xf32>
    %cst_102 = arith.constant 1.000000e+00 : f32
    %259 = vector.broadcast %cst_102 : f32 to vector<8x128xf32>
    %260 = arith.addf %259, %258 : vector<8x128xf32>
    %cst_103 = arith.constant 1.000000e+00 : f32
    %261 = vector.broadcast %cst_103 : f32 to vector<8x128xf32>
    %262 = arith.divf %261, %260 : vector<8x128xf32>
    %263 = arith.mulf %252, %227 : vector<8x128xf32>
    %264 = arith.mulf %244, %254 : vector<8x128xf32>
    %265 = arith.addf %263, %264 : vector<8x128xf32>
    %266 = math.tanh %265 : vector<8x128xf32>
    %267 = arith.mulf %262, %266 : vector<8x128xf32>
    %c4 = arith.constant 4 : index
    %c0_104 = arith.constant 0 : index
    %c0_105 = arith.constant 0 : index
    %268 = vector.load %arg2[%c4, %c0_104, %c0_105] : memref<8x8x1xf32, #tpu.memory_space<vmem>>, vector<1x8x1xf32>
    %269 = vector.shape_cast %268 : vector<1x8x1xf32> to vector<8x1xf32>
    %270 = vector.broadcast %269 : vector<8x1xf32> to vector<8x128xf32>
    %271 = arith.mulf %270, %267 : vector<8x128xf32>
    %cst_106 = arith.constant 1.000000e+00 : f32
    %272 = vector.broadcast %cst_106 : f32 to vector<8x1xf32>
    %273 = arith.subf %272, %269 : vector<8x1xf32>
    %274 = vector.broadcast %273 : vector<8x1xf32> to vector<8x128xf32>
    %275 = arith.mulf %274, %220 : vector<8x128xf32>
    %276 = arith.addf %271, %275 : vector<8x128xf32>
    %277 = vector.broadcast %269 : vector<8x1xf32> to vector<8x128xf32>
    %278 = arith.mulf %277, %265 : vector<8x128xf32>
    %cst_107 = arith.constant 1.000000e+00 : f32
    %279 = vector.broadcast %cst_107 : f32 to vector<8x1xf32>
    %280 = arith.subf %279, %269 : vector<8x1xf32>
    %281 = vector.broadcast %280 : vector<8x1xf32> to vector<8x128xf32>
    %282 = arith.mulf %281, %227 : vector<8x128xf32>
    %283 = arith.addf %278, %282 : vector<8x128xf32>
    %284 = vector.broadcast %269 : vector<8x1xf32> to vector<8x128xf32>
    %285 = arith.mulf %284, %267 : vector<8x128xf32>
    %c4_108 = arith.constant 4 : index
    %c0_109 = arith.constant 0 : index
    %c0_110 = arith.constant 0 : index
    %286 = vector.load %arg22[%c4_108, %c0_109, %c0_110] : memref<8x8x128xf32, #tpu.memory_space<vmem>>, vector<1x8x128xf32>
    %287 = vector.shape_cast %286 : vector<1x8x128xf32> to vector<8x128xf32>
    %288 = vector.shape_cast %285 : vector<8x128xf32> to vector<1x8x128xf32>
    tpu.vector_store %arg22[%c4_108, %c0_109, %c0_110], %288 {strides = array<i32>} : memref<8x8x128xf32, #tpu.memory_space<vmem>>, vector<1x8x128xf32>,
    %c40 = arith.constant 40 : index
    %c0_111 = arith.constant 0 : index
    %289 = vector.load %arg21[%c40, %c0_111] : memref<64x512xf32, #tpu.memory_space<vmem>>, vector<8x512xf32>
    %c0_112 = arith.constant 0 : index
    %c0_113 = arith.constant 0 : index
    %290 = vector.load %arg7[%c0_112, %c0_113] : memref<128x512xf32, #tpu.memory_space<vmem>>, vector<128x512xf32>
    %cst_114 = arith.constant dense<0.000000e+00> : vector<8x512xf32>
    %291 = tpu.matmul %276, %290, %cst_114 {dimension_numbers = #tpu.dot_dimension_numbers<[1], [0], [0], [1], [0, 0, 1, 1], [], []>} : vector<8x128xf32>, vector<128x512xf32>, vector<8x512xf32> -> vector<8x512xf32>
    %292 = arith.addf %289, %291 : vector<8x512xf32>
    %293 = vector.extract_strided_slice %292 {offsets = [0, 0], sizes = [8, 128], strides = [1, 1]} : vector<8x512xf32> to vector<8x128xf32>
    %cst_115 = arith.constant 0.000000e+00 : f32
    %294 = vector.broadcast %cst_115 : f32 to vector<8x128xf32>
    %295 = arith.subf %294, %293 : vector<8x128xf32>
    %296 = math.exp %295 : vector<8x128xf32>
    %cst_116 = arith.constant 1.000000e+00 : f32
    %297 = vector.broadcast %cst_116 : f32 to vector<8x128xf32>
    %298 = arith.addf %297, %296 : vector<8x128xf32>
    %cst_117 = arith.constant 1.000000e+00 : f32
    %299 = vector.broadcast %cst_117 : f32 to vector<8x128xf32>
    %300 = arith.divf %299, %298 : vector<8x128xf32>
    %301 = vector.extract_strided_slice %292 {offsets = [0, 128], sizes = [8, 128], strides = [1, 1]} : vector<8x512xf32> to vector<8x128xf32>
    %cst_118 = arith.constant 0.000000e+00 : f32
    %302 = vector.broadcast %cst_118 : f32 to vector<8x128xf32>
    %303 = arith.subf %302, %301 : vector<8x128xf32>
    %304 = math.exp %303 : vector<8x128xf32>
    %cst_119 = arith.constant 1.000000e+00 : f32
    %305 = vector.broadcast %cst_119 : f32 to vector<8x128xf32>
    %306 = arith.addf %305, %304 : vector<8x128xf32>
    %cst_120 = arith.constant 1.000000e+00 : f32
    %307 = vector.broadcast %cst_120 : f32 to vector<8x128xf32>
    %308 = arith.divf %307, %306 : vector<8x128xf32>
    %309 = vector.extract_strided_slice %292 {offsets = [0, 256], sizes = [8, 128], strides = [1, 1]} : vector<8x512xf32> to vector<8x128xf32>
    %310 = math.tanh %309 : vector<8x128xf32>
    %311 = vector.extract_strided_slice %292 {offsets = [0, 384], sizes = [8, 128], strides = [1, 1]} : vector<8x512xf32> to vector<8x128xf32>
    %cst_121 = arith.constant 0.000000e+00 : f32
    %312 = vector.broadcast %cst_121 : f32 to vector<8x128xf32>
    %313 = arith.subf %312, %311 : vector<8x128xf32>
    %314 = math.exp %313 : vector<8x128xf32>
    %cst_122 = arith.constant 1.000000e+00 : f32
    %315 = vector.broadcast %cst_122 : f32 to vector<8x128xf32>
    %316 = arith.addf %315, %314 : vector<8x128xf32>
    %cst_123 = arith.constant 1.000000e+00 : f32
    %317 = vector.broadcast %cst_123 : f32 to vector<8x128xf32>
    %318 = arith.divf %317, %316 : vector<8x128xf32>
    %319 = arith.mulf %308, %283 : vector<8x128xf32>
    %320 = arith.mulf %300, %310 : vector<8x128xf32>
    %321 = arith.addf %319, %320 : vector<8x128xf32>
    %322 = math.tanh %321 : vector<8x128xf32>
    %323 = arith.mulf %318, %322 : vector<8x128xf32>
    %c5 = arith.constant 5 : index
    %c0_124 = arith.constant 0 : index
    %c0_125 = arith.constant 0 : index
    %324 = vector.load %arg2[%c5, %c0_124, %c0_125] : memref<8x8x1xf32, #tpu.memory_space<vmem>>, vector<1x8x1xf32>
    %325 = vector.shape_cast %324 : vector<1x8x1xf32> to vector<8x1xf32>
    %326 = vector.broadcast %325 : vector<8x1xf32> to vector<8x128xf32>
    %327 = arith.mulf %326, %323 : vector<8x128xf32>
    %cst_126 = arith.constant 1.000000e+00 : f32
    %328 = vector.broadcast %cst_126 : f32 to vector<8x1xf32>
    %329 = arith.subf %328, %325 : vector<8x1xf32>
    %330 = vector.broadcast %329 : vector<8x1xf32> to vector<8x128xf32>
    %331 = arith.mulf %330, %276 : vector<8x128xf32>
    %332 = arith.addf %327, %331 : vector<8x128xf32>
    %333 = vector.broadcast %325 : vector<8x1xf32> to vector<8x128xf32>
    %334 = arith.mulf %333, %321 : vector<8x128xf32>
    %cst_127 = arith.constant 1.000000e+00 : f32
    %335 = vector.broadcast %cst_127 : f32 to vector<8x1xf32>
    %336 = arith.subf %335, %325 : vector<8x1xf32>
    %337 = vector.broadcast %336 : vector<8x1xf32> to vector<8x128xf32>
    %338 = arith.mulf %337, %283 : vector<8x128xf32>
    %339 = arith.addf %334, %338 : vector<8x128xf32>
    %340 = vector.broadcast %325 : vector<8x1xf32> to vector<8x128xf32>
    %341 = arith.mulf %340, %323 : vector<8x128xf32>
    %c5_128 = arith.constant 5 : index
    %c0_129 = arith.constant 0 : index
    %c0_130 = arith.constant 0 : index
    %342 = vector.load %arg22[%c5_128, %c0_129, %c0_130] : memref<8x8x128xf32, #tpu.memory_space<vmem>>, vector<1x8x128xf32>
    %343 = vector.shape_cast %342 : vector<1x8x128xf32> to vector<8x128xf32>
    %344 = vector.shape_cast %341 : vector<8x128xf32> to vector<1x8x128xf32>
    tpu.vector_store %arg22[%c5_128, %c0_129, %c0_130], %344 {strides = array<i32>} : memref<8x8x128xf32, #tpu.memory_space<vmem>>, vector<1x8x128xf32>,
    %c48 = arith.constant 48 : index
    %c0_131 = arith.constant 0 : index
    %345 = vector.load %arg21[%c48, %c0_131] : memref<64x512xf32, #tpu.memory_space<vmem>>, vector<8x512xf32>
    %c0_132 = arith.constant 0 : index
    %c0_133 = arith.constant 0 : index
    %346 = vector.load %arg7[%c0_132, %c0_133] : memref<128x512xf32, #tpu.memory_space<vmem>>, vector<128x512xf32>
    %cst_134 = arith.constant dense<0.000000e+00> : vector<8x512xf32>
    %347 = tpu.matmul %332, %346, %cst_134 {dimension_numbers = #tpu.dot_dimension_numbers<[1], [0], [0], [1], [0, 0, 1, 1], [], []>} : vector<8x128xf32>, vector<128x512xf32>, vector<8x512xf32> -> vector<8x512xf32>
    %348 = arith.addf %345, %347 : vector<8x512xf32>
    %349 = vector.extract_strided_slice %348 {offsets = [0, 0], sizes = [8, 128], strides = [1, 1]} : vector<8x512xf32> to vector<8x128xf32>
    %cst_135 = arith.constant 0.000000e+00 : f32
    %350 = vector.broadcast %cst_135 : f32 to vector<8x128xf32>
    %351 = arith.subf %350, %349 : vector<8x128xf32>
    %352 = math.exp %351 : vector<8x128xf32>
    %cst_136 = arith.constant 1.000000e+00 : f32
    %353 = vector.broadcast %cst_136 : f32 to vector<8x128xf32>
    %354 = arith.addf %353, %352 : vector<8x128xf32>
    %cst_137 = arith.constant 1.000000e+00 : f32
    %355 = vector.broadcast %cst_137 : f32 to vector<8x128xf32>
    %356 = arith.divf %355, %354 : vector<8x128xf32>
    %357 = vector.extract_strided_slice %348 {offsets = [0, 128], sizes = [8, 128], strides = [1, 1]} : vector<8x512xf32> to vector<8x128xf32>
    %cst_138 = arith.constant 0.000000e+00 : f32
    %358 = vector.broadcast %cst_138 : f32 to vector<8x128xf32>
    %359 = arith.subf %358, %357 : vector<8x128xf32>
    %360 = math.exp %359 : vector<8x128xf32>
    %cst_139 = arith.constant 1.000000e+00 : f32
    %361 = vector.broadcast %cst_139 : f32 to vector<8x128xf32>
    %362 = arith.addf %361, %360 : vector<8x128xf32>
    %cst_140 = arith.constant 1.000000e+00 : f32
    %363 = vector.broadcast %cst_140 : f32 to vector<8x128xf32>
    %364 = arith.divf %363, %362 : vector<8x128xf32>
    %365 = vector.extract_strided_slice %348 {offsets = [0, 256], sizes = [8, 128], strides = [1, 1]} : vector<8x512xf32> to vector<8x128xf32>
    %366 = math.tanh %365 : vector<8x128xf32>
    %367 = vector.extract_strided_slice %348 {offsets = [0, 384], sizes = [8, 128], strides = [1, 1]} : vector<8x512xf32> to vector<8x128xf32>
    %cst_141 = arith.constant 0.000000e+00 : f32
    %368 = vector.broadcast %cst_141 : f32 to vector<8x128xf32>
    %369 = arith.subf %368, %367 : vector<8x128xf32>
    %370 = math.exp %369 : vector<8x128xf32>
    %cst_142 = arith.constant 1.000000e+00 : f32
    %371 = vector.broadcast %cst_142 : f32 to vector<8x128xf32>
    %372 = arith.addf %371, %370 : vector<8x128xf32>
    %cst_143 = arith.constant 1.000000e+00 : f32
    %373 = vector.broadcast %cst_143 : f32 to vector<8x128xf32>
    %374 = arith.divf %373, %372 : vector<8x128xf32>
    %375 = arith.mulf %364, %339 : vector<8x128xf32>
    %376 = arith.mulf %356, %366 : vector<8x128xf32>
    %377 = arith.addf %375, %376 : vector<8x128xf32>
    %378 = math.tanh %377 : vector<8x128xf32>
    %379 = arith.mulf %374, %378 : vector<8x128xf32>
    %c6 = arith.constant 6 : index
    %c0_144 = arith.constant 0 : index
    %c0_145 = arith.constant 0 : index
    %380 = vector.load %arg2[%c6, %c0_144, %c0_145] : memref<8x8x1xf32, #tpu.memory_space<vmem>>, vector<1x8x1xf32>
    %381 = vector.shape_cast %380 : vector<1x8x1xf32> to vector<8x1xf32>
    %382 = vector.broadcast %381 : vector<8x1xf32> to vector<8x128xf32>
    %383 = arith.mulf %382, %379 : vector<8x128xf32>
    %cst_146 = arith.constant 1.000000e+00 : f32
    %384 = vector.broadcast %cst_146 : f32 to vector<8x1xf32>
    %385 = arith.subf %384, %381 : vector<8x1xf32>
    %386 = vector.broadcast %385 : vector<8x1xf32> to vector<8x128xf32>
    %387 = arith.mulf %386, %332 : vector<8x128xf32>
    %388 = arith.addf %383, %387 : vector<8x128xf32>
    %389 = vector.broadcast %381 : vector<8x1xf32> to vector<8x128xf32>
    %390 = arith.mulf %389, %377 : vector<8x128xf32>
    %cst_147 = arith.constant 1.000000e+00 : f32
    %391 = vector.broadcast %cst_147 : f32 to vector<8x1xf32>
    %392 = arith.subf %391, %381 : vector<8x1xf32>
    %393 = vector.broadcast %392 : vector<8x1xf32> to vector<8x128xf32>
    %394 = arith.mulf %393, %339 : vector<8x128xf32>
    %395 = arith.addf %390, %394 : vector<8x128xf32>
    %396 = vector.broadcast %381 : vector<8x1xf32> to vector<8x128xf32>
    %397 = arith.mulf %396, %379 : vector<8x128xf32>
    %c6_148 = arith.constant 6 : index
    %c0_149 = arith.constant 0 : index
    %c0_150 = arith.constant 0 : index
    %398 = vector.load %arg22[%c6_148, %c0_149, %c0_150] : memref<8x8x128xf32, #tpu.memory_space<vmem>>, vector<1x8x128xf32>
    %399 = vector.shape_cast %398 : vector<1x8x128xf32> to vector<8x128xf32>
    %400 = vector.shape_cast %397 : vector<8x128xf32> to vector<1x8x128xf32>
    tpu.vector_store %arg22[%c6_148, %c0_149, %c0_150], %400 {strides = array<i32>} : memref<8x8x128xf32, #tpu.memory_space<vmem>>, vector<1x8x128xf32>,
    %c56 = arith.constant 56 : index
    %c0_151 = arith.constant 0 : index
    %401 = vector.load %arg21[%c56, %c0_151] : memref<64x512xf32, #tpu.memory_space<vmem>>, vector<8x512xf32>
    %c0_152 = arith.constant 0 : index
    %c0_153 = arith.constant 0 : index
    %402 = vector.load %arg7[%c0_152, %c0_153] : memref<128x512xf32, #tpu.memory_space<vmem>>, vector<128x512xf32>
    %cst_154 = arith.constant dense<0.000000e+00> : vector<8x512xf32>
    %403 = tpu.matmul %388, %402, %cst_154 {dimension_numbers = #tpu.dot_dimension_numbers<[1], [0], [0], [1], [0, 0, 1, 1], [], []>} : vector<8x128xf32>, vector<128x512xf32>, vector<8x512xf32> -> vector<8x512xf32>
    %404 = arith.addf %401, %403 : vector<8x512xf32>
    %405 = vector.extract_strided_slice %404 {offsets = [0, 0], sizes = [8, 128], strides = [1, 1]} : vector<8x512xf32> to vector<8x128xf32>
    %cst_155 = arith.constant 0.000000e+00 : f32
    %406 = vector.broadcast %cst_155 : f32 to vector<8x128xf32>
    %407 = arith.subf %406, %405 : vector<8x128xf32>
    %408 = math.exp %407 : vector<8x128xf32>
    %cst_156 = arith.constant 1.000000e+00 : f32
    %409 = vector.broadcast %cst_156 : f32 to vector<8x128xf32>
    %410 = arith.addf %409, %408 : vector<8x128xf32>
    %cst_157 = arith.constant 1.000000e+00 : f32
    %411 = vector.broadcast %cst_157 : f32 to vector<8x128xf32>
    %412 = arith.divf %411, %410 : vector<8x128xf32>
    %413 = vector.extract_strided_slice %404 {offsets = [0, 128], sizes = [8, 128], strides = [1, 1]} : vector<8x512xf32> to vector<8x128xf32>
    %cst_158 = arith.constant 0.000000e+00 : f32
    %414 = vector.broadcast %cst_158 : f32 to vector<8x128xf32>
    %415 = arith.subf %414, %413 : vector<8x128xf32>
    %416 = math.exp %415 : vector<8x128xf32>
    %cst_159 = arith.constant 1.000000e+00 : f32
    %417 = vector.broadcast %cst_159 : f32 to vector<8x128xf32>
    %418 = arith.addf %417, %416 : vector<8x128xf32>
    %cst_160 = arith.constant 1.000000e+00 : f32
    %419 = vector.broadcast %cst_160 : f32 to vector<8x128xf32>
    %420 = arith.divf %419, %418 : vector<8x128xf32>
    %421 = vector.extract_strided_slice %404 {offsets = [0, 256], sizes = [8, 128], strides = [1, 1]} : vector<8x512xf32> to vector<8x128xf32>
    %422 = math.tanh %421 : vector<8x128xf32>
    %423 = vector.extract_strided_slice %404 {offsets = [0, 384], sizes = [8, 128], strides = [1, 1]} : vector<8x512xf32> to vector<8x128xf32>
    %cst_161 = arith.constant 0.000000e+00 : f32
    %424 = vector.broadcast %cst_161 : f32 to vector<8x128xf32>
    %425 = arith.subf %424, %423 : vector<8x128xf32>
    %426 = math.exp %425 : vector<8x128xf32>
    %cst_162 = arith.constant 1.000000e+00 : f32
    %427 = vector.broadcast %cst_162 : f32 to vector<8x128xf32>
    %428 = arith.addf %427, %426 : vector<8x128xf32>
    %cst_163 = arith.constant 1.000000e+00 : f32
    %429 = vector.broadcast %cst_163 : f32 to vector<8x128xf32>
    %430 = arith.divf %429, %428 : vector<8x128xf32>
    %431 = arith.mulf %420, %395 : vector<8x128xf32>
    %432 = arith.mulf %412, %422 : vector<8x128xf32>
    %433 = arith.addf %431, %432 : vector<8x128xf32>
    %434 = math.tanh %433 : vector<8x128xf32>
    %435 = arith.mulf %430, %434 : vector<8x128xf32>
    %c7 = arith.constant 7 : index
    %c0_164 = arith.constant 0 : index
    %c0_165 = arith.constant 0 : index
    %436 = vector.load %arg2[%c7, %c0_164, %c0_165] : memref<8x8x1xf32, #tpu.memory_space<vmem>>, vector<1x8x1xf32>
    %437 = vector.shape_cast %436 : vector<1x8x1xf32> to vector<8x1xf32>
    %438 = vector.broadcast %437 : vector<8x1xf32> to vector<8x128xf32>
    %439 = arith.mulf %438, %435 : vector<8x128xf32>
    %cst_166 = arith.constant 1.000000e+00 : f32
    %440 = vector.broadcast %cst_166 : f32 to vector<8x1xf32>
    %441 = arith.subf %440, %437 : vector<8x1xf32>
    %442 = vector.broadcast %441 : vector<8x1xf32> to vector<8x128xf32>
    %443 = arith.mulf %442, %388 : vector<8x128xf32>
    %444 = arith.addf %439, %443 : vector<8x128xf32>
    %445 = vector.broadcast %437 : vector<8x1xf32> to vector<8x128xf32>
    %446 = arith.mulf %445, %433 : vector<8x128xf32>
    %cst_167 = arith.constant 1.000000e+00 : f32
    %447 = vector.broadcast %cst_167 : f32 to vector<8x1xf32>
    %448 = arith.subf %447, %437 : vector<8x1xf32>
    %449 = vector.broadcast %448 : vector<8x1xf32> to vector<8x128xf32>
    %450 = arith.mulf %449, %395 : vector<8x128xf32>
    %451 = arith.addf %446, %450 : vector<8x128xf32>
    %452 = vector.broadcast %437 : vector<8x1xf32> to vector<8x128xf32>
    %453 = arith.mulf %452, %435 : vector<8x128xf32>
    %c7_168 = arith.constant 7 : index
    %c0_169 = arith.constant 0 : index
    %c0_170 = arith.constant 0 : index
    %454 = vector.load %arg22[%c7_168, %c0_169, %c0_170] : memref<8x8x128xf32, #tpu.memory_space<vmem>>, vector<1x8x128xf32>
    %455 = vector.shape_cast %454 : vector<1x8x128xf32> to vector<8x128xf32>
    %456 = vector.shape_cast %453 : vector<8x128xf32> to vector<1x8x128xf32>
    tpu.vector_store %arg22[%c7_168, %c0_169, %c0_170], %456 {strides = array<i32>} : memref<8x8x128xf32, #tpu.memory_space<vmem>>, vector<1x8x128xf32>,
    %c0_171 = arith.constant 0 : index
    %c0_172 = arith.constant 0 : index
    %457 = vector.load %arg9[%c0_171, %c0_172] : memref<128x128xf32, #tpu.memory_space<vmem>>, vector<128x128xf32>
    %cst_173 = arith.constant dense<0.000000e+00> : vector<8x128xf32>
    %458 = tpu.matmul %444, %457, %cst_173 {dimension_numbers = #tpu.dot_dimension_numbers<[1], [0], [0], [1], [0, 0, 1, 1], [], []>} : vector<8x128xf32>, vector<128x128xf32>, vector<8x128xf32> -> vector<8x128xf32>
    %c0_174 = arith.constant 0 : index
    %c0_175 = arith.constant 0 : index
    %459 = vector.load %arg10[%c0_174, %c0_175] : memref<128x128xf32, #tpu.memory_space<vmem>>, vector<128x128xf32>
    %cst_176 = arith.constant dense<0.000000e+00> : vector<8x128xf32>
    %460 = tpu.matmul %451, %459, %cst_176 {dimension_numbers = #tpu.dot_dimension_numbers<[1], [0], [0], [1], [0, 0, 1, 1], [], []>} : vector<8x128xf32>, vector<128x128xf32>, vector<8x128xf32> -> vector<8x128xf32>
    %cst_177 = arith.constant 0.000000e+00 : f32
    %461 = vector.broadcast %cst_177 : f32 to vector<8x128xf32>
    %c0_178 = arith.constant 0 : index
    %c0_179 = arith.constant 0 : index
    %c0_180 = arith.constant 0 : index
    %462 = vector.load %arg22[%c0_178, %c0_179, %c0_180] : memref<8x8x128xf32, #tpu.memory_space<vmem>>, vector<8x8x128xf32>
    %463 = vector.shape_cast %462 : vector<8x8x128xf32> to vector<64x128xf32>
    %c0_181 = arith.constant 0 : index
    %c0_182 = arith.constant 0 : index
    %464 = vector.load %arg11[%c0_181, %c0_182] : memref<128x128xf32, #tpu.memory_space<vmem>>, vector<128x128xf32>
    %cst_183 = arith.constant dense<0.000000e+00> : vector<64x128xf32>
    %465 = tpu.matmul %463, %464, %cst_183 {dimension_numbers = #tpu.dot_dimension_numbers<[1], [0], [0], [1], [0, 0, 1, 1], [], []>} : vector<64x128xf32>, vector<128x128xf32>, vector<64x128xf32> -> vector<64x128xf32>
    %c0_184 = arith.constant 0 : index
    %c0_185 = arith.constant 0 : index
    %466 = vector.load %arg12[%c0_184, %c0_185] : memref<1x128xf32, #tpu.memory_space<vmem>>, vector<1x128xf32>
    %467 = vector.broadcast %466 : vector<1x128xf32> to vector<64x128xf32>
    %468 = arith.addf %465, %467 : vector<64x128xf32>
    %469 = vector.shape_cast %468 : vector<64x128xf32> to vector<8x8x128xf32>
    %c0_186 = arith.constant 0 : index
    %c0_187 = arith.constant 0 : index
    %c0_188 = arith.constant 0 : index
    %470 = vector.load %arg23[%c0_186, %c0_187, %c0_188] : memref<8x8x128xf32, #tpu.memory_space<vmem>>, vector<8x8x128xf32>
    tpu.vector_store %arg23[%c0_186, %c0_187, %c0_188], %469 {strides = array<i32>} : memref<8x8x128xf32, #tpu.memory_space<vmem>>, vector<8x8x128xf32>,
    %c0_189 = arith.constant 0 : index
    %c0_190 = arith.constant 0 : index
    %471 = vector.load %arg4[%c0_189, %c0_190] : memref<40x128xf32, #tpu.memory_space<vmem>>, vector<40x128xf32>
    %c0_191 = arith.constant 0 : index
    %c0_192 = arith.constant 0 : index
    %472 = vector.load %arg13[%c0_191, %c0_192] : memref<128x512xf32, #tpu.memory_space<vmem>>, vector<128x512xf32>
    %cst_193 = arith.constant dense<0.000000e+00> : vector<40x512xf32>
    %473 = tpu.matmul %471, %472, %cst_193 {dimension_numbers = #tpu.dot_dimension_numbers<[1], [0], [0], [1], [0, 0, 1, 1], [], []>} : vector<40x128xf32>, vector<128x512xf32>, vector<40x512xf32> -> vector<40x512xf32>
    %c0_194 = arith.constant 0 : index
    %c0_195 = arith.constant 0 : index
    %474 = vector.load %arg15[%c0_194, %c0_195] : memref<1x512xf32, #tpu.memory_space<vmem>>, vector<1x512xf32>
    %475 = vector.broadcast %474 : vector<1x512xf32> to vector<40x512xf32>
    %476 = arith.addf %473, %475 : vector<40x512xf32>
    %c0_196 = arith.constant 0 : index
    %c0_197 = arith.constant 0 : index
    %477 = vector.load %arg24[%c0_196, %c0_197] : memref<40x512xf32, #tpu.memory_space<vmem>>, vector<40x512xf32>
    tpu.vector_store %arg24[%c0_196, %c0_197], %476 {strides = array<i32>} : memref<40x512xf32, #tpu.memory_space<vmem>>, vector<40x512xf32>,
    %c0_198 = arith.constant 0 : index
    %c0_199 = arith.constant 0 : index
    %478 = vector.load %arg3[%c0_198, %c0_199] : memref<8x8xf32, #tpu.memory_space<vmem>>, vector<8x8xf32>
    %c0_200 = arith.constant 0 : index
    %c0_201 = arith.constant 0 : index
    %479 = vector.load %arg24[%c0_200, %c0_201] : memref<40x512xf32, #tpu.memory_space<vmem>>, vector<8x512xf32>
    %c0_202 = arith.constant 0 : index
    %c0_203 = arith.constant 0 : index
    %480 = vector.load %arg13[%c0_202, %c0_203] : memref<128x512xf32, #tpu.memory_space<vmem>>, vector<128x512xf32>
    %cst_204 = arith.constant dense<0.000000e+00> : vector<8x512xf32>
    %481 = tpu.matmul %461, %480, %cst_204 {dimension_numbers = #tpu.dot_dimension_numbers<[1], [0], [0], [1], [0, 0, 1, 1], [], []>} : vector<8x128xf32>, vector<128x512xf32>, vector<8x512xf32> -> vector<8x512xf32>
    %482 = arith.addf %479, %481 : vector<8x512xf32>
    %c0_205 = arith.constant 0 : index
    %c0_206 = arith.constant 0 : index
    %483 = vector.load %arg14[%c0_205, %c0_206] : memref<128x512xf32, #tpu.memory_space<vmem>>, vector<128x512xf32>
    %cst_207 = arith.constant dense<0.000000e+00> : vector<8x512xf32>
    %484 = tpu.matmul %458, %483, %cst_207 {dimension_numbers = #tpu.dot_dimension_numbers<[1], [0], [0], [1], [0, 0, 1, 1], [], []>} : vector<8x128xf32>, vector<128x512xf32>, vector<8x512xf32> -> vector<8x512xf32>
    %485 = arith.addf %482, %484 : vector<8x512xf32>
    %486 = vector.extract_strided_slice %485 {offsets = [0, 0], sizes = [8, 128], strides = [1, 1]} : vector<8x512xf32> to vector<8x128xf32>
    %cst_208 = arith.constant 0.000000e+00 : f32
    %487 = vector.broadcast %cst_208 : f32 to vector<8x128xf32>
    %488 = arith.subf %487, %486 : vector<8x128xf32>
    %489 = math.exp %488 : vector<8x128xf32>
    %cst_209 = arith.constant 1.000000e+00 : f32
    %490 = vector.broadcast %cst_209 : f32 to vector<8x128xf32>
    %491 = arith.addf %490, %489 : vector<8x128xf32>
    %cst_210 = arith.constant 1.000000e+00 : f32
    %492 = vector.broadcast %cst_210 : f32 to vector<8x128xf32>
    %493 = arith.divf %492, %491 : vector<8x128xf32>
    %494 = vector.extract_strided_slice %485 {offsets = [0, 128], sizes = [8, 128], strides = [1, 1]} : vector<8x512xf32> to vector<8x128xf32>
    %cst_211 = arith.constant 0.000000e+00 : f32
    %495 = vector.broadcast %cst_211 : f32 to vector<8x128xf32>
    %496 = arith.subf %495, %494 : vector<8x128xf32>
    %497 = math.exp %496 : vector<8x128xf32>
    %cst_212 = arith.constant 1.000000e+00 : f32
    %498 = vector.broadcast %cst_212 : f32 to vector<8x128xf32>
    %499 = arith.addf %498, %497 : vector<8x128xf32>
    %cst_213 = arith.constant 1.000000e+00 : f32
    %500 = vector.broadcast %cst_213 : f32 to vector<8x128xf32>
    %501 = arith.divf %500, %499 : vector<8x128xf32>
    %502 = vector.extract_strided_slice %485 {offsets = [0, 256], sizes = [8, 128], strides = [1, 1]} : vector<8x512xf32> to vector<8x128xf32>
    %503 = math.tanh %502 : vector<8x128xf32>
    %504 = vector.extract_strided_slice %485 {offsets = [0, 384], sizes = [8, 128], strides = [1, 1]} : vector<8x512xf32> to vector<8x128xf32>
    %cst_214 = arith.constant 0.000000e+00 : f32
    %505 = vector.broadcast %cst_214 : f32 to vector<8x128xf32>
    %506 = arith.subf %505, %504 : vector<8x128xf32>
    %507 = math.exp %506 : vector<8x128xf32>
    %cst_215 = arith.constant 1.000000e+00 : f32
    %508 = vector.broadcast %cst_215 : f32 to vector<8x128xf32>
    %509 = arith.addf %508, %507 : vector<8x128xf32>
    %cst_216 = arith.constant 1.000000e+00 : f32
    %510 = vector.broadcast %cst_216 : f32 to vector<8x128xf32>
    %511 = arith.divf %510, %509 : vector<8x128xf32>
    %512 = arith.mulf %501, %460 : vector<8x128xf32>
    %513 = arith.mulf %493, %503 : vector<8x128xf32>
    %514 = arith.addf %512, %513 : vector<8x128xf32>
    %515 = math.tanh %514 : vector<8x128xf32>
    %516 = arith.mulf %511, %515 : vector<8x128xf32>
    %c0_217 = arith.constant 0 : index
    %c0_218 = arith.constant 0 : index
    %c0_219 = arith.constant 0 : index
    %517 = vector.load %arg23[%c0_217, %c0_218, %c0_219] : memref<8x8x128xf32, #tpu.memory_space<vmem>>, vector<8x8x128xf32>
    %518 = vector.shape_cast %516 : vector<8x128xf32> to vector<1x8x128xf32>
    %519 = vector.broadcast %518 : vector<1x8x128xf32> to vector<8x8x128xf32>
    %520 = arith.mulf %517, %519 : vector<8x8x128xf32>
    %cst_220 = arith.constant dense<0.000000e+00> : vector<8x8xf32>
    %521 = vector.multi_reduction <add>, %520, %cst_220 [2] : vector<8x8x128xf32> to vector<8x8xf32>
    %cst_221 = arith.constant 0.000000e+00 : f32
    %522 = vector.broadcast %cst_221 : f32 to vector<8x8xf32>
    %523 = arith.cmpf ogt, %478, %522 : vector<8x8xf32>
    %cst_222 = arith.constant -1.000000e+30 : f32
    %524 = vector.broadcast %cst_222 : f32 to vector<8x8xf32>
    %525 = arith.select %523, %524, %521 : vector<8x8xi1>, vector<8x8xf32>
    %cst_223 = arith.constant dense<0xFF800000> : vector<8xf32>
    %526 = vector.multi_reduction <maximumf>, %525, %cst_223 [0] : vector<8x8xf32> to vector<8xf32>
    %527 = vector.shape_cast %526 : vector<8xf32> to vector<1x8xf32>
    %528 = vector.broadcast %527 : vector<1x8xf32> to vector<8x8xf32>
    %529 = arith.subf %525, %528 : vector<8x8xf32>
    %530 = math.exp %529 : vector<8x8xf32>
    %cst_224 = arith.constant dense<0.000000e+00> : vector<8xf32>
    %531 = vector.multi_reduction <add>, %530, %cst_224 [0] : vector<8x8xf32> to vector<8xf32>
    %532 = vector.shape_cast %531 : vector<8xf32> to vector<1x8xf32>
    %533 = tpu.reciprocal %532 {approx = true} : vector<1x8xf32> -> vector<1x8xf32>
    %534 = vector.broadcast %533 : vector<1x8xf32> to vector<8x8xf32>
    %535 = arith.mulf %530, %534 : vector<8x8xf32>
    %536 = vector.shape_cast %535 : vector<8x8xf32> to vector<8x8x1xf32>
    %c0_225 = arith.constant 0 : index
    %c0_226 = arith.constant 0 : index
    %c0_227 = arith.constant 0 : index
    %537 = vector.load %arg22[%c0_225, %c0_226, %c0_227] : memref<8x8x128xf32, #tpu.memory_space<vmem>>, vector<8x8x128xf32>
    %538 = vector.broadcast %536 : vector<8x8x1xf32> to vector<8x8x128xf32>
    %539 = arith.mulf %538, %537 : vector<8x8x128xf32>
    %cst_228 = arith.constant dense<0.000000e+00> : vector<8x128xf32>
    %540 = vector.multi_reduction <add>, %539, %cst_228 [0] : vector<8x8x128xf32> to vector<8x128xf32>
    %c0_229 = arith.constant 0 : index
    %c0_230 = arith.constant 0 : index
    %541 = vector.load %arg16[%c0_229, %c0_230] : memref<128x128xf32, #tpu.memory_space<vmem>>, vector<128x128xf32>
    %cst_231 = arith.constant dense<0.000000e+00> : vector<8x128xf32>
    %542 = tpu.matmul %540, %541, %cst_231 {dimension_numbers = #tpu.dot_dimension_numbers<[1], [0], [0], [1], [0, 0, 1, 1], [], []>} : vector<8x128xf32>, vector<128x128xf32>, vector<8x128xf32> -> vector<8x128xf32>
    %c0_232 = arith.constant 0 : index
    %c0_233 = arith.constant 0 : index
    %543 = vector.load %arg17[%c0_232, %c0_233] : memref<128x128xf32, #tpu.memory_space<vmem>>, vector<128x128xf32>
    %cst_234 = arith.constant dense<0.000000e+00> : vector<8x128xf32>
    %544 = tpu.matmul %516, %543, %cst_234 {dimension_numbers = #tpu.dot_dimension_numbers<[1], [0], [0], [1], [0, 0, 1, 1], [], []>} : vector<8x128xf32>, vector<128x128xf32>, vector<8x128xf32> -> vector<8x128xf32>
    %545 = arith.addf %542, %544 : vector<8x128xf32>
    %546 = math.tanh %545 : vector<8x128xf32>
    %c0_235 = arith.constant 0 : index
    %c0_236 = arith.constant 0 : index
    %547 = vector.load %arg25[%c0_235, %c0_236] : memref<40x128xf32, #tpu.memory_space<vmem>>, vector<8x128xf32>
    tpu.vector_store %arg25[%c0_235, %c0_236], %546 {strides = array<i32>} : memref<40x128xf32, #tpu.memory_space<vmem>>, vector<8x128xf32>,
    %c8_237 = arith.constant 8 : index
    %c0_238 = arith.constant 0 : index
    %548 = vector.load %arg24[%c8_237, %c0_238] : memref<40x512xf32, #tpu.memory_space<vmem>>, vector<8x512xf32>
    %c0_239 = arith.constant 0 : index
    %c0_240 = arith.constant 0 : index
    %549 = vector.load %arg13[%c0_239, %c0_240] : memref<128x512xf32, #tpu.memory_space<vmem>>, vector<128x512xf32>
    %cst_241 = arith.constant dense<0.000000e+00> : vector<8x512xf32>
    %550 = tpu.matmul %546, %549, %cst_241 {dimension_numbers = #tpu.dot_dimension_numbers<[1], [0], [0], [1], [0, 0, 1, 1], [], []>} : vector<8x128xf32>, vector<128x512xf32>, vector<8x512xf32> -> vector<8x512xf32>
    %551 = arith.addf %548, %550 : vector<8x512xf32>
    %c0_242 = arith.constant 0 : index
    %c0_243 = arith.constant 0 : index
    %552 = vector.load %arg14[%c0_242, %c0_243] : memref<128x512xf32, #tpu.memory_space<vmem>>, vector<128x512xf32>
    %cst_244 = arith.constant dense<0.000000e+00> : vector<8x512xf32>
    %553 = tpu.matmul %516, %552, %cst_244 {dimension_numbers = #tpu.dot_dimension_numbers<[1], [0], [0], [1], [0, 0, 1, 1], [], []>} : vector<8x128xf32>, vector<128x512xf32>, vector<8x512xf32> -> vector<8x512xf32>
    %554 = arith.addf %551, %553 : vector<8x512xf32>
    %555 = vector.extract_strided_slice %554 {offsets = [0, 0], sizes = [8, 128], strides = [1, 1]} : vector<8x512xf32> to vector<8x128xf32>
    %cst_245 = arith.constant 0.000000e+00 : f32
    %556 = vector.broadcast %cst_245 : f32 to vector<8x128xf32>
    %557 = arith.subf %556, %555 : vector<8x128xf32>
    %558 = math.exp %557 : vector<8x128xf32>
    %cst_246 = arith.constant 1.000000e+00 : f32
    %559 = vector.broadcast %cst_246 : f32 to vector<8x128xf32>
    %560 = arith.addf %559, %558 : vector<8x128xf32>
    %cst_247 = arith.constant 1.000000e+00 : f32
    %561 = vector.broadcast %cst_247 : f32 to vector<8x128xf32>
    %562 = arith.divf %561, %560 : vector<8x128xf32>
    %563 = vector.extract_strided_slice %554 {offsets = [0, 128], sizes = [8, 128], strides = [1, 1]} : vector<8x512xf32> to vector<8x128xf32>
    %cst_248 = arith.constant 0.000000e+00 : f32
    %564 = vector.broadcast %cst_248 : f32 to vector<8x128xf32>
    %565 = arith.subf %564, %563 : vector<8x128xf32>
    %566 = math.exp %565 : vector<8x128xf32>
    %cst_249 = arith.constant 1.000000e+00 : f32
    %567 = vector.broadcast %cst_249 : f32 to vector<8x128xf32>
    %568 = arith.addf %567, %566 : vector<8x128xf32>
    %cst_250 = arith.constant 1.000000e+00 : f32
    %569 = vector.broadcast %cst_250 : f32 to vector<8x128xf32>
    %570 = arith.divf %569, %568 : vector<8x128xf32>
    %571 = vector.extract_strided_slice %554 {offsets = [0, 256], sizes = [8, 128], strides = [1, 1]} : vector<8x512xf32> to vector<8x128xf32>
    %572 = math.tanh %571 : vector<8x128xf32>
    %573 = vector.extract_strided_slice %554 {offsets = [0, 384], sizes = [8, 128], strides = [1, 1]} : vector<8x512xf32> to vector<8x128xf32>
    %cst_251 = arith.constant 0.000000e+00 : f32
    %574 = vector.broadcast %cst_251 : f32 to vector<8x128xf32>
    %575 = arith.subf %574, %573 : vector<8x128xf32>
    %576 = math.exp %575 : vector<8x128xf32>
    %cst_252 = arith.constant 1.000000e+00 : f32
    %577 = vector.broadcast %cst_252 : f32 to vector<8x128xf32>
    %578 = arith.addf %577, %576 : vector<8x128xf32>
    %cst_253 = arith.constant 1.000000e+00 : f32
    %579 = vector.broadcast %cst_253 : f32 to vector<8x128xf32>
    %580 = arith.divf %579, %578 : vector<8x128xf32>
    %581 = arith.mulf %570, %514 : vector<8x128xf32>
    %582 = arith.mulf %562, %572 : vector<8x128xf32>
    %583 = arith.addf %581, %582 : vector<8x128xf32>
    %584 = math.tanh %583 : vector<8x128xf32>
    %585 = arith.mulf %580, %584 : vector<8x128xf32>
    %c0_254 = arith.constant 0 : index
    %c0_255 = arith.constant 0 : index
    %c0_256 = arith.constant 0 : index
    %586 = vector.load %arg23[%c0_254, %c0_255, %c0_256] : memref<8x8x128xf32, #tpu.memory_space<vmem>>, vector<8x8x128xf32>
    %587 = vector.shape_cast %585 : vector<8x128xf32> to vector<1x8x128xf32>
    %588 = vector.broadcast %587 : vector<1x8x128xf32> to vector<8x8x128xf32>
    %589 = arith.mulf %586, %588 : vector<8x8x128xf32>
    %cst_257 = arith.constant dense<0.000000e+00> : vector<8x8xf32>
    %590 = vector.multi_reduction <add>, %589, %cst_257 [2] : vector<8x8x128xf32> to vector<8x8xf32>
    %cst_258 = arith.constant 0.000000e+00 : f32
    %591 = vector.broadcast %cst_258 : f32 to vector<8x8xf32>
    %592 = arith.cmpf ogt, %478, %591 : vector<8x8xf32>
    %cst_259 = arith.constant -1.000000e+30 : f32
    %593 = vector.broadcast %cst_259 : f32 to vector<8x8xf32>
    %594 = arith.select %592, %593, %590 : vector<8x8xi1>, vector<8x8xf32>
    %cst_260 = arith.constant dense<0xFF800000> : vector<8xf32>
    %595 = vector.multi_reduction <maximumf>, %594, %cst_260 [0] : vector<8x8xf32> to vector<8xf32>
    %596 = vector.shape_cast %595 : vector<8xf32> to vector<1x8xf32>
    %597 = vector.broadcast %596 : vector<1x8xf32> to vector<8x8xf32>
    %598 = arith.subf %594, %597 : vector<8x8xf32>
    %599 = math.exp %598 : vector<8x8xf32>
    %cst_261 = arith.constant dense<0.000000e+00> : vector<8xf32>
    %600 = vector.multi_reduction <add>, %599, %cst_261 [0] : vector<8x8xf32> to vector<8xf32>
    %601 = vector.shape_cast %600 : vector<8xf32> to vector<1x8xf32>
    %602 = tpu.reciprocal %601 {approx = true} : vector<1x8xf32> -> vector<1x8xf32>
    %603 = vector.broadcast %602 : vector<1x8xf32> to vector<8x8xf32>
    %604 = arith.mulf %599, %603 : vector<8x8xf32>
    %605 = vector.shape_cast %604 : vector<8x8xf32> to vector<8x8x1xf32>
    %c0_262 = arith.constant 0 : index
    %c0_263 = arith.constant 0 : index
    %c0_264 = arith.constant 0 : index
    %606 = vector.load %arg22[%c0_262, %c0_263, %c0_264] : memref<8x8x128xf32, #tpu.memory_space<vmem>>, vector<8x8x128xf32>
    %607 = vector.broadcast %605 : vector<8x8x1xf32> to vector<8x8x128xf32>
    %608 = arith.mulf %607, %606 : vector<8x8x128xf32>
    %cst_265 = arith.constant dense<0.000000e+00> : vector<8x128xf32>
    %609 = vector.multi_reduction <add>, %608, %cst_265 [0] : vector<8x8x128xf32> to vector<8x128xf32>
    %c0_266 = arith.constant 0 : index
    %c0_267 = arith.constant 0 : index
    %610 = vector.load %arg16[%c0_266, %c0_267] : memref<128x128xf32, #tpu.memory_space<vmem>>, vector<128x128xf32>
    %cst_268 = arith.constant dense<0.000000e+00> : vector<8x128xf32>
    %611 = tpu.matmul %609, %610, %cst_268 {dimension_numbers = #tpu.dot_dimension_numbers<[1], [0], [0], [1], [0, 0, 1, 1], [], []>} : vector<8x128xf32>, vector<128x128xf32>, vector<8x128xf32> -> vector<8x128xf32>
    %c0_269 = arith.constant 0 : index
    %c0_270 = arith.constant 0 : index
    %612 = vector.load %arg17[%c0_269, %c0_270] : memref<128x128xf32, #tpu.memory_space<vmem>>, vector<128x128xf32>
    %cst_271 = arith.constant dense<0.000000e+00> : vector<8x128xf32>
    %613 = tpu.matmul %585, %612, %cst_271 {dimension_numbers = #tpu.dot_dimension_numbers<[1], [0], [0], [1], [0, 0, 1, 1], [], []>} : vector<8x128xf32>, vector<128x128xf32>, vector<8x128xf32> -> vector<8x128xf32>
    %614 = arith.addf %611, %613 : vector<8x128xf32>
    %615 = math.tanh %614 : vector<8x128xf32>
    %c8_272 = arith.constant 8 : index
    %c0_273 = arith.constant 0 : index
    %616 = vector.load %arg25[%c8_272, %c0_273] : memref<40x128xf32, #tpu.memory_space<vmem>>, vector<8x128xf32>
    tpu.vector_store %arg25[%c8_272, %c0_273], %615 {strides = array<i32>} : memref<40x128xf32, #tpu.memory_space<vmem>>, vector<8x128xf32>,
    %c16_274 = arith.constant 16 : index
    %c0_275 = arith.constant 0 : index
    %617 = vector.load %arg24[%c16_274, %c0_275] : memref<40x512xf32, #tpu.memory_space<vmem>>, vector<8x512xf32>
    %c0_276 = arith.constant 0 : index
    %c0_277 = arith.constant 0 : index
    %618 = vector.load %arg13[%c0_276, %c0_277] : memref<128x512xf32, #tpu.memory_space<vmem>>, vector<128x512xf32>
    %cst_278 = arith.constant dense<0.000000e+00> : vector<8x512xf32>
    %619 = tpu.matmul %615, %618, %cst_278 {dimension_numbers = #tpu.dot_dimension_numbers<[1], [0], [0], [1], [0, 0, 1, 1], [], []>} : vector<8x128xf32>, vector<128x512xf32>, vector<8x512xf32> -> vector<8x512xf32>
    %620 = arith.addf %617, %619 : vector<8x512xf32>
    %c0_279 = arith.constant 0 : index
    %c0_280 = arith.constant 0 : index
    %621 = vector.load %arg14[%c0_279, %c0_280] : memref<128x512xf32, #tpu.memory_space<vmem>>, vector<128x512xf32>
    %cst_281 = arith.constant dense<0.000000e+00> : vector<8x512xf32>
    %622 = tpu.matmul %585, %621, %cst_281 {dimension_numbers = #tpu.dot_dimension_numbers<[1], [0], [0], [1], [0, 0, 1, 1], [], []>} : vector<8x128xf32>, vector<128x512xf32>, vector<8x512xf32> -> vector<8x512xf32>
    %623 = arith.addf %620, %622 : vector<8x512xf32>
    %624 = vector.extract_strided_slice %623 {offsets = [0, 0], sizes = [8, 128], strides = [1, 1]} : vector<8x512xf32> to vector<8x128xf32>
    %cst_282 = arith.constant 0.000000e+00 : f32
    %625 = vector.broadcast %cst_282 : f32 to vector<8x128xf32>
    %626 = arith.subf %625, %624 : vector<8x128xf32>
    %627 = math.exp %626 : vector<8x128xf32>
    %cst_283 = arith.constant 1.000000e+00 : f32
    %628 = vector.broadcast %cst_283 : f32 to vector<8x128xf32>
    %629 = arith.addf %628, %627 : vector<8x128xf32>
    %cst_284 = arith.constant 1.000000e+00 : f32
    %630 = vector.broadcast %cst_284 : f32 to vector<8x128xf32>
    %631 = arith.divf %630, %629 : vector<8x128xf32>
    %632 = vector.extract_strided_slice %623 {offsets = [0, 128], sizes = [8, 128], strides = [1, 1]} : vector<8x512xf32> to vector<8x128xf32>
    %cst_285 = arith.constant 0.000000e+00 : f32
    %633 = vector.broadcast %cst_285 : f32 to vector<8x128xf32>
    %634 = arith.subf %633, %632 : vector<8x128xf32>
    %635 = math.exp %634 : vector<8x128xf32>
    %cst_286 = arith.constant 1.000000e+00 : f32
    %636 = vector.broadcast %cst_286 : f32 to vector<8x128xf32>
    %637 = arith.addf %636, %635 : vector<8x128xf32>
    %cst_287 = arith.constant 1.000000e+00 : f32
    %638 = vector.broadcast %cst_287 : f32 to vector<8x128xf32>
    %639 = arith.divf %638, %637 : vector<8x128xf32>
    %640 = vector.extract_strided_slice %623 {offsets = [0, 256], sizes = [8, 128], strides = [1, 1]} : vector<8x512xf32> to vector<8x128xf32>
    %641 = math.tanh %640 : vector<8x128xf32>
    %642 = vector.extract_strided_slice %623 {offsets = [0, 384], sizes = [8, 128], strides = [1, 1]} : vector<8x512xf32> to vector<8x128xf32>
    %cst_288 = arith.constant 0.000000e+00 : f32
    %643 = vector.broadcast %cst_288 : f32 to vector<8x128xf32>
    %644 = arith.subf %643, %642 : vector<8x128xf32>
    %645 = math.exp %644 : vector<8x128xf32>
    %cst_289 = arith.constant 1.000000e+00 : f32
    %646 = vector.broadcast %cst_289 : f32 to vector<8x128xf32>
    %647 = arith.addf %646, %645 : vector<8x128xf32>
    %cst_290 = arith.constant 1.000000e+00 : f32
    %648 = vector.broadcast %cst_290 : f32 to vector<8x128xf32>
    %649 = arith.divf %648, %647 : vector<8x128xf32>
    %650 = arith.mulf %639, %583 : vector<8x128xf32>
    %651 = arith.mulf %631, %641 : vector<8x128xf32>
    %652 = arith.addf %650, %651 : vector<8x128xf32>
    %653 = math.tanh %652 : vector<8x128xf32>
    %654 = arith.mulf %649, %653 : vector<8x128xf32>
    %c0_291 = arith.constant 0 : index
    %c0_292 = arith.constant 0 : index
    %c0_293 = arith.constant 0 : index
    %655 = vector.load %arg23[%c0_291, %c0_292, %c0_293] : memref<8x8x128xf32, #tpu.memory_space<vmem>>, vector<8x8x128xf32>
    %656 = vector.shape_cast %654 : vector<8x128xf32> to vector<1x8x128xf32>
    %657 = vector.broadcast %656 : vector<1x8x128xf32> to vector<8x8x128xf32>
    %658 = arith.mulf %655, %657 : vector<8x8x128xf32>
    %cst_294 = arith.constant dense<0.000000e+00> : vector<8x8xf32>
    %659 = vector.multi_reduction <add>, %658, %cst_294 [2] : vector<8x8x128xf32> to vector<8x8xf32>
    %cst_295 = arith.constant 0.000000e+00 : f32
    %660 = vector.broadcast %cst_295 : f32 to vector<8x8xf32>
    %661 = arith.cmpf ogt, %478, %660 : vector<8x8xf32>
    %cst_296 = arith.constant -1.000000e+30 : f32
    %662 = vector.broadcast %cst_296 : f32 to vector<8x8xf32>
    %663 = arith.select %661, %662, %659 : vector<8x8xi1>, vector<8x8xf32>
    %cst_297 = arith.constant dense<0xFF800000> : vector<8xf32>
    %664 = vector.multi_reduction <maximumf>, %663, %cst_297 [0] : vector<8x8xf32> to vector<8xf32>
    %665 = vector.shape_cast %664 : vector<8xf32> to vector<1x8xf32>
    %666 = vector.broadcast %665 : vector<1x8xf32> to vector<8x8xf32>
    %667 = arith.subf %663, %666 : vector<8x8xf32>
    %668 = math.exp %667 : vector<8x8xf32>
    %cst_298 = arith.constant dense<0.000000e+00> : vector<8xf32>
    %669 = vector.multi_reduction <add>, %668, %cst_298 [0] : vector<8x8xf32> to vector<8xf32>
    %670 = vector.shape_cast %669 : vector<8xf32> to vector<1x8xf32>
    %671 = tpu.reciprocal %670 {approx = true} : vector<1x8xf32> -> vector<1x8xf32>
    %672 = vector.broadcast %671 : vector<1x8xf32> to vector<8x8xf32>
    %673 = arith.mulf %668, %672 : vector<8x8xf32>
    %674 = vector.shape_cast %673 : vector<8x8xf32> to vector<8x8x1xf32>
    %c0_299 = arith.constant 0 : index
    %c0_300 = arith.constant 0 : index
    %c0_301 = arith.constant 0 : index
    %675 = vector.load %arg22[%c0_299, %c0_300, %c0_301] : memref<8x8x128xf32, #tpu.memory_space<vmem>>, vector<8x8x128xf32>
    %676 = vector.broadcast %674 : vector<8x8x1xf32> to vector<8x8x128xf32>
    %677 = arith.mulf %676, %675 : vector<8x8x128xf32>
    %cst_302 = arith.constant dense<0.000000e+00> : vector<8x128xf32>
    %678 = vector.multi_reduction <add>, %677, %cst_302 [0] : vector<8x8x128xf32> to vector<8x128xf32>
    %c0_303 = arith.constant 0 : index
    %c0_304 = arith.constant 0 : index
    %679 = vector.load %arg16[%c0_303, %c0_304] : memref<128x128xf32, #tpu.memory_space<vmem>>, vector<128x128xf32>
    %cst_305 = arith.constant dense<0.000000e+00> : vector<8x128xf32>
    %680 = tpu.matmul %678, %679, %cst_305 {dimension_numbers = #tpu.dot_dimension_numbers<[1], [0], [0], [1], [0, 0, 1, 1], [], []>} : vector<8x128xf32>, vector<128x128xf32>, vector<8x128xf32> -> vector<8x128xf32>
    %c0_306 = arith.constant 0 : index
    %c0_307 = arith.constant 0 : index
    %681 = vector.load %arg17[%c0_306, %c0_307] : memref<128x128xf32, #tpu.memory_space<vmem>>, vector<128x128xf32>
    %cst_308 = arith.constant dense<0.000000e+00> : vector<8x128xf32>
    %682 = tpu.matmul %654, %681, %cst_308 {dimension_numbers = #tpu.dot_dimension_numbers<[1], [0], [0], [1], [0, 0, 1, 1], [], []>} : vector<8x128xf32>, vector<128x128xf32>, vector<8x128xf32> -> vector<8x128xf32>
    %683 = arith.addf %680, %682 : vector<8x128xf32>
    %684 = math.tanh %683 : vector<8x128xf32>
    %c16_309 = arith.constant 16 : index
    %c0_310 = arith.constant 0 : index
    %685 = vector.load %arg25[%c16_309, %c0_310] : memref<40x128xf32, #tpu.memory_space<vmem>>, vector<8x128xf32>
    tpu.vector_store %arg25[%c16_309, %c0_310], %684 {strides = array<i32>} : memref<40x128xf32, #tpu.memory_space<vmem>>, vector<8x128xf32>,
    %c24_311 = arith.constant 24 : index
    %c0_312 = arith.constant 0 : index
    %686 = vector.load %arg24[%c24_311, %c0_312] : memref<40x512xf32, #tpu.memory_space<vmem>>, vector<8x512xf32>
    %c0_313 = arith.constant 0 : index
    %c0_314 = arith.constant 0 : index
    %687 = vector.load %arg13[%c0_313, %c0_314] : memref<128x512xf32, #tpu.memory_space<vmem>>, vector<128x512xf32>
    %cst_315 = arith.constant dense<0.000000e+00> : vector<8x512xf32>
    %688 = tpu.matmul %684, %687, %cst_315 {dimension_numbers = #tpu.dot_dimension_numbers<[1], [0], [0], [1], [0, 0, 1, 1], [], []>} : vector<8x128xf32>, vector<128x512xf32>, vector<8x512xf32> -> vector<8x512xf32>
    %689 = arith.addf %686, %688 : vector<8x512xf32>
    %c0_316 = arith.constant 0 : index
    %c0_317 = arith.constant 0 : index
    %690 = vector.load %arg14[%c0_316, %c0_317] : memref<128x512xf32, #tpu.memory_space<vmem>>, vector<128x512xf32>
    %cst_318 = arith.constant dense<0.000000e+00> : vector<8x512xf32>
    %691 = tpu.matmul %654, %690, %cst_318 {dimension_numbers = #tpu.dot_dimension_numbers<[1], [0], [0], [1], [0, 0, 1, 1], [], []>} : vector<8x128xf32>, vector<128x512xf32>, vector<8x512xf32> -> vector<8x512xf32>
    %692 = arith.addf %689, %691 : vector<8x512xf32>
    %693 = vector.extract_strided_slice %692 {offsets = [0, 0], sizes = [8, 128], strides = [1, 1]} : vector<8x512xf32> to vector<8x128xf32>
    %cst_319 = arith.constant 0.000000e+00 : f32
    %694 = vector.broadcast %cst_319 : f32 to vector<8x128xf32>
    %695 = arith.subf %694, %693 : vector<8x128xf32>
    %696 = math.exp %695 : vector<8x128xf32>
    %cst_320 = arith.constant 1.000000e+00 : f32
    %697 = vector.broadcast %cst_320 : f32 to vector<8x128xf32>
    %698 = arith.addf %697, %696 : vector<8x128xf32>
    %cst_321 = arith.constant 1.000000e+00 : f32
    %699 = vector.broadcast %cst_321 : f32 to vector<8x128xf32>
    %700 = arith.divf %699, %698 : vector<8x128xf32>
    %701 = vector.extract_strided_slice %692 {offsets = [0, 128], sizes = [8, 128], strides = [1, 1]} : vector<8x512xf32> to vector<8x128xf32>
    %cst_322 = arith.constant 0.000000e+00 : f32
    %702 = vector.broadcast %cst_322 : f32 to vector<8x128xf32>
    %703 = arith.subf %702, %701 : vector<8x128xf32>
    %704 = math.exp %703 : vector<8x128xf32>
    %cst_323 = arith.constant 1.000000e+00 : f32
    %705 = vector.broadcast %cst_323 : f32 to vector<8x128xf32>
    %706 = arith.addf %705, %704 : vector<8x128xf32>
    %cst_324 = arith.constant 1.000000e+00 : f32
    %707 = vector.broadcast %cst_324 : f32 to vector<8x128xf32>
    %708 = arith.divf %707, %706 : vector<8x128xf32>
    %709 = vector.extract_strided_slice %692 {offsets = [0, 256], sizes = [8, 128], strides = [1, 1]} : vector<8x512xf32> to vector<8x128xf32>
    %710 = math.tanh %709 : vector<8x128xf32>
    %711 = vector.extract_strided_slice %692 {offsets = [0, 384], sizes = [8, 128], strides = [1, 1]} : vector<8x512xf32> to vector<8x128xf32>
    %cst_325 = arith.constant 0.000000e+00 : f32
    %712 = vector.broadcast %cst_325 : f32 to vector<8x128xf32>
    %713 = arith.subf %712, %711 : vector<8x128xf32>
    %714 = math.exp %713 : vector<8x128xf32>
    %cst_326 = arith.constant 1.000000e+00 : f32
    %715 = vector.broadcast %cst_326 : f32 to vector<8x128xf32>
    %716 = arith.addf %715, %714 : vector<8x128xf32>
    %cst_327 = arith.constant 1.000000e+00 : f32
    %717 = vector.broadcast %cst_327 : f32 to vector<8x128xf32>
    %718 = arith.divf %717, %716 : vector<8x128xf32>
    %719 = arith.mulf %708, %652 : vector<8x128xf32>
    %720 = arith.mulf %700, %710 : vector<8x128xf32>
    %721 = arith.addf %719, %720 : vector<8x128xf32>
    %722 = math.tanh %721 : vector<8x128xf32>
    %723 = arith.mulf %718, %722 : vector<8x128xf32>
    %c0_328 = arith.constant 0 : index
    %c0_329 = arith.constant 0 : index
    %c0_330 = arith.constant 0 : index
    %724 = vector.load %arg23[%c0_328, %c0_329, %c0_330] : memref<8x8x128xf32, #tpu.memory_space<vmem>>, vector<8x8x128xf32>
    %725 = vector.shape_cast %723 : vector<8x128xf32> to vector<1x8x128xf32>
    %726 = vector.broadcast %725 : vector<1x8x128xf32> to vector<8x8x128xf32>
    %727 = arith.mulf %724, %726 : vector<8x8x128xf32>
    %cst_331 = arith.constant dense<0.000000e+00> : vector<8x8xf32>
    %728 = vector.multi_reduction <add>, %727, %cst_331 [2] : vector<8x8x128xf32> to vector<8x8xf32>
    %cst_332 = arith.constant 0.000000e+00 : f32
    %729 = vector.broadcast %cst_332 : f32 to vector<8x8xf32>
    %730 = arith.cmpf ogt, %478, %729 : vector<8x8xf32>
    %cst_333 = arith.constant -1.000000e+30 : f32
    %731 = vector.broadcast %cst_333 : f32 to vector<8x8xf32>
    %732 = arith.select %730, %731, %728 : vector<8x8xi1>, vector<8x8xf32>
    %cst_334 = arith.constant dense<0xFF800000> : vector<8xf32>
    %733 = vector.multi_reduction <maximumf>, %732, %cst_334 [0] : vector<8x8xf32> to vector<8xf32>
    %734 = vector.shape_cast %733 : vector<8xf32> to vector<1x8xf32>
    %735 = vector.broadcast %734 : vector<1x8xf32> to vector<8x8xf32>
    %736 = arith.subf %732, %735 : vector<8x8xf32>
    %737 = math.exp %736 : vector<8x8xf32>
    %cst_335 = arith.constant dense<0.000000e+00> : vector<8xf32>
    %738 = vector.multi_reduction <add>, %737, %cst_335 [0] : vector<8x8xf32> to vector<8xf32>
    %739 = vector.shape_cast %738 : vector<8xf32> to vector<1x8xf32>
    %740 = tpu.reciprocal %739 {approx = true} : vector<1x8xf32> -> vector<1x8xf32>
    %741 = vector.broadcast %740 : vector<1x8xf32> to vector<8x8xf32>
    %742 = arith.mulf %737, %741 : vector<8x8xf32>
    %743 = vector.shape_cast %742 : vector<8x8xf32> to vector<8x8x1xf32>
    %c0_336 = arith.constant 0 : index
    %c0_337 = arith.constant 0 : index
    %c0_338 = arith.constant 0 : index
    %744 = vector.load %arg22[%c0_336, %c0_337, %c0_338] : memref<8x8x128xf32, #tpu.memory_space<vmem>>, vector<8x8x128xf32>
    %745 = vector.broadcast %743 : vector<8x8x1xf32> to vector<8x8x128xf32>
    %746 = arith.mulf %745, %744 : vector<8x8x128xf32>
    %cst_339 = arith.constant dense<0.000000e+00> : vector<8x128xf32>
    %747 = vector.multi_reduction <add>, %746, %cst_339 [0] : vector<8x8x128xf32> to vector<8x128xf32>
    %c0_340 = arith.constant 0 : index
    %c0_341 = arith.constant 0 : index
    %748 = vector.load %arg16[%c0_340, %c0_341] : memref<128x128xf32, #tpu.memory_space<vmem>>, vector<128x128xf32>
    %cst_342 = arith.constant dense<0.000000e+00> : vector<8x128xf32>
    %749 = tpu.matmul %747, %748, %cst_342 {dimension_numbers = #tpu.dot_dimension_numbers<[1], [0], [0], [1], [0, 0, 1, 1], [], []>} : vector<8x128xf32>, vector<128x128xf32>, vector<8x128xf32> -> vector<8x128xf32>
    %c0_343 = arith.constant 0 : index
    %c0_344 = arith.constant 0 : index
    %750 = vector.load %arg17[%c0_343, %c0_344] : memref<128x128xf32, #tpu.memory_space<vmem>>, vector<128x128xf32>
    %cst_345 = arith.constant dense<0.000000e+00> : vector<8x128xf32>
    %751 = tpu.matmul %723, %750, %cst_345 {dimension_numbers = #tpu.dot_dimension_numbers<[1], [0], [0], [1], [0, 0, 1, 1], [], []>} : vector<8x128xf32>, vector<128x128xf32>, vector<8x128xf32> -> vector<8x128xf32>
    %752 = arith.addf %749, %751 : vector<8x128xf32>
    %753 = math.tanh %752 : vector<8x128xf32>
    %c24_346 = arith.constant 24 : index
    %c0_347 = arith.constant 0 : index
    %754 = vector.load %arg25[%c24_346, %c0_347] : memref<40x128xf32, #tpu.memory_space<vmem>>, vector<8x128xf32>
    tpu.vector_store %arg25[%c24_346, %c0_347], %753 {strides = array<i32>} : memref<40x128xf32, #tpu.memory_space<vmem>>, vector<8x128xf32>,
    %c32_348 = arith.constant 32 : index
    %c0_349 = arith.constant 0 : index
    %755 = vector.load %arg24[%c32_348, %c0_349] : memref<40x512xf32, #tpu.memory_space<vmem>>, vector<8x512xf32>
    %c0_350 = arith.constant 0 : index
    %c0_351 = arith.constant 0 : index
    %756 = vector.load %arg13[%c0_350, %c0_351] : memref<128x512xf32, #tpu.memory_space<vmem>>, vector<128x512xf32>
    %cst_352 = arith.constant dense<0.000000e+00> : vector<8x512xf32>
    %757 = tpu.matmul %753, %756, %cst_352 {dimension_numbers = #tpu.dot_dimension_numbers<[1], [0], [0], [1], [0, 0, 1, 1], [], []>} : vector<8x128xf32>, vector<128x512xf32>, vector<8x512xf32> -> vector<8x512xf32>
    %758 = arith.addf %755, %757 : vector<8x512xf32>
    %c0_353 = arith.constant 0 : index
    %c0_354 = arith.constant 0 : index
    %759 = vector.load %arg14[%c0_353, %c0_354] : memref<128x512xf32, #tpu.memory_space<vmem>>, vector<128x512xf32>
    %cst_355 = arith.constant dense<0.000000e+00> : vector<8x512xf32>
    %760 = tpu.matmul %723, %759, %cst_355 {dimension_numbers = #tpu.dot_dimension_numbers<[1], [0], [0], [1], [0, 0, 1, 1], [], []>} : vector<8x128xf32>, vector<128x512xf32>, vector<8x512xf32> -> vector<8x512xf32>
    %761 = arith.addf %758, %760 : vector<8x512xf32>
    %762 = vector.extract_strided_slice %761 {offsets = [0, 0], sizes = [8, 128], strides = [1, 1]} : vector<8x512xf32> to vector<8x128xf32>
    %cst_356 = arith.constant 0.000000e+00 : f32
    %763 = vector.broadcast %cst_356 : f32 to vector<8x128xf32>
    %764 = arith.subf %763, %762 : vector<8x128xf32>
    %765 = math.exp %764 : vector<8x128xf32>
    %cst_357 = arith.constant 1.000000e+00 : f32
    %766 = vector.broadcast %cst_357 : f32 to vector<8x128xf32>
    %767 = arith.addf %766, %765 : vector<8x128xf32>
    %cst_358 = arith.constant 1.000000e+00 : f32
    %768 = vector.broadcast %cst_358 : f32 to vector<8x128xf32>
    %769 = arith.divf %768, %767 : vector<8x128xf32>
    %770 = vector.extract_strided_slice %761 {offsets = [0, 128], sizes = [8, 128], strides = [1, 1]} : vector<8x512xf32> to vector<8x128xf32>
    %cst_359 = arith.constant 0.000000e+00 : f32
    %771 = vector.broadcast %cst_359 : f32 to vector<8x128xf32>
    %772 = arith.subf %771, %770 : vector<8x128xf32>
    %773 = math.exp %772 : vector<8x128xf32>
    %cst_360 = arith.constant 1.000000e+00 : f32
    %774 = vector.broadcast %cst_360 : f32 to vector<8x128xf32>
    %775 = arith.addf %774, %773 : vector<8x128xf32>
    %cst_361 = arith.constant 1.000000e+00 : f32
    %776 = vector.broadcast %cst_361 : f32 to vector<8x128xf32>
    %777 = arith.divf %776, %775 : vector<8x128xf32>
    %778 = vector.extract_strided_slice %761 {offsets = [0, 256], sizes = [8, 128], strides = [1, 1]} : vector<8x512xf32> to vector<8x128xf32>
    %779 = math.tanh %778 : vector<8x128xf32>
    %780 = vector.extract_strided_slice %761 {offsets = [0, 384], sizes = [8, 128], strides = [1, 1]} : vector<8x512xf32> to vector<8x128xf32>
    %cst_362 = arith.constant 0.000000e+00 : f32
    %781 = vector.broadcast %cst_362 : f32 to vector<8x128xf32>
    %782 = arith.subf %781, %780 : vector<8x128xf32>
    %783 = math.exp %782 : vector<8x128xf32>
    %cst_363 = arith.constant 1.000000e+00 : f32
    %784 = vector.broadcast %cst_363 : f32 to vector<8x128xf32>
    %785 = arith.addf %784, %783 : vector<8x128xf32>
    %cst_364 = arith.constant 1.000000e+00 : f32
    %786 = vector.broadcast %cst_364 : f32 to vector<8x128xf32>
    %787 = arith.divf %786, %785 : vector<8x128xf32>
    %788 = arith.mulf %777, %721 : vector<8x128xf32>
    %789 = arith.mulf %769, %779 : vector<8x128xf32>
    %790 = arith.addf %788, %789 : vector<8x128xf32>
    %791 = math.tanh %790 : vector<8x128xf32>
    %792 = arith.mulf %787, %791 : vector<8x128xf32>
    %c0_365 = arith.constant 0 : index
    %c0_366 = arith.constant 0 : index
    %c0_367 = arith.constant 0 : index
    %793 = vector.load %arg23[%c0_365, %c0_366, %c0_367] : memref<8x8x128xf32, #tpu.memory_space<vmem>>, vector<8x8x128xf32>
    %794 = vector.shape_cast %792 : vector<8x128xf32> to vector<1x8x128xf32>
    %795 = vector.broadcast %794 : vector<1x8x128xf32> to vector<8x8x128xf32>
    %796 = arith.mulf %793, %795 : vector<8x8x128xf32>
    %cst_368 = arith.constant dense<0.000000e+00> : vector<8x8xf32>
    %797 = vector.multi_reduction <add>, %796, %cst_368 [2] : vector<8x8x128xf32> to vector<8x8xf32>
    %cst_369 = arith.constant 0.000000e+00 : f32
    %798 = vector.broadcast %cst_369 : f32 to vector<8x8xf32>
    %799 = arith.cmpf ogt, %478, %798 : vector<8x8xf32>
    %cst_370 = arith.constant -1.000000e+30 : f32
    %800 = vector.broadcast %cst_370 : f32 to vector<8x8xf32>
    %801 = arith.select %799, %800, %797 : vector<8x8xi1>, vector<8x8xf32>
    %cst_371 = arith.constant dense<0xFF800000> : vector<8xf32>
    %802 = vector.multi_reduction <maximumf>, %801, %cst_371 [0] : vector<8x8xf32> to vector<8xf32>
    %803 = vector.shape_cast %802 : vector<8xf32> to vector<1x8xf32>
    %804 = vector.broadcast %803 : vector<1x8xf32> to vector<8x8xf32>
    %805 = arith.subf %801, %804 : vector<8x8xf32>
    %806 = math.exp %805 : vector<8x8xf32>
    %cst_372 = arith.constant dense<0.000000e+00> : vector<8xf32>
    %807 = vector.multi_reduction <add>, %806, %cst_372 [0] : vector<8x8xf32> to vector<8xf32>
    %808 = vector.shape_cast %807 : vector<8xf32> to vector<1x8xf32>
    %809 = tpu.reciprocal %808 {approx = true} : vector<1x8xf32> -> vector<1x8xf32>
    %810 = vector.broadcast %809 : vector<1x8xf32> to vector<8x8xf32>
    %811 = arith.mulf %806, %810 : vector<8x8xf32>
    %812 = vector.shape_cast %811 : vector<8x8xf32> to vector<8x8x1xf32>
    %c0_373 = arith.constant 0 : index
    %c0_374 = arith.constant 0 : index
    %c0_375 = arith.constant 0 : index
    %813 = vector.load %arg22[%c0_373, %c0_374, %c0_375] : memref<8x8x128xf32, #tpu.memory_space<vmem>>, vector<8x8x128xf32>
    %814 = vector.broadcast %812 : vector<8x8x1xf32> to vector<8x8x128xf32>
    %815 = arith.mulf %814, %813 : vector<8x8x128xf32>
    %cst_376 = arith.constant dense<0.000000e+00> : vector<8x128xf32>
    %816 = vector.multi_reduction <add>, %815, %cst_376 [0] : vector<8x8x128xf32> to vector<8x128xf32>
    %c0_377 = arith.constant 0 : index
    %c0_378 = arith.constant 0 : index
    %817 = vector.load %arg16[%c0_377, %c0_378] : memref<128x128xf32, #tpu.memory_space<vmem>>, vector<128x128xf32>
    %cst_379 = arith.constant dense<0.000000e+00> : vector<8x128xf32>
    %818 = tpu.matmul %816, %817, %cst_379 {dimension_numbers = #tpu.dot_dimension_numbers<[1], [0], [0], [1], [0, 0, 1, 1], [], []>} : vector<8x128xf32>, vector<128x128xf32>, vector<8x128xf32> -> vector<8x128xf32>
    %c0_380 = arith.constant 0 : index
    %c0_381 = arith.constant 0 : index
    %819 = vector.load %arg17[%c0_380, %c0_381] : memref<128x128xf32, #tpu.memory_space<vmem>>, vector<128x128xf32>
    %cst_382 = arith.constant dense<0.000000e+00> : vector<8x128xf32>
    %820 = tpu.matmul %792, %819, %cst_382 {dimension_numbers = #tpu.dot_dimension_numbers<[1], [0], [0], [1], [0, 0, 1, 1], [], []>} : vector<8x128xf32>, vector<128x128xf32>, vector<8x128xf32> -> vector<8x128xf32>
    %821 = arith.addf %818, %820 : vector<8x128xf32>
    %822 = math.tanh %821 : vector<8x128xf32>
    %c32_383 = arith.constant 32 : index
    %c0_384 = arith.constant 0 : index
    %823 = vector.load %arg25[%c32_383, %c0_384] : memref<40x128xf32, #tpu.memory_space<vmem>>, vector<8x128xf32>
    tpu.vector_store %arg25[%c32_383, %c0_384], %822 {strides = array<i32>} : memref<40x128xf32, #tpu.memory_space<vmem>>, vector<8x128xf32>,
    %c0_385 = arith.constant 0 : index
    %c0_386 = arith.constant 0 : index
    %824 = vector.load %arg25[%c0_385, %c0_386] : memref<40x128xf32, #tpu.memory_space<vmem>>, vector<40x128xf32>
    %c0_387 = arith.constant 0 : index
    %c0_388 = arith.constant 0 : index
    %825 = vector.load %arg18[%c0_387, %c0_388] : memref<128x256xf32, #tpu.memory_space<vmem>>, vector<128x256xf32>
    %cst_389 = arith.constant dense<0.000000e+00> : vector<40x256xf32>
    %826 = tpu.matmul %824, %825, %cst_389 {dimension_numbers = #tpu.dot_dimension_numbers<[1], [0], [0], [1], [0, 0, 1, 1], [], []>} : vector<40x128xf32>, vector<128x256xf32>, vector<40x256xf32> -> vector<40x256xf32>
    %c0_390 = arith.constant 0 : index
    %c0_391 = arith.constant 0 : index
    %827 = vector.load %arg19[%c0_390, %c0_391] : memref<1x256xf32, #tpu.memory_space<vmem>>, vector<1x256xf32>
    %828 = vector.broadcast %827 : vector<1x256xf32> to vector<40x256xf32>
    %829 = arith.addf %826, %828 : vector<40x256xf32>
    %cst_392 = arith.constant dense<0xFF800000> : vector<40xf32>
    %830 = vector.multi_reduction <maximumf>, %829, %cst_392 [1] : vector<40x256xf32> to vector<40xf32>
    %831 = vector.shape_cast %830 : vector<40xf32> to vector<40x1xf32>
    %832 = vector.broadcast %831 : vector<40x1xf32> to vector<40x256xf32>
    %833 = arith.subf %829, %832 : vector<40x256xf32>
    %834 = math.exp %833 : vector<40x256xf32>
    %cst_393 = arith.constant dense<0.000000e+00> : vector<40xf32>
    %835 = vector.multi_reduction <add>, %834, %cst_393 [1] : vector<40x256xf32> to vector<40xf32>
    %836 = vector.shape_cast %835 : vector<40xf32> to vector<40x1xf32>
    %837 = math.log %836 : vector<40x1xf32>
    %838 = arith.addf %831, %837 : vector<40x1xf32>
    %839 = vector.broadcast %838 : vector<40x1xf32> to vector<40x256xf32>
    %840 = arith.subf %829, %839 : vector<40x256xf32>
    %c0_394 = arith.constant 0 : index
    %c0_395 = arith.constant 0 : index
    %841 = vector.load %arg5[%c0_394, %c0_395] : memref<40x256xf32, #tpu.memory_space<vmem>>, vector<40x256xf32>
    %842 = arith.mulf %840, %841 : vector<40x256xf32>
    %cst_396 = arith.constant dense<0.000000e+00> : vector<40xf32>
    %843 = vector.multi_reduction <add>, %842, %cst_396 [1] : vector<40x256xf32> to vector<40xf32>
    %844 = vector.shape_cast %843 : vector<40xf32> to vector<40x1xf32>
    %cst_397 = arith.constant 0.000000e+00 : f32
    %845 = vector.broadcast %cst_397 : f32 to vector<8x1xf32>
    %846 = vector.extract_strided_slice %844 {offsets = [0, 0], sizes = [8, 1], strides = [1, 1]} : vector<40x1xf32> to vector<8x1xf32>
    %847 = arith.addf %845, %846 : vector<8x1xf32>
    %848 = vector.extract_strided_slice %844 {offsets = [8, 0], sizes = [8, 1], strides = [1, 1]} : vector<40x1xf32> to vector<8x1xf32>
    %849 = arith.addf %847, %848 : vector<8x1xf32>
    %850 = vector.extract_strided_slice %844 {offsets = [16, 0], sizes = [8, 1], strides = [1, 1]} : vector<40x1xf32> to vector<8x1xf32>
    %851 = arith.addf %849, %850 : vector<8x1xf32>
    %852 = vector.extract_strided_slice %844 {offsets = [24, 0], sizes = [8, 1], strides = [1, 1]} : vector<40x1xf32> to vector<8x1xf32>
    %853 = arith.addf %851, %852 : vector<8x1xf32>
    %854 = vector.extract_strided_slice %844 {offsets = [32, 0], sizes = [8, 1], strides = [1, 1]} : vector<40x1xf32> to vector<8x1xf32>
    %855 = arith.addf %853, %854 : vector<8x1xf32>
    %c0_398 = arith.constant 0 : index
    %c0_399 = arith.constant 0 : index
    %856 = vector.load %arg20[%c0_398, %c0_399] : memref<8x1xf32, #tpu.memory_space<vmem>>, vector<8x1xf32>
    tpu.vector_store %arg20[%c0_398, %c0_399], %855 {strides = array<i32>} : memref<8x1xf32, #tpu.memory_space<vmem>>, vector<8x1xf32>,
    return
  }
  func.func @transform_0(%arg0: i32) -> (i32, i32) {
    %c0_i32 = arith.constant 0 : i32
    %c0_i32_0 = arith.constant 0 : i32
    %c0_i32_1 = arith.constant 0 : i32
    return %c0_i32, %c0_i32_0 : i32, i32
  }
  func.func @transform_1(%arg0: i32) -> (i32, i32, i32) {
    %c0_i32 = arith.constant 0 : i32
    %c0_i32_0 = arith.constant 0 : i32
    %c0_i32_1 = arith.constant 0 : i32
    %c0_i32_2 = arith.constant 0 : i32
    return %c0_i32, %c0_i32_0, %c0_i32_1 : i32, i32, i32
  }
  func.func @transform_2(%arg0: i32) -> (i32, i32) {
    %c0_i32 = arith.constant 0 : i32
    %c0_i32_0 = arith.constant 0 : i32
    %c0_i32_1 = arith.constant 0 : i32
    return %c0_i32, %c0_i32_0 : i32, i32
  }
  func.func @transform_3(%arg0: i32) -> (i32, i32) {
    %c0_i32 = arith.constant 0 : i32
    %c0_i32_0 = arith.constant 0 : i32
    %c0_i32_1 = arith.constant 0 : i32
    return %c0_i32, %c0_i32_0 : i32, i32
  }
  func.func @transform_4(%arg0: i32) -> (i32, i32) {
    %c0_i32 = arith.constant 0 : i32
    %c0_i32_0 = arith.constant 0 : i32
    %c0_i32_1 = arith.constant 0 : i32
    return %c0_i32, %c0_i32_0 : i32, i32
  }
  func.func @transform_5(%arg0: i32) -> (i32, i32) {
    %c0_i32 = arith.constant 0 : i32
    %c0_i32_0 = arith.constant 0 : i32
    %c0_i32_1 = arith.constant 0 : i32
    return %c0_i32, %c0_i32_0 : i32, i32
  }
  func.func @transform_6(%arg0: i32) -> (i32, i32) {
    %c0_i32 = arith.constant 0 : i32
    %c0_i32_0 = arith.constant 0 : i32
    %c0_i32_1 = arith.constant 0 : i32
    return %c0_i32, %c0_i32_0 : i32, i32
  }
  func.func @transform_7(%arg0: i32) -> (i32, i32) {
    %c0_i32 = arith.constant 0 : i32
    %c0_i32_0 = arith.constant 0 : i32
    %c0_i32_1 = arith.constant 0 : i32
    return %c0_i32, %c0_i32_0 : i32, i32
  }
  func.func @transform_8(%arg0: i32) -> (i32, i32) {
    %c0_i32 = arith.constant 0 : i32
    %c0_i32_0 = arith.constant 0 : i32
    %c0_i32_1 = arith.constant 0 : i32
    return %c0_i32, %c0_i32_0 : i32, i32
  }
  func.func @transform_9(%arg0: i32) -> (i32, i32) {
    %c0_i32 = arith.constant 0 : i32
    %c0_i32_0 = arith.constant 0 : i32
    %c0_i32_1 = arith.constant 0 : i32
    return %c0_i32, %c0_i32_0 : i32, i32
  }
  func.func @transform_10(%arg0: i32) -> (i32, i32) {
    %c0_i32 = arith.constant 0 : i32
    %c0_i32_0 = arith.constant 0 : i32
    %c0_i32_1 = arith.constant 0 : i32
    return %c0_i32, %c0_i32_0 : i32, i32
  }
  func.func @transform_11(%arg0: i32) -> (i32, i32) {
    %c0_i32 = arith.constant 0 : i32
    %c0_i32_0 = arith.constant 0 : i32
    %c0_i32_1 = arith.constant 0 : i32
    return %c0_i32, %c0_i32_0 : i32, i32
  }
  func.func @transform_12(%arg0: i32) -> (i32, i32) {
    %c0_i32 = arith.constant 0 : i32
    %c0_i32_0 = arith.constant 0 : i32
    %c0_i32_1 = arith.constant 0 : i32
    return %c0_i32, %c0_i32_0 : i32, i32
  }
  func.func @transform_13(%arg0: i32) -> (i32, i32) {
    %c0_i32 = arith.constant 0 : i32
    %c0_i32_0 = arith.constant 0 : i32
    %c0_i32_1 = arith.constant 0 : i32
    return %c0_i32, %c0_i32_0 : i32, i32
  }
  func.func @transform_14(%arg0: i32) -> (i32, i32) {
    %c0_i32 = arith.constant 0 : i32
    %c0_i32_0 = arith.constant 0 : i32
    %c0_i32_1 = arith.constant 0 : i32
    return %c0_i32, %c0_i32_0 : i32, i32
  }
  func.func @transform_15(%arg0: i32) -> (i32, i32) {
    %c0_i32 = arith.constant 0 : i32
    %c0_i32_0 = arith.constant 0 : i32
    %c0_i32_1 = arith.constant 0 : i32
    return %c0_i32, %c0_i32_0 : i32, i32
  }
  func.func @transform_16(%arg0: i32) -> (i32, i32) {
    %c0_i32 = arith.constant 0 : i32
    %c0_i32_0 = arith.constant 0 : i32
    %c0_i32_1 = arith.constant 0 : i32
    return %c0_i32, %c0_i32_0 : i32, i32
  }
  func.func @transform_17(%arg0: i32) -> (i32, i32) {
    %c0_i32 = arith.constant 0 : i32
    %c0_i32_0 = arith.constant 0 : i32
    %c0_i32_1 = arith.constant 0 : i32
    return %c0_i32, %c0_i32_0 : i32, i32
  }
  func.func @transform_18(%arg0: i32) -> (i32, i32) {
    %c0_i32 = arith.constant 0 : i32
    %c0_i32_0 = arith.constant 0 : i32
    %c0_i32_1 = arith.constant 0 : i32
    return %c0_i32, %c0_i32_0 : i32, i32
  }
  func.func @transform_19(%arg0: i32) -> (i32, i32) {
    %c0_i32 = arith.constant 0 : i32
    %c0_i32_0 = arith.constant 0 : i32
    %c0_i32_1 = arith.constant 0 : i32
    return %c0_i32, %c0_i32_0 : i32, i32
  }
}

</mosaic_0001>

<bundles_post_ra>
// kernel: tpu_custom_call.1
= control target key start
LH: loop header
LB: loop body
LE: loop exit
PB: predicated region body
PF: predicated region fallthrough
CT: control target
= control target key end

     0   :  { %s12467_s0 = inlined_call_operand.vmem [shape: f32[64,128], index: 0, kind: input, shape index: {}]   ;;  %s12468_s1 = inlined_call_operand.vmem [shape: f32[8,8,1], index: 1, kind: input, shape index: {}]   ;;  %s12469_s2 = inlined_call_operand.vmem [shape: f32[8,8], index: 2, kind: input, shape index: {}]   ;;  %s12470_s3 = inlined_call_operand.hbm [shape: f32[40,128], index: 3, kind: input, shape index: {}]   ;;  %s12471_s4 = inlined_call_operand.hbm [shape: f32[40,256], index: 4, kind: input, shape index: {}]   ;;  %s12472_s5 = inlined_call_operand.hbm [shape: f32[128,512], index: 5, kind: input, shape index: {}]   ;;  %s12473_s6 = inlined_call_operand.hbm [shape: f32[128,512], index: 6, kind: input, shape index: {}]   ;;  %s12474_s7 = inlined_call_operand.vmem [shape: f32[1,512], index: 7, kind: input, shape index: {}]   ;;  %s12475_s8 = inlined_call_operand.hbm [shape: f32[128,128], index: 8, kind: input, shape index: {}]   ;;  %s12476_s9 = inlined_call_operand.hbm [shape: f32[128,128], index: 9, kind: input, shape index: {}]   ;;  %s12477_s10 = inlined_call_operand.hbm [shape: f32[128,128], index: 10, kind: input, shape index: {}]   ;;  %s12478_s11 = inlined_call_operand.vmem [shape: f32[1,128], index: 11, kind: input, shape index: {}]   ;;  %s12479_s12 = inlined_call_operand.hbm [shape: f32[128,512], index: 12, kind: input, shape index: {}]   ;;  %s12480_s13 = inlined_call_operand.hbm [shape: f32[128,512], index: 13, kind: input, shape index: {}]   ;;  %s12481_s14 = inlined_call_operand.vmem [shape: f32[1,512], index: 14, kind: input, shape index: {}]   ;;  %s12482_s15 = inlined_call_operand.hbm [shape: f32[128,128], index: 15, kind: input, shape index: {}]   ;;  %s12483_s16 = inlined_call_operand.hbm [shape: f32[128,128], index: 16, kind: input, shape index: {}]   ;;  %s12484_s17 = inlined_call_operand.hbm [shape: f32[128,256], index: 17, kind: input, shape index: {}]   ;;  %s12485_s18 = inlined_call_operand.vmem [shape: f32[1,256], index: 18, kind: input, shape index: {}]   ;;  %s12486_s19 = inlined_call_operand.vmem [shape: f32[8,1], index: 19, kind: output, shape index: {}]  }
   0x1   :  { %12864 = sst [smem:[#allocation175_spill]] %s12467_s0 }
   0x2   :  { %12865 = sst [smem:[#allocation176_spill]] %s12468_s1 }
   0x3   :  { %12866 = sst [smem:[#allocation177_spill]] %s12469_s2 }
   0x4   :  { %12867 = sst [smem:[#allocation178_spill]] %s12470_s3 }
   0x5   :  { %24 = vsyncpa [#allocation8], 0 }
   0x6   :  { %25 = vsyncpa [#allocation10], 0 }
   0x7   :  { %26 = vsyncpa [#allocation13], 0 }
   0x8   :  { %27 = vsyncpa [#allocation16], 0 }
   0x9   :  { %28 = vsyncpa [#allocation19], 0 }
   0xa   :  { %29 = vsyncpa [#allocation22], 0 }
   0xb   :  { %30 = vsyncpa [#allocation25], 0  ;;  %s8807_s0 = smov [#allocation9]  }
   0xc   :  { %s54_s30 = sshll.u32 %s8807_s0, 4  ;;  %s55_s30 = int_to_ptr.vmem [resolvable:$true] %s54_s30 }
   0xd   :  { %s8561_s20 = scalar_lea.vmem %s55_s30, 1280  ;;  %p8566_p1 = scmp.lt.s32.totalorder %s55_s30, %s55_s30 }
   0xe   :  { %p8562_p0 = scmp.ne.s32.totalorder %s55_s30, %s8561_s20  ;;  %p8567_p2 = scmp.lt.s32.totalorder %s8561_s20, %s8561_s20 }
  0x10   :  { %p8568_p3 = por %p8567_p2, %p8566_p1 }
  0x12   :  { %p8569_p4 = pnand %p8568_p3, %p8562_p0 }
  0x14   :  { %8572 = shalt.err (!%p8569_p4)
}
  0x15   :  { %s8808_s21 = smov 256   ;;  %s8809_s1 = smov 16  }
  0x16   :  { %60 = dma.hbm_to_vmem [thread:$0]  %s12471_s4, 1280, %s55_s30, [#allocation10], %s8808_s21, %s8808_s21, %s8809_s1  }
  0x17   :  { %s8810_s23 = smov [#allocation12]  }
  0x18   :  { %s78_s24 = sshll.u32 %s8810_s23, 4  ;;  %s79_s24 = int_to_ptr.vmem [resolvable:$true] %s78_s24 }
  0x19   :  { %s8581_s25 = scalar_lea.vmem %s79_s24, 8192  ;;  %p8586_p6 = scmp.lt.s32.totalorder %s79_s24, %s79_s24 }
  0x1a   :  { %p8582_p5 = scmp.ne.s32.totalorder %s79_s24, %s8581_s25  ;;  %p8587_p7 = scmp.lt.s32.totalorder %s8581_s25, %s8581_s25 }
  0x1c   :  { %p8588_p8 = por %p8587_p7, %p8586_p6 }
  0x1e   :  { %p8589_p9 = pnand %p8588_p8, %p8582_p5 }
  0x20   :  { %8592 = shalt.err (!%p8589_p9)
}
  0x21   :  { %s8811_s3 = smov 512   ;;  %s8812_s26 = smov 32  }
  0x22   :  { %84 = dma.hbm_to_vmem [thread:$0]  %s12473_s6, 8192, %s79_s24, [#allocation13], %s8811_s3, %s8811_s3, %s8812_s26  }
  0x23   :  { %s8813_s4 = smov [#allocation15]   ;;  %s8814_s0 = smov [#allocation18]  }
  0x24   :  { %s104_s29 = sshll.u32 %s8813_s4, 4  ;;  %s130_s30 = sshll.u32 %s8814_s0, 4  ;;  %s105_s29 = int_to_ptr.vmem [resolvable:$true] %s104_s29  ;;  %s131_s30 = int_to_ptr.vmem [resolvable:$true] %s130_s30 }
  0x25   :  { %s8601_s20 = scalar_lea.vmem %s105_s29, 2048  ;;  %p8606_p11 = scmp.lt.s32.totalorder %s105_s29, %s105_s29 }
  0x26   :  { %p8602_p10 = scmp.ne.s32.totalorder %s105_s29, %s8601_s20  ;;  %p8607_p12 = scmp.lt.s32.totalorder %s8601_s20, %s8601_s20 }
  0x28   :  { %p8608_p13 = por %p8607_p12, %p8606_p11 }
  0x2a   :  { %p8609_p0 = pnand %p8608_p13, %p8602_p10 }
  0x2c   :  { %8612 = shalt.err (!%p8609_p0)
}
  0x2d   :  { %s8815_s22 = smov 128   ;;  %s8816_s2 = smov 8  }
  0x2e   :  { %110 = dma.hbm_to_vmem [thread:$0]  %s12476_s9, 2048, %s105_s29, [#allocation16], %s8815_s22, %s8815_s22, %s8816_s2  }
  0x2f   :  { %s8621_s24 = scalar_lea.vmem %s131_s30, 8192  ;;  %p8626_p2 = scmp.lt.s32.totalorder %s131_s30, %s131_s30 }
  0x30   :  { %p8622_p1 = scmp.ne.s32.totalorder %s131_s30, %s8621_s24  ;;  %p8627_p3 = scmp.lt.s32.totalorder %s8621_s24, %s8621_s24 }
  0x32   :  { %p8628_p4 = por %p8627_p3, %p8626_p2 }
  0x34   :  { %p8629_p5 = pnand %p8628_p4, %p8622_p1 }
  0x36   :  { %8632 = shalt.err (!%p8629_p5)
}
  0x37   :  { %136 = dma.hbm_to_vmem [thread:$0]  %s12479_s12, 8192, %s131_s30, [#allocation19], %s8811_s3, %s8811_s3, %s8812_s26  }
  0x38   :  { %s8817_s28 = smov [#allocation21]   ;;  %s8818_s0 = smov [#allocation7]  }
  0x39   :  { %s156_s4 = sshll.u32 %s8817_s28, 4  ;;  %s42_s20 = sshll.u32 %s8818_s0, 4  ;;  %s157_s4 = int_to_ptr.vmem [resolvable:$true] %s156_s4  ;;  %s43_s20 = int_to_ptr.vmem [resolvable:$true] %s42_s20 }
  0x3a   :  { %s8641_s9 = scalar_lea.vmem %s157_s4, 2048  ;;  %p8646_p7 = scmp.lt.s32.totalorder %s157_s4, %s157_s4 }
  0x3b   :  { %p8642_p6 = scmp.ne.s32.totalorder %s157_s4, %s8641_s9  ;;  %p8647_p8 = scmp.lt.s32.totalorder %s8641_s9, %s8641_s9 }
  0x3d   :  { %p8648_p9 = por %p8647_p8, %p8646_p7 }
  0x3f   :  { %p8649_p10 = pnand %p8648_p9, %p8642_p6 }
  0x41   :  { %8652 = shalt.err (!%p8649_p10)
}
  0x42   :  { %162 = dma.hbm_to_vmem [thread:$0]  %s12482_s15, 2048, %s157_s4, [#allocation22], %s8815_s22, %s8815_s22, %s8816_s2  }
  0x43   :  { %s8661_s12 = scalar_lea.vmem %s43_s20, 640  ;;  %p8666_p12 = scmp.lt.s32.totalorder %s43_s20, %s43_s20 }
  0x44   :  { %p8662_p11 = scmp.ne.s32.totalorder %s43_s20, %s8661_s12  ;;  %p8667_p13 = scmp.lt.s32.totalorder %s8661_s12, %s8661_s12 }
  0x46   :  { %p8668_p0 = por %p8667_p13, %p8666_p12 }
  0x48   :  { %p8669_p1 = pnand %p8668_p0, %p8662_p11 }
  0x4a   :  { %8672 = shalt.err (!%p8669_p1)
}
  0x4b   :  { %s12868_s24 = sld [smem:[#allocation178_spill]]  ;;  %s8819_s25 = smov [#allocation11]  }
  0x4c   :  { %s66_s27 = sshll.u32 %s8819_s25, 4  ;;  %s8820_s28 = smov [#allocation14]   ;;  %s67_s27 = int_to_ptr.vmem [resolvable:$true] %s66_s27 }
  0x4d   :  { %s92_s0 = sshll.u32 %s8820_s28, 4  ;;  %s8681_s15 = scalar_lea.vmem %s67_s27, 8192  ;;  %s93_s0 = int_to_ptr.vmem [resolvable:$true] %s92_s0 }
  0x4e   :  { %p8682_p2 = scmp.ne.s32.totalorder %s67_s27, %s8681_s15  ;;  %p8686_p3 = scmp.lt.s32.totalorder %s67_s27, %s67_s27 }
  0x4f   :  { %p8687_p4 = scmp.lt.s32.totalorder %s8681_s15, %s8681_s15 }
  0x51   :  { %48 = dma.hbm_to_vmem [thread:$0]  %s12868_s24, 640, %s43_s20, [#allocation8], %s8815_s22, %s8815_s22, %s8816_s2  }
  0x52   :  { %p8688_p5 = por %p8687_p4, %p8686_p3 }
  0x54   :  { %p8689_p6 = pnand %p8688_p5, %p8682_p2 }
  0x56   :  { %8692 = shalt.err (!%p8689_p6)
}
  0x57   :  { %72 = dma.hbm_to_vmem [thread:$0]  %s12472_s5, 8192, %s67_s27, [#allocation10], %s8811_s3, %s8811_s3, %s8812_s26  }
  0x58   :  { %s8701_s20 = scalar_lea.vmem %s93_s0, 2048  ;;  %p8706_p8 = scmp.lt.s32.totalorder %s93_s0, %s93_s0 }
  0x59   :  { %p8702_p7 = scmp.ne.s32.totalorder %s93_s0, %s8701_s20  ;;  %p8707_p9 = scmp.lt.s32.totalorder %s8701_s20, %s8701_s20 }
  0x5b   :  { %p8708_p10 = por %p8707_p9, %p8706_p8 }
  0x5d   :  { %p8709_p11 = pnand %p8708_p10, %p8702_p7 }
  0x5f   :  { %8712 = shalt.err (!%p8709_p11)
}
  0x60   :  { %98 = dma.hbm_to_vmem [thread:$0]  %s12475_s8, 2048, %s93_s0, [#allocation13], %s8815_s22, %s8815_s22, %s8816_s2  }
  0x61   :  { %s8821_s12 = smov [#allocation17]   ;;  %s8822_s6 = smov [#allocation20]  }
  0x62   :  { %s116_s30 = sshll.u32 %s8821_s12, 4  ;;  %s142_s24 = sshll.u32 %s8822_s6, 4  ;;  %s117_s30 = int_to_ptr.vmem [resolvable:$true] %s116_s30  ;;  %s143_s24 = int_to_ptr.vmem [resolvable:$true] %s142_s24 }
  0x63   :  { %s8721_s5 = scalar_lea.vmem %s117_s30, 2048  ;;  %p8726_p13 = scmp.lt.s32.totalorder %s117_s30, %s117_s30 }
  0x64   :  { %p8722_p12 = scmp.ne.s32.totalorder %s117_s30, %s8721_s5  ;;  %p8727_p0 = scmp.lt.s32.totalorder %s8721_s5, %s8721_s5 }
  0x66   :  { %p8728_p1 = por %p8727_p0, %p8726_p13 }
  0x68   :  { %p8729_p2 = pnand %p8728_p1, %p8722_p12 }
  0x6a   :  { %8732 = shalt.err (!%p8729_p2)
}
  0x6b   :  { %122 = dma.hbm_to_vmem [thread:$0]  %s12477_s10, 2048, %s117_s30, [#allocation16], %s8815_s22, %s8815_s22, %s8816_s2  }
  0x6c   :  { %s8741_s8 = scalar_lea.vmem %s143_s24, 8192  ;;  %p8746_p4 = scmp.lt.s32.totalorder %s143_s24, %s143_s24 }
  0x6d   :  { %p8742_p3 = scmp.ne.s32.totalorder %s143_s24, %s8741_s8  ;;  %p8747_p5 = scmp.lt.s32.totalorder %s8741_s8, %s8741_s8 }
  0x6f   :  { %p8748_p6 = por %p8747_p5, %p8746_p4 }
  0x71   :  { %p8749_p7 = pnand %p8748_p6, %p8742_p3 }
  0x73   :  { %8752 = shalt.err (!%p8749_p7)
}
  0x74   :  { %148 = dma.hbm_to_vmem [thread:$0]  %s12480_s13, 8192, %s143_s24, [#allocation19], %s8811_s3, %s8811_s3, %s8812_s26  }
  0x75   :  { %s8823_s15 = smov [#allocation23]   ;;  %s8824_s9 = smov [#allocation24]  }
  0x76   :  { %s168_s4 = sshll.u32 %s8823_s15, 4  ;;  %s180_s20 = sshll.u32 %s8824_s9, 4  ;;  %s169_s4 = int_to_ptr.vmem [resolvable:$true] %s168_s4  ;;  %s181_s20 = int_to_ptr.vmem [resolvable:$true] %s180_s20 }
  0x77   :  { %s8761_s10 = scalar_lea.vmem %s169_s4, 2048  ;;  %p8766_p9 = scmp.lt.s32.totalorder %s169_s4, %s169_s4 }
  0x78   :  { %p8762_p8 = scmp.ne.s32.totalorder %s169_s4, %s8761_s10  ;;  %p8767_p10 = scmp.lt.s32.totalorder %s8761_s10, %s8761_s10 }
  0x7a   :  { %p8768_p11 = por %p8767_p10, %p8766_p9 }
  0x7c   :  { %p8769_p12 = pnand %p8768_p11, %p8762_p8 }
  0x7e   :  { %8772 = shalt.err (!%p8769_p12)
}
  0x7f   :  { %174 = dma.hbm_to_vmem [thread:$0]  %s12483_s16, 2048, %s169_s4, [#allocation22], %s8815_s22, %s8815_s22, %s8816_s2  }
  0x80   :  { %s8781_s13 = scalar_lea.vmem %s181_s20, 4096  ;;  %p8786_p0 = scmp.lt.s32.totalorder %s181_s20, %s181_s20 }
  0x81   :  { %p8782_p13 = scmp.ne.s32.totalorder %s181_s20, %s8781_s13  ;;  %p8787_p1 = scmp.lt.s32.totalorder %s8781_s13, %s8781_s13 }
  0x83   :  { %p8788_p2 = por %p8787_p1, %p8786_p0 }
  0x85   :  { %p8789_p3 = pnand %p8788_p2, %p8782_p13 }
  0x87   :  { %8792 = shalt.err (!%p8789_p3)
}
  0x88   :  { %186 = dma.hbm_to_vmem [thread:$0]  %s12484_s17, 4096, %s181_s20, [#allocation25], %s8808_s21, %s8808_s21, %s8809_s1  }
  0x89   :  { %8793 = dma.done.wait [#allocation8], 640  }
  0x8a   :  { %8794 = vsyncadd [#allocation8], 4294966656 }
  0x8b   :  { %8795 = dma.done.wait [#allocation10], 9472  }
  0x8c   :  { %8796 = vsyncadd [#allocation10], 4294957824 }
  0x8d   :  { %8797 = dma.done.wait [#allocation13], 10240  }
  0x8e   :  { %8798 = vsyncadd [#allocation13], 4294957056 }
  0x8f   :  { %8799 = dma.done.wait [#allocation16], 4096  }
  0x90   :  { %8800 = vsyncadd [#allocation16], 4294963200 }
  0x91   :  { %8801 = dma.done.wait [#allocation19], 16384  }
  0x92   :  { %8802 = vsyncadd [#allocation19], 4294950912 }
  0x93   :  { %8803 = dma.done.wait [#allocation22], 4096  }
  0x94   :  { %8804 = vsyncadd [#allocation22], 4294963200 }
  0x95   :  { %8805 = dma.done.wait [#allocation25], 4096  }
  0x96   :  { %8806 = vsyncadd [#allocation25], 4294963200  ;;  %v12489_v0 = vmov 0.0   ;;  %v8826_v1 = vmov 0   ;;  %v294_v2 = vld [vmem:[#allocation11 + $0x1e8] sm:$0xff]  ;;  %v296_v3 = vld [vmem:[#allocation11 + $0x1f8] sm:$0xff] }
  0x97   :  { %383 = vmatprep.mubr.f32.mxu0 %v12489_v0  ;;  %496 = vmatprep.mubr.f32.mxu1 %v12489_v0  ;;  %v293_v4 = vld [vmem:[#allocation11 + $0x1e0] sm:$0xff]  ;;  %v295_v5 = vld [vmem:[#allocation11 + $0x1f0] sm:$0xff]  ;;  %v290_v6 = vld [vmem:[#allocation11 + $0x1c8] sm:$0xff]  ;;  %s12869_s21 = sld [smem:[#allocation175_spill]]  ;;  %vm8827_vm0 = vmmov 0   ;;  %vm3787_vm1 = vcmask 1041409  }
  0x98   :  { %8283 = vset.pattern.permute.xlu0 %v8826_v1  ;;  %8284 = vset.pattern.permute.xlu1 %v8826_v1  ;;  %v292_v7 = vld [vmem:[#allocation11 + $0x1d8] sm:$0xff]  ;;  %v289_v8 = vld [vmem:[#allocation11 + $0x1c0] sm:$0xff]  ;;  %v291_v9 = vld [vmem:[#allocation11 + $0x1d0] sm:$0xff]  ;;  %s12893_s20 = sld [smem:[#allocation176_spill]]  ;;  %vm3789_vm2 = vcmask 1042434   ;;  %vm3791_vm3 = vcmask 1043459  }
  0x99   :  { %319 = vmatprep.subr.mxu0 %v294_v2  ;;  %432 = vmatprep.subr.mxu1 %v296_v3  ;;  %v286_v10 = vld [vmem:[#allocation11 + $0x1a8] sm:$0xff]  ;;  %v288_v11 = vld [vmem:[#allocation11 + $0x1b8] sm:$0xff]  ;;  %v285_v12 = vld [vmem:[#allocation11 + $0x1a0] sm:$0xff]  ;;  %vm3793_vm4 = vcmask 1044484   ;;  %vm3795_vm5 = vcmask 1045509   ;;  %s13117_s8 = sld [smem:[#allocation177_spill]] }
  0x9a   :  { %320 = vmatpush1.msra.mxu0 %v293_v4  ;;  %433 = vmatpush1.msra.mxu1 %v295_v5  ;;  %v287_v13 = vld [vmem:[#allocation11 + $0x1b0] sm:$0xff]  ;;  %v282_v14 = vld [vmem:[#allocation11 + $0x188] sm:$0xff]  ;;  %v284_v15 = vld [vmem:[#allocation11 + $0x198] sm:$0xff]  ;;  %vm3797_vm6 = vcmask 1046534   ;;  %vm3799_vm7 = vcmask 1047559   ;;  %vm3803_vm9 = vcmask 64512  }
  0x9b   :  { %321 = vmatprep.subr.mxu0 %v290_v6  ;;  %434 = vmatprep.subr.mxu1 %v292_v7  ;;  %v281_v16 = vld [vmem:[#allocation11 + $0x180] sm:$0xff]  ;;  %v283_v17 = vld [vmem:[#allocation11 + $0x190] sm:$0xff]  ;;  %v278_v18 = vld [vmem:[#allocation11 + $0x168] sm:$0xff]  ;;  %vm7549_vm10 = vcmask 7168  }
  0x9c   :  { %322 = vmatpush1.msra.mxu0 %v289_v8  ;;  %435 = vmatpush1.msra.mxu1 %v291_v9  ;;  %v280_v19 = vld [vmem:[#allocation11 + $0x178] sm:$0xff]  ;;  %v277_v20 = vld [vmem:[#allocation11 + $0x160] sm:$0xff]  ;;  %v279_v21 = vld [vmem:[#allocation11 + $0x170] sm:$0xff] }
  0x9d   :  { %323 = vmatprep.subr.mxu0 %v286_v10  ;;  %436 = vmatprep.subr.mxu1 %v288_v11  ;;  %v274_v22 = vld [vmem:[#allocation11 + $0x148] sm:$0xff]  ;;  %v276_v23 = vld [vmem:[#allocation11 + $0x158] sm:$0xff]  ;;  %v273_v24 = vld [vmem:[#allocation11 + $0x140] sm:$0xff] }
  0x9e   :  { %324 = vmatpush1.msra.mxu0 %v285_v12  ;;  %437 = vmatpush1.msra.mxu1 %v287_v13  ;;  %v275_v25 = vld [vmem:[#allocation11 + $0x150] sm:$0xff]  ;;  %v270_v26 = vld [vmem:[#allocation11 + $0x128] sm:$0xff]  ;;  %v272_v27 = vld [vmem:[#allocation11 + $0x138] sm:$0xff] }
  0x9f   :  { %325 = vmatprep.subr.mxu0 %v282_v14  ;;  %438 = vmatprep.subr.mxu1 %v284_v15  ;;  %v269_v28 = vld [vmem:[#allocation11 + $0x120] sm:$0xff]  ;;  %v271_v29 = vld [vmem:[#allocation11 + $0x130] sm:$0xff]  ;;  %v266_v30 = vld [vmem:[#allocation11 + $0x108] sm:$0xff] }
  0xa0   :  { %326 = vmatpush1.msra.mxu0 %v281_v16  ;;  %439 = vmatpush1.msra.mxu1 %v283_v17  ;;  %v268_v31 = vld [vmem:[#allocation11 + $0x118] sm:$0xff]  ;;  %v265_v32 = vld [vmem:[#allocation11 + $0x100] sm:$0xff]  ;;  %v267_v33 = vld [vmem:[#allocation11 + $0x110] sm:$0xff] }
  0xa1   :  { %327 = vmatprep.subr.mxu0 %v278_v18  ;;  %440 = vmatprep.subr.mxu1 %v280_v19  ;;  %v262_v34 = vld [vmem:[#allocation11 + $0xe8] sm:$0xff]  ;;  %v264_v35 = vld [vmem:[#allocation11 + $0xf8] sm:$0xff]  ;;  %v261_v36 = vld [vmem:[#allocation11 + $0xe0] sm:$0xff] }
  0xa2   :  { %328 = vmatpush1.msra.mxu0 %v277_v20  ;;  %441 = vmatpush1.msra.mxu1 %v279_v21  ;;  %v263_v37 = vld [vmem:[#allocation11 + $0xf0] sm:$0xff]  ;;  %v258_v38 = vld [vmem:[#allocation11 + $0xc8] sm:$0xff]  ;;  %v260_v39 = vld [vmem:[#allocation11 + $0xd8] sm:$0xff] }
  0xa3   :  { %329 = vmatprep.subr.mxu0 %v274_v22  ;;  %442 = vmatprep.subr.mxu1 %v276_v23  ;;  %v257_v40 = vld [vmem:[#allocation11 + $0xc0] sm:$0xff]  ;;  %v259_v41 = vld [vmem:[#allocation11 + $0xd0] sm:$0xff]  ;;  %v254_v42 = vld [vmem:[#allocation11 + $0xa8] sm:$0xff] }
  0xa4   :  { %330 = vmatpush1.msra.mxu0 %v273_v24  ;;  %443 = vmatpush1.msra.mxu1 %v275_v25  ;;  %v256_v43 = vld [vmem:[#allocation11 + $0xb8] sm:$0xff]  ;;  %v253_v44 = vld [vmem:[#allocation11 + $0xa0] sm:$0xff]  ;;  %v255_v45 = vld [vmem:[#allocation11 + $0xb0] sm:$0xff] }
  0xa5   :  { %331 = vmatprep.subr.mxu0 %v270_v26  ;;  %444 = vmatprep.subr.mxu1 %v272_v27  ;;  %v250_v46 = vld [vmem:[#allocation11 + $0x88] sm:$0xff]  ;;  %v252_v47 = vld [vmem:[#allocation11 + $0x98] sm:$0xff]  ;;  %v249_v48 = vld [vmem:[#allocation11 + $0x80] sm:$0xff] }
  0xa6   :  { %332 = vmatpush1.msra.mxu0 %v269_v28  ;;  %445 = vmatpush1.msra.mxu1 %v271_v29  ;;  %v251_v49 = vld [vmem:[#allocation11 + $0x90] sm:$0xff]  ;;  %v246_v50 = vld [vmem:[#allocation11 + $0x68] sm:$0xff]  ;;  %v248_v51 = vld [vmem:[#allocation11 + $0x78] sm:$0xff] }
  0xa7   :  { %333 = vmatprep.subr.mxu0 %v266_v30  ;;  %446 = vmatprep.subr.mxu1 %v268_v31  ;;  %v245_v52 = vld [vmem:[#allocation11 + $0x60] sm:$0xff]  ;;  %v247_v53 = vld [vmem:[#allocation11 + $0x70] sm:$0xff]  ;;  %v242_v54 = vld [vmem:[#allocation11 + $0x48] sm:$0xff] }
  0xa8   :  { %334 = vmatpush1.msra.mxu0 %v265_v32  ;;  %447 = vmatpush1.msra.mxu1 %v267_v33  ;;  %v244_v55 = vld [vmem:[#allocation11 + $0x58] sm:$0xff]  ;;  %v241_v56 = vld [vmem:[#allocation11 + $0x40] sm:$0xff]  ;;  %v243_v57 = vld [vmem:[#allocation11 + $0x50] sm:$0xff] }
  0xa9   :  { %335 = vmatprep.subr.mxu0 %v262_v34  ;;  %448 = vmatprep.subr.mxu1 %v264_v35  ;;  %v238_v58 = vld [vmem:[#allocation11 + $0x28] sm:$0xff]  ;;  %v240_v59 = vld [vmem:[#allocation11 + $0x38] sm:$0xff]  ;;  %v237_v60 = vld [vmem:[#allocation11 + $0x20] sm:$0xff] }
  0xaa   :  { %336 = vmatpush1.msra.mxu0 %v261_v36  ;;  %449 = vmatpush1.msra.mxu1 %v263_v37  ;;  %v239_v61 = vld [vmem:[#allocation11 + $0x30] sm:$0xff]  ;;  %v234_v62 = vld [vmem:[#allocation11 + $0x8] sm:$0xff]  ;;  %v236_v63 = vld [vmem:[#allocation11 + $0x18] sm:$0xff] }
  0xab   :  { %337 = vmatprep.subr.mxu0 %v258_v38  ;;  %450 = vmatprep.subr.mxu1 %v260_v39  ;;  %v233_v1 = vld [vmem:[#allocation11] sm:$0xff]  ;;  %v235_v2 = vld [vmem:[#allocation11 + $0x10] sm:$0xff]  ;;  %v225_v3 = vld [vmem:[%s12869_s21] sm:$0xff] }
  0xac   :  { %338 = vmatpush1.msra.mxu0 %v257_v40  ;;  %451 = vmatpush1.msra.mxu1 %v259_v41  ;;  %v9005_v4 = vld [vmem:[#allocation12 + $0x1e8] sm:$0xff]  ;;  %v9007_v5 = vld [vmem:[#allocation12 + $0x1f8] sm:$0xff]  ;;  %v9009_v6 = vld [vmem:[#allocation12 + $0x1e0] sm:$0xff] }
  0xad   :  { %339 = vmatprep.subr.mxu0 %v254_v42  ;;  %452 = vmatprep.subr.mxu1 %v256_v43  ;;  %v9011_v7 = vld [vmem:[#allocation12 + $0x1f0] sm:$0xff]  ;;  %v9013_v8 = vld [vmem:[#allocation12 + $0x1c8] sm:$0xff]  ;;  %v9015_v9 = vld [vmem:[#allocation12 + $0x1d8] sm:$0xff] }
  0xae   :  { %340 = vmatpush1.msra.mxu0 %v253_v44  ;;  %453 = vmatpush1.msra.mxu1 %v255_v45  ;;  %v9021_v10 = vld [vmem:[#allocation12 + $0x1c0] sm:$0xff]  ;;  %v9023_v11 = vld [vmem:[#allocation12 + $0x1d0] sm:$0xff]  ;;  %v9032_v13 = vld [vmem:[#allocation12 + $0x1a8] sm:$0xff] }
  0xaf   :  { %341 = vmatprep.subr.mxu0 %v250_v46  ;;  %454 = vmatprep.subr.mxu1 %v252_v47  ;;  %v226_v12 = vld [vmem:[%s12869_s21 + $0x8] sm:$0xff]  ;;  %v9034_v14 = vld [vmem:[#allocation12 + $0x1b8] sm:$0xff]  ;;  %v9038_v15 = vld [vmem:[#allocation12 + $0x1a0] sm:$0xff] }
  0xb0   :  { %342 = vmatpush1.msra.mxu0 %v249_v48  ;;  %455 = vmatpush1.msra.mxu1 %v251_v49  ;;  %v9040_v16 = vld [vmem:[#allocation12 + $0x1b0] sm:$0xff]  ;;  %v9042_v17 = vld [vmem:[#allocation12 + $0x188] sm:$0xff]  ;;  %v9044_v18 = vld [vmem:[#allocation12 + $0x198] sm:$0xff] }
  0xb1   :  { %343 = vmatprep.subr.mxu0 %v246_v50  ;;  %456 = vmatprep.subr.mxu1 %v248_v51  ;;  %v9050_v19 = vld [vmem:[#allocation12 + $0x180] sm:$0xff]  ;;  %v9052_v20 = vld [vmem:[#allocation12 + $0x190] sm:$0xff]  ;;  %v227_v21 = vld [vmem:[%s12869_s21 + $0x10] sm:$0xff] }
  0xb2   :  { %344 = vmatpush1.msra.mxu0 %v245_v52  ;;  %457 = vmatpush1.msra.mxu1 %v247_v53  ;;  %v9061_v22 = vld [vmem:[#allocation12 + $0x168] sm:$0xff]  ;;  %v9063_v23 = vld [vmem:[#allocation12 + $0x178] sm:$0xff]  ;;  %v9067_v24 = vld [vmem:[#allocation12 + $0x160] sm:$0xff] }
  0xb3   :  { %345 = vmatprep.subr.mxu0 %v242_v54  ;;  %458 = vmatprep.subr.mxu1 %v244_v55  ;;  %v9069_v25 = vld [vmem:[#allocation12 + $0x170] sm:$0xff]  ;;  %v9071_v26 = vld [vmem:[#allocation12 + $0x148] sm:$0xff]  ;;  %v9073_v27 = vld [vmem:[#allocation12 + $0x158] sm:$0xff] }
  0xb4   :  { %346 = vmatpush1.msra.mxu0 %v241_v56  ;;  %459 = vmatpush1.msra.mxu1 %v243_v57  ;;  %v9079_v28 = vld [vmem:[#allocation12 + $0x140] sm:$0xff]  ;;  %v9081_v29 = vld [vmem:[#allocation12 + $0x150] sm:$0xff]  ;;  %v9090_v31 = vld [vmem:[#allocation12 + $0x128] sm:$0xff] }
  0xb5   :  { %347 = vmatprep.subr.mxu0 %v238_v58  ;;  %460 = vmatprep.subr.mxu1 %v240_v59  ;;  %v228_v30 = vld [vmem:[%s12869_s21 + $0x18] sm:$0xff]  ;;  %v9092_v32 = vld [vmem:[#allocation12 + $0x138] sm:$0xff]  ;;  %v9098_v34 = vld [vmem:[#allocation12 + $0x130] sm:$0xff] }
  0xb6   :  { %348 = vmatpush1.msra.mxu0 %v237_v60  ;;  %461 = vmatpush1.msra.mxu1 %v239_v61  ;;  %v9096_v33 = vld [vmem:[#allocation12 + $0x120] sm:$0xff]  ;;  %v9100_v35 = vld [vmem:[#allocation12 + $0x108] sm:$0xff]  ;;  %v9102_v36 = vld [vmem:[#allocation12 + $0x118] sm:$0xff] }
  0xb7   :  { %349 = vmatprep.subr.mxu0 %v234_v62  ;;  %462 = vmatprep.subr.mxu1 %v236_v63  ;;  %12870 = vst [vmem:[#allocation33_spill] sm:$0xff] %v9096_v33  ;;  %v9108_v37 = vld [vmem:[#allocation12 + $0x100] sm:$0xff]  ;;  %v9110_v38 = vld [vmem:[#allocation12 + $0x110] sm:$0xff]  ;;  %v229_v39 = vld [vmem:[%s12869_s21 + $0x20] sm:$0xff] }
  0xb8   :  { %350 = vmatpush1.msra.mxu0 %v233_v1  ;;  %463 = vmatpush1.msra.mxu1 %v235_v2  ;;  %v9119_v40 = vld [vmem:[#allocation12 + $0xe8] sm:$0xff]  ;;  %v9121_v41 = vld [vmem:[#allocation12 + $0xf8] sm:$0xff]  ;;  %v9125_v42 = vld [vmem:[#allocation12 + $0xe0] sm:$0xff] }
  0xb9   :  { %384 = vmatmul.mubr.f32.vlgmr.msra.gmra.mxu0 %v225_v3  ;;  %497 = vmatmul.mubr.f32.vlgmr.msra.gmra.mxu1 %v225_v3  ;;  %12871 = vst [vmem:[#allocation34_spill] sm:$0xff] %v9121_v41  ;;  %v9127_v43 = vld [vmem:[#allocation12 + $0xf0] sm:$0xff]  ;;  %v9129_v44 = vld [vmem:[#allocation12 + $0xc8] sm:$0xff]  ;;  %v9131_v45 = vld [vmem:[#allocation12 + $0xd8] sm:$0xff] }
  0xba   :  { %645 = vmatprep.subr.mxu0 %v9005_v4  ;;  %716 = vmatprep.subr.mxu1 %v9007_v5  ;;  %v9137_v46 = vld [vmem:[#allocation12 + $0xc0] sm:$0xff]  ;;  %v9139_v47 = vld [vmem:[#allocation12 + $0xd0] sm:$0xff]  ;;  %v9148_v49 = vld [vmem:[#allocation12 + $0xa8] sm:$0xff] }
  0xbb   :  { %646 = vmatpush1.msra.mxu0 %v9009_v6  ;;  %717 = vmatpush1.msra.mxu1 %v9011_v7  ;;  %v230_v48 = vld [vmem:[%s12869_s21 + $0x28] sm:$0xff]  ;;  %v9150_v50 = vld [vmem:[#allocation12 + $0xb8] sm:$0xff]  ;;  %v9154_v51 = vld [vmem:[#allocation12 + $0xa0] sm:$0xff] }
  0xbc   :  { %647 = vmatprep.subr.mxu0 %v9013_v8  ;;  %718 = vmatprep.subr.mxu1 %v9015_v9  ;;  %v9156_v52 = vld [vmem:[#allocation12 + $0xb0] sm:$0xff]  ;;  %v9158_v53 = vld [vmem:[#allocation12 + $0x88] sm:$0xff]  ;;  %v9160_v54 = vld [vmem:[#allocation12 + $0x98] sm:$0xff] }
  0xbd   :  { %389 = vmatprep.mubr.f32.mxu0 %v12489_v0  ;;  %502 = vmatprep.mubr.f32.mxu1 %v12489_v0  ;;  %12872 = vst [vmem:[#allocation35_spill] sm:$0xff] %v9158_v53  ;;  %12873 = vst [vmem:[#allocation36_spill] sm:$0xff] %v9160_v54  ;;  %v9166_v55 = vld [vmem:[#allocation12 + $0x80] sm:$0xff]  ;;  %v9168_v56 = vld [vmem:[#allocation12 + $0x90] sm:$0xff] }
  0xbe   :  { %648 = vmatpush1.msra.mxu0 %v9021_v10  ;;  %719 = vmatpush1.msra.mxu1 %v9023_v11  ;;  %12874 = vst [vmem:[#allocation37_spill] sm:$0xff] %v9166_v55  ;;  %12875 = vst [vmem:[#allocation38_spill] sm:$0xff] %v9168_v56  ;;  %v231_v57 = vld [vmem:[%s12869_s21 + $0x30] sm:$0xff]  ;;  %v9177_v58 = vld [vmem:[#allocation12 + $0x68] sm:$0xff] }
  0xbf   :  { %390 = vmatmul.mubr.f32.gmra.mxu0 %v226_v12  ;;  %503 = vmatmul.mubr.f32.gmra.mxu1 %v226_v12  ;;  %12876 = vst [vmem:[#allocation39_spill] sm:$0xff] %v9177_v58  ;;  %v9179_v59 = vld [vmem:[#allocation12 + $0x78] sm:$0xff]  ;;  %v9183_v60 = vld [vmem:[#allocation12 + $0x60] sm:$0xff]  ;;  %v9185_v61 = vld [vmem:[#allocation12 + $0x70] sm:$0xff] }
  0xc0   :  { %649 = vmatprep.subr.mxu0 %v9032_v13  ;;  %720 = vmatprep.subr.mxu1 %v9034_v14  ;;  %12877 = vst [vmem:[#allocation40_spill] sm:$0xff] %v9179_v59  ;;  %12878 = vst [vmem:[#allocation41_spill] sm:$0xff] %v9183_v60  ;;  %v9187_v62 = vld [vmem:[#allocation12 + $0x48] sm:$0xff]  ;;  %v9189_v63 = vld [vmem:[#allocation12 + $0x58] sm:$0xff] }
  0xc1   :  { %650 = vmatpush1.msra.mxu0 %v9038_v15  ;;  %721 = vmatpush1.msra.mxu1 %v9040_v16  ;;  %12879 = vst [vmem:[#allocation42_spill] sm:$0xff] %v9185_v61  ;;  %12880 = vst [vmem:[#allocation43_spill] sm:$0xff] %v9187_v62  ;;  %v9195_v1 = vld [vmem:[#allocation12 + $0x40] sm:$0xff]  ;;  %v9197_v2 = vld [vmem:[#allocation12 + $0x50] sm:$0xff] }
  0xc2   :  { %651 = vmatprep.subr.mxu0 %v9042_v17  ;;  %722 = vmatprep.subr.mxu1 %v9044_v18  ;;  %12881 = vst [vmem:[#allocation44_spill] sm:$0xff] %v9189_v63  ;;  %12882 = vst [vmem:[#allocation45_spill] sm:$0xff] %v9195_v1  ;;  %v232_v3 = vld [vmem:[%s12869_s21 + $0x38] sm:$0xff]  ;;  %v9206_v12 = vld [vmem:[#allocation12 + $0x28] sm:$0xff] }
  0xc3   :  { %395 = vmatprep.mubr.f32.mxu0 %v12489_v0  ;;  %508 = vmatprep.mubr.f32.mxu1 %v12489_v0  ;;  %12883 = vst [vmem:[#allocation46_spill] sm:$0xff] %v9197_v2  ;;  %12884 = vst [vmem:[#allocation47_spill] sm:$0xff] %v9206_v12 }
  0xc4   :  { %652 = vmatpush1.msra.mxu0 %v9050_v19  ;;  %723 = vmatpush1.msra.mxu1 %v9052_v20 }
  0xc5   :  { %396 = vmatmul.mubr.f32.gmra.mxu0 %v227_v21  ;;  %509 = vmatmul.mubr.f32.gmra.mxu1 %v227_v21  ;;  %v9208_v21 = vld [vmem:[#allocation12 + $0x38] sm:$0xff] }
  0xc6   :  { %653 = vmatprep.subr.mxu0 %v9061_v22  ;;  %724 = vmatprep.subr.mxu1 %v9063_v23  ;;  %12885 = vst [vmem:[#allocation48_spill] sm:$0xff] %v9208_v21 }
  0xc7   :  { %654 = vmatpush1.msra.mxu0 %v9067_v24  ;;  %725 = vmatpush1.msra.mxu1 %v9069_v25 }
  0xc8   :  { %655 = vmatprep.subr.mxu0 %v9071_v26  ;;  %726 = vmatprep.subr.mxu1 %v9073_v27 }
  0xc9   :  { %401 = vmatprep.mubr.f32.mxu0 %v12489_v0  ;;  %514 = vmatprep.mubr.f32.mxu1 %v12489_v0 }
  0xca   :  { %656 = vmatpush1.msra.mxu0 %v9079_v28  ;;  %727 = vmatpush1.msra.mxu1 %v9081_v29 }
  0xcb   :  { %402 = vmatmul.mubr.f32.gmra.mxu0 %v228_v30  ;;  %515 = vmatmul.mubr.f32.gmra.mxu1 %v228_v30  ;;  %v9212_v30 = vld [vmem:[#allocation12 + $0x20] sm:$0xff] }
  0xcc   :  { %657 = vmatprep.subr.mxu0 %v9090_v31  ;;  %728 = vmatprep.subr.mxu1 %v9092_v32  ;;  %12886 = vst [vmem:[#allocation49_spill] sm:$0xff] %v9212_v30 }
  0xcd   :  { %658 = vmatpush1.msra.mxu0 %v9096_v33  ;;  %729 = vmatpush1.msra.mxu1 %v9098_v34 }
  0xce   :  { %659 = vmatprep.subr.mxu0 %v9100_v35  ;;  %730 = vmatprep.subr.mxu1 %v9102_v36 }
  0xcf   :  { %407 = vmatprep.mubr.f32.mxu0 %v12489_v0  ;;  %520 = vmatprep.mubr.f32.mxu1 %v12489_v0 }
  0xd0   :  { %660 = vmatpush1.msra.mxu0 %v9108_v37  ;;  %731 = vmatpush1.msra.mxu1 %v9110_v38 }
  0xd1   :  { %408 = vmatmul.mubr.f32.gmra.mxu0 %v229_v39  ;;  %521 = vmatmul.mubr.f32.gmra.mxu1 %v229_v39  ;;  %v9214_v39 = vld [vmem:[#allocation12 + $0x30] sm:$0xff] }
  0xd2   :  { %661 = vmatprep.subr.mxu0 %v9119_v40  ;;  %732 = vmatprep.subr.mxu1 %v9121_v41  ;;  %12887 = vst [vmem:[#allocation50_spill] sm:$0xff] %v9214_v39 }
  0xd3   :  { %662 = vmatpush1.msra.mxu0 %v9125_v42  ;;  %733 = vmatpush1.msra.mxu1 %v9127_v43 }
  0xd4   :  { %663 = vmatprep.subr.mxu0 %v9129_v44  ;;  %734 = vmatprep.subr.mxu1 %v9131_v45 }
  0xd5   :  { %413 = vmatprep.mubr.f32.mxu0 %v12489_v0  ;;  %526 = vmatprep.mubr.f32.mxu1 %v12489_v0 }
  0xd6   :  { %664 = vmatpush1.msra.mxu0 %v9137_v46  ;;  %735 = vmatpush1.msra.mxu1 %v9139_v47 }
  0xd7   :  { %414 = vmatmul.mubr.f32.gmra.mxu0 %v230_v48  ;;  %527 = vmatmul.mubr.f32.gmra.mxu1 %v230_v48  ;;  %v9216_v48 = vld [vmem:[#allocation12 + $0x8] sm:$0xff] }
  0xd8   :  { %665 = vmatprep.subr.mxu0 %v9148_v49  ;;  %736 = vmatprep.subr.mxu1 %v9150_v50  ;;  %12888 = vst [vmem:[#allocation51_spill] sm:$0xff] %v9216_v48 }
  0xd9   :  { %666 = vmatpush1.msra.mxu0 %v9154_v51  ;;  %737 = vmatpush1.msra.mxu1 %v9156_v52 }
  0xda   :  { %667 = vmatprep.subr.mxu0 %v9158_v53  ;;  %738 = vmatprep.subr.mxu1 %v9160_v54 }
  0xdb   :  { %419 = vmatprep.mubr.f32.mxu0 %v12489_v0  ;;  %532 = vmatprep.mubr.f32.mxu1 %v12489_v0 }
  0xdc   :  { %668 = vmatpush1.msra.mxu0 %v9166_v55  ;;  %739 = vmatpush1.msra.mxu1 %v9168_v56 }
  0xdd   :  { %420 = vmatmul.mubr.f32.gmra.mxu0 %v231_v57  ;;  %533 = vmatmul.mubr.f32.gmra.mxu1 %v231_v57  ;;  %v9218_v57 = vld [vmem:[#allocation12 + $0x18] sm:$0xff] }
  0xde   :  { %669 = vmatprep.subr.mxu0 %v9177_v58  ;;  %740 = vmatprep.subr.mxu1 %v9179_v59  ;;  %12889 = vst [vmem:[#allocation52_spill] sm:$0xff] %v9218_v57 }
  0xdf   :  { %670 = vmatpush1.msra.mxu0 %v9183_v60  ;;  %741 = vmatpush1.msra.mxu1 %v9185_v61 }
  0xe0   :  { %671 = vmatprep.subr.mxu0 %v9187_v62  ;;  %742 = vmatprep.subr.mxu1 %v9189_v63 }
  0xe1   :  { %425 = vmatprep.mubr.f32.mxu0 %v12489_v0  ;;  %538 = vmatprep.mubr.f32.mxu1 %v12489_v0  ;;  %v9222_v0 = vld [vmem:[#allocation12] sm:$0xff] }
  0xe2   :  { %672 = vmatpush1.msra.mxu0 %v9195_v1  ;;  %743 = vmatpush1.msra.mxu1 %v9197_v2  ;;  %12890 = vst [vmem:[#allocation53_spill] sm:$0xff] %v9222_v0  ;;  %v9226_v2 = vld [vmem:[#allocation12 + $0x10] sm:$0xff] }
  0xe3   :  { %426 = vmatmul.mubr.f32.gmra.mxu0 %v232_v3  ;;  %539 = vmatmul.mubr.f32.gmra.mxu1 %v232_v3  ;;  %12891 = vst [vmem:[#allocation54_spill] sm:$0xff] %v9226_v2  ;;  %v12892_v3 = vmov 0.0  }
  0xe4   :  { %673 = vmatprep.subr.mxu0 %v9206_v12  ;;  %744 = vmatprep.subr.mxu1 %v9208_v21  ;;  %v815_v21 = vld [vmem:[%s12893_s20] sm:$0xff] }
  0xe5   :  { %674 = vmatpush1.msra.mxu0 %v9212_v30  ;;  %745 = vmatpush1.msra.mxu1 %v9214_v39  ;;  %v7562_v30 = vld [vmem:[%s12893_s20 + $0x8] sm:$0xff] }
  0xe6   :  { %675 = vmatprep.subr.mxu0 %v9216_v48  ;;  %746 = vmatprep.subr.mxu1 %v9218_v57  ;;  %v1079_v57 = vsub.f32 1.0, %v7562_v30 }
  0xe7   :  { %676 = vmatpush1.msra.mxu0 %v9222_v0  ;;  %709 = vmatprep.mubr.f32.mxu0 %v12892_v3  ;;  %v822_v0 = vsub.f32 1.0, %v815_v21 }
  0xe8   :  { %747 = vmatpush1.msra.mxu1 %v9226_v2  ;;  %780 = vmatprep.mubr.f32.mxu1 %v12892_v3 }
  0xe9   :  { %710 = vmatmul.mubr.f32.vlgmr.msra.gmra.mxu0 %v12892_v3  ;;  %781 = vmatmul.mubr.f32.vlgmr.msra.gmra.mxu1 %v12892_v3 }
  0xea   :  { %818 = vperm.xlu0 %8283, %v815_v21   ;;  %1075 = vperm.xlu1 %8284, %v7562_v30   ;;  %v9251_v21 = vld [vmem:[%s12893_s20 + $0x10] sm:$0xff]  ;;  %v7565_v30 = vld [vmem:[%s12893_s20 + $0x20] sm:$0xff] }
  0xeb   :  { %901 = vmatprep.subr.mxu0 %v9005_v4  ;;  %972 = vmatprep.subr.mxu1 %v9007_v5 }
  0xec   :  { %902 = vmatpush1.msra.mxu0 %v9009_v6  ;;  %973 = vmatpush1.msra.mxu1 %v9011_v7 }
  0xed   :  { %903 = vmatprep.subr.mxu0 %v9013_v8  ;;  %974 = vmatprep.subr.mxu1 %v9015_v9 }
  0xee   :  { %825 = vperm.xlu0 %8283, %v822_v0   ;;  %1082 = vperm.xlu1 %8284, %v1079_v57   ;;  %v9264_v0 = vld [vmem:[%s12893_s20 + $0x18] sm:$0xff]  ;;  %v7566_v57 = vld [vmem:[%s12893_s20 + $0x28] sm:$0xff] }
  0xef   :  { %904 = vmatpush1.msra.mxu0 %v9021_v10  ;;  %975 = vmatpush1.msra.mxu1 %v9023_v11 }
  0xf0   :  { %905 = vmatprep.subr.mxu0 %v9032_v13  ;;  %976 = vmatprep.subr.mxu1 %v9034_v14 }
  0xf1   :  { %906 = vmatpush1.msra.mxu0 %v9038_v15  ;;  %977 = vmatpush1.msra.mxu1 %v9040_v16 }
  0xf2   :  { %1334 = vperm.xlu0 %8283, %v9251_v21   ;;  %907 = vmatprep.subr.mxu0 %v9042_v17 }
  0xf3   :  { %978 = vmatprep.subr.mxu1 %v9044_v18  ;;  %908 = vmatpush1.msra.mxu0 %v9050_v19 }
  0xf4   :  { %979 = vmatpush1.msra.mxu1 %v9052_v20  ;;  %909 = vmatprep.subr.mxu0 %v9061_v22 }
  0xf5   :  { %980 = vmatprep.subr.mxu1 %v9063_v23  ;;  %910 = vmatpush1.msra.mxu0 %v9067_v24 }
  0xf6   :  { %1593 = vperm.xlu0 %8283, %v9264_v0   ;;  %981 = vmatpush1.msra.mxu1 %v9069_v25 }
  0xf7   :  { %911 = vmatprep.subr.mxu0 %v9071_v26  ;;  %982 = vmatprep.subr.mxu1 %v9073_v27 }
  0xf8   :  { %912 = vmatpush1.msra.mxu0 %v9079_v28  ;;  %983 = vmatpush1.msra.mxu1 %v9081_v29 }
  0xf9   :  { %913 = vmatprep.subr.mxu0 %v9090_v31  ;;  %984 = vmatprep.subr.mxu1 %v9092_v32 }
  0xfa   :  { %1852 = vperm.xlu0 %8283, %v7565_v30   ;;  %914 = vmatpush1.msra.mxu0 %v9096_v33  ;;  %v7567_v33 = vld [vmem:[%s12893_s20 + $0x30] sm:$0xff] }
  0xfb   :  { %985 = vmatpush1.msra.mxu1 %v9098_v34  ;;  %915 = vmatprep.subr.mxu0 %v9100_v35 }
  0xfc   :  { %986 = vmatprep.subr.mxu1 %v9102_v36  ;;  %916 = vmatpush1.msra.mxu0 %v9108_v37 }
  0xfd   :  { %987 = vmatpush1.msra.mxu1 %v9110_v38  ;;  %917 = vmatprep.subr.mxu0 %v9119_v40 }
  0xfe   :  { %2111 = vperm.xlu0 %8283, %v7566_v57   ;;  %988 = vmatprep.subr.mxu1 %v9121_v41  ;;  %v7568_v41 = vld [vmem:[%s12893_s20 + $0x38] sm:$0xff] }
  0xff   :  { %918 = vmatpush1.msra.mxu0 %v9125_v42  ;;  %989 = vmatpush1.msra.mxu1 %v9127_v43 }
 0x100   :  { %919 = vmatprep.subr.mxu0 %v9129_v44  ;;  %990 = vmatprep.subr.mxu1 %v9131_v45 }
 0x101   :  { %920 = vmatpush1.msra.mxu0 %v9137_v46  ;;  %991 = vmatpush1.msra.mxu1 %v9139_v47 }
 0x102   :  { %2370 = vperm.xlu0 %8283, %v7567_v33   ;;  %921 = vmatprep.subr.mxu0 %v9148_v49 }
 0x103   :  { %992 = vmatprep.subr.mxu1 %v9150_v50  ;;  %922 = vmatpush1.msra.mxu0 %v9154_v51 }
 0x104   :  { %993 = vmatpush1.msra.mxu1 %v9156_v52  ;;  %923 = vmatprep.subr.mxu0 %v9158_v53 }
 0x105   :  { %994 = vmatprep.subr.mxu1 %v9160_v54  ;;  %924 = vmatpush1.msra.mxu0 %v9166_v55  ;;  %v12894_v54 = vld [vmem:[#allocation46_spill] sm:$0xff]  ;;  %v12895_v55 = vld [vmem:[#allocation48_spill] sm:$0xff] }
 0x106   :  { %2629 = vperm.xlu0 %8283, %v7568_v41   ;;  %995 = vmatpush1.msra.mxu1 %v9168_v56  ;;  %v12896_v56 = vld [vmem:[#allocation49_spill] sm:$0xff] }
 0x107   :  { %925 = vmatprep.subr.mxu0 %v9177_v58  ;;  %996 = vmatprep.subr.mxu1 %v9179_v59  ;;  %v1338_v58 = vsub.f32 1.0, %v9251_v21  ;;  %v1856_v21 = vsub.f32 1.0, %v7565_v30 }
 0x108   :  { %926 = vmatpush1.msra.mxu0 %v9183_v60  ;;  %997 = vmatpush1.msra.mxu1 %v9185_v61  ;;  %v12897_v61 = vld [vmem:[#allocation52_spill] sm:$0xff] }
 0x109   :  { %927 = vmatprep.subr.mxu0 %v9187_v62  ;;  %998 = vmatprep.subr.mxu1 %v9189_v63  ;;  %v12898_v62 = vld [vmem:[#allocation53_spill] sm:$0xff] }
 0x10a   :  { %928 = vmatpush1.msra.mxu0 %v9195_v1  ;;  %999 = vmatpush1.msra.mxu1 %v12894_v54 }
 0x10b   :  { %929 = vmatprep.subr.mxu0 %v9206_v12  ;;  %1000 = vmatprep.subr.mxu1 %v12895_v55  ;;  %v1597_v55 = vsub.f32 1.0, %v9264_v0 }
 0x10c   :  { %930 = vmatpush1.msra.mxu0 %v12896_v56  ;;  %1001 = vmatpush1.msra.mxu1 %v9214_v39  ;;  %v12513_v39 = vlaneseq }
 0x10d   :  { %931 = vmatprep.subr.mxu0 %v9216_v48  ;;  %1002 = vmatprep.subr.mxu1 %v12897_v61  ;;  %v2115_v48 = vsub.f32 1.0, %v7566_v57  ;;  %v2374_v61 = vsub.f32 1.0, %v7567_v33  ;;  %v297_v33 = vld [vmem:[%s12474_s7] sm:$0xf] }
 0x10e   :  { %932 = vmatpush1.msra.mxu0 %v12898_v62  ;;  %965 = vmatprep.mubr.f32.mxu0 %v12892_v3  ;;  %v2633_v62 = vsub.f32 1.0, %v7568_v41 }
 0x10f   :  { %1003 = vmatpush1.msra.mxu1 %v9226_v2  ;;  %1036 = vmatprep.mubr.f32.mxu1 %v12892_v3  ;;  %v9337_v2 = vshrl.u32 %v12513_v39, 7 }
 0x110   :  { %1341 = vperm.xlu1 %8284, %v1338_v58   ;;  %1160 = vmatprep.subr.mxu0 %v9005_v4 }
 0x111   :  { %1231 = vmatprep.subr.mxu1 %v9007_v5  ;;  %12899 = vst [vmem:[#allocation55_spill] sm:$0xff] %v9337_v2  ;;  %v9344_v4 = vsub.s32 0, %v9337_v2  ;;  %v9347_v5 = vsub.s32 2, %v9337_v2 }
 0x113   :  { %12900 = vst [vmem:[#allocation56_spill] sm:$0xff] %v9344_v4  ;;  %12901 = vst [vmem:[#allocation57_spill] sm:$0xff] %v9347_v5  ;;  %v9364_v0 = vrot.slane %v297_v33, %v9347_v5 }
 0x114   :  { %1600 = vperm.xlu1 %8284, %v1597_v55  }
 0x118   :  { %1859 = vperm.xlu1 %8284, %v1856_v21  }
 0x11c   :  { %2118 = vperm.xlu1 %8284, %v2115_v48   ;;  %v302_v48 = vrot.slane %v297_v33, %v9344_v4 }
 0x120   :  { %2377 = vperm.xlu1 %8284, %v2374_v61   ;;  %v9357_v61 = vsub.s32 1, %v9337_v2 }
 0x122   :  { %12902 = vst [vmem:[#allocation58_spill] sm:$0xff] %v9357_v61  ;;  %v306_v21 = vrot.slane %v297_v33, %v9357_v61 }
 0x124   :  { %2636 = vperm.xlu1 %8284, %v2633_v62   ;;  %v9360_v62 = vsub.s32 3, %v9337_v2 }
 0x126   :  { %12903 = vst [vmem:[#allocation59_spill] sm:$0xff] %v9360_v62  ;;  %v9368_v39 = vrot.slane %v297_v33, %v9360_v62 }
 0x179   :  { %v9339_v3 = vpop.f32.mrf.mxu0  ;;  %v9341_v58 = vpop.f32.mrf.mxu1 }
 0x17b   :  { %v9352_v41 = vpop.f32.mrf.mxu0  ;;  %v9354_v55 = vpop.f32.mrf.mxu1 }
 0x17f   :  { %v391_v30 = vpop.f32.mrf.mxu0  ;;  %v504_v57 = vpop.f32.mrf.mxu1 }
 0x180   :  { %v9370_v56 = vadd.f32 %v391_v30, %v302_v48  ;;  %v9373_v12 = vadd.f32 %v504_v57, %v9364_v0 }
 0x181   :  { %v393_v54 = vpop.f32.mrf.mxu0  ;;  %v506_v2 = vpop.f32.mrf.mxu1 }
 0x182   :  { %12904 = vst [vmem:[#allocation60_spill] sm:$0xff] %v9370_v56  ;;  %12905 = vst [vmem:[#allocation61_spill] sm:$0xff] %v9373_v12  ;;  %v9375_v1 = vadd.f32 %v393_v54, %v306_v21  ;;  %v9378_v4 = vadd.f32 %v506_v2, %v9368_v39 }
 0x184   :  { %12906 = vst [vmem:[#allocation62_spill] sm:$0xff] %v9375_v1  ;;  %12907 = vst [vmem:[#allocation63_spill] sm:$0xff] %v9378_v4 }
 0x185   :  { %v397_v5 = vpop.f32.mrf.mxu0  ;;  %v510_v63 = vpop.f32.mrf.mxu1 }
 0x186   :  { %v9380_v60 = vadd.f32 %v397_v5, %v302_v48  ;;  %v9383_v61 = vadd.f32 %v510_v63, %v9364_v0 }
 0x187   :  { %v399_v33 = vpop.f32.mrf.mxu0  ;;  %v512_v30 = vpop.f32.mrf.mxu1 }
 0x188   :  { %12908 = vst [vmem:[#allocation64_spill] sm:$0xff] %v9380_v60  ;;  %12909 = vst [vmem:[#allocation65_spill] sm:$0xff] %v9383_v61  ;;  %v9385_v62 = vadd.f32 %v399_v33, %v306_v21  ;;  %v9388_v57 = vadd.f32 %v512_v30, %v9368_v39 }
 0x18a   :  { %12910 = vst [vmem:[#allocation66_spill] sm:$0xff] %v9385_v62  ;;  %12911 = vst [vmem:[#allocation67_spill] sm:$0xff] %v9388_v57 }
 0x18b   :  { %v403_v12 = vpop.f32.mrf.mxu0  ;;  %v516_v54 = vpop.f32.mrf.mxu1 }
 0x18c   :  { %v9390_v1 = vadd.f32 %v403_v12, %v302_v48  ;;  %v9393_v2 = vadd.f32 %v516_v54, %v9364_v0 }
 0x18d   :  { %v405_v4 = vpop.f32.mrf.mxu0  ;;  %v518_v5 = vpop.f32.mrf.mxu1 }
 0x18e   :  { %12912 = vst [vmem:[#allocation68_spill] sm:$0xff] %v9390_v1  ;;  %12913 = vst [vmem:[#allocation69_spill] sm:$0xff] %v9393_v2  ;;  %v9395_v60 = vadd.f32 %v405_v4, %v306_v21  ;;  %v9398_v63 = vadd.f32 %v518_v5, %v9368_v39 }
 0x190   :  { %12914 = vst [vmem:[#allocation70_spill] sm:$0xff] %v9395_v60  ;;  %12915 = vst [vmem:[#allocation71_spill] sm:$0xff] %v9398_v63 }
 0x191   :  { %v409_v61 = vpop.f32.mrf.mxu0  ;;  %v522_v33 = vpop.f32.mrf.mxu1 }
 0x192   :  { %v9400_v62 = vadd.f32 %v409_v61, %v302_v48  ;;  %v9403_v30 = vadd.f32 %v522_v33, %v9364_v0 }
 0x193   :  { %v411_v57 = vpop.f32.mrf.mxu0  ;;  %v524_v12 = vpop.f32.mrf.mxu1 }
 0x194   :  { %12916 = vst [vmem:[#allocation72_spill] sm:$0xff] %v9400_v62  ;;  %12917 = vst [vmem:[#allocation73_spill] sm:$0xff] %v9403_v30  ;;  %v9405_v1 = vadd.f32 %v411_v57, %v306_v21  ;;  %v9408_v54 = vadd.f32 %v524_v12, %v9368_v39 }
 0x196   :  { %12918 = vst [vmem:[#allocation74_spill] sm:$0xff] %v9405_v1  ;;  %12919 = vst [vmem:[#allocation75_spill] sm:$0xff] %v9408_v54 }
 0x197   :  { %v415_v2 = vpop.f32.mrf.mxu0  ;;  %v528_v4 = vpop.f32.mrf.mxu1 }
 0x198   :  { %v9410_v60 = vadd.f32 %v415_v2, %v302_v48  ;;  %v9413_v5 = vadd.f32 %v528_v4, %v9364_v0 }
 0x199   :  { %v417_v63 = vpop.f32.mrf.mxu0  ;;  %v530_v61 = vpop.f32.mrf.mxu1 }
 0x19a   :  { %12920 = vst [vmem:[#allocation76_spill] sm:$0xff] %v9410_v60  ;;  %12921 = vst [vmem:[#allocation77_spill] sm:$0xff] %v9413_v5  ;;  %v9415_v62 = vadd.f32 %v417_v63, %v306_v21  ;;  %v9418_v33 = vadd.f32 %v530_v61, %v9368_v39 }
 0x19c   :  { %12922 = vst [vmem:[#allocation78_spill] sm:$0xff] %v9415_v62  ;;  %12923 = vst [vmem:[#allocation79_spill] sm:$0xff] %v9418_v33 }
 0x19d   :  { %v421_v30 = vpop.f32.mrf.mxu0  ;;  %v534_v57 = vpop.f32.mrf.mxu1 }
 0x19e   :  { %v9420_v1 = vadd.f32 %v421_v30, %v302_v48  ;;  %v9423_v12 = vadd.f32 %v534_v57, %v9364_v0 }
 0x19f   :  { %v423_v54 = vpop.f32.mrf.mxu0  ;;  %v536_v2 = vpop.f32.mrf.mxu1 }
 0x1a0   :  { %12924 = vst [vmem:[#allocation80_spill] sm:$0xff] %v9420_v1  ;;  %12925 = vst [vmem:[#allocation81_spill] sm:$0xff] %v9423_v12  ;;  %v9425_v60 = vadd.f32 %v423_v54, %v306_v21  ;;  %v9428_v4 = vadd.f32 %v536_v2, %v9368_v39  ;;  %v386_v54 = vadd.f32 %v9339_v3, %v302_v48 }
 0x1a1   :  { %v388_v2 = vadd.f32 %v9352_v41, %v306_v21  ;;  %v499_v3 = vadd.f32 %v9341_v58, %v9364_v0 }
 0x1a2   :  { %12926 = vst [vmem:[#allocation82_spill] sm:$0xff] %v9425_v60  ;;  %12927 = vst [vmem:[#allocation83_spill] sm:$0xff] %v9428_v4 }
 0x1a3   :  { %v427_v5 = vpop.f32.mrf.mxu0  ;;  %v540_v63 = vpop.f32.mrf.mxu1 }
 0x1a4   :  { %v9430_v62 = vadd.f32 %v427_v5, %v302_v48  ;;  %v9433_v61 = vadd.f32 %v540_v63, %v9364_v0 }
 0x1a5   :  { %v429_v33 = vpop.f32.mrf.mxu0  ;;  %v542_v30 = vpop.f32.mrf.mxu1 }
 0x1a6   :  { %12928 = vst [vmem:[#allocation84_spill] sm:$0xff] %v9430_v62  ;;  %12929 = vst [vmem:[#allocation85_spill] sm:$0xff] %v9433_v61  ;;  %v9435_v1 = vadd.f32 %v429_v33, %v306_v21  ;;  %v9438_v57 = vadd.f32 %v542_v30, %v9368_v39  ;;  %v501_v33 = vadd.f32 %v9354_v55, %v9368_v39 }
 0x1a8   :  { %12930 = vst [vmem:[#allocation86_spill] sm:$0xff] %v9435_v1  ;;  %12931 = vst [vmem:[#allocation87_spill] sm:$0xff] %v9438_v57  ;;  %v9713_v1 = vld [vmem:[#allocation12 + $0x38] sm:$0xff] }
 0x1a9   :  { %v711_v12 = vpop.f32.mrf.mxu0  ;;  %v782_v5 = vpop.f32.mrf.mxu1 }
 0x1aa   :  { %v787_v4 = vadd.f32 %v711_v12, %v386_v54  ;;  %v789_v21 = vadd.f32 %v782_v5, %v499_v3 }
 0x1ab   :  { %v713_v60 = vpop.f32.mrf.mxu0  ;;  %v784_v53 = vpop.f32.mrf.mxu1 }
 0x1ac   :  { %v791_v56 = vsub.f32 0.0, %v787_v4  ;;  %v788_v62 = vadd.f32 %v713_v60, %v388_v2  ;;  %v790_v30 = vadd.f32 %v784_v53, %v501_v33 }
 0x1ae   :  { %v792_v59 = vmul.f32 1.442695, %v791_v56  ;;  %v797_v63 = vsub.f32 0.0, %v788_v62  ;;  %v804_v57 = vsub.f32 0.0, %v790_v30 }
 0x1b0   :  { %8285 = vpow2.f32 %v792_v59  ;;  %v798_v61 = vmul.f32 1.442695, %v797_v63  ;;  %v805_v41 = vmul.f32 1.442695, %v804_v57  ;;  %v819_v59 = vpop.permute.xlu0 %818 }
 0x1b2   :  { %8287 = vpow2.f32 %v798_v61 }
 0x1b3   :  { %8289 = vpow2.f32 %v805_v41 }
 0x1b4   :  { %v826_v2 = vpop.permute.xlu0 %825 }
 0x1b5   :  { %v828_v0 = vmul.f32 0.0, %v826_v2  ;;  %v9527_v2 = vpop.permute.xlu1 %1075 }
 0x1bd   :  { %v8286_v48 = vpop.eup %8285 }
 0x1be   :  { %v794_v12 = vadd.f32 1.0, %v8286_v48 }
 0x1bf   :  { %v8288_v4 = vpop.eup %8287 }
 0x1c0   :  { %8291 = vrcp.f32 %v794_v12  ;;  %v800_v56 = vadd.f32 1.0, %v8288_v4  ;;  %v8290_v60 = vpop.eup %8289 }
 0x1c1   :  { %8293 = vtanh.f32 %v789_v21  ;;  %v807_v53 = vadd.f32 1.0, %v8290_v60 }
 0x1c2   :  { %8295 = vrcp.f32 %v800_v56 }
 0x1c3   :  { %8297 = vrcp.f32 %v807_v53 }
 0x1cd   :  { %v8292_v62 = vpop.eup %8291 }
 0x1ce   :  { %v8294_v39 = vpop.eup %8293 }
 0x1cf   :  { %v8296_v55 = vpop.eup %8295  ;;  %v811_v54 = vmul.f32 %v8294_v39, %v8292_v62 }
 0x1d0   :  { %v810_v61 = vmul.f32 0.0, %v8296_v55  ;;  %v8298_v63 = vpop.eup %8297 }
 0x1d2   :  { %v812_v58 = vadd.f32 %v811_v54, %v810_v61 }
 0x1d4   :  { %8299 = vtanh.f32 %v812_v58  ;;  %v830_v57 = vmul.f32 %v819_v59, %v812_v58 }
 0x1d6   :  { %v9446_v5 = vadd.f32 %v830_v57, %v828_v0 }
 0x1e1   :  { %v8300_v33 = vpop.eup %8299 }
 0x1e2   :  { %v814_v30 = vmul.f32 %v8300_v33, %v8298_v63  ;;  %v9529_v63 = vpop.permute.xlu1 %1082 }
 0x1e4   :  { %v9448_v3 = vmul.f32 %v819_v59, %v814_v30 }
 0x1e6   :  { %12932 = vst [vmem:[#allocation88_spill] sm:$0xff] %v9448_v3  ;;  %v9451_v41 = vadd.f32 %v828_v0, %v9448_v3  ;;  %v9711_v3 = vld [vmem:[#allocation12 + $0x28] sm:$0xff] }
 0x1e8   :  { %966 = vmatmul.mubr.f32.vlgmr.msra.gmra.mxu0 %v9451_v41  ;;  %1037 = vmatmul.mubr.f32.vlgmr.msra.gmra.mxu1 %v9451_v41  ;;  %v1085_v33 = vmul.f32 %v9529_v63, %v9451_v41  ;;  %v9549_v41 = vld [vmem:[#allocation12 + $0x1e0] sm:$0xff] }
 0x1e9   :  { %1161 = vmatpush1.msra.mxu0 %v9009_v6  ;;  %1232 = vmatpush1.msra.mxu1 %v9011_v7  ;;  %v12933_v6 = vld [vmem:[#allocation33_spill] sm:$0xff]  ;;  %v12934_v7 = vld [vmem:[#allocation34_spill] sm:$0xff] }
 0x1ea   :  { %1162 = vmatprep.subr.mxu0 %v9013_v8  ;;  %1233 = vmatprep.subr.mxu1 %v9015_v9  ;;  %v12935_v8 = vld [vmem:[#allocation35_spill] sm:$0xff]  ;;  %v12936_v9 = vld [vmem:[#allocation36_spill] sm:$0xff] }
 0x1eb   :  { %1163 = vmatpush1.msra.mxu0 %v9021_v10  ;;  %1234 = vmatpush1.msra.mxu1 %v9023_v11  ;;  %v12937_v10 = vld [vmem:[#allocation37_spill] sm:$0xff]  ;;  %v12938_v11 = vld [vmem:[#allocation38_spill] sm:$0xff] }
 0x1ec   :  { %1164 = vmatprep.subr.mxu0 %v9032_v13  ;;  %1235 = vmatprep.subr.mxu1 %v9034_v14  ;;  %v12939_v13 = vld [vmem:[#allocation39_spill] sm:$0xff]  ;;  %v12940_v14 = vld [vmem:[#allocation40_spill] sm:$0xff] }
 0x1ed   :  { %1165 = vmatpush1.msra.mxu0 %v9038_v15  ;;  %1236 = vmatpush1.msra.mxu1 %v9040_v16  ;;  %v12941_v15 = vld [vmem:[#allocation41_spill] sm:$0xff]  ;;  %v12942_v16 = vld [vmem:[#allocation42_spill] sm:$0xff] }
 0x1ee   :  { %1166 = vmatprep.subr.mxu0 %v9042_v17  ;;  %1237 = vmatprep.subr.mxu1 %v9044_v18  ;;  %v12943_v17 = vld [vmem:[#allocation43_spill] sm:$0xff]  ;;  %v12944_v18 = vld [vmem:[#allocation44_spill] sm:$0xff] }
 0x1ef   :  { %1167 = vmatpush1.msra.mxu0 %v9050_v19  ;;  %1238 = vmatpush1.msra.mxu1 %v9052_v20  ;;  %v12945_v19 = vld [vmem:[#allocation45_spill] sm:$0xff]  ;;  %v12946_v20 = vld [vmem:[#allocation46_spill] sm:$0xff] }
 0x1f0   :  { %1168 = vmatprep.subr.mxu0 %v9061_v22  ;;  %1239 = vmatprep.subr.mxu1 %v9063_v23  ;;  %v12947_v22 = vld [vmem:[#allocation47_spill] sm:$0xff]  ;;  %v12948_v23 = vld [vmem:[#allocation48_spill] sm:$0xff] }
 0x1f1   :  { %1169 = vmatpush1.msra.mxu0 %v9067_v24  ;;  %1240 = vmatpush1.msra.mxu1 %v9069_v25  ;;  %v12949_v24 = vld [vmem:[#allocation49_spill] sm:$0xff]  ;;  %v12950_v25 = vld [vmem:[#allocation50_spill] sm:$0xff] }
 0x1f2   :  { %1170 = vmatprep.subr.mxu0 %v9071_v26  ;;  %1241 = vmatprep.subr.mxu1 %v9073_v27  ;;  %v12951_v26 = vld [vmem:[#allocation51_spill] sm:$0xff]  ;;  %v12952_v27 = vld [vmem:[#allocation52_spill] sm:$0xff] }
 0x1f3   :  { %1171 = vmatpush1.msra.mxu0 %v9079_v28  ;;  %1242 = vmatpush1.msra.mxu1 %v9081_v29  ;;  %v12953_v28 = vld [vmem:[#allocation53_spill] sm:$0xff]  ;;  %v12954_v29 = vmov 0.0   ;;  %12978 = vst [vmem:[#allocation51_spill] sm:$0xff] %v9711_v3  ;;  %12979 = vst [vmem:[#allocation52_spill] sm:$0xff] %v9713_v1 }
 0x1f4   :  { %1172 = vmatprep.subr.mxu0 %v9090_v31  ;;  %1243 = vmatprep.subr.mxu1 %v9092_v32  ;;  %v12955_v31 = vld [vmem:[#allocation54_spill] sm:$0xff] }
 0x1f5   :  { %1173 = vmatpush1.msra.mxu0 %v12933_v6  ;;  %1244 = vmatpush1.msra.mxu1 %v9098_v34  ;;  %v12956_v34 = vld [vmem:[#allocation60_spill] sm:$0xff] }
 0x1f6   :  { %1174 = vmatprep.subr.mxu0 %v9100_v35  ;;  %1245 = vmatprep.subr.mxu1 %v9102_v36 }
 0x1f7   :  { %1175 = vmatpush1.msra.mxu0 %v9108_v37  ;;  %1246 = vmatpush1.msra.mxu1 %v9110_v38 }
 0x1f8   :  { %1176 = vmatprep.subr.mxu0 %v9119_v40  ;;  %1247 = vmatprep.subr.mxu1 %v12934_v7  ;;  %v12957_v40 = vld [vmem:[#allocation62_spill] sm:$0xff] }
 0x1f9   :  { %1177 = vmatpush1.msra.mxu0 %v9125_v42  ;;  %1248 = vmatpush1.msra.mxu1 %v9127_v43  ;;  %v9543_v7 = vld [vmem:[#allocation12 + $0x1e8] sm:$0xff] }
 0x1fa   :  { %1178 = vmatprep.subr.mxu0 %v9129_v44  ;;  %1249 = vmatprep.subr.mxu1 %v9131_v45  ;;  %12961 = vst [vmem:[#allocation34_spill] sm:$0xff] %v9543_v7 }
 0x1fb   :  { %1179 = vmatpush1.msra.mxu0 %v9137_v46  ;;  %1250 = vmatpush1.msra.mxu1 %v9139_v47  ;;  %v12958_v47 = vld [vmem:[#allocation63_spill] sm:$0xff] }
 0x1fc   :  { %1180 = vmatprep.subr.mxu0 %v9148_v49  ;;  %1251 = vmatprep.subr.mxu1 %v9150_v50 }
 0x1fd   :  { %1181 = vmatpush1.msra.mxu0 %v9154_v51  ;;  %1252 = vmatpush1.msra.mxu1 %v9156_v52  ;;  %v12959_v51 = vld [vmem:[#allocation61_spill] sm:$0xff] }
 0x1fe   :  { %1182 = vmatprep.subr.mxu0 %v12935_v8  ;;  %1253 = vmatprep.subr.mxu1 %v12936_v9  ;;  %v9545_v8 = vld [vmem:[#allocation12 + $0x1f8] sm:$0xff]  ;;  %v9551_v9 = vld [vmem:[#allocation12 + $0x1f0] sm:$0xff] }
 0x1ff   :  { %1183 = vmatpush1.msra.mxu0 %v12937_v10  ;;  %1254 = vmatpush1.msra.mxu1 %v12938_v11  ;;  %12962 = vst [vmem:[#allocation35_spill] sm:$0xff] %v9545_v8  ;;  %v9555_v10 = vld [vmem:[#allocation12 + $0x1c8] sm:$0xff]  ;;  %v9557_v11 = vld [vmem:[#allocation12 + $0x1d8] sm:$0xff] }
 0x200   :  { %1184 = vmatprep.subr.mxu0 %v12939_v13  ;;  %1255 = vmatprep.subr.mxu1 %v12940_v14  ;;  %v9561_v13 = vld [vmem:[#allocation12 + $0x1c0] sm:$0xff]  ;;  %v9563_v14 = vld [vmem:[#allocation12 + $0x1d0] sm:$0xff] }
 0x201   :  { %1185 = vmatpush1.msra.mxu0 %v12941_v15  ;;  %1256 = vmatpush1.msra.mxu1 %v12942_v16  ;;  %v9567_v15 = vld [vmem:[#allocation12 + $0x1a8] sm:$0xff]  ;;  %v9569_v16 = vld [vmem:[#allocation12 + $0x1b8] sm:$0xff] }
 0x202   :  { %1186 = vmatprep.subr.mxu0 %v12943_v17  ;;  %1257 = vmatprep.subr.mxu1 %v12944_v18  ;;  %v9573_v17 = vld [vmem:[#allocation12 + $0x1a0] sm:$0xff]  ;;  %v9575_v18 = vld [vmem:[#allocation12 + $0x1b0] sm:$0xff] }
 0x203   :  { %1187 = vmatpush1.msra.mxu0 %v12945_v19  ;;  %1258 = vmatpush1.msra.mxu1 %v12946_v20  ;;  %v9579_v19 = vld [vmem:[#allocation12 + $0x188] sm:$0xff]  ;;  %v9581_v20 = vld [vmem:[#allocation12 + $0x198] sm:$0xff] }
 0x204   :  { %1188 = vmatprep.subr.mxu0 %v12947_v22  ;;  %1259 = vmatprep.subr.mxu1 %v12948_v23  ;;  %v9585_v22 = vld [vmem:[#allocation12 + $0x180] sm:$0xff]  ;;  %v9587_v23 = vld [vmem:[#allocation12 + $0x190] sm:$0xff] }
 0x205   :  { %1189 = vmatpush1.msra.mxu0 %v12949_v24  ;;  %1260 = vmatpush1.msra.mxu1 %v12950_v25  ;;  %v9591_v24 = vld [vmem:[#allocation12 + $0x168] sm:$0xff]  ;;  %v9593_v25 = vld [vmem:[#allocation12 + $0x178] sm:$0xff] }
 0x206   :  { %1190 = vmatprep.subr.mxu0 %v12951_v26  ;;  %1261 = vmatprep.subr.mxu1 %v12952_v27  ;;  %v9597_v26 = vld [vmem:[#allocation12 + $0x160] sm:$0xff]  ;;  %v9599_v27 = vld [vmem:[#allocation12 + $0x170] sm:$0xff] }
 0x207   :  { %1191 = vmatpush1.msra.mxu0 %v12953_v28  ;;  %1224 = vmatprep.mubr.f32.mxu0 %v12954_v29  ;;  %v9603_v28 = vld [vmem:[#allocation12 + $0x148] sm:$0xff] }
 0x208   :  { %1262 = vmatpush1.msra.mxu1 %v12955_v31  ;;  %1295 = vmatprep.mubr.f32.mxu1 %v12954_v29  ;;  %v9605_v31 = vld [vmem:[#allocation12 + $0x158] sm:$0xff] }
 0x209   :  { %1419 = vmatprep.subr.mxu0 %v9543_v7  ;;  %1490 = vmatprep.subr.mxu1 %v9545_v8 }
 0x2a8   :  { %v967_v32 = vpop.f32.mrf.mxu0  ;;  %v1038_v38 = vpop.f32.mrf.mxu1 }
 0x2a9   :  { %v1043_v35 = vadd.f32 %v967_v32, %v12956_v34  ;;  %v1045_v52 = vadd.f32 %v1038_v38, %v12959_v51  ;;  %v9609_v32 = vld [vmem:[#allocation12 + $0x140] sm:$0xff]  ;;  %v9611_v34 = vld [vmem:[#allocation12 + $0x150] sm:$0xff]  ;;  %v9653_v51 = vld [vmem:[#allocation12 + $0xd8] sm:$0xff] }
 0x2aa   :  { %v969_v36 = vpop.f32.mrf.mxu0  ;;  %v1040_v46 = vpop.f32.mrf.mxu1  ;;  %v9623_v38 = vld [vmem:[#allocation12 + $0x130] sm:$0xff] }
 0x2ab   :  { %v1047_v37 = vsub.f32 0.0, %v1043_v35  ;;  %v1044_v42 = vadd.f32 %v969_v36, %v12957_v40  ;;  %v1046_v49 = vadd.f32 %v1040_v46, %v12958_v47  ;;  %v9615_v35 = vld [vmem:[#allocation12 + $0x128] sm:$0xff]  ;;  %v9617_v36 = vld [vmem:[#allocation12 + $0x138] sm:$0xff]  ;;  %v9645_v47 = vld [vmem:[#allocation12 + $0xe0] sm:$0xff] }
 0x2ac   :  { %v9627_v40 = vld [vmem:[#allocation12 + $0x108] sm:$0xff]  ;;  %v9641_v46 = vld [vmem:[#allocation12 + $0xf8] sm:$0xff] }
 0x2ad   :  { %v1048_v43 = vmul.f32 1.442695, %v1047_v37  ;;  %v1053_v44 = vsub.f32 0.0, %v1044_v42  ;;  %v1060_v50 = vsub.f32 0.0, %v1046_v49  ;;  %v9621_v37 = vld [vmem:[#allocation12 + $0x120] sm:$0xff]  ;;  %v9629_v42 = vld [vmem:[#allocation12 + $0x118] sm:$0xff] }
 0x2ae   :  { %v9647_v49 = vld [vmem:[#allocation12 + $0xf0] sm:$0xff] }
 0x2af   :  { %8301 = vpow2.f32 %v1048_v43  ;;  %v1054_v45 = vmul.f32 1.442695, %v1053_v44  ;;  %v1061_v48 = vmul.f32 1.442695, %v1060_v50  ;;  %v9633_v43 = vld [vmem:[#allocation12 + $0x100] sm:$0xff]  ;;  %v9635_v44 = vld [vmem:[#allocation12 + $0x110] sm:$0xff] }
 0x2b0   :  { %v9651_v50 = vld [vmem:[#allocation12 + $0xc8] sm:$0xff] }
 0x2b1   :  { %8303 = vpow2.f32 %v1054_v45  ;;  %v9639_v45 = vld [vmem:[#allocation12 + $0xe8] sm:$0xff] }
 0x2b2   :  { %8305 = vtanh.f32 %v1045_v52  ;;  %v9657_v52 = vld [vmem:[#allocation12 + $0xc0] sm:$0xff] }
 0x2b3   :  { %8307 = vpow2.f32 %v1061_v48  ;;  %v9659_v48 = vld [vmem:[#allocation12 + $0xd0] sm:$0xff] }
 0x2bc   :  { %v8302_v21 = vpop.eup %8301 }
 0x2bd   :  { %v1050_v12 = vadd.f32 1.0, %v8302_v21  ;;  %v9663_v21 = vld [vmem:[#allocation12 + $0xa8] sm:$0xff] }
 0x2be   :  { %v8304_v4 = vpop.eup %8303 }
 0x2bf   :  { %8309 = vrcp.f32 %v1050_v12  ;;  %v1056_v56 = vadd.f32 1.0, %v8304_v4  ;;  %v8306_v59 = vpop.eup %8305  ;;  %v9665_v12 = vld [vmem:[#allocation12 + $0xb8] sm:$0xff]  ;;  %v9669_v4 = vld [vmem:[#allocation12 + $0xa0] sm:$0xff] }
 0x2c0   :  { %v8308_v60 = vpop.eup %8307  ;;  %12963 = vst [vmem:[#allocation36_spill] sm:$0xff] %v9665_v12  ;;  %12964 = vst [vmem:[#allocation37_spill] sm:$0xff] %v9669_v4 }
 0x2c1   :  { %8311 = vrcp.f32 %v1056_v56  ;;  %v1063_v53 = vadd.f32 1.0, %v8308_v60  ;;  %v9671_v56 = vld [vmem:[#allocation12 + $0xb0] sm:$0xff]  ;;  %v9677_v60 = vld [vmem:[#allocation12 + $0x98] sm:$0xff] }
 0x2c2   :  { %12965 = vst [vmem:[#allocation38_spill] sm:$0xff] %v9671_v56  ;;  %12967 = vst [vmem:[#allocation40_spill] sm:$0xff] %v9677_v60 }
 0x2c3   :  { %8313 = vrcp.f32 %v1063_v53  ;;  %v9689_v53 = vld [vmem:[#allocation12 + $0x78] sm:$0xff] }
 0x2c4   :  { %12971 = vst [vmem:[#allocation44_spill] sm:$0xff] %v9689_v53 }
 0x2cc   :  { %v8310_v62 = vpop.eup %8309 }
 0x2cd   :  { %v1067_v39 = vmul.f32 %v8310_v62, %v8306_v59  ;;  %v9675_v59 = vld [vmem:[#allocation12 + $0x88] sm:$0xff]  ;;  %v9681_v62 = vld [vmem:[#allocation12 + $0x80] sm:$0xff] }
 0x2ce   :  { %v8312_v55 = vpop.eup %8311  ;;  %12966 = vst [vmem:[#allocation39_spill] sm:$0xff] %v9675_v59  ;;  %12968 = vst [vmem:[#allocation41_spill] sm:$0xff] %v9681_v62 }
 0x2cf   :  { %v1066_v61 = vmul.f32 %v8312_v55, %v9446_v5  ;;  %v9687_v55 = vld [vmem:[#allocation12 + $0x68] sm:$0xff] }
 0x2d0   :  { %v8314_v58 = vpop.eup %8313  ;;  %12970 = vst [vmem:[#allocation43_spill] sm:$0xff] %v9687_v55 }
 0x2d1   :  { %v9524_v54 = vadd.f32 %v1067_v39, %v1066_v61  ;;  %v9683_v39 = vld [vmem:[#allocation12 + $0x90] sm:$0xff]  ;;  %v9693_v61 = vld [vmem:[#allocation12 + $0x60] sm:$0xff] }
 0x2d2   :  { %12969 = vst [vmem:[#allocation42_spill] sm:$0xff] %v9683_v39  ;;  %12972 = vst [vmem:[#allocation45_spill] sm:$0xff] %v9693_v61 }
 0x2d3   :  { %8315 = vtanh.f32 %v9524_v54 }
 0x2e0   :  { %v8316_v0 = vpop.eup %8315 }
 0x2e1   :  { %v1070_v57 = vmul.f32 %v8316_v0, %v8314_v58  ;;  %v9695_v58 = vld [vmem:[#allocation12 + $0x70] sm:$0xff]  ;;  %v9699_v0 = vld [vmem:[#allocation12 + $0x48] sm:$0xff] }
 0x2e2   :  { %12973 = vst [vmem:[#allocation46_spill] sm:$0xff] %v9695_v58  ;;  %12974 = vst [vmem:[#allocation47_spill] sm:$0xff] %v9699_v0 }
 0x2e3   :  { %v9534_v30 = vmul.f32 %v9527_v2, %v1070_v57  ;;  %v9701_v57 = vld [vmem:[#allocation12 + $0x58] sm:$0xff] }
 0x2e4   :  { %12975 = vst [vmem:[#allocation48_spill] sm:$0xff] %v9701_v57 }
 0x2e5   :  { %12960 = vst [vmem:[#allocation33_spill] sm:$0xff] %v9534_v30  ;;  %v9537_v6 = vadd.f32 %v1085_v33, %v9534_v30  ;;  %v9705_v33 = vld [vmem:[#allocation12 + $0x40] sm:$0xff]  ;;  %v9707_v30 = vld [vmem:[#allocation12 + $0x50] sm:$0xff] }
 0x2e6   :  { %12976 = vst [vmem:[#allocation49_spill] sm:$0xff] %v9705_v33  ;;  %12977 = vst [vmem:[#allocation50_spill] sm:$0xff] %v9707_v30 }
 0x2e7   :  { %1225 = vmatmul.mubr.f32.vlgmr.msra.gmra.mxu0 %v9537_v6  ;;  %1296 = vmatmul.mubr.f32.vlgmr.msra.gmra.mxu1 %v9537_v6 }
 0x2e8   :  { %1483 = vmatprep.mubr.f32.mxu0 %v12954_v29  ;;  %1554 = vmatprep.mubr.f32.mxu1 %v12954_v29  ;;  %v9715_v29 = vld [vmem:[#allocation12 + $0x20] sm:$0xff] }
 0x2e9   :  { %1420 = vmatpush1.msra.mxu0 %v9549_v41  ;;  %1491 = vmatpush1.msra.mxu1 %v9551_v9  ;;  %12980 = vst [vmem:[#allocation53_spill] sm:$0xff] %v9715_v29 }
 0x2ea   :  { %1421 = vmatprep.subr.mxu0 %v9555_v10  ;;  %1492 = vmatprep.subr.mxu1 %v9557_v11 }
 0x2eb   :  { %1422 = vmatpush1.msra.mxu0 %v9561_v13  ;;  %1493 = vmatpush1.msra.mxu1 %v9563_v14 }
 0x2ec   :  { %1423 = vmatprep.subr.mxu0 %v9567_v15  ;;  %1494 = vmatprep.subr.mxu1 %v9569_v16 }
 0x2ed   :  { %1424 = vmatpush1.msra.mxu0 %v9573_v17  ;;  %1495 = vmatpush1.msra.mxu1 %v9575_v18 }
 0x2ee   :  { %1425 = vmatprep.subr.mxu0 %v9579_v19  ;;  %1496 = vmatprep.subr.mxu1 %v9581_v20 }
 0x2ef   :  { %1426 = vmatpush1.msra.mxu0 %v9585_v22  ;;  %1497 = vmatpush1.msra.mxu1 %v9587_v23 }
 0x2f0   :  { %1427 = vmatprep.subr.mxu0 %v9591_v24  ;;  %1498 = vmatprep.subr.mxu1 %v9593_v25 }
 0x2f1   :  { %1428 = vmatpush1.msra.mxu0 %v9597_v26  ;;  %1499 = vmatpush1.msra.mxu1 %v9599_v27 }
 0x2f2   :  { %1429 = vmatprep.subr.mxu0 %v9603_v28  ;;  %1500 = vmatprep.subr.mxu1 %v9605_v31 }
 0x2f3   :  { %1430 = vmatpush1.msra.mxu0 %v9609_v32  ;;  %1501 = vmatpush1.msra.mxu1 %v9611_v34 }
 0x2f4   :  { %1431 = vmatprep.subr.mxu0 %v9615_v35  ;;  %1502 = vmatprep.subr.mxu1 %v9617_v36 }
 0x2f5   :  { %1432 = vmatpush1.msra.mxu0 %v9621_v37  ;;  %1503 = vmatpush1.msra.mxu1 %v9623_v38 }
 0x2f6   :  { %1433 = vmatprep.subr.mxu0 %v9627_v40  ;;  %1504 = vmatprep.subr.mxu1 %v9629_v42 }
 0x2f7   :  { %1434 = vmatpush1.msra.mxu0 %v9633_v43  ;;  %1505 = vmatpush1.msra.mxu1 %v9635_v44 }
 0x2f8   :  { %1435 = vmatprep.subr.mxu0 %v9639_v45  ;;  %1506 = vmatprep.subr.mxu1 %v9641_v46 }
 0x2f9   :  { %1436 = vmatpush1.msra.mxu0 %v9645_v47  ;;  %1507 = vmatpush1.msra.mxu1 %v9647_v49 }
 0x2fa   :  { %1437 = vmatprep.subr.mxu0 %v9651_v50  ;;  %1508 = vmatprep.subr.mxu1 %v9653_v51 }
 0x2fb   :  { %1438 = vmatpush1.msra.mxu0 %v9657_v52  ;;  %1509 = vmatpush1.msra.mxu1 %v9659_v48 }
 0x2fc   :  { %1439 = vmatprep.subr.mxu0 %v9663_v21  ;;  %1510 = vmatprep.subr.mxu1 %v9665_v12 }
 0x2fd   :  { %1440 = vmatpush1.msra.mxu0 %v9669_v4  ;;  %1511 = vmatpush1.msra.mxu1 %v9671_v56 }
 0x2fe   :  { %1441 = vmatprep.subr.mxu0 %v9675_v59  ;;  %1512 = vmatprep.subr.mxu1 %v9677_v60 }
 0x2ff   :  { %1442 = vmatpush1.msra.mxu0 %v9681_v62  ;;  %1513 = vmatpush1.msra.mxu1 %v9683_v39 }
 0x300   :  { %1443 = vmatprep.subr.mxu0 %v9687_v55  ;;  %1514 = vmatprep.subr.mxu1 %v9689_v53  ;;  %v12987_v55 = vld [vmem:[#allocation66_spill] sm:$0xff] }
 0x301   :  { %1444 = vmatpush1.msra.mxu0 %v9693_v61  ;;  %1515 = vmatpush1.msra.mxu1 %v9695_v58  ;;  %v9723_v58 = vld [vmem:[#allocation12 + $0x18] sm:$0xff] }
 0x302   :  { %1445 = vmatprep.subr.mxu0 %v9699_v0  ;;  %1516 = vmatprep.subr.mxu1 %v9701_v57  ;;  %v9719_v0 = vld [vmem:[#allocation12 + $0x30] sm:$0xff]  ;;  %v9721_v57 = vld [vmem:[#allocation12 + $0x8] sm:$0xff]  ;;  %12983 = vst [vmem:[#allocation62_spill] sm:$0xff] %v9723_v58 }
 0x303   :  { %1446 = vmatpush1.msra.mxu0 %v9705_v33  ;;  %1517 = vmatpush1.msra.mxu1 %v9707_v30  ;;  %12981 = vst [vmem:[#allocation54_spill] sm:$0xff] %v9719_v0  ;;  %12982 = vst [vmem:[#allocation60_spill] sm:$0xff] %v9721_v57  ;;  %v9727_v30 = vld [vmem:[#allocation12] sm:$0xff]  ;;  %v9729_v33 = vld [vmem:[#allocation12 + $0x10] sm:$0xff] }
 0x304   :  { %1447 = vmatprep.subr.mxu0 %v9711_v3  ;;  %1518 = vmatprep.subr.mxu1 %v9713_v1  ;;  %12984 = vst [vmem:[#allocation63_spill] sm:$0xff] %v9727_v30  ;;  %12985 = vst [vmem:[#allocation61_spill] sm:$0xff] %v9729_v33 }
 0x305   :  { %1448 = vmatpush1.msra.mxu0 %v9715_v29  ;;  %1519 = vmatpush1.msra.mxu1 %v9719_v0  ;;  %v12986_v29 = vld [vmem:[#allocation64_spill] sm:$0xff] }
 0x306   :  { %1449 = vmatprep.subr.mxu0 %v9721_v57  ;;  %1520 = vmatprep.subr.mxu1 %v9723_v58 }
 0x307   :  { %1450 = vmatpush1.msra.mxu0 %v9727_v30  ;;  %1521 = vmatpush1.msra.mxu1 %v9729_v33  ;;  %v12988_v30 = vld [vmem:[#allocation67_spill] sm:$0xff] }
 0x308   :  { %1678 = vmatprep.subr.mxu0 %v9543_v7  ;;  %1749 = vmatprep.subr.mxu1 %v9545_v8  ;;  %v12989_v7 = vld [vmem:[#allocation65_spill] sm:$0xff] }
 0x3a7   :  { %v1226_v1 = vpop.f32.mrf.mxu0  ;;  %v1297_v53 = vpop.f32.mrf.mxu1 }
 0x3a8   :  { %v1302_v3 = vadd.f32 %v1226_v1, %v12986_v29  ;;  %v1304_v56 = vadd.f32 %v1297_v53, %v12989_v7  ;;  %v1087_v29 = vmul.f32 %v9527_v2, %v9524_v54  ;;  %v9751_v53 = vpop.permute.xlu0 %1334 }
 0x3a9   :  { %v1228_v0 = vpop.f32.mrf.mxu0  ;;  %v1299_v60 = vpop.f32.mrf.mxu1 }
 0x3aa   :  { %v1306_v61 = vsub.f32 0.0, %v1302_v3  ;;  %v1303_v39 = vadd.f32 %v1228_v0, %v12987_v55  ;;  %v1305_v33 = vadd.f32 %v1299_v60, %v12988_v30  ;;  %v1088_v30 = vmul.f32 %v9529_v63, %v9446_v5  ;;  %v12992_v0 = vld [vmem:[#allocation37_spill] sm:$0xff] }
 0x3ac   :  { %v1307_v62 = vmul.f32 1.442695, %v1306_v61  ;;  %v1312_v57 = vsub.f32 0.0, %v1303_v39  ;;  %v1319_v59 = vsub.f32 0.0, %v1305_v33  ;;  %v9745_v55 = vadd.f32 %v1088_v30, %v1087_v29  ;;  %v9753_v61 = vpop.permute.xlu1 %1341  ;;  %v12994_v33 = vld [vmem:[#allocation39_spill] sm:$0xff]  ;;  %v12997_v29 = vld [vmem:[#allocation42_spill] sm:$0xff] }
 0x3ad   :  { %v1344_v5 = vmul.f32 %v9753_v61, %v9537_v6  ;;  %v12991_v6 = vld [vmem:[#allocation36_spill] sm:$0xff]  ;;  %v13000_v30 = vld [vmem:[#allocation45_spill] sm:$0xff] }
 0x3ae   :  { %8317 = vpow2.f32 %v1307_v62  ;;  %v1313_v58 = vmul.f32 1.442695, %v1312_v57  ;;  %v1320_v8 = vmul.f32 1.442695, %v1319_v59  ;;  %v12993_v57 = vld [vmem:[#allocation38_spill] sm:$0xff] }
 0x3b0   :  { %8319 = vpow2.f32 %v1313_v58 }
 0x3b1   :  { %8321 = vtanh.f32 %v1304_v56 }
 0x3b2   :  { %8323 = vpow2.f32 %v1320_v8 }
 0x3bb   :  { %v8318_v4 = vpop.eup %8317 }
 0x3bc   :  { %v1309_v12 = vadd.f32 1.0, %v8318_v4 }
 0x3bd   :  { %v8320_v1 = vpop.eup %8319 }
 0x3be   :  { %8325 = vrcp.f32 %v1309_v12  ;;  %v1315_v3 = vadd.f32 1.0, %v8320_v1  ;;  %v8322_v62 = vpop.eup %8321  ;;  %v12995_v1 = vld [vmem:[#allocation40_spill] sm:$0xff] }
 0x3bf   :  { %v8324_v39 = vpop.eup %8323 }
 0x3c0   :  { %8327 = vrcp.f32 %v1315_v3  ;;  %v1322_v4 = vadd.f32 1.0, %v8324_v39  ;;  %v12996_v3 = vld [vmem:[#allocation41_spill] sm:$0xff]  ;;  %v12999_v39 = vld [vmem:[#allocation44_spill] sm:$0xff] }
 0x3c2   :  { %8329 = vrcp.f32 %v1322_v4  ;;  %v13004_v4 = vld [vmem:[#allocation49_spill] sm:$0xff] }
 0x3cb   :  { %v8326_v60 = vpop.eup %8325 }
 0x3cc   :  { %v1326_v7 = vmul.f32 %v8326_v60, %v8322_v62  ;;  %v12998_v62 = vld [vmem:[#allocation43_spill] sm:$0xff]  ;;  %v13001_v60 = vld [vmem:[#allocation46_spill] sm:$0xff] }
 0x3cd   :  { %v8328_v59 = vpop.eup %8327 }
 0x3ce   :  { %v1325_v56 = vmul.f32 %v8328_v59, %v9745_v55  ;;  %v13003_v59 = vld [vmem:[#allocation48_spill] sm:$0xff] }
 0x3cf   :  { %v8330_v12 = vpop.eup %8329 }
 0x3d0   :  { %v9748_v8 = vadd.f32 %v1326_v7, %v1325_v56  ;;  %v13002_v7 = vld [vmem:[#allocation47_spill] sm:$0xff]  ;;  %v13005_v56 = vld [vmem:[#allocation50_spill] sm:$0xff] }
 0x3d2   :  { %8331 = vtanh.f32 %v9748_v8 }
 0x3df   :  { %v8332_v54 = vpop.eup %8331 }
 0x3e0   :  { %v1329_v2 = vmul.f32 %v8332_v54, %v8330_v12  ;;  %v13006_v12 = vld [vmem:[#allocation51_spill] sm:$0xff]  ;;  %v13007_v54 = vld [vmem:[#allocation52_spill] sm:$0xff] }
 0x3e2   :  { %v9758_v63 = vmul.f32 %v9751_v53, %v1329_v2  ;;  %v13008_v2 = vld [vmem:[#allocation53_spill] sm:$0xff] }
 0x3e4   :  { %12990 = vst [vmem:[#allocation64_spill] sm:$0xff] %v9758_v63  ;;  %v9761_v58 = vadd.f32 %v1344_v5, %v9758_v63  ;;  %v13009_v5 = vld [vmem:[#allocation54_spill] sm:$0xff]  ;;  %v13010_v63 = vld [vmem:[#allocation60_spill] sm:$0xff] }
 0x3e6   :  { %1484 = vmatmul.mubr.f32.vlgmr.msra.gmra.mxu0 %v9761_v58  ;;  %1555 = vmatmul.mubr.f32.vlgmr.msra.gmra.mxu1 %v9761_v58 }
 0x3e7   :  { %1679 = vmatpush1.msra.mxu0 %v9549_v41  ;;  %1750 = vmatpush1.msra.mxu1 %v9551_v9 }
 0x3e8   :  { %1680 = vmatprep.subr.mxu0 %v9555_v10  ;;  %1751 = vmatprep.subr.mxu1 %v9557_v11 }
 0x3e9   :  { %1681 = vmatpush1.msra.mxu0 %v9561_v13  ;;  %1752 = vmatpush1.msra.mxu1 %v9563_v14 }
 0x3ea   :  { %1682 = vmatprep.subr.mxu0 %v9567_v15  ;;  %1753 = vmatprep.subr.mxu1 %v9569_v16 }
 0x3eb   :  { %1683 = vmatpush1.msra.mxu0 %v9573_v17  ;;  %1754 = vmatpush1.msra.mxu1 %v9575_v18 }
 0x3ec   :  { %1684 = vmatprep.subr.mxu0 %v9579_v19  ;;  %1755 = vmatprep.subr.mxu1 %v9581_v20 }
 0x3ed   :  { %1685 = vmatpush1.msra.mxu0 %v9585_v22  ;;  %1756 = vmatpush1.msra.mxu1 %v9587_v23 }
 0x3ee   :  { %1686 = vmatprep.subr.mxu0 %v9591_v24  ;;  %1757 = vmatprep.subr.mxu1 %v9593_v25 }
 0x3ef   :  { %1687 = vmatpush1.msra.mxu0 %v9597_v26  ;;  %1758 = vmatpush1.msra.mxu1 %v9599_v27 }
 0x3f0   :  { %1688 = vmatprep.subr.mxu0 %v9603_v28  ;;  %1759 = vmatprep.subr.mxu1 %v9605_v31 }
 0x3f1   :  { %1689 = vmatpush1.msra.mxu0 %v9609_v32  ;;  %1760 = vmatpush1.msra.mxu1 %v9611_v34 }
 0x3f2   :  { %1690 = vmatprep.subr.mxu0 %v9615_v35  ;;  %1761 = vmatprep.subr.mxu1 %v9617_v36 }
 0x3f3   :  { %1691 = vmatpush1.msra.mxu0 %v9621_v37  ;;  %1762 = vmatpush1.msra.mxu1 %v9623_v38 }
 0x3f4   :  { %1692 = vmatprep.subr.mxu0 %v9627_v40  ;;  %1763 = vmatprep.subr.mxu1 %v9629_v42 }
 0x3f5   :  { %1693 = vmatpush1.msra.mxu0 %v9633_v43  ;;  %1764 = vmatpush1.msra.mxu1 %v9635_v44 }
 0x3f6   :  { %1694 = vmatprep.subr.mxu0 %v9639_v45  ;;  %1765 = vmatprep.subr.mxu1 %v9641_v46 }
 0x3f7   :  { %1695 = vmatpush1.msra.mxu0 %v9645_v47  ;;  %1766 = vmatpush1.msra.mxu1 %v9647_v49 }
 0x3f8   :  { %1696 = vmatprep.subr.mxu0 %v9651_v50  ;;  %1767 = vmatprep.subr.mxu1 %v9653_v51 }
 0x3f9   :  { %1697 = vmatpush1.msra.mxu0 %v9657_v52  ;;  %1768 = vmatpush1.msra.mxu1 %v9659_v48 }
 0x3fa   :  { %1698 = vmatprep.subr.mxu0 %v9663_v21  ;;  %1769 = vmatprep.subr.mxu1 %v12991_v6 }
 0x3fb   :  { %1699 = vmatpush1.msra.mxu0 %v12992_v0  ;;  %1770 = vmatpush1.msra.mxu1 %v12993_v57 }
 0x3fc   :  { %1700 = vmatprep.subr.mxu0 %v12994_v33  ;;  %1771 = vmatprep.subr.mxu1 %v12995_v1 }
 0x3fd   :  { %1701 = vmatpush1.msra.mxu0 %v12996_v3  ;;  %1772 = vmatpush1.msra.mxu1 %v12997_v29 }
 0x3fe   :  { %1702 = vmatprep.subr.mxu0 %v12998_v62  ;;  %1773 = vmatprep.subr.mxu1 %v12999_v39  ;;  %v13018_v62 = vld [vmem:[#allocation70_spill] sm:$0xff] }
 0x3ff   :  { %1703 = vmatpush1.msra.mxu0 %v13000_v30  ;;  %1774 = vmatpush1.msra.mxu1 %v13001_v60  ;;  %v13011_v30 = vld [vmem:[#allocation62_spill] sm:$0xff]  ;;  %v13012_v60 = vld [vmem:[#allocation63_spill] sm:$0xff] }
 0x400   :  { %1704 = vmatprep.subr.mxu0 %v13002_v7  ;;  %1775 = vmatprep.subr.mxu1 %v13003_v59  ;;  %v13013_v7 = vmov 0.0   ;;  %v13014_v59 = vld [vmem:[#allocation61_spill] sm:$0xff] }
 0x401   :  { %1705 = vmatpush1.msra.mxu0 %v13004_v4  ;;  %1776 = vmatpush1.msra.mxu1 %v13005_v56  ;;  %v13015_v56 = vld [vmem:[#allocation34_spill] sm:$0xff] }
 0x402   :  { %1706 = vmatprep.subr.mxu0 %v13006_v12  ;;  %1777 = vmatprep.subr.mxu1 %v13007_v54  ;;  %v13016_v12 = vld [vmem:[#allocation35_spill] sm:$0xff] }
 0x403   :  { %1707 = vmatpush1.msra.mxu0 %v13008_v2  ;;  %1778 = vmatpush1.msra.mxu1 %v13009_v5  ;;  %v13017_v2 = vld [vmem:[#allocation68_spill] sm:$0xff] }
 0x404   :  { %1708 = vmatprep.subr.mxu0 %v13010_v63  ;;  %1779 = vmatprep.subr.mxu1 %v13011_v30 }
 0x405   :  { %1709 = vmatpush1.msra.mxu0 %v13012_v60  ;;  %1742 = vmatprep.mubr.f32.mxu0 %v13013_v7 }
 0x406   :  { %1780 = vmatpush1.msra.mxu1 %v13014_v59  ;;  %1813 = vmatprep.mubr.f32.mxu1 %v13013_v7  ;;  %v13019_v59 = vld [vmem:[#allocation71_spill] sm:$0xff] }
 0x407   :  { %1937 = vmatprep.subr.mxu0 %v13015_v56  ;;  %2008 = vmatprep.subr.mxu1 %v13016_v12  ;;  %v13020_v56 = vld [vmem:[#allocation69_spill] sm:$0xff] }
 0x4a6   :  { %v1485_v54 = vpop.f32.mrf.mxu0  ;;  %v1556_v63 = vpop.f32.mrf.mxu1 }
 0x4a7   :  { %v1561_v4 = vadd.f32 %v1485_v54, %v13017_v2  ;;  %v1563_v57 = vadd.f32 %v1556_v63, %v13020_v56  ;;  %v13024_v2 = vld [vmem:[#allocation38_spill] sm:$0xff] }
 0x4a8   :  { %v1487_v5 = vpop.f32.mrf.mxu0  ;;  %v1558_v1 = vpop.f32.mrf.mxu1 }
 0x4a9   :  { %v1565_v39 = vsub.f32 0.0, %v1561_v4  ;;  %v1562_v30 = vadd.f32 %v1487_v5, %v13018_v62  ;;  %v1564_v7 = vadd.f32 %v1558_v1, %v13019_v59  ;;  %v1347_v1 = vmul.f32 %v9753_v61, %v9745_v55  ;;  %v9847_v59 = vpop.permute.xlu1 %1600  ;;  %v13025_v5 = vld [vmem:[#allocation39_spill] sm:$0xff] }
 0x4aa   :  { %v1603_v61 = vmul.f32 %v9847_v59, %v9761_v58  ;;  %v13022_v58 = vld [vmem:[#allocation36_spill] sm:$0xff] }
 0x4ab   :  { %v1566_v29 = vmul.f32 1.442695, %v1565_v39  ;;  %v1571_v60 = vsub.f32 0.0, %v1562_v30  ;;  %v1578_v33 = vsub.f32 0.0, %v1564_v7  ;;  %v9845_v7 = vpop.permute.xlu0 %1593 }
 0x4ad   :  { %8333 = vpow2.f32 %v1566_v29  ;;  %v1572_v3 = vmul.f32 1.442695, %v1571_v60  ;;  %v1579_v12 = vmul.f32 1.442695, %v1578_v33  ;;  %v1346_v29 = vmul.f32 %v9751_v53, %v9748_v8 }
 0x4af   :  { %8335 = vpow2.f32 %v1572_v3  ;;  %v9839_v63 = vadd.f32 %v1347_v1, %v1346_v29  ;;  %v13028_v29 = vld [vmem:[#allocation42_spill] sm:$0xff]  ;;  %v13031_v1 = vld [vmem:[#allocation45_spill] sm:$0xff] }
 0x4b0   :  { %8337 = vtanh.f32 %v1563_v57 }
 0x4b1   :  { %8339 = vpow2.f32 %v1579_v12  ;;  %v13023_v12 = vld [vmem:[#allocation37_spill] sm:$0xff] }
 0x4ba   :  { %v8334_v0 = vpop.eup %8333 }
 0x4bb   :  { %v1568_v6 = vadd.f32 1.0, %v8334_v0 }
 0x4bc   :  { %v8336_v54 = vpop.eup %8335 }
 0x4bd   :  { %8341 = vrcp.f32 %v1568_v6  ;;  %v1574_v4 = vadd.f32 1.0, %v8336_v54  ;;  %v8338_v62 = vpop.eup %8337  ;;  %v13026_v54 = vld [vmem:[#allocation40_spill] sm:$0xff] }
 0x4be   :  { %v8340_v39 = vpop.eup %8339 }
 0x4bf   :  { %8343 = vrcp.f32 %v1574_v4  ;;  %v1581_v0 = vadd.f32 1.0, %v8340_v39  ;;  %v13027_v4 = vld [vmem:[#allocation41_spill] sm:$0xff]  ;;  %v13030_v39 = vld [vmem:[#allocation44_spill] sm:$0xff] }
 0x4c1   :  { %8345 = vrcp.f32 %v1581_v0  ;;  %v13035_v0 = vld [vmem:[#allocation49_spill] sm:$0xff] }
 0x4ca   :  { %v8342_v3 = vpop.eup %8341 }
 0x4cb   :  { %v1585_v30 = vmul.f32 %v8342_v3, %v8338_v62  ;;  %v13029_v62 = vld [vmem:[#allocation43_spill] sm:$0xff]  ;;  %v13032_v3 = vld [vmem:[#allocation46_spill] sm:$0xff] }
 0x4cc   :  { %v8344_v33 = vpop.eup %8343 }
 0x4cd   :  { %v1584_v57 = vmul.f32 %v8344_v33, %v9839_v63  ;;  %v13034_v33 = vld [vmem:[#allocation48_spill] sm:$0xff] }
 0x4ce   :  { %v8346_v6 = vpop.eup %8345 }
 0x4cf   :  { %v9842_v60 = vadd.f32 %v1585_v30, %v1584_v57  ;;  %v13033_v30 = vld [vmem:[#allocation47_spill] sm:$0xff]  ;;  %v13036_v57 = vld [vmem:[#allocation50_spill] sm:$0xff] }
 0x4d1   :  { %8347 = vtanh.f32 %v9842_v60 }
 0x4de   :  { %v8348_v8 = vpop.eup %8347 }
 0x4df   :  { %v1588_v53 = vmul.f32 %v8348_v8, %v8346_v6  ;;  %v13037_v6 = vld [vmem:[#allocation51_spill] sm:$0xff]  ;;  %v13038_v8 = vld [vmem:[#allocation52_spill] sm:$0xff] }
 0x4e1   :  { %v9850_v55 = vmul.f32 %v9845_v7, %v1588_v53  ;;  %v13039_v53 = vld [vmem:[#allocation53_spill] sm:$0xff] }
 0x4e3   :  { %13021 = vst [vmem:[#allocation66_spill] sm:$0xff] %v9850_v55  ;;  %v9855_v56 = vadd.f32 %v1603_v61, %v9850_v55  ;;  %v13040_v61 = vld [vmem:[#allocation54_spill] sm:$0xff]  ;;  %v13041_v55 = vld [vmem:[#allocation60_spill] sm:$0xff] }
 0x4e5   :  { %1743 = vmatmul.mubr.f32.vlgmr.msra.gmra.mxu0 %v9855_v56  ;;  %1814 = vmatmul.mubr.f32.vlgmr.msra.gmra.mxu1 %v9855_v56 }
 0x4e6   :  { %1938 = vmatpush1.msra.mxu0 %v9549_v41  ;;  %2009 = vmatpush1.msra.mxu1 %v9551_v9 }
 0x4e7   :  { %1939 = vmatprep.subr.mxu0 %v9555_v10  ;;  %2010 = vmatprep.subr.mxu1 %v9557_v11 }
 0x4e8   :  { %1940 = vmatpush1.msra.mxu0 %v9561_v13  ;;  %2011 = vmatpush1.msra.mxu1 %v9563_v14 }
 0x4e9   :  { %1941 = vmatprep.subr.mxu0 %v9567_v15  ;;  %2012 = vmatprep.subr.mxu1 %v9569_v16 }
 0x4ea   :  { %1942 = vmatpush1.msra.mxu0 %v9573_v17  ;;  %2013 = vmatpush1.msra.mxu1 %v9575_v18 }
 0x4eb   :  { %1943 = vmatprep.subr.mxu0 %v9579_v19  ;;  %2014 = vmatprep.subr.mxu1 %v9581_v20 }
 0x4ec   :  { %1944 = vmatpush1.msra.mxu0 %v9585_v22  ;;  %2015 = vmatpush1.msra.mxu1 %v9587_v23 }
 0x4ed   :  { %1945 = vmatprep.subr.mxu0 %v9591_v24  ;;  %2016 = vmatprep.subr.mxu1 %v9593_v25 }
 0x4ee   :  { %1946 = vmatpush1.msra.mxu0 %v9597_v26  ;;  %2017 = vmatpush1.msra.mxu1 %v9599_v27 }
 0x4ef   :  { %1947 = vmatprep.subr.mxu0 %v9603_v28  ;;  %2018 = vmatprep.subr.mxu1 %v9605_v31 }
 0x4f0   :  { %1948 = vmatpush1.msra.mxu0 %v9609_v32  ;;  %2019 = vmatpush1.msra.mxu1 %v9611_v34 }
 0x4f1   :  { %1949 = vmatprep.subr.mxu0 %v9615_v35  ;;  %2020 = vmatprep.subr.mxu1 %v9617_v36 }
 0x4f2   :  { %1950 = vmatpush1.msra.mxu0 %v9621_v37  ;;  %2021 = vmatpush1.msra.mxu1 %v9623_v38 }
 0x4f3   :  { %1951 = vmatprep.subr.mxu0 %v9627_v40  ;;  %2022 = vmatprep.subr.mxu1 %v9629_v42 }
 0x4f4   :  { %1952 = vmatpush1.msra.mxu0 %v9633_v43  ;;  %2023 = vmatpush1.msra.mxu1 %v9635_v44 }
 0x4f5   :  { %1953 = vmatprep.subr.mxu0 %v9639_v45  ;;  %2024 = vmatprep.subr.mxu1 %v9641_v46 }
 0x4f6   :  { %1954 = vmatpush1.msra.mxu0 %v9645_v47  ;;  %2025 = vmatpush1.msra.mxu1 %v9647_v49 }
 0x4f7   :  { %1955 = vmatprep.subr.mxu0 %v9651_v50  ;;  %2026 = vmatprep.subr.mxu1 %v9653_v51 }
 0x4f8   :  { %1956 = vmatpush1.msra.mxu0 %v9657_v52  ;;  %2027 = vmatpush1.msra.mxu1 %v9659_v48 }
 0x4f9   :  { %1957 = vmatprep.subr.mxu0 %v9663_v21  ;;  %2028 = vmatprep.subr.mxu1 %v13022_v58 }
 0x4fa   :  { %1958 = vmatpush1.msra.mxu0 %v13023_v12  ;;  %2029 = vmatpush1.msra.mxu1 %v13024_v2 }
 0x4fb   :  { %1959 = vmatprep.subr.mxu0 %v13025_v5  ;;  %2030 = vmatprep.subr.mxu1 %v13026_v54 }
 0x4fc   :  { %1960 = vmatpush1.msra.mxu0 %v13027_v4  ;;  %2031 = vmatpush1.msra.mxu1 %v13028_v29 }
 0x4fd   :  { %1961 = vmatprep.subr.mxu0 %v13029_v62  ;;  %2032 = vmatprep.subr.mxu1 %v13030_v39  ;;  %v13049_v62 = vld [vmem:[#allocation74_spill] sm:$0xff] }
 0x4fe   :  { %1962 = vmatpush1.msra.mxu0 %v13031_v1  ;;  %2033 = vmatpush1.msra.mxu1 %v13032_v3  ;;  %v13042_v1 = vld [vmem:[#allocation62_spill] sm:$0xff]  ;;  %v13043_v3 = vld [vmem:[#allocation63_spill] sm:$0xff] }
 0x4ff   :  { %1963 = vmatprep.subr.mxu0 %v13033_v30  ;;  %2034 = vmatprep.subr.mxu1 %v13034_v33  ;;  %v13044_v30 = vmov 0.0   ;;  %v13045_v33 = vld [vmem:[#allocation61_spill] sm:$0xff] }
 0x500   :  { %1964 = vmatpush1.msra.mxu0 %v13035_v0  ;;  %2035 = vmatpush1.msra.mxu1 %v13036_v57  ;;  %v13046_v57 = vld [vmem:[#allocation34_spill] sm:$0xff] }
 0x501   :  { %1965 = vmatprep.subr.mxu0 %v13037_v6  ;;  %2036 = vmatprep.subr.mxu1 %v13038_v8  ;;  %v13047_v6 = vld [vmem:[#allocation35_spill] sm:$0xff] }
 0x502   :  { %1966 = vmatpush1.msra.mxu0 %v13039_v53  ;;  %2037 = vmatpush1.msra.mxu1 %v13040_v61  ;;  %v13048_v53 = vld [vmem:[#allocation72_spill] sm:$0xff] }
 0x503   :  { %1967 = vmatprep.subr.mxu0 %v13041_v55  ;;  %2038 = vmatprep.subr.mxu1 %v13042_v1 }
 0x504   :  { %1968 = vmatpush1.msra.mxu0 %v13043_v3  ;;  %2001 = vmatprep.mubr.f32.mxu0 %v13044_v30 }
 0x505   :  { %2039 = vmatpush1.msra.mxu1 %v13045_v33  ;;  %2072 = vmatprep.mubr.f32.mxu1 %v13044_v30  ;;  %v13050_v33 = vld [vmem:[#allocation75_spill] sm:$0xff] }
 0x506   :  { %2196 = vmatprep.subr.mxu0 %v13046_v57  ;;  %2267 = vmatprep.subr.mxu1 %v13047_v6  ;;  %v13051_v57 = vld [vmem:[#allocation73_spill] sm:$0xff] }
 0x5a5   :  { %v1744_v8 = vpop.f32.mrf.mxu0  ;;  %v1815_v55 = vpop.f32.mrf.mxu1 }
 0x5a6   :  { %v1820_v0 = vadd.f32 %v1744_v8, %v13048_v53  ;;  %v1822_v2 = vadd.f32 %v1815_v55, %v13051_v57 }
 0x5a7   :  { %v1746_v61 = vpop.f32.mrf.mxu0  ;;  %v1817_v54 = vpop.f32.mrf.mxu1 }
 0x5a8   :  { %v1824_v39 = vsub.f32 0.0, %v1820_v0  ;;  %v1821_v1 = vadd.f32 %v1746_v61, %v13049_v62  ;;  %v1823_v30 = vadd.f32 %v1817_v54, %v13050_v33  ;;  %v1606_v54 = vmul.f32 %v9847_v59, %v9839_v63  ;;  %v9941_v33 = vpop.permute.xlu1 %1859 }
 0x5a9   :  { %v1862_v59 = vmul.f32 %v9941_v33, %v9855_v56  ;;  %v13080_v56 = vld [vmem:[#allocation77_spill] sm:$0xff] }
 0x5aa   :  { %v1825_v29 = vmul.f32 1.442695, %v1824_v39  ;;  %v1830_v3 = vsub.f32 0.0, %v1821_v1  ;;  %v1837_v5 = vsub.f32 0.0, %v1823_v30  ;;  %v9939_v30 = vpop.permute.xlu0 %1852 }
 0x5ac   :  { %8349 = vpow2.f32 %v1825_v29  ;;  %v1831_v4 = vmul.f32 1.442695, %v1830_v3  ;;  %v1838_v6 = vmul.f32 1.442695, %v1837_v5  ;;  %v1605_v29 = vmul.f32 %v9845_v7, %v9842_v60 }
 0x5ae   :  { %8351 = vpow2.f32 %v1831_v4  ;;  %v9933_v55 = vadd.f32 %v1606_v54, %v1605_v29 }
 0x5af   :  { %8353 = vtanh.f32 %v1822_v2 }
 0x5b0   :  { %8355 = vpow2.f32 %v1838_v6 }
 0x5b9   :  { %v8350_v12 = vpop.eup %8349 }
 0x5ba   :  { %v1827_v58 = vadd.f32 1.0, %v8350_v12 }
 0x5bb   :  { %v8352_v8 = vpop.eup %8351 }
 0x5bc   :  { %8357 = vrcp.f32 %v1827_v58  ;;  %v1833_v0 = vadd.f32 1.0, %v8352_v8  ;;  %v8354_v62 = vpop.eup %8353 }
 0x5bd   :  { %v8356_v39 = vpop.eup %8355 }
 0x5be   :  { %8359 = vrcp.f32 %v1833_v0  ;;  %v1840_v12 = vadd.f32 1.0, %v8356_v39 }
 0x5c0   :  { %8361 = vrcp.f32 %v1840_v12 }
 0x5c9   :  { %v8358_v4 = vpop.eup %8357 }
 0x5ca   :  { %v1844_v1 = vmul.f32 %v8358_v4, %v8354_v62  ;;  %v1865_v4 = vmul.f32 %v9941_v33, %v9933_v55 }
 0x5cb   :  { %v8360_v5 = vpop.eup %8359 }
 0x5cc   :  { %v1843_v2 = vmul.f32 %v8360_v5, %v9933_v55 }
 0x5cd   :  { %v8362_v58 = vpop.eup %8361 }
 0x5ce   :  { %v9936_v3 = vadd.f32 %v1844_v1, %v1843_v2 }
 0x5d0   :  { %8363 = vtanh.f32 %v9936_v3  ;;  %v1864_v62 = vmul.f32 %v9939_v30, %v9936_v3 }
 0x5d2   :  { %v10025_v12 = vadd.f32 %v1865_v4, %v1864_v62  ;;  %v2413_v62 = vld [vmem:[#allocation12 + $0xb0] sm:$0xff]  ;;  %v2407_v4 = vld [vmem:[#allocation12 + $0x80] sm:$0xff] }
 0x5dd   :  { %v8364_v60 = vpop.eup %8363 }
 0x5de   :  { %v1847_v7 = vmul.f32 %v8364_v60, %v8362_v58 }
 0x5e0   :  { %v9944_v63 = vmul.f32 %v9939_v30, %v1847_v7 }
 0x5e2   :  { %13052 = vst [vmem:[#allocation67_spill] sm:$0xff] %v9944_v63  ;;  %v9949_v53 = vadd.f32 %v1862_v59, %v9944_v63 }
 0x5e4   :  { %2002 = vmatmul.mubr.f32.vlgmr.msra.gmra.mxu0 %v9949_v53  ;;  %2073 = vmatmul.mubr.f32.vlgmr.msra.gmra.mxu1 %v9949_v53 }
 0x5e5   :  { %2197 = vmatpush1.msra.mxu0 %v9549_v41  ;;  %2268 = vmatpush1.msra.mxu1 %v9551_v9  ;;  %v13053_v41 = vld [vmem:[#allocation36_spill] sm:$0xff]  ;;  %v13054_v9 = vld [vmem:[#allocation37_spill] sm:$0xff] }
 0x5e6   :  { %2198 = vmatprep.subr.mxu0 %v9555_v10  ;;  %2269 = vmatprep.subr.mxu1 %v9557_v11  ;;  %v13055_v10 = vld [vmem:[#allocation38_spill] sm:$0xff]  ;;  %v13056_v11 = vld [vmem:[#allocation39_spill] sm:$0xff] }
 0x5e7   :  { %2199 = vmatpush1.msra.mxu0 %v9561_v13  ;;  %2270 = vmatpush1.msra.mxu1 %v9563_v14  ;;  %v13057_v13 = vld [vmem:[#allocation40_spill] sm:$0xff]  ;;  %v13058_v14 = vld [vmem:[#allocation41_spill] sm:$0xff] }
 0x5e8   :  { %2200 = vmatprep.subr.mxu0 %v9567_v15  ;;  %2271 = vmatprep.subr.mxu1 %v9569_v16  ;;  %v13059_v15 = vld [vmem:[#allocation42_spill] sm:$0xff]  ;;  %v13060_v16 = vld [vmem:[#allocation43_spill] sm:$0xff] }
 0x5e9   :  { %2201 = vmatpush1.msra.mxu0 %v9573_v17  ;;  %2272 = vmatpush1.msra.mxu1 %v9575_v18  ;;  %v13061_v17 = vld [vmem:[#allocation44_spill] sm:$0xff]  ;;  %v13062_v18 = vld [vmem:[#allocation45_spill] sm:$0xff] }
 0x5ea   :  { %2202 = vmatprep.subr.mxu0 %v9579_v19  ;;  %2273 = vmatprep.subr.mxu1 %v9581_v20  ;;  %v13063_v19 = vld [vmem:[#allocation46_spill] sm:$0xff]  ;;  %v13064_v20 = vld [vmem:[#allocation47_spill] sm:$0xff] }
 0x5eb   :  { %2203 = vmatpush1.msra.mxu0 %v9585_v22  ;;  %2274 = vmatpush1.msra.mxu1 %v9587_v23  ;;  %v13065_v22 = vld [vmem:[#allocation48_spill] sm:$0xff]  ;;  %v13066_v23 = vld [vmem:[#allocation49_spill] sm:$0xff] }
 0x5ec   :  { %2204 = vmatprep.subr.mxu0 %v9591_v24  ;;  %2275 = vmatprep.subr.mxu1 %v9593_v25  ;;  %v13067_v24 = vld [vmem:[#allocation50_spill] sm:$0xff]  ;;  %v13068_v25 = vld [vmem:[#allocation51_spill] sm:$0xff] }
 0x5ed   :  { %2205 = vmatpush1.msra.mxu0 %v9597_v26  ;;  %2276 = vmatpush1.msra.mxu1 %v9599_v27  ;;  %v13069_v26 = vld [vmem:[#allocation52_spill] sm:$0xff]  ;;  %v13070_v27 = vld [vmem:[#allocation53_spill] sm:$0xff] }
 0x5ee   :  { %2206 = vmatprep.subr.mxu0 %v9603_v28  ;;  %2277 = vmatprep.subr.mxu1 %v9605_v31  ;;  %v13071_v28 = vld [vmem:[#allocation54_spill] sm:$0xff]  ;;  %v13072_v31 = vld [vmem:[#allocation60_spill] sm:$0xff] }
 0x5ef   :  { %2207 = vmatpush1.msra.mxu0 %v9609_v32  ;;  %2278 = vmatpush1.msra.mxu1 %v9611_v34  ;;  %v13073_v32 = vld [vmem:[#allocation62_spill] sm:$0xff]  ;;  %v13074_v34 = vld [vmem:[#allocation63_spill] sm:$0xff] }
 0x5f0   :  { %2208 = vmatprep.subr.mxu0 %v9615_v35  ;;  %2279 = vmatprep.subr.mxu1 %v9617_v36  ;;  %v13075_v35 = vmov 0.0   ;;  %v13076_v36 = vld [vmem:[#allocation61_spill] sm:$0xff] }
 0x5f1   :  { %2209 = vmatpush1.msra.mxu0 %v9621_v37  ;;  %2280 = vmatpush1.msra.mxu1 %v9623_v38  ;;  %v13077_v38 = vld [vmem:[#allocation76_spill] sm:$0xff] }
 0x5f2   :  { %2210 = vmatprep.subr.mxu0 %v9627_v40  ;;  %2281 = vmatprep.subr.mxu1 %v9629_v42 }
 0x5f3   :  { %2211 = vmatpush1.msra.mxu0 %v9633_v43  ;;  %2282 = vmatpush1.msra.mxu1 %v9635_v44 }
 0x5f4   :  { %2212 = vmatprep.subr.mxu0 %v9639_v45  ;;  %2283 = vmatprep.subr.mxu1 %v9641_v46  ;;  %v13078_v45 = vld [vmem:[#allocation78_spill] sm:$0xff] }
 0x5f5   :  { %2213 = vmatpush1.msra.mxu0 %v9645_v47  ;;  %2284 = vmatpush1.msra.mxu1 %v9647_v49 }
 0x5f6   :  { %2214 = vmatprep.subr.mxu0 %v9651_v50  ;;  %2285 = vmatprep.subr.mxu1 %v9653_v51 }
 0x5f7   :  { %2215 = vmatpush1.msra.mxu0 %v9657_v52  ;;  %2286 = vmatpush1.msra.mxu1 %v9659_v48  ;;  %v13079_v52 = vld [vmem:[#allocation79_spill] sm:$0xff] }
 0x5f8   :  { %2216 = vmatprep.subr.mxu0 %v9663_v21  ;;  %2287 = vmatprep.subr.mxu1 %v13053_v41  ;;  %v10031_v41 = vpop.permute.xlu0 %2111 }
 0x5f9   :  { %2217 = vmatpush1.msra.mxu0 %v13054_v9  ;;  %2288 = vmatpush1.msra.mxu1 %v13055_v10  ;;  %v10033_v9 = vpop.permute.xlu1 %2118 }
 0x5fa   :  { %2218 = vmatprep.subr.mxu0 %v13056_v11  ;;  %2289 = vmatprep.subr.mxu1 %v13057_v13  ;;  %v2121_v33 = vmul.f32 %v10033_v9, %v9949_v53  ;;  %v2452_v11 = vld [vmem:[#allocation12 + $0x1e8] sm:$0xff]  ;;  %v2454_v13 = vld [vmem:[#allocation12 + $0x1f8] sm:$0xff] }
 0x5fb   :  { %2219 = vmatpush1.msra.mxu0 %v13058_v14  ;;  %2290 = vmatpush1.msra.mxu1 %v13059_v15  ;;  %v2451_v14 = vld [vmem:[#allocation12 + $0x1e0] sm:$0xff]  ;;  %v2453_v15 = vld [vmem:[#allocation12 + $0x1f0] sm:$0xff]  ;;  %v2448_v53 = vld [vmem:[#allocation12 + $0x1c8] sm:$0xff] }
 0x5fc   :  { %2220 = vmatprep.subr.mxu0 %v13060_v16  ;;  %2291 = vmatprep.subr.mxu1 %v13061_v17  ;;  %v2450_v16 = vld [vmem:[#allocation12 + $0x1d8] sm:$0xff]  ;;  %v2447_v17 = vld [vmem:[#allocation12 + $0x1c0] sm:$0xff] }
 0x5fd   :  { %2221 = vmatpush1.msra.mxu0 %v13062_v18  ;;  %2292 = vmatpush1.msra.mxu1 %v13063_v19  ;;  %v2449_v18 = vld [vmem:[#allocation12 + $0x1d0] sm:$0xff]  ;;  %v2444_v19 = vld [vmem:[#allocation12 + $0x1a8] sm:$0xff] }
 0x5fe   :  { %2222 = vmatprep.subr.mxu0 %v13064_v20  ;;  %2293 = vmatprep.subr.mxu1 %v13065_v22  ;;  %v2446_v20 = vld [vmem:[#allocation12 + $0x1b8] sm:$0xff]  ;;  %v2443_v22 = vld [vmem:[#allocation12 + $0x1a0] sm:$0xff] }
 0x5ff   :  { %2223 = vmatpush1.msra.mxu0 %v13066_v23  ;;  %2294 = vmatpush1.msra.mxu1 %v13067_v24  ;;  %v2445_v23 = vld [vmem:[#allocation12 + $0x1b0] sm:$0xff]  ;;  %v2440_v24 = vld [vmem:[#allocation12 + $0x188] sm:$0xff] }
 0x600   :  { %2224 = vmatprep.subr.mxu0 %v13068_v25  ;;  %2295 = vmatprep.subr.mxu1 %v13069_v26  ;;  %v2442_v25 = vld [vmem:[#allocation12 + $0x198] sm:$0xff]  ;;  %v2439_v26 = vld [vmem:[#allocation12 + $0x180] sm:$0xff] }
 0x601   :  { %2225 = vmatpush1.msra.mxu0 %v13070_v27  ;;  %2296 = vmatpush1.msra.mxu1 %v13071_v28  ;;  %v2441_v27 = vld [vmem:[#allocation12 + $0x190] sm:$0xff]  ;;  %v2436_v28 = vld [vmem:[#allocation12 + $0x168] sm:$0xff] }
 0x602   :  { %2226 = vmatprep.subr.mxu0 %v13072_v31  ;;  %2297 = vmatprep.subr.mxu1 %v13073_v32  ;;  %v2438_v31 = vld [vmem:[#allocation12 + $0x178] sm:$0xff]  ;;  %v2435_v32 = vld [vmem:[#allocation12 + $0x160] sm:$0xff] }
 0x603   :  { %2227 = vmatpush1.msra.mxu0 %v13074_v34  ;;  %2260 = vmatprep.mubr.f32.mxu0 %v13075_v35  ;;  %v2437_v34 = vld [vmem:[#allocation12 + $0x170] sm:$0xff] }
 0x604   :  { %2298 = vmatpush1.msra.mxu1 %v13076_v36  ;;  %2331 = vmatprep.mubr.f32.mxu1 %v13075_v35  ;;  %v2432_v36 = vld [vmem:[#allocation12 + $0x148] sm:$0xff] }
 0x605   :  { %2455 = vmatprep.subr.mxu0 %v2452_v11  ;;  %2526 = vmatprep.subr.mxu1 %v2454_v13  ;;  %v2396_v11 = vld [vmem:[#allocation12 + $0x28] sm:$0xff]  ;;  %v2398_v13 = vld [vmem:[#allocation12 + $0x38] sm:$0xff] }
 0x6a4   :  { %v2003_v37 = vpop.f32.mrf.mxu0  ;;  %v2074_v44 = vpop.f32.mrf.mxu1 }
 0x6a5   :  { %v2079_v40 = vadd.f32 %v2003_v37, %v13077_v38  ;;  %v2081_v61 = vadd.f32 %v2074_v44, %v13080_v56  ;;  %v2434_v37 = vld [vmem:[#allocation12 + $0x158] sm:$0xff]  ;;  %v2431_v38 = vld [vmem:[#allocation12 + $0x140] sm:$0xff]  ;;  %v2416_v56 = vld [vmem:[#allocation12 + $0xc8] sm:$0xff] }
 0x6a6   :  { %v2005_v42 = vpop.f32.mrf.mxu0  ;;  %v2076_v51 = vpop.f32.mrf.mxu1  ;;  %v2427_v44 = vld [vmem:[#allocation12 + $0x120] sm:$0xff] }
 0x6a7   :  { %v2083_v43 = vsub.f32 0.0, %v2079_v40  ;;  %v2080_v46 = vadd.f32 %v2005_v42, %v13078_v45  ;;  %v2082_v48 = vadd.f32 %v2076_v51, %v13079_v52  ;;  %v2433_v40 = vld [vmem:[#allocation12 + $0x150] sm:$0xff]  ;;  %v2428_v42 = vld [vmem:[#allocation12 + $0x128] sm:$0xff]  ;;  %v2422_v52 = vld [vmem:[#allocation12 + $0xf8] sm:$0xff] }
 0x6a8   :  { %v2429_v45 = vld [vmem:[#allocation12 + $0x130] sm:$0xff]  ;;  %v2420_v51 = vld [vmem:[#allocation12 + $0xe8] sm:$0xff] }
 0x6a9   :  { %v2084_v47 = vmul.f32 1.442695, %v2083_v43  ;;  %v2089_v49 = vsub.f32 0.0, %v2080_v46  ;;  %v2096_v21 = vsub.f32 0.0, %v2082_v48  ;;  %v2430_v43 = vld [vmem:[#allocation12 + $0x138] sm:$0xff]  ;;  %v2424_v46 = vld [vmem:[#allocation12 + $0x108] sm:$0xff] }
 0x6aa   :  { %v2419_v48 = vld [vmem:[#allocation12 + $0xe0] sm:$0xff] }
 0x6ab   :  { %8365 = vpow2.f32 %v2084_v47  ;;  %v2090_v50 = vmul.f32 1.442695, %v2089_v49  ;;  %v2097_v57 = vmul.f32 1.442695, %v2096_v21  ;;  %v2426_v47 = vld [vmem:[#allocation12 + $0x118] sm:$0xff]  ;;  %v2423_v49 = vld [vmem:[#allocation12 + $0x100] sm:$0xff] }
 0x6ac   :  { %v2421_v21 = vld [vmem:[#allocation12 + $0xf0] sm:$0xff] }
 0x6ad   :  { %8367 = vpow2.f32 %v2090_v50  ;;  %v2425_v50 = vld [vmem:[#allocation12 + $0x110] sm:$0xff] }
 0x6ae   :  { %8369 = vtanh.f32 %v2081_v61  ;;  %v2418_v61 = vld [vmem:[#allocation12 + $0xd8] sm:$0xff] }
 0x6af   :  { %8371 = vpow2.f32 %v2097_v57  ;;  %v2415_v57 = vld [vmem:[#allocation12 + $0xc0] sm:$0xff] }
 0x6b8   :  { %v8366_v6 = vpop.eup %8365 }
 0x6b9   :  { %v2086_v8 = vadd.f32 1.0, %v8366_v6  ;;  %v2417_v6 = vld [vmem:[#allocation12 + $0xd0] sm:$0xff] }
 0x6ba   :  { %v8368_v0 = vpop.eup %8367 }
 0x6bb   :  { %8373 = vrcp.f32 %v2086_v8  ;;  %v2092_v29 = vadd.f32 1.0, %v8368_v0  ;;  %v8370_v39 = vpop.eup %8369  ;;  %v2412_v8 = vld [vmem:[#allocation12 + $0xa8] sm:$0xff]  ;;  %v2414_v0 = vld [vmem:[#allocation12 + $0xb8] sm:$0xff] }
 0x6bc   :  { %v8372_v54 = vpop.eup %8371 }
 0x6bd   :  { %8375 = vrcp.f32 %v2092_v29  ;;  %v2099_v58 = vadd.f32 1.0, %v8372_v54  ;;  %v2411_v29 = vld [vmem:[#allocation12 + $0xa0] sm:$0xff]  ;;  %v2410_v54 = vld [vmem:[#allocation12 + $0x98] sm:$0xff] }
 0x6bf   :  { %8377 = vrcp.f32 %v2099_v58  ;;  %v2403_v58 = vld [vmem:[#allocation12 + $0x60] sm:$0xff] }
 0x6c8   :  { %v8374_v1 = vpop.eup %8373 }
 0x6c9   :  { %v2103_v5 = vmul.f32 %v8374_v1, %v8370_v39  ;;  %v2408_v39 = vld [vmem:[#allocation12 + $0x88] sm:$0xff]  ;;  %v2409_v1 = vld [vmem:[#allocation12 + $0x90] sm:$0xff] }
 0x6ca   :  { %v8376_v2 = vpop.eup %8375 }
 0x6cb   :  { %v2102_v60 = vmul.f32 %v8376_v2, %v10025_v12  ;;  %v2406_v2 = vld [vmem:[#allocation12 + $0x78] sm:$0xff] }
 0x6cc   :  { %v8378_v59 = vpop.eup %8377 }
 0x6cd   :  { %v10028_v7 = vadd.f32 %v2103_v5, %v2102_v60  ;;  %v2404_v5 = vld [vmem:[#allocation12 + $0x68] sm:$0xff]  ;;  %v2405_v60 = vld [vmem:[#allocation12 + $0x70] sm:$0xff] }
 0x6cf   :  { %8379 = vtanh.f32 %v10028_v7 }
 0x6dc   :  { %v8380_v3 = vpop.eup %8379 }
 0x6dd   :  { %v2106_v30 = vmul.f32 %v8380_v3, %v8378_v59  ;;  %v2400_v59 = vld [vmem:[#allocation12 + $0x48] sm:$0xff]  ;;  %v2402_v3 = vld [vmem:[#allocation12 + $0x58] sm:$0xff] }
 0x6df   :  { %v10036_v55 = vmul.f32 %v10031_v41, %v2106_v30  ;;  %v2399_v30 = vld [vmem:[#allocation12 + $0x40] sm:$0xff] }
 0x6e1   :  { %13081 = vst [vmem:[#allocation65_spill] sm:$0xff] %v10036_v55  ;;  %v10041_v10 = vadd.f32 %v2121_v33, %v10036_v55  ;;  %v2401_v33 = vld [vmem:[#allocation12 + $0x50] sm:$0xff] }
 0x6e3   :  { %2261 = vmatmul.mubr.f32.vlgmr.msra.gmra.mxu0 %v10041_v10  ;;  %2332 = vmatmul.mubr.f32.vlgmr.msra.gmra.mxu1 %v10041_v10 }
 0x6e4   :  { %2519 = vmatprep.mubr.f32.mxu0 %v13075_v35  ;;  %2590 = vmatprep.mubr.f32.mxu1 %v13075_v35 }
 0x6e5   :  { %2456 = vmatpush1.msra.mxu0 %v2451_v14  ;;  %2527 = vmatpush1.msra.mxu1 %v2453_v15  ;;  %v2395_v14 = vld [vmem:[#allocation12 + $0x20] sm:$0xff]  ;;  %v2397_v15 = vld [vmem:[#allocation12 + $0x30] sm:$0xff] }
 0x6e6   :  { %2457 = vmatprep.subr.mxu0 %v2448_v53  ;;  %2528 = vmatprep.subr.mxu1 %v2450_v16  ;;  %v2392_v53 = vld [vmem:[#allocation12 + $0x8] sm:$0xff]  ;;  %v2394_v16 = vld [vmem:[#allocation12 + $0x18] sm:$0xff] }
 0x6e7   :  { %2458 = vmatpush1.msra.mxu0 %v2447_v17  ;;  %2529 = vmatpush1.msra.mxu1 %v2449_v18  ;;  %v2391_v17 = vld [vmem:[#allocation12] sm:$0xff]  ;;  %v2393_v18 = vld [vmem:[#allocation12 + $0x10] sm:$0xff] }
 0x6e8   :  { %2459 = vmatprep.subr.mxu0 %v2444_v19  ;;  %2530 = vmatprep.subr.mxu1 %v2446_v20  ;;  %v13082_v20 = vld [vmem:[#allocation80_spill] sm:$0xff] }
 0x6e9   :  { %2460 = vmatpush1.msra.mxu0 %v2443_v22  ;;  %2531 = vmatpush1.msra.mxu1 %v2445_v23 }
 0x6ea   :  { %2461 = vmatprep.subr.mxu0 %v2440_v24  ;;  %2532 = vmatprep.subr.mxu1 %v2442_v25 }
 0x6eb   :  { %2462 = vmatpush1.msra.mxu0 %v2439_v26  ;;  %2533 = vmatpush1.msra.mxu1 %v2441_v27  ;;  %v13083_v26 = vld [vmem:[#allocation82_spill] sm:$0xff] }
 0x6ec   :  { %2463 = vmatprep.subr.mxu0 %v2436_v28  ;;  %2534 = vmatprep.subr.mxu1 %v2438_v31 }
 0x6ed   :  { %2464 = vmatpush1.msra.mxu0 %v2435_v32  ;;  %2535 = vmatpush1.msra.mxu1 %v2437_v34 }
 0x6ee   :  { %2465 = vmatprep.subr.mxu0 %v2432_v36  ;;  %2536 = vmatprep.subr.mxu1 %v2434_v37  ;;  %v13084_v36 = vld [vmem:[#allocation83_spill] sm:$0xff] }
 0x6ef   :  { %2466 = vmatpush1.msra.mxu0 %v2431_v38  ;;  %2537 = vmatpush1.msra.mxu1 %v2433_v40  ;;  %v13085_v40 = vld [vmem:[#allocation81_spill] sm:$0xff] }
 0x6f0   :  { %2467 = vmatprep.subr.mxu0 %v2428_v42  ;;  %2538 = vmatprep.subr.mxu1 %v2430_v43 }
 0x6f1   :  { %2468 = vmatpush1.msra.mxu0 %v2427_v44  ;;  %2539 = vmatpush1.msra.mxu1 %v2429_v45 }
 0x6f2   :  { %2469 = vmatprep.subr.mxu0 %v2424_v46  ;;  %2540 = vmatprep.subr.mxu1 %v2426_v47 }
 0x6f3   :  { %2470 = vmatpush1.msra.mxu0 %v2423_v49  ;;  %2541 = vmatpush1.msra.mxu1 %v2425_v50  ;;  %v2123_v49 = vmul.f32 %v10031_v41, %v10028_v7 }
 0x6f4   :  { %2471 = vmatprep.subr.mxu0 %v2420_v51  ;;  %2542 = vmatprep.subr.mxu1 %v2422_v52  ;;  %v2124_v52 = vmul.f32 %v10033_v9, %v10025_v12 }
 0x6f5   :  { %2472 = vmatpush1.msra.mxu0 %v2419_v48  ;;  %2543 = vmatpush1.msra.mxu1 %v2421_v21 }
 0x6f6   :  { %2473 = vmatprep.subr.mxu0 %v2416_v56  ;;  %2544 = vmatprep.subr.mxu1 %v2418_v61  ;;  %v10057_v56 = vadd.f32 %v2124_v52, %v2123_v49 }
 0x6f7   :  { %2474 = vmatpush1.msra.mxu0 %v2415_v57  ;;  %2545 = vmatpush1.msra.mxu1 %v2417_v6 }
 0x6f8   :  { %2475 = vmatprep.subr.mxu0 %v2412_v8  ;;  %2546 = vmatprep.subr.mxu1 %v2414_v0 }
 0x6f9   :  { %2476 = vmatpush1.msra.mxu0 %v2411_v29  ;;  %2547 = vmatpush1.msra.mxu1 %v2413_v62  ;;  %v10063_v29 = vpop.permute.xlu0 %2370  ;;  %v10065_v62 = vpop.permute.xlu1 %2377 }
 0x6fa   :  { %2477 = vmatprep.subr.mxu0 %v2408_v39  ;;  %2548 = vmatprep.subr.mxu1 %v2410_v54  ;;  %v2380_v9 = vmul.f32 %v10065_v62, %v10041_v10  ;;  %v2747_v54 = vld [vmem:[#allocation15 + $0x78] sm:$0xff]  ;;  %v2744_v10 = vld [vmem:[#allocation15 + $0x60] sm:$0xff] }
 0x6fb   :  { %2478 = vmatpush1.msra.mxu0 %v2407_v4  ;;  %2549 = vmatpush1.msra.mxu1 %v2409_v1  ;;  %v2746_v4 = vld [vmem:[#allocation15 + $0x70] sm:$0xff]  ;;  %v2745_v1 = vld [vmem:[#allocation15 + $0x68] sm:$0xff] }
 0x6fc   :  { %2479 = vmatprep.subr.mxu0 %v2404_v5  ;;  %2550 = vmatprep.subr.mxu1 %v2406_v2  ;;  %v2743_v5 = vld [vmem:[#allocation15 + $0x58] sm:$0xff]  ;;  %v2742_v2 = vld [vmem:[#allocation15 + $0x50] sm:$0xff] }
 0x6fd   :  { %2480 = vmatpush1.msra.mxu0 %v2403_v58  ;;  %2551 = vmatpush1.msra.mxu1 %v2405_v60  ;;  %v2741_v58 = vld [vmem:[#allocation15 + $0x48] sm:$0xff]  ;;  %v2661_v60 = vld [vmem:[#allocation14 + $0x78] sm:$0xff] }
 0x6fe   :  { %2481 = vmatprep.subr.mxu0 %v2400_v59  ;;  %2552 = vmatprep.subr.mxu1 %v2402_v3  ;;  %v2660_v59 = vld [vmem:[#allocation14 + $0x70] sm:$0xff]  ;;  %v2740_v3 = vld [vmem:[#allocation15 + $0x40] sm:$0xff] }
 0x6ff   :  { %2482 = vmatpush1.msra.mxu0 %v2399_v30  ;;  %2553 = vmatpush1.msra.mxu1 %v2401_v33  ;;  %v2659_v30 = vld [vmem:[#allocation14 + $0x68] sm:$0xff]  ;;  %v2739_v33 = vld [vmem:[#allocation15 + $0x38] sm:$0xff] }
 0x700   :  { %2483 = vmatprep.subr.mxu0 %v2396_v11  ;;  %2554 = vmatprep.subr.mxu1 %v2398_v13  ;;  %v2658_v11 = vld [vmem:[#allocation14 + $0x60] sm:$0xff]  ;;  %v2738_v13 = vld [vmem:[#allocation15 + $0x30] sm:$0xff] }
 0x701   :  { %2484 = vmatpush1.msra.mxu0 %v2395_v14  ;;  %2555 = vmatpush1.msra.mxu1 %v2397_v15  ;;  %v2657_v14 = vld [vmem:[#allocation14 + $0x58] sm:$0xff]  ;;  %v2737_v15 = vld [vmem:[#allocation15 + $0x28] sm:$0xff] }
 0x702   :  { %2485 = vmatprep.subr.mxu0 %v2392_v53  ;;  %2556 = vmatprep.subr.mxu1 %v2394_v16  ;;  %v2656_v53 = vld [vmem:[#allocation14 + $0x50] sm:$0xff]  ;;  %v2736_v16 = vld [vmem:[#allocation15 + $0x20] sm:$0xff] }
 0x703   :  { %2486 = vmatpush1.msra.mxu0 %v2391_v17  ;;  %2557 = vmatpush1.msra.mxu1 %v2393_v18  ;;  %v2655_v17 = vld [vmem:[#allocation14 + $0x48] sm:$0xff]  ;;  %v2735_v18 = vld [vmem:[#allocation15 + $0x18] sm:$0xff] }
 0x704   :  { %7833 = vmatprep.subr.mxu1 %v13075_v35  ;;  %7798 = vmatprep.subr.mxu0 %v13075_v35 }
 0x7a3   :  { %v2262_v19 = vpop.f32.mrf.mxu0  ;;  %v2333_v25 = vpop.f32.mrf.mxu1 }
 0x7a4   :  { %v2338_v22 = vadd.f32 %v2262_v19, %v13082_v20  ;;  %v2340_v42 = vadd.f32 %v2333_v25, %v13085_v40  ;;  %v2654_v19 = vld [vmem:[#allocation14 + $0x40] sm:$0xff]  ;;  %v2734_v20 = vld [vmem:[#allocation15 + $0x10] sm:$0xff]  ;;  %v13087_v40 = vld [vmem:[#allocation84_spill] sm:$0xff] }
 0x7a5   :  { %v2264_v23 = vpop.f32.mrf.mxu0  ;;  %v2335_v34 = vpop.f32.mrf.mxu1  ;;  %v2652_v25 = vld [vmem:[#allocation14 + $0x30] sm:$0xff] }
 0x7a6   :  { %v2342_v24 = vsub.f32 0.0, %v2338_v22  ;;  %v2339_v27 = vadd.f32 %v2264_v23, %v13083_v26  ;;  %v2341_v37 = vadd.f32 %v2335_v34, %v13084_v36  ;;  %v2653_v22 = vld [vmem:[#allocation14 + $0x38] sm:$0xff]  ;;  %v2733_v23 = vld [vmem:[#allocation15 + $0x8] sm:$0xff]  ;;  %v2646_v34 = vld [vmem:[#allocation14] sm:$0xff] }
 0x7a7   :  { %v2651_v26 = vld [vmem:[#allocation14 + $0x28] sm:$0xff]  ;;  %v10110_v36 = vld [vmem:[#allocation17 + $0x78] sm:$0xff] }
 0x7a8   :  { %v2343_v28 = vmul.f32 1.442695, %v2342_v24  ;;  %v2348_v31 = vsub.f32 0.0, %v2339_v27  ;;  %v2355_v38 = vsub.f32 0.0, %v2341_v37  ;;  %v2732_v24 = vld [vmem:[#allocation15] sm:$0xff]  ;;  %v10114_v37 = vld [vmem:[#allocation18 + $0x1e8] sm:$0xff] }
 0x7a9   :  { %v2650_v27 = vld [vmem:[#allocation14 + $0x20] sm:$0xff] }
 0x7aa   :  { %8381 = vpow2.f32 %v2343_v28  ;;  %v2349_v32 = vmul.f32 1.442695, %v2348_v31  ;;  %v2356_v43 = vmul.f32 1.442695, %v2355_v38  ;;  %v2649_v28 = vld [vmem:[#allocation14 + $0x18] sm:$0xff]  ;;  %v2648_v31 = vld [vmem:[#allocation14 + $0x10] sm:$0xff] }
 0x7ac   :  { %8383 = vpow2.f32 %v2349_v32  ;;  %v2647_v32 = vld [vmem:[#allocation14 + $0x8] sm:$0xff] }
 0x7ad   :  { %8385 = vtanh.f32 %v2340_v42 }
 0x7ae   :  { %8387 = vpow2.f32 %v2356_v43 }
 0x7b7   :  { %v8382_v44 = vpop.eup %8381 }
 0x7b8   :  { %v2345_v45 = vadd.f32 1.0, %v8382_v44 }
 0x7b9   :  { %v8384_v46 = vpop.eup %8383 }
 0x7ba   :  { %8389 = vrcp.f32 %v2345_v45  ;;  %v2351_v47 = vadd.f32 1.0, %v8384_v46  ;;  %v8386_v50 = vpop.eup %8385  ;;  %v13088_v46 = vld [vmem:[#allocation86_spill] sm:$0xff] }
 0x7bb   :  { %v8388_v51 = vpop.eup %8387 }
 0x7bc   :  { %8391 = vrcp.f32 %v2351_v47  ;;  %v2358_v57 = vadd.f32 1.0, %v8388_v51 }
 0x7be   :  { %8393 = vrcp.f32 %v2358_v57  ;;  %v13090_v57 = vld [vmem:[#allocation85_spill] sm:$0xff] }
 0x7c7   :  { %v8390_v48 = vpop.eup %8389 }
 0x7c8   :  { %v2362_v21 = vmul.f32 %v8390_v48, %v8386_v50  ;;  %v13089_v48 = vld [vmem:[#allocation87_spill] sm:$0xff] }
 0x7c9   :  { %v8392_v61 = vpop.eup %8391 }
 0x7ca   :  { %v2361_v6 = vmul.f32 %v8392_v61, %v10057_v56 }
 0x7cb   :  { %v8394_v0 = vpop.eup %8393 }
 0x7cc   :  { %v10060_v8 = vadd.f32 %v2362_v21, %v2361_v6 }
 0x7ce   :  { %8395 = vtanh.f32 %v10060_v8 }
 0x7db   :  { %v8396_v7 = vpop.eup %8395 }
 0x7dc   :  { %v2365_v41 = vmul.f32 %v8396_v7, %v8394_v0 }
 0x7de   :  { %v10068_v12 = vmul.f32 %v10063_v29, %v2365_v41 }
 0x7e0   :  { %13086 = vst [vmem:[#allocation68_spill] sm:$0xff] %v10068_v12  ;;  %v10073_v39 = vadd.f32 %v2380_v9, %v10068_v12 }
 0x7e2   :  { %2520 = vmatmul.mubr.f32.vlgmr.msra.gmra.mxu0 %v10073_v39  ;;  %2591 = vmatmul.mubr.f32.vlgmr.msra.gmra.mxu1 %v10073_v39 }
 0x7e3   :  { %7834 = vmatpush3.msra.mxu1 %v2747_v54  ;;  %7865 = vmatprep.mubr.msk.f32.mxu1 %vm8827_vm0, %v13075_v35 }
 0x7e4   :  { %7835 = vmatprep.subr.mxu1 %v13075_v35  ;;  %7799 = vmatpush3.msra.mxu0 %v2661_v60 }
 0x7e5   :  { %7836 = vmatpush3.msra.mxu1 %v2746_v4  ;;  %7800 = vmatprep.subr.mxu0 %v13075_v35  ;;  %v2382_v4 = vmul.f32 %v10063_v29, %v10060_v8  ;;  %v10125_v8 = vld [vmem:[#allocation18 + $0x1e0] sm:$0xff]  ;;  %v10127_v29 = vld [vmem:[#allocation18 + $0x1c8] sm:$0xff] }
 0x7e6   :  { %7837 = vmatprep.subr.mxu1 %v13075_v35  ;;  %7801 = vmatpush3.msra.mxu0 %v2660_v59 }
 0x7e7   :  { %7838 = vmatpush3.msra.mxu1 %v2745_v1  ;;  %7802 = vmatprep.subr.mxu0 %v13075_v35 }
 0x7e8   :  { %7839 = vmatprep.subr.mxu1 %v13075_v35  ;;  %7803 = vmatpush3.msra.mxu0 %v2659_v30 }
 0x7e9   :  { %7840 = vmatpush3.msra.mxu1 %v2744_v10  ;;  %7804 = vmatprep.subr.mxu0 %v13075_v35 }
 0x7ea   :  { %7841 = vmatprep.subr.mxu1 %v13075_v35  ;;  %7805 = vmatpush3.msra.mxu0 %v2658_v11  ;;  %v2630_v11 = vpop.permute.xlu0 %2629 }
 0x7eb   :  { %7842 = vmatpush3.msra.mxu1 %v2743_v5  ;;  %7806 = vmatprep.subr.mxu0 %v13075_v35  ;;  %v2383_v5 = vmul.f32 %v10065_v62, %v10057_v56  ;;  %v10129_v56 = vld [vmem:[#allocation18 + $0x1c0] sm:$0xff]  ;;  %v10132_v62 = vld [vmem:[#allocation18 + $0x1a8] sm:$0xff] }
 0x7ec   :  { %7843 = vmatprep.subr.mxu1 %v13075_v35  ;;  %7807 = vmatpush3.msra.mxu0 %v2657_v14 }
 0x7ed   :  { %7844 = vmatpush3.msra.mxu1 %v2742_v2  ;;  %7808 = vmatprep.subr.mxu0 %v13075_v35 }
 0x7ee   :  { %7845 = vmatprep.subr.mxu1 %v13075_v35  ;;  %7809 = vmatpush3.msra.mxu0 %v2656_v53 }
 0x7ef   :  { %7846 = vmatpush3.msra.mxu1 %v2741_v58  ;;  %7810 = vmatprep.subr.mxu0 %v13075_v35  ;;  %v2384_v58 = vadd.f32 %v2383_v5, %v2382_v4  ;;  %v10217_v4 = vld [vmem:[#allocation18 + $0x8] sm:$0xff]  ;;  %v2832_v5 = vld [vmem:[#allocation17 + $0x30] sm:$0xff] }
 0x7f0   :  { %7847 = vmatprep.subr.mxu1 %v13075_v35  ;;  %7811 = vmatpush3.msra.mxu0 %v2655_v17  ;;  %v10139_v17 = vld [vmem:[#allocation18 + $0x188] sm:$0xff] }
 0x7f1   :  { %7848 = vmatpush3.msra.mxu1 %v2740_v3  ;;  %7812 = vmatprep.subr.mxu0 %v13075_v35 }
 0x7f2   :  { %7849 = vmatprep.subr.mxu1 %v13075_v35  ;;  %7813 = vmatpush3.msra.mxu0 %v2654_v19  ;;  %v10145_v19 = vld [vmem:[#allocation18 + $0x168] sm:$0xff] }
 0x7f3   :  { %7850 = vmatpush3.msra.mxu1 %v2739_v33  ;;  %7814 = vmatprep.subr.mxu0 %v13075_v35 }
 0x7f4   :  { %7851 = vmatprep.subr.mxu1 %v13075_v35  ;;  %7815 = vmatpush3.msra.mxu0 %v2653_v22  ;;  %v10151_v22 = vld [vmem:[#allocation18 + $0x148] sm:$0xff] }
 0x7f5   :  { %7852 = vmatpush3.msra.mxu1 %v2738_v13  ;;  %7816 = vmatprep.subr.mxu0 %v13075_v35  ;;  %v2637_v13 = vpop.permute.xlu1 %2636 }
 0x7f6   :  { %7853 = vmatprep.subr.mxu1 %v13075_v35  ;;  %7830 = vmatprep.mubr.msk.f32.mxu0 %vm8827_vm0, %v13075_v35 }
 0x7f7   :  { %7854 = vmatpush3.msra.mxu1 %v2737_v15  ;;  %7817 = vmatpush3.msra.mxu0 %v2652_v25  ;;  %v2642_v15 = vmul.f32 %v2637_v13, %v2384_v58 }
 0x7f8   :  { %7855 = vmatprep.subr.mxu1 %v13075_v35  ;;  %7818 = vmatprep.subr.mxu0 %v13075_v35 }
 0x7f9   :  { %7856 = vmatpush3.msra.mxu1 %v2736_v16  ;;  %7819 = vmatpush3.msra.mxu0 %v2651_v26  ;;  %v10136_v16 = vld [vmem:[#allocation18 + $0x1a0] sm:$0xff]  ;;  %v10157_v26 = vld [vmem:[#allocation18 + $0x128] sm:$0xff] }
 0x7fa   :  { %7857 = vmatprep.subr.mxu1 %v13075_v35  ;;  %7820 = vmatprep.subr.mxu0 %v13075_v35 }
 0x7fb   :  { %7858 = vmatpush3.msra.mxu1 %v2735_v18  ;;  %7821 = vmatpush3.msra.mxu0 %v2650_v27  ;;  %v10142_v18 = vld [vmem:[#allocation18 + $0x180] sm:$0xff] }
 0x7fc   :  { %7859 = vmatprep.subr.mxu1 %v13075_v35  ;;  %7822 = vmatprep.subr.mxu0 %v13075_v35 }
 0x7fd   :  { %7860 = vmatpush3.msra.mxu1 %v2734_v20  ;;  %7823 = vmatpush3.msra.mxu0 %v2649_v28  ;;  %v10148_v20 = vld [vmem:[#allocation18 + $0x160] sm:$0xff] }
 0x7fe   :  { %7861 = vmatprep.subr.mxu1 %v13075_v35  ;;  %7824 = vmatprep.subr.mxu0 %v13075_v35  ;;  %v10160_v28 = vld [vmem:[#allocation18 + $0x120] sm:$0xff] }
 0x7ff   :  { %7862 = vmatpush3.msra.mxu1 %v2733_v23  ;;  %7825 = vmatpush3.msra.mxu0 %v2648_v31  ;;  %v10163_v31 = vld [vmem:[#allocation18 + $0x108] sm:$0xff] }
 0x800   :  { %7863 = vmatprep.subr.mxu1 %v13075_v35  ;;  %7826 = vmatprep.subr.mxu0 %v13075_v35 }
 0x801   :  { %7864 = vmatpush3.msra.mxu1 %v2732_v24  ;;  %7827 = vmatpush3.msra.mxu0 %v2647_v32  ;;  %v10154_v24 = vld [vmem:[#allocation18 + $0x140] sm:$0xff] }
 0x802   :  { %7828 = vmatprep.subr.mxu0 %v13075_v35  ;;  %3053 = vmatprep.subr.mxu1 %v10114_v37 }
 0x803   :  { %7829 = vmatpush3.msra.mxu0 %v2646_v34  ;;  %v2639_v34 = vmul.f32 %v2637_v13, %v10073_v39  ;;  %v10180_v39 = vld [vmem:[#allocation18 + $0xc8] sm:$0xff]  ;;  %v10245_v13 = vld [vmem:[#allocation18 + $0x1d8] sm:$0xff] }
 0x804   :  { %7868 = vmatprep.subr.mxu0 %v10110_v36 }
 0x8a2   :  { %v2521_v38 = vpop.f32.mrf.mxu0  ;;  %v2592_v45 = vpop.f32.mrf.mxu1 }
 0x8a3   :  { %v2597_v42 = vadd.f32 %v2521_v38, %v13087_v40  ;;  %v2599_v6 = vadd.f32 %v2592_v45, %v13090_v57  ;;  %v10169_v38 = vld [vmem:[#allocation18 + $0x100] sm:$0xff]  ;;  %v10172_v40 = vld [vmem:[#allocation18 + $0xe8] sm:$0xff]  ;;  %v13092_v45 = vld [vmem:[#allocation88_spill] sm:$0xff] }
 0x8a4   :  { %v2523_v43 = vpop.f32.mrf.mxu0  ;;  %v2594_v52 = vpop.f32.mrf.mxu1  ;;  %v10202_v57 = vld [vmem:[#allocation18 + $0x60] sm:$0xff] }
 0x8a5   :  { %v2601_v44 = vsub.f32 0.0, %v2597_v42  ;;  %v2598_v47 = vadd.f32 %v2523_v43, %v13088_v46  ;;  %v2600_v21 = vadd.f32 %v2594_v52, %v13089_v48  ;;  %v2840_v43 = vld [vmem:[#allocation17 + $0x70] sm:$0xff]  ;;  %v2839_v46 = vld [vmem:[#allocation17 + $0x68] sm:$0xff]  ;;  %v2837_v52 = vld [vmem:[#allocation17 + $0x58] sm:$0xff] }
 0x8a6   :  { %v10196_v48 = vld [vmem:[#allocation18 + $0x80] sm:$0xff] }
 0x8a7   :  { %v2602_v49 = vmul.f32 1.442695, %v2601_v44  ;;  %v2607_v50 = vsub.f32 0.0, %v2598_v47  ;;  %v2614_v61 = vsub.f32 0.0, %v2600_v21  ;;  %v10177_v44 = vld [vmem:[#allocation18 + $0xe0] sm:$0xff]  ;;  %v10199_v21 = vld [vmem:[#allocation18 + $0x68] sm:$0xff] }
 0x8a8   :  { %v10184_v47 = vld [vmem:[#allocation18 + $0xc0] sm:$0xff] }
 0x8a9   :  { %8397 = vpow2.f32 %v2602_v49  ;;  %v2608_v51 = vmul.f32 1.442695, %v2607_v50  ;;  %v2615_v0 = vmul.f32 1.442695, %v2614_v61  ;;  %v10187_v49 = vld [vmem:[#allocation18 + $0xa8] sm:$0xff]  ;;  %v2838_v50 = vld [vmem:[#allocation17 + $0x60] sm:$0xff] }
 0x8aa   :  { %v2836_v61 = vld [vmem:[#allocation17 + $0x50] sm:$0xff] }
 0x8ab   :  { %8399 = vpow2.f32 %v2608_v51  ;;  %v10190_v51 = vld [vmem:[#allocation18 + $0xa0] sm:$0xff] }
 0x8ac   :  { %8401 = vtanh.f32 %v2599_v6  ;;  %v10205_v6 = vld [vmem:[#allocation18 + $0x48] sm:$0xff] }
 0x8ad   :  { %8403 = vpow2.f32 %v2615_v0  ;;  %v2835_v0 = vld [vmem:[#allocation17 + $0x48] sm:$0xff] }
 0x8b6   :  { %v8398_v7 = vpop.eup %8397 }
 0x8b7   :  { %v2604_v41 = vadd.f32 1.0, %v8398_v7  ;;  %v10208_v7 = vld [vmem:[#allocation18 + $0x40] sm:$0xff] }
 0x8b8   :  { %v8400_v9 = vpop.eup %8399 }
 0x8b9   :  { %8405 = vrcp.f32 %v2604_v41  ;;  %v2610_v54 = vadd.f32 1.0, %v8400_v9  ;;  %v8402_v1 = vpop.eup %8401  ;;  %v10211_v41 = vld [vmem:[#allocation18 + $0x28] sm:$0xff]  ;;  %v2834_v9 = vld [vmem:[#allocation17 + $0x40] sm:$0xff] }
 0x8ba   :  { %v8404_v10 = vpop.eup %8403 }
 0x8bb   :  { %8407 = vrcp.f32 %v2610_v54  ;;  %v2617_v3 = vadd.f32 1.0, %v8404_v10  ;;  %v10214_v54 = vld [vmem:[#allocation18 + $0x20] sm:$0xff] }
 0x8bc   :  { %v10220_v10 = vld [vmem:[#allocation18] sm:$0xff] }
 0x8bd   :  { %8409 = vrcp.f32 %v2617_v3  ;;  %v2828_v3 = vld [vmem:[#allocation17 + $0x10] sm:$0xff] }
 0x8c6   :  { %v8406_v2 = vpop.eup %8405 }
 0x8c7   :  { %v2621_v60 = vmul.f32 %v8406_v2, %v8402_v1  ;;  %v2833_v1 = vld [vmem:[#allocation17 + $0x38] sm:$0xff]  ;;  %v10224_v2 = vld [vmem:[#allocation7] sm:$0xff] }
 0x8c8   :  { %v8408_v59 = vpop.eup %8407 }
 0x8c9   :  { %v2620_v30 = vmul.f32 %v8408_v59, %v2384_v58  ;;  %v2831_v58 = vld [vmem:[#allocation17 + $0x28] sm:$0xff]  ;;  %v2829_v59 = vld [vmem:[#allocation17 + $0x18] sm:$0xff] }
 0x8ca   :  { %v8410_v23 = vpop.eup %8409 }
 0x8cb   :  { %v2622_v33 = vadd.f32 %v2621_v60, %v2620_v30  ;;  %v2830_v60 = vld [vmem:[#allocation17 + $0x20] sm:$0xff] }
 0x8cc   :  { %v2826_v30 = vld [vmem:[#allocation17] sm:$0xff] }
 0x8cd   :  { %8411 = vtanh.f32 %v2622_v33  ;;  %v2641_v14 = vmul.f32 %v2630_v11, %v2622_v33  ;;  %v10239_v33 = vld [vmem:[#allocation18 + $0x1f8] sm:$0xff] }
 0x8cf   :  { %v2643_v53 = vadd.f32 %v2642_v15, %v2641_v14  ;;  %v13093_v14 = vld [vmem:[#allocation33_spill] sm:$0xff]  ;;  %v10250_v15 = vld [vmem:[#allocation18 + $0x1d0] sm:$0xff] }
 0x8d1   :  { %7866 = vmatmul.mubr.f32.vlgmr.msra.gmra.mxu1 %v2643_v53  ;;  %v13094_v53 = vld [vmem:[#allocation64_spill] sm:$0xff] }
 0x8d2   :  { %3054 = vmatpush1.msra.mxu1 %v10125_v8  ;;  %3117 = vmatprep.mubr.f32.mxu1 %v13075_v35 }
 0x8d3   :  { %3055 = vmatprep.subr.mxu1 %v10127_v29 }
 0x8d4   :  { %3056 = vmatpush1.msra.mxu1 %v10129_v56 }
 0x8d5   :  { %3057 = vmatprep.subr.mxu1 %v10132_v62 }
 0x8d6   :  { %3058 = vmatpush1.msra.mxu1 %v10136_v16 }
 0x8d7   :  { %3059 = vmatprep.subr.mxu1 %v10139_v17 }
 0x8d8   :  { %3060 = vmatpush1.msra.mxu1 %v10142_v18 }
 0x8d9   :  { %3061 = vmatprep.subr.mxu1 %v10145_v19 }
 0x8da   :  { %v8412_v25 = vpop.eup %8411  ;;  %3062 = vmatpush1.msra.mxu1 %v10148_v20 }
 0x8db   :  { %v2624_v27 = vmul.f32 %v8412_v25, %v8410_v23  ;;  %3063 = vmatprep.subr.mxu1 %v10151_v22  ;;  %v10288_v23 = vld [vmem:[#allocation18 + $0x138] sm:$0xff] }
 0x8dc   :  { %3064 = vmatpush1.msra.mxu1 %v10154_v24  ;;  %v10295_v25 = vld [vmem:[#allocation18 + $0x118] sm:$0xff] }
 0x8dd   :  { %v10165_v32 = vmul.f32 %v2630_v11, %v2624_v27  ;;  %3065 = vmatprep.subr.mxu1 %v10157_v26  ;;  %v10242_v11 = vld [vmem:[#allocation18 + $0x1f0] sm:$0xff]  ;;  %v10303_v27 = vld [vmem:[#allocation18 + $0xf8] sm:$0xff] }
 0x8de   :  { %3066 = vmatpush1.msra.mxu1 %v10160_v28 }
 0x8df   :  { %13091 = vst [vmem:[#allocation70_spill] sm:$0xff] %v10165_v32  ;;  %v2640_v42 = vadd.f32 %v2639_v34, %v10165_v32  ;;  %3067 = vmatprep.subr.mxu1 %v10163_v31  ;;  %v10313_v34 = vld [vmem:[#allocation18 + $0xd8] sm:$0xff] }
 0x8e0   :  { %3068 = vmatpush1.msra.mxu1 %v10169_v38 }
 0x8e1   :  { %7831 = vmatmul.mubr.f32.vlgmr.msra.gmra.mxu0 %v2640_v42  ;;  %3069 = vmatprep.subr.mxu1 %v10172_v40  ;;  %v10325_v42 = vld [vmem:[#allocation18 + $0xb0] sm:$0xff] }
 0x8e2   :  { %7869 = vmatpush3.msra.mxu0 %v10110_v36  ;;  %7900 = vmatprep.mubr.f32.mxu0 %v13092_v45  ;;  %v10193_v36 = vld [vmem:[#allocation18 + $0x88] sm:$0xff] }
 0x8e3   :  { %7870 = vmatprep.subr.mxu0 %v2840_v43  ;;  %3070 = vmatpush1.msra.mxu1 %v10177_v44 }
 0x8e4   :  { %7871 = vmatpush3.msra.mxu0 %v2840_v43  ;;  %3071 = vmatprep.subr.mxu1 %v10180_v39  ;;  %v10329_v43 = vld [vmem:[#allocation18 + $0x98] sm:$0xff] }
 0x8e5   :  { %7872 = vmatprep.subr.mxu0 %v2839_v46  ;;  %3072 = vmatpush1.msra.mxu1 %v10184_v47 }
 0x8e6   :  { %7873 = vmatpush3.msra.mxu0 %v2839_v46  ;;  %3073 = vmatprep.subr.mxu1 %v10187_v49  ;;  %v10339_v46 = vld [vmem:[#allocation18 + $0x78] sm:$0xff] }
 0x8e7   :  { %7874 = vmatprep.subr.mxu0 %v2838_v50  ;;  %3074 = vmatpush1.msra.mxu1 %v10190_v51 }
 0x8e8   :  { %7875 = vmatpush3.msra.mxu0 %v2838_v50  ;;  %3075 = vmatprep.subr.mxu1 %v10193_v36  ;;  %v10351_v50 = vld [vmem:[#allocation18 + $0x50] sm:$0xff] }
 0x8e9   :  { %7876 = vmatprep.subr.mxu0 %v2837_v52  ;;  %3076 = vmatpush1.msra.mxu1 %v10196_v48 }
 0x8ea   :  { %7877 = vmatpush3.msra.mxu0 %v2837_v52  ;;  %3077 = vmatprep.subr.mxu1 %v10199_v21  ;;  %v2966_v52 = vld [vmem:[#allocation7 + $0x20] sm:$0xff] }
 0x8eb   :  { %7878 = vmatprep.subr.mxu0 %v2836_v61  ;;  %3078 = vmatpush1.msra.mxu1 %v10202_v57 }
 0x8ec   :  { %7879 = vmatpush3.msra.mxu0 %v2836_v61  ;;  %3079 = vmatprep.subr.mxu1 %v10205_v6  ;;  %v3539_v61 = vld [vmem:[#allocation20 + $0x1e8] sm:$0xff] }
 0x8ed   :  { %7880 = vmatprep.subr.mxu0 %v2835_v0  ;;  %3080 = vmatpush1.msra.mxu1 %v10208_v7 }
 0x8ee   :  { %7881 = vmatpush3.msra.mxu0 %v2835_v0  ;;  %3081 = vmatprep.subr.mxu1 %v10211_v41  ;;  %v3534_v0 = vld [vmem:[#allocation20 + $0x1c0] sm:$0xff] }
 0x8ef   :  { %7882 = vmatprep.subr.mxu0 %v2834_v9  ;;  %3082 = vmatpush1.msra.mxu1 %v10214_v54 }
 0x8f0   :  { %7883 = vmatpush3.msra.mxu0 %v2834_v9  ;;  %3083 = vmatprep.subr.mxu1 %v10217_v4  ;;  %v3527_v9 = vld [vmem:[#allocation20 + $0x188] sm:$0xff] }
 0x8f1   :  { %7884 = vmatprep.subr.mxu0 %v2833_v1  ;;  %3084 = vmatpush1.msra.mxu1 %v10220_v10 }
 0x8f2   :  { %7885 = vmatpush3.msra.mxu0 %v2833_v1  ;;  %3332 = vmatprep.subr.mxu1 %v10114_v37  ;;  %v2827_v37 = vld [vmem:[#allocation17 + $0x8] sm:$0xff]  ;;  %v3522_v1 = vld [vmem:[#allocation20 + $0x160] sm:$0xff] }
 0x8f3   :  { %7886 = vmatprep.subr.mxu0 %v2832_v5  ;;  %3118 = vmatmul.mubr.f32.vlgmr.msra.gmra.mxu1 %v10224_v2 }
 0x8f4   :  { %7887 = vmatpush3.msra.mxu0 %v2832_v5  ;;  %3333 = vmatpush1.msra.mxu1 %v10125_v8  ;;  %v10254_v8 = vld [vmem:[#allocation18 + $0x1b8] sm:$0xff]  ;;  %v3518_v5 = vld [vmem:[#allocation20 + $0x140] sm:$0xff] }
 0x8f5   :  { %7888 = vmatprep.subr.mxu0 %v2831_v58  ;;  %3334 = vmatprep.subr.mxu1 %v10127_v29  ;;  %v10257_v29 = vld [vmem:[#allocation18 + $0x1b0] sm:$0xff] }
 0x8f6   :  { %7889 = vmatpush3.msra.mxu0 %v2831_v58  ;;  %3335 = vmatpush1.msra.mxu1 %v10129_v56  ;;  %v10261_v56 = vld [vmem:[#allocation18 + $0x198] sm:$0xff]  ;;  %v3514_v58 = vld [vmem:[#allocation20 + $0x120] sm:$0xff] }
 0x8f7   :  { %7890 = vmatprep.subr.mxu0 %v2830_v60  ;;  %3336 = vmatprep.subr.mxu1 %v10132_v62  ;;  %v13095_v62 = vld [vmem:[#allocation66_spill] sm:$0xff] }
 0x8f8   :  { %7891 = vmatpush3.msra.mxu0 %v2830_v60  ;;  %3337 = vmatpush1.msra.mxu1 %v10136_v16  ;;  %v10266_v16 = vld [vmem:[#allocation18 + $0x190] sm:$0xff]  ;;  %v3511_v60 = vld [vmem:[#allocation20 + $0x108] sm:$0xff] }
 0x8f9   :  { %7892 = vmatprep.subr.mxu0 %v2829_v59  ;;  %3338 = vmatprep.subr.mxu1 %v10139_v17  ;;  %v10268_v17 = vld [vmem:[#allocation7 + $0x8] sm:$0xff] }
 0x8fa   :  { %7893 = vmatpush3.msra.mxu0 %v2829_v59  ;;  %3339 = vmatpush1.msra.mxu1 %v10142_v18  ;;  %v10272_v18 = vld [vmem:[#allocation18 + $0x178] sm:$0xff]  ;;  %v3510_v59 = vld [vmem:[#allocation20 + $0x100] sm:$0xff] }
 0x8fb   :  { %7894 = vmatprep.subr.mxu0 %v2828_v3  ;;  %3340 = vmatprep.subr.mxu1 %v10145_v19  ;;  %v10275_v19 = vld [vmem:[#allocation18 + $0x170] sm:$0xff] }
 0x8fc   :  { %7895 = vmatpush3.msra.mxu0 %v2828_v3  ;;  %3341 = vmatpush1.msra.mxu1 %v10148_v20  ;;  %v10279_v20 = vld [vmem:[#allocation18 + $0x158] sm:$0xff]  ;;  %v3507_v3 = vld [vmem:[#allocation20 + $0xe8] sm:$0xff] }
 0x8fd   :  { %7896 = vmatprep.subr.mxu0 %v2827_v37  ;;  %3342 = vmatprep.subr.mxu1 %v10151_v22  ;;  %v10284_v22 = vld [vmem:[#allocation18 + $0x150] sm:$0xff] }
 0x8fe   :  { %7897 = vmatpush3.msra.mxu0 %v2827_v37  ;;  %3343 = vmatpush1.msra.mxu1 %v10154_v24  ;;  %v10291_v24 = vld [vmem:[#allocation18 + $0x130] sm:$0xff]  ;;  %v3506_v37 = vld [vmem:[#allocation20 + $0xe0] sm:$0xff] }
 0x8ff   :  { %7898 = vmatprep.subr.mxu0 %v2826_v30  ;;  %3344 = vmatprep.subr.mxu1 %v10157_v26  ;;  %v10300_v26 = vld [vmem:[#allocation18 + $0x110] sm:$0xff] }
 0x900   :  { %7899 = vmatpush3.msra.mxu0 %v2826_v30  ;;  %3345 = vmatpush1.msra.mxu1 %v10160_v28  ;;  %v10307_v28 = vld [vmem:[#allocation18 + $0xf0] sm:$0xff]  ;;  %v3541_v30 = vld [vmem:[#allocation20 + $0x1f8] sm:$0xff] }
 0x901   :  { %7901 = vmatmul.mubr.f32.vlgmr.msra.gmra.mxu0 %v13093_v14  ;;  %3148 = vmatprep.subr.mxu0 %v10239_v33 }
 0x902   :  { %7903 = vmatprep.mubr.f32.mxu0 %v13094_v53  ;;  %3149 = vmatpush1.msra.mxu0 %v10242_v11 }
 0x903   :  { %3150 = vmatprep.subr.mxu0 %v10245_v13  ;;  %3346 = vmatprep.subr.mxu1 %v10163_v31  ;;  %v10310_v31 = vld [vmem:[#allocation7 + $0x10] sm:$0xff] }
 0x904   :  { %3151 = vmatpush1.msra.mxu0 %v10250_v15  ;;  %3123 = vmatprep.mubr.f32.mxu1 %v13075_v35 }
 0x905   :  { %7904 = vmatmul.mubr.f32.gmra.mxu0 %v13095_v62  ;;  %3152 = vmatprep.subr.mxu0 %v10254_v8 }
 0x906   :  { %7906 = vmatprep.mubr.f32.mxu0 %v9944_v63  ;;  %3153 = vmatpush1.msra.mxu0 %v10257_v29 }
 0x907   :  { %3154 = vmatprep.subr.mxu0 %v10261_v56  ;;  %3347 = vmatpush1.msra.mxu1 %v10169_v38  ;;  %v10317_v38 = vld [vmem:[#allocation18 + $0xd0] sm:$0xff] }
 0x908   :  { %3155 = vmatpush1.msra.mxu0 %v10266_v16  ;;  %3124 = vmatmul.mubr.f32.gmra.mxu1 %v10268_v17 }
 0x909   :  { %7907 = vmatmul.mubr.f32.gmra.mxu0 %v10036_v55  ;;  %3156 = vmatprep.subr.mxu0 %v10272_v18 }
 0x90a   :  { %7909 = vmatprep.mubr.f32.mxu0 %v10068_v12  ;;  %3157 = vmatpush1.msra.mxu0 %v10275_v19 }
 0x90b   :  { %3158 = vmatprep.subr.mxu0 %v10279_v20  ;;  %3348 = vmatprep.subr.mxu1 %v10172_v40  ;;  %v10321_v40 = vld [vmem:[#allocation18 + $0xb8] sm:$0xff] }
 0x90c   :  { %3159 = vmatpush1.msra.mxu0 %v10284_v22  ;;  %3349 = vmatpush1.msra.mxu1 %v10177_v44  ;;  %v10333_v44 = vld [vmem:[#allocation18 + $0x90] sm:$0xff] }
 0x90d   :  { %7910 = vmatmul.mubr.f32.gmra.mxu0 %v10165_v32  ;;  %3160 = vmatprep.subr.mxu0 %v10288_v23 }
 0x90e   :  { %3161 = vmatpush1.msra.mxu0 %v10291_v24  ;;  %3212 = vmatprep.mubr.f32.mxu0 %v13075_v35 }
 0x90f   :  { %3162 = vmatprep.subr.mxu0 %v10295_v25  ;;  %3350 = vmatprep.subr.mxu1 %v10180_v39  ;;  %v10336_v39 = vld [vmem:[#allocation7 + $0x18] sm:$0xff] }
 0x910   :  { %3163 = vmatpush1.msra.mxu0 %v10300_v26  ;;  %3129 = vmatprep.mubr.f32.mxu1 %v13075_v35 }
 0x911   :  { %3164 = vmatprep.subr.mxu0 %v10303_v27  ;;  %3351 = vmatpush1.msra.mxu1 %v10184_v47  ;;  %v10343_v47 = vld [vmem:[#allocation18 + $0x70] sm:$0xff] }
 0x912   :  { %3165 = vmatpush1.msra.mxu0 %v10307_v28  ;;  %3130 = vmatmul.mubr.f32.gmra.mxu1 %v10310_v31 }
 0x913   :  { %3166 = vmatprep.subr.mxu0 %v10313_v34  ;;  %3352 = vmatprep.subr.mxu1 %v10187_v49  ;;  %v10347_v49 = vld [vmem:[#allocation18 + $0x58] sm:$0xff] }
 0x914   :  { %3167 = vmatpush1.msra.mxu0 %v10317_v38  ;;  %3353 = vmatpush1.msra.mxu1 %v10190_v51  ;;  %v10355_v51 = vld [vmem:[#allocation18 + $0x38] sm:$0xff] }
 0x915   :  { %3168 = vmatprep.subr.mxu0 %v10321_v40  ;;  %3354 = vmatprep.subr.mxu1 %v10193_v36  ;;  %v10359_v36 = vld [vmem:[#allocation18 + $0x30] sm:$0xff] }
 0x916   :  { %3169 = vmatpush1.msra.mxu0 %v10325_v42  ;;  %3135 = vmatprep.mubr.f32.mxu1 %v13075_v35 }
 0x917   :  { %3170 = vmatprep.subr.mxu0 %v10329_v43  ;;  %3355 = vmatpush1.msra.mxu1 %v10196_v48  ;;  %v10363_v48 = vld [vmem:[#allocation18 + $0x18] sm:$0xff] }
 0x918   :  { %3171 = vmatpush1.msra.mxu0 %v10333_v44  ;;  %3136 = vmatmul.mubr.f32.gmra.mxu1 %v10336_v39 }
 0x919   :  { %3172 = vmatprep.subr.mxu0 %v10339_v46  ;;  %3356 = vmatprep.subr.mxu1 %v10199_v21  ;;  %v10367_v21 = vld [vmem:[#allocation18 + $0x10] sm:$0xff] }
 0x91a   :  { %3173 = vmatpush1.msra.mxu0 %v10343_v47  ;;  %3357 = vmatpush1.msra.mxu1 %v10202_v57  ;;  %v3538_v57 = vld [vmem:[#allocation20 + $0x1e0] sm:$0xff] }
 0x91b   :  { %3174 = vmatprep.subr.mxu0 %v10347_v49  ;;  %3358 = vmatprep.subr.mxu1 %v10205_v6  ;;  %v3535_v6 = vld [vmem:[#allocation20 + $0x1c8] sm:$0xff] }
 0x91c   :  { %3175 = vmatpush1.msra.mxu0 %v10351_v50  ;;  %3141 = vmatprep.mubr.f32.mxu1 %v13075_v35 }
 0x91d   :  { %3176 = vmatprep.subr.mxu0 %v10355_v51  ;;  %3359 = vmatpush1.msra.mxu1 %v10208_v7  ;;  %v3531_v7 = vld [vmem:[#allocation20 + $0x1a8] sm:$0xff] }
 0x91e   :  { %3177 = vmatpush1.msra.mxu0 %v10359_v36  ;;  %3142 = vmatmul.mubr.f32.gmra.mxu1 %v2966_v52 }
 0x91f   :  { %3178 = vmatprep.subr.mxu0 %v10363_v48  ;;  %3360 = vmatprep.subr.mxu1 %v10211_v41  ;;  %v3530_v41 = vld [vmem:[#allocation20 + $0x1a0] sm:$0xff] }
 0x920   :  { %3179 = vmatpush1.msra.mxu0 %v10367_v21  ;;  %3361 = vmatpush1.msra.mxu1 %v10214_v54  ;;  %v3526_v54 = vld [vmem:[#allocation20 + $0x180] sm:$0xff] }
 0x921   :  { %3403 = vmatprep.subr.mxu0 %v10239_v33  ;;  %3213 = vmatmul.mubr.f32.vlgmr.msra.gmra.mxu0 %v10224_v2  ;;  %v3515_v2 = vld [vmem:[#allocation20 + $0x128] sm:$0xff]  ;;  %v3540_v33 = vld [vmem:[#allocation20 + $0x1f0] sm:$0xff] }
 0x922   :  { %3404 = vmatpush1.msra.mxu0 %v10242_v11  ;;  %3362 = vmatprep.subr.mxu1 %v10217_v4  ;;  %v3523_v4 = vld [vmem:[#allocation20 + $0x168] sm:$0xff] }
 0x923   :  { %3405 = vmatprep.subr.mxu0 %v10245_v13  ;;  %3363 = vmatpush1.msra.mxu1 %v10220_v10  ;;  %v3519_v10 = vld [vmem:[#allocation20 + $0x148] sm:$0xff]  ;;  %v3537_v13 = vld [vmem:[#allocation20 + $0x1d8] sm:$0xff] }
 0x924   :  { %3406 = vmatpush1.msra.mxu0 %v10250_v15  ;;  %3396 = vmatprep.mubr.f32.mxu1 %v13075_v35  ;;  %v3503_v11 = vld [vmem:[#allocation20 + $0xc8] sm:$0xff]  ;;  %v3502_v15 = vld [vmem:[#allocation20 + $0xc0] sm:$0xff] }
 0x925   :  { %3407 = vmatprep.subr.mxu0 %v10254_v8  ;;  %3397 = vmatmul.mubr.f32.vlgmr.msra.gmra.mxu1 %v13075_v35  ;;  %v3536_v8 = vld [vmem:[#allocation20 + $0x1d0] sm:$0xff] }
 0x926   :  { %3408 = vmatpush1.msra.mxu0 %v10257_v29  ;;  %3218 = vmatprep.mubr.f32.mxu0 %v13075_v35  ;;  %v3499_v29 = vld [vmem:[#allocation20 + $0xa8] sm:$0xff] }
 0x927   :  { %3409 = vmatprep.subr.mxu0 %v10261_v56  ;;  %3219 = vmatmul.mubr.f32.gmra.mxu0 %v10268_v17  ;;  %v3533_v56 = vld [vmem:[#allocation20 + $0x1b8] sm:$0xff]  ;;  %v3532_v17 = vld [vmem:[#allocation20 + $0x1b0] sm:$0xff] }
 0x928   :  { %3410 = vmatpush1.msra.mxu0 %v10266_v16  ;;  %3224 = vmatprep.mubr.f32.mxu0 %v13075_v35  ;;  %v3498_v16 = vld [vmem:[#allocation20 + $0xa0] sm:$0xff] }
 0x929   :  { %3411 = vmatprep.subr.mxu0 %v10272_v18  ;;  %3542 = vmatprep.subr.mxu1 %v3539_v61  ;;  %v3495_v18 = vld [vmem:[#allocation20 + $0x88] sm:$0xff]  ;;  %v3496_v61 = vld [vmem:[#allocation20 + $0x90] sm:$0xff] }
 0x92a   :  { %3412 = vmatpush1.msra.mxu0 %v10275_v19  ;;  %3543 = vmatpush1.msra.mxu1 %v3538_v57  ;;  %v3529_v19 = vld [vmem:[#allocation20 + $0x198] sm:$0xff] }
 0x92b   :  { %3413 = vmatprep.subr.mxu0 %v10279_v20  ;;  %3225 = vmatmul.mubr.f32.gmra.mxu0 %v10310_v31  ;;  %v3494_v20 = vld [vmem:[#allocation20 + $0x80] sm:$0xff]  ;;  %v3493_v57 = vld [vmem:[#allocation20 + $0x78] sm:$0xff] }
 0x92c   :  { %3414 = vmatpush1.msra.mxu0 %v10284_v22  ;;  %3230 = vmatprep.mubr.f32.mxu0 %v13075_v35  ;;  %v3528_v22 = vld [vmem:[#allocation20 + $0x190] sm:$0xff]  ;;  %v3486_v31 = vld [vmem:[#allocation20 + $0x40] sm:$0xff] }
 0x92d   :  { %3415 = vmatprep.subr.mxu0 %v10288_v23  ;;  %3544 = vmatprep.subr.mxu1 %v3535_v6  ;;  %v3491_v23 = vld [vmem:[#allocation20 + $0x68] sm:$0xff]  ;;  %v3492_v6 = vld [vmem:[#allocation20 + $0x70] sm:$0xff] }
 0x92e   :  { %3416 = vmatpush1.msra.mxu0 %v10291_v24  ;;  %3545 = vmatpush1.msra.mxu1 %v3534_v0  ;;  %v3525_v24 = vld [vmem:[#allocation20 + $0x178] sm:$0xff] }
 0x92f   :  { %3417 = vmatprep.subr.mxu0 %v10295_v25  ;;  %3231 = vmatmul.mubr.f32.gmra.mxu0 %v10336_v39  ;;  %v3490_v25 = vld [vmem:[#allocation20 + $0x60] sm:$0xff]  ;;  %v3513_v39 = vld [vmem:[#allocation20 + $0x118] sm:$0xff] }
 0x930   :  { %3418 = vmatpush1.msra.mxu0 %v10300_v26  ;;  %3236 = vmatprep.mubr.f32.mxu0 %v13075_v35  ;;  %v3524_v26 = vld [vmem:[#allocation20 + $0x170] sm:$0xff]  ;;  %v3489_v0 = vld [vmem:[#allocation20 + $0x58] sm:$0xff] }
 0x931   :  { %3419 = vmatprep.subr.mxu0 %v10303_v27  ;;  %3546 = vmatprep.subr.mxu1 %v3531_v7  ;;  %v3487_v27 = vld [vmem:[#allocation20 + $0x48] sm:$0xff]  ;;  %v3488_v7 = vld [vmem:[#allocation20 + $0x50] sm:$0xff] }
 0x932   :  { %3420 = vmatpush1.msra.mxu0 %v10307_v28  ;;  %3547 = vmatpush1.msra.mxu1 %v3530_v41  ;;  %v3521_v28 = vld [vmem:[#allocation20 + $0x158] sm:$0xff] }
 0x933   :  { %3421 = vmatprep.subr.mxu0 %v10313_v34  ;;  %3237 = vmatmul.mubr.f32.gmra.mxu0 %v2966_v52  ;;  %v3520_v34 = vld [vmem:[#allocation20 + $0x150] sm:$0xff]  ;;  %v3501_v52 = vld [vmem:[#allocation20 + $0xb8] sm:$0xff] }
 0x934   :  { %3422 = vmatpush1.msra.mxu0 %v10317_v38  ;;  %3467 = vmatprep.mubr.f32.mxu0 %v13075_v35  ;;  %v3483_v38 = vld [vmem:[#allocation20 + $0x28] sm:$0xff]  ;;  %v3485_v41 = vld [vmem:[#allocation20 + $0x38] sm:$0xff] }
 0x935   :  { %3423 = vmatprep.subr.mxu0 %v10321_v40  ;;  %3548 = vmatprep.subr.mxu1 %v3527_v9  ;;  %v3517_v40 = vld [vmem:[#allocation20 + $0x138] sm:$0xff]  ;;  %v3484_v9 = vld [vmem:[#allocation20 + $0x30] sm:$0xff] }
 0x936   :  { %3424 = vmatpush1.msra.mxu0 %v10325_v42  ;;  %3549 = vmatpush1.msra.mxu1 %v3526_v54  ;;  %v3482_v42 = vld [vmem:[#allocation20 + $0x20] sm:$0xff]  ;;  %v3481_v54 = vld [vmem:[#allocation20 + $0x18] sm:$0xff] }
 0x937   :  { %3425 = vmatprep.subr.mxu0 %v10329_v43  ;;  %3550 = vmatprep.subr.mxu1 %v3523_v4  ;;  %v3516_v43 = vld [vmem:[#allocation20 + $0x130] sm:$0xff] }
 0x938   :  { %3426 = vmatpush1.msra.mxu0 %v10333_v44  ;;  %3551 = vmatpush1.msra.mxu1 %v3522_v1  ;;  %v3479_v44 = vld [vmem:[#allocation20 + $0x8] sm:$0xff]  ;;  %v3480_v4 = vld [vmem:[#allocation20 + $0x10] sm:$0xff] }
 0x939   :  { %3427 = vmatprep.subr.mxu0 %v10339_v46  ;;  %3552 = vmatprep.subr.mxu1 %v3519_v10  ;;  %v3478_v46 = vld [vmem:[#allocation20] sm:$0xff] }
 0x93a   :  { %3428 = vmatpush1.msra.mxu0 %v10343_v47  ;;  %3553 = vmatpush1.msra.mxu1 %v3518_v5  ;;  %v3512_v47 = vld [vmem:[#allocation20 + $0x110] sm:$0xff] }
 0x93b   :  { %3429 = vmatprep.subr.mxu0 %v10347_v49  ;;  %3554 = vmatprep.subr.mxu1 %v3515_v2  ;;  %v3509_v49 = vld [vmem:[#allocation20 + $0xf8] sm:$0xff] }
 0x93c   :  { %3430 = vmatpush1.msra.mxu0 %v10351_v50  ;;  %3555 = vmatpush1.msra.mxu1 %v3514_v58  ;;  %v3508_v50 = vld [vmem:[#allocation20 + $0xf0] sm:$0xff] }
 0x93d   :  { %3431 = vmatprep.subr.mxu0 %v10355_v51  ;;  %3556 = vmatprep.subr.mxu1 %v3511_v60  ;;  %v3505_v51 = vld [vmem:[#allocation20 + $0xd8] sm:$0xff] }
 0x93e   :  { %3432 = vmatpush1.msra.mxu0 %v10359_v36  ;;  %3557 = vmatpush1.msra.mxu1 %v3510_v59  ;;  %v3504_v36 = vld [vmem:[#allocation20 + $0xd0] sm:$0xff]  ;;  %v3031_v59 = vld [vmem:[%s12481_s14] sm:$0xf] }
 0x93f   :  { %3433 = vmatprep.subr.mxu0 %v10363_v48  ;;  %3558 = vmatprep.subr.mxu1 %v3507_v3  ;;  %v3500_v48 = vld [vmem:[#allocation20 + $0xb0] sm:$0xff] }
 0x940   :  { %3434 = vmatpush1.msra.mxu0 %v10367_v21  ;;  %3559 = vmatpush1.msra.mxu1 %v3506_v37  ;;  %v3497_v21 = vld [vmem:[#allocation20 + $0x98] sm:$0xff] }
 0x941   :  { %3468 = vmatmul.mubr.f32.vlgmr.msra.gmra.mxu0 %v13075_v35  ;;  %3613 = vmatprep.subr.mxu0 %v3541_v30  ;;  %v13096_v30 = vld [vmem:[#allocation56_spill] sm:$0xff] }
 0x942   :  { %3614 = vmatpush1.msra.mxu0 %v3540_v33  ;;  %3560 = vmatprep.subr.mxu1 %v3503_v11  ;;  %v10443_v33 = vrot.slane %v3031_v59, %v13096_v30 }
 0x943   :  { %3615 = vmatprep.subr.mxu0 %v3537_v13  ;;  %3561 = vmatpush1.msra.mxu1 %v3502_v15  ;;  %v13097_v13 = vld [vmem:[#allocation58_spill] sm:$0xff] }
 0x944   :  { %3616 = vmatpush1.msra.mxu0 %v3536_v8  ;;  %3562 = vmatprep.subr.mxu1 %v3499_v29  ;;  %v10446_v15 = vrot.slane %v3031_v59, %v13097_v13 }
 0x945   :  { %3617 = vmatprep.subr.mxu0 %v3533_v56  ;;  %3563 = vmatpush1.msra.mxu1 %v3498_v16 }
 0x946   :  { %3618 = vmatpush1.msra.mxu0 %v3532_v17  ;;  %3564 = vmatprep.subr.mxu1 %v3495_v18 }
 0x947   :  { %3619 = vmatprep.subr.mxu0 %v3529_v19  ;;  %3565 = vmatpush1.msra.mxu1 %v3494_v20 }
 0x948   :  { %3620 = vmatpush1.msra.mxu0 %v3528_v22  ;;  %3566 = vmatprep.subr.mxu1 %v3491_v23 }
 0x949   :  { %3621 = vmatprep.subr.mxu0 %v3525_v24  ;;  %3567 = vmatpush1.msra.mxu1 %v3490_v25 }
 0x94a   :  { %3622 = vmatpush1.msra.mxu0 %v3524_v26  ;;  %3568 = vmatprep.subr.mxu1 %v3487_v27 }
 0x94b   :  { %3623 = vmatprep.subr.mxu0 %v3521_v28  ;;  %3569 = vmatpush1.msra.mxu1 %v3486_v31 }
 0x94c   :  { %3624 = vmatpush1.msra.mxu0 %v3520_v34  ;;  %3570 = vmatprep.subr.mxu1 %v3483_v38 }
 0x94d   :  { %3625 = vmatprep.subr.mxu0 %v3517_v40  ;;  %3571 = vmatpush1.msra.mxu1 %v3482_v42 }
 0x94e   :  { %3626 = vmatpush1.msra.mxu0 %v3516_v43  ;;  %3572 = vmatprep.subr.mxu1 %v3479_v44 }
 0x94f   :  { %3627 = vmatprep.subr.mxu0 %v3513_v39  ;;  %3573 = vmatpush1.msra.mxu1 %v3478_v46  ;;  %v13104_v46 = vld [vmem:[#allocation57_spill] sm:$0xff] }
 0x950   :  { %3628 = vmatpush1.msra.mxu0 %v3512_v47  ;;  %3606 = vmatprep.mubr.f32.mxu1 %v13075_v35  ;;  %v10489_v47 = vrot.slane %v3031_v59, %v13104_v46 }
 0x951   :  { %3629 = vmatprep.subr.mxu0 %v3509_v49  ;;  %3677 = vmatprep.mubr.f32.mxu0 %v13075_v35 }
 0x952   :  { %3630 = vmatpush1.msra.mxu0 %v3508_v50  ;;  %7912 = vmatprep.subr.mxu1 %v13075_v35  ;;  %v13105_v50 = vld [vmem:[#allocation59_spill] sm:$0xff] }
 0x953   :  { %3631 = vmatprep.subr.mxu0 %v3505_v51  ;;  %v10492_v51 = vrot.slane %v3031_v59, %v13105_v50  ;;  %v3932_v59 = vld [vmem:[#allocation23 + $0x70] sm:$0xff] }
 0x954   :  { %3632 = vmatpush1.msra.mxu0 %v3504_v36 }
 0x955   :  { %3633 = vmatprep.subr.mxu0 %v3501_v52 }
 0x956   :  { %3634 = vmatpush1.msra.mxu0 %v3500_v48 }
 0x957   :  { %3635 = vmatprep.subr.mxu0 %v3497_v21 }
 0x958   :  { %3636 = vmatpush1.msra.mxu0 %v3496_v61 }
 0x959   :  { %3637 = vmatprep.subr.mxu0 %v3493_v57 }
 0x95a   :  { %3638 = vmatpush1.msra.mxu0 %v3492_v6 }
 0x95b   :  { %3639 = vmatprep.subr.mxu0 %v3489_v0 }
 0x95c   :  { %3640 = vmatpush1.msra.mxu0 %v3488_v7 }
 0x95d   :  { %3641 = vmatprep.subr.mxu0 %v3485_v41 }
 0x95e   :  { %3642 = vmatpush1.msra.mxu0 %v3484_v9 }
 0x95f   :  { %3643 = vmatprep.subr.mxu0 %v3481_v54 }
 0x960   :  { %3644 = vmatpush1.msra.mxu0 %v3480_v4 }
 0x961   :  { %7947 = vmatprep.subr.mxu0 %v13075_v35 }
 0x991   :  { %v10425_v1 = vpop.f32.mrf.mxu1 }
 0x993   :  { %v7867_v10 = vpop.f32.mrf.mxu1 }
 0x9a1   :  { %v2728_v5 = vpop.f32.mrf.mxu0 }
 0x9a2   :  { %3607 = vmatmul.mubr.f32.vlgmr.msra.gmra.mxu1 %v2728_v5  ;;  %3678 = vmatmul.mubr.f32.vlgmr.msra.gmra.mxu0 %v2728_v5 }
 0x9a3   :  { %v7832_v2 = vpop.f32.mrf.mxu0  ;;  %7944 = vmatprep.mubr.msk.f32.mxu1 %vm8827_vm0, %v13075_v35  ;;  %7979 = vmatprep.mubr.msk.f32.mxu0 %vm8827_vm0, %v13075_v35 }
 0x9a4   :  { %v3933_v2 = vld [vmem:[#allocation23 + $0x78] sm:$0xff] }
 0x9a5   :  { %7913 = vmatpush3.msra.mxu1 %v3933_v2 }
 0x9a6   :  { %7914 = vmatprep.subr.mxu1 %v13075_v35 }
 0x9a7   :  { %7915 = vmatpush3.msra.mxu1 %v3932_v59 }
 0x9a8   :  { %7916 = vmatprep.subr.mxu1 %v13075_v35 }
 0x9b3   :  { %v10431_v58 = vpop.f32.mrf.mxu1 }
 0x9b5   :  { %v10438_v3 = vpop.f32.mrf.mxu1 }
 0x9b6   :  { %v3122_v2 = vadd.f32 %v10438_v3, %v10446_v15 }
 0x9c1   :  { %v10433_v60 = vpop.f32.mrf.mxu0 }
 0x9c3   :  { %v10440_v37 = vpop.f32.mrf.mxu0 }
 0x9c5   :  { %v10451_v56 = vpop.f32.mrf.mxu0 }
 0x9c7   :  { %v10456_v17 = vpop.f32.mrf.mxu0 }
 0x9c8   :  { %v3125_v11 = vpop.f32.mrf.mxu1 }
 0x9c9   :  { %v10449_v8 = vadd.f32 %v3125_v11, %v10443_v33  ;;  %v10458_v19 = vpop.f32.mrf.mxu0  ;;  %v3931_v11 = vld [vmem:[#allocation23 + $0x68] sm:$0xff] }
 0x9ca   :  { %v3127_v29 = vpop.f32.mrf.mxu1  ;;  %7917 = vmatpush3.msra.mxu1 %v3931_v11 }
 0x9cb   :  { %v10454_v16 = vadd.f32 %v3127_v29, %v10446_v15  ;;  %v10466_v24 = vpop.f32.mrf.mxu0  ;;  %7918 = vmatprep.subr.mxu1 %v13075_v35  ;;  %v3930_v29 = vld [vmem:[#allocation23 + $0x60] sm:$0xff] }
 0x9cc   :  { %7919 = vmatpush3.msra.mxu1 %v3930_v29 }
 0x9cd   :  { %v10471_v28 = vpop.f32.mrf.mxu0  ;;  %7920 = vmatprep.subr.mxu1 %v13075_v35 }
 0x9cf   :  { %v10476_v38 = vpop.f32.mrf.mxu0 }
 0x9d2   :  { %v3131_v18 = vpop.f32.mrf.mxu1 }
 0x9d3   :  { %v10461_v20 = vadd.f32 %v3131_v18, %v10443_v33  ;;  %v3929_v18 = vld [vmem:[#allocation23 + $0x58] sm:$0xff] }
 0x9d4   :  { %v3133_v22 = vpop.f32.mrf.mxu1  ;;  %7921 = vmatpush3.msra.mxu1 %v3929_v18 }
 0x9d5   :  { %13098 = vst [vmem:[#allocation71_spill] sm:$0xff] %v10461_v20  ;;  %v10464_v23 = vadd.f32 %v3133_v22, %v10446_v15  ;;  %7922 = vmatprep.subr.mxu1 %v13075_v35  ;;  %v3928_v22 = vld [vmem:[#allocation23 + $0x50] sm:$0xff]  ;;  %v10734_v20 = vld [vmem:[#allocation18 + $0x160] sm:$0xff] }
 0x9d6   :  { %7923 = vmatpush3.msra.mxu1 %v3928_v22  ;;  %13124 = vst [vmem:[#allocation49_spill] sm:$0xff] %v10734_v20 }
 0x9d7   :  { %13099 = vst [vmem:[#allocation69_spill] sm:$0xff] %v10464_v23  ;;  %7924 = vmatprep.subr.mxu1 %v13075_v35  ;;  %v10731_v23 = vld [vmem:[#allocation18 + $0x168] sm:$0xff] }
 0x9d8   :  { %v3137_v25 = vpop.f32.mrf.mxu1  ;;  %13123 = vst [vmem:[#allocation48_spill] sm:$0xff] %v10731_v23 }
 0x9d9   :  { %v10469_v26 = vadd.f32 %v3137_v25, %v10443_v33  ;;  %v3927_v25 = vld [vmem:[#allocation23 + $0x48] sm:$0xff] }
 0x9da   :  { %v3139_v27 = vpop.f32.mrf.mxu1  ;;  %7925 = vmatpush3.msra.mxu1 %v3927_v25 }
 0x9db   :  { %13100 = vst [vmem:[#allocation34_spill] sm:$0xff] %v10469_v26  ;;  %v10474_v31 = vadd.f32 %v3139_v27, %v10446_v15  ;;  %7926 = vmatprep.subr.mxu1 %v13075_v35  ;;  %v3926_v27 = vld [vmem:[#allocation23 + $0x40] sm:$0xff] }
 0x9dc   :  { %7927 = vmatpush3.msra.mxu1 %v3926_v27 }
 0x9dd   :  { %13101 = vst [vmem:[#allocation35_spill] sm:$0xff] %v10474_v31  ;;  %7928 = vmatprep.subr.mxu1 %v13075_v35 }
 0x9de   :  { %v3143_v34 = vpop.f32.mrf.mxu1 }
 0x9df   :  { %v10479_v40 = vadd.f32 %v3143_v34, %v10443_v33  ;;  %v3925_v34 = vld [vmem:[#allocation23 + $0x38] sm:$0xff] }
 0x9e0   :  { %v3145_v42 = vpop.f32.mrf.mxu1  ;;  %7929 = vmatpush3.msra.mxu1 %v3925_v34 }
 0x9e1   :  { %13102 = vst [vmem:[#allocation72_spill] sm:$0xff] %v10479_v40  ;;  %v10482_v43 = vadd.f32 %v3145_v42, %v10446_v15  ;;  %v10484_v44 = vpop.f32.mrf.mxu0  ;;  %7930 = vmatprep.subr.mxu1 %v13075_v35  ;;  %v3924_v42 = vld [vmem:[#allocation23 + $0x30] sm:$0xff] }
 0x9e2   :  { %7931 = vmatpush3.msra.mxu1 %v3924_v42 }
 0x9e3   :  { %13103 = vst [vmem:[#allocation74_spill] sm:$0xff] %v10482_v43  ;;  %v10486_v39 = vpop.f32.mrf.mxu0  ;;  %7932 = vmatprep.subr.mxu1 %v13075_v35 }
 0x9e7   :  { %v3220_v49 = vpop.f32.mrf.mxu0 }
 0x9e8   :  { %v10495_v36 = vadd.f32 %v3220_v49, %v10489_v47  ;;  %v3923_v49 = vld [vmem:[#allocation23 + $0x28] sm:$0xff] }
 0x9e9   :  { %v3222_v52 = vpop.f32.mrf.mxu0  ;;  %7933 = vmatpush3.msra.mxu1 %v3923_v49 }
 0x9ea   :  { %v10498_v48 = vadd.f32 %v3222_v52, %v10492_v51  ;;  %7934 = vmatprep.subr.mxu1 %v13075_v35  ;;  %v3922_v52 = vld [vmem:[#allocation23 + $0x20] sm:$0xff] }
 0x9eb   :  { %v3226_v21 = vpop.f32.mrf.mxu0  ;;  %7935 = vmatpush3.msra.mxu1 %v3922_v52 }
 0x9ec   :  { %v10501_v61 = vadd.f32 %v3226_v21, %v10489_v47  ;;  %7936 = vmatprep.subr.mxu1 %v13075_v35  ;;  %v3921_v21 = vld [vmem:[#allocation23 + $0x18] sm:$0xff] }
 0x9ed   :  { %v3228_v57 = vpop.f32.mrf.mxu0  ;;  %7937 = vmatpush3.msra.mxu1 %v3921_v21  ;;  %v3217_v21 = vadd.f32 %v10486_v39, %v10492_v51 }
 0x9ee   :  { %13106 = vst [vmem:[#allocation75_spill] sm:$0xff] %v10501_v61  ;;  %v10504_v6 = vadd.f32 %v3228_v57, %v10492_v51  ;;  %7938 = vmatprep.subr.mxu1 %v13075_v35  ;;  %v3920_v57 = vld [vmem:[#allocation23 + $0x10] sm:$0xff]  ;;  %v10724_v61 = vld [vmem:[#allocation18 + $0x188] sm:$0xff] }
 0x9ef   :  { %v3232_v0 = vpop.f32.mrf.mxu0  ;;  %7939 = vmatpush3.msra.mxu1 %v3920_v57 }
 0x9f0   :  { %13107 = vst [vmem:[#allocation73_spill] sm:$0xff] %v10504_v6  ;;  %v10507_v7 = vadd.f32 %v3232_v0, %v10489_v47  ;;  %7940 = vmatprep.subr.mxu1 %v13075_v35  ;;  %v3919_v0 = vld [vmem:[#allocation23 + $0x8] sm:$0xff] }
 0x9f1   :  { %v3234_v41 = vpop.f32.mrf.mxu0  ;;  %7941 = vmatpush3.msra.mxu1 %v3919_v0 }
 0x9f2   :  { %13108 = vst [vmem:[#allocation36_spill] sm:$0xff] %v10507_v7  ;;  %v10510_v9 = vadd.f32 %v3234_v41, %v10492_v51  ;;  %v3918_v41 = vld [vmem:[#allocation23] sm:$0xff]  ;;  %7942 = vmatprep.subr.mxu1 %v13075_v35  ;;  %v10705_v7 = vld [vmem:[#allocation18 + $0x1c8] sm:$0xff] }
 0x9f3   :  { %v3238_v54 = vpop.f32.mrf.mxu0  ;;  %7943 = vmatpush3.msra.mxu1 %v3918_v41  ;;  %v3215_v41 = vadd.f32 %v10484_v44, %v10489_v47 }
 0x9f4   :  { %13109 = vst [vmem:[#allocation37_spill] sm:$0xff] %v10510_v9  ;;  %v10513_v4 = vadd.f32 %v3238_v54, %v10489_v47  ;;  %v3398_v54 = vpop.f32.mrf.mxu1  ;;  %v10709_v9 = vld [vmem:[#allocation18 + $0x1c0] sm:$0xff] }
 0x9f5   :  { %v3240_v10 = vpop.f32.mrf.mxu0 }
 0x9f6   :  { %13110 = vst [vmem:[#allocation38_spill] sm:$0xff] %v10513_v4  ;;  %v10516_v5 = vadd.f32 %v3240_v10, %v10492_v51  ;;  %v3120_v10 = vadd.f32 %v10431_v58, %v10443_v33  ;;  %v3400_v11 = vpop.f32.mrf.mxu1 }
 0x9f7   :  { %v3475_v22 = vadd.f32 %v3400_v11, %v3122_v2 }
 0x9f8   :  { %13111 = vst [vmem:[#allocation39_spill] sm:$0xff] %v10516_v5  ;;  %v3474_v29 = vadd.f32 %v3398_v54, %v3120_v10 }
 0xa01   :  { %v3469_v59 = vpop.f32.mrf.mxu0 }
 0xa02   :  { %v3476_v10 = vadd.f32 %v3469_v59, %v3215_v41  ;;  %v7569_v59 = vld [vmem:[%s12478_s11] ss:$0 sm:$0xff] }
 0xa03   :  { %v3471_v25 = vpop.f32.mrf.mxu0  ;;  %v10573_v41 = vadd.f32 %v10451_v56, %v7569_v59 }
 0xa04   :  { %v3477_v3 = vadd.f32 %v3471_v25, %v3217_v21 }
 0xa62   :  { %v3608_v18 = vpop.f32.mrf.mxu1  ;;  %v3679_v49 = vpop.f32.mrf.mxu0 }
 0xa63   :  { %v3684_v27 = vadd.f32 %v3608_v18, %v3474_v29  ;;  %v3686_v29 = vadd.f32 %v3679_v49, %v3476_v10  ;;  %v10583_v10 = vadd.f32 %v10458_v19, %v7569_v59  ;;  %v10598_v19 = vld [vmem:[#allocation21 + $0x68] sm:$0xff] }
 0xa64   :  { %v3610_v34 = vpop.f32.mrf.mxu1  ;;  %v3681_v33 = vpop.f32.mrf.mxu0 }
 0xa65   :  { %v3688_v42 = vsub.f32 0.0, %v3684_v27  ;;  %v3685_v52 = vadd.f32 %v3610_v34, %v3475_v22  ;;  %v3687_v15 = vadd.f32 %v3681_v33, %v3477_v3  ;;  %v10563_v3 = vadd.f32 %v7569_v59, %v10456_v17  ;;  %13112 = vst [vmem:[#allocation40_spill] sm:$0xff] %v10583_v10 }
 0xa67   :  { %v3689_v57 = vmul.f32 1.442695, %v3688_v42  ;;  %v3694_v0 = vsub.f32 0.0, %v3685_v52  ;;  %v3701_v54 = vsub.f32 0.0, %v3687_v15 }
 0xa69   :  { %8413 = vpow2.f32 %v3689_v57  ;;  %v3695_v58 = vmul.f32 1.442695, %v3694_v0  ;;  %v3702_v2 = vmul.f32 1.442695, %v3701_v54  ;;  %v10549_v57 = vadd.f32 %v10433_v60, %v7569_v59 }
 0xa6a   :  { %v10552_v0 = vadd.f32 %v7569_v59, %v10440_v37  ;;  %v10566_v60 = vadd.f32 %v7569_v59, %v10466_v24  ;;  %v10576_v54 = vadd.f32 %v7569_v59, %v10476_v38 }
 0xa6b   :  { %8415 = vpow2.f32 %v3695_v58 }
 0xa6c   :  { %8417 = vpow2.f32 %v3702_v2  ;;  %v10588_v2 = vadd.f32 %v10471_v28, %v7569_v59  ;;  %v10602_v28 = vld [vmem:[#allocation21 + $0x60] sm:$0xff] }
 0xa6e   :  { %13113 = vst [vmem:[#allocation41_spill] sm:$0xff] %v10588_v2 }
 0xa76   :  { %v8414_v11 = vpop.eup %8413 }
 0xa77   :  { %v3691_v18 = vadd.f32 1.0, %v8414_v11  ;;  %v10592_v11 = vld [vmem:[#allocation21 + $0x78] sm:$0xff] }
 0xa78   :  { %v8416_v22 = vpop.eup %8415  ;;  %7948 = vmatpush3.msra.mxu0 %v10592_v11 }
 0xa79   :  { %8419 = vrcp.f32 %v3691_v18  ;;  %v3697_v39 = vadd.f32 1.0, %v8416_v22  ;;  %v8418_v51 = vpop.eup %8417  ;;  %7949 = vmatprep.subr.mxu0 %v13075_v35  ;;  %v10606_v18 = vld [vmem:[#allocation21 + $0x58] sm:$0xff]  ;;  %v10610_v22 = vld [vmem:[#allocation21 + $0x50] sm:$0xff] }
 0xa7a   :  { %8421 = vtanh.f32 %v3686_v29  ;;  %v3704_v42 = vadd.f32 1.0, %v8418_v51  ;;  %v10594_v29 = vld [vmem:[#allocation21 + $0x70] sm:$0xff] }
 0xa7b   :  { %8423 = vrcp.f32 %v3697_v39  ;;  %7950 = vmatpush3.msra.mxu0 %v10594_v29  ;;  %v13114_v39 = vlaneseq }
 0xa7c   :  { %8425 = vrcp.f32 %v3704_v42  ;;  %7951 = vmatprep.subr.mxu0 %v13075_v35 }
 0xa7d   :  { %7952 = vmatpush3.msra.mxu0 %v10598_v19  ;;  %v3754_v51 = vand.u32 127, %v13114_v39 }
 0xa7e   :  { %7953 = vmatprep.subr.mxu0 %v13075_v35 }
 0xa7f   :  { %7954 = vmatpush3.msra.mxu0 %v10602_v28 }
 0xa80   :  { %7955 = vmatprep.subr.mxu0 %v13075_v35 }
 0xa81   :  { %7956 = vmatpush3.msra.mxu0 %v10606_v18 }
 0xa82   :  { %7957 = vmatprep.subr.mxu0 %v13075_v35 }
 0xa83   :  { %7958 = vmatpush3.msra.mxu0 %v10610_v22 }
 0xa84   :  { %7959 = vmatprep.subr.mxu0 %v13075_v35 }
 0xa86   :  { %v8420_v27 = vpop.eup %8419 }
 0xa87   :  { %v8422_v25 = vpop.eup %8421 }
 0xa88   :  { %v8424_v34 = vpop.eup %8423  ;;  %v3708_v52 = vmul.f32 %v8422_v25, %v8420_v27  ;;  %v13115_v25 = vld [vmem:[#allocation55_spill] sm:$0xff] }
 0xa89   :  { %v3707_v44 = vmul.f32 %v8424_v34, %v10425_v1  ;;  %v8426_v49 = vpop.eup %8425  ;;  %v10618_v34 = vsub.s32 %v3754_v51, %v13115_v25  ;;  %v10713_v26 = vsub.s32 7, %v13115_v25 }
 0xa8b   :  { %v10542_v47 = vadd.f32 %v3708_v52, %v3707_v44  ;;  %13116 = vst [vmem:[#allocation42_spill] sm:$0xff] %v10618_v34  ;;  %13122 = vst [vmem:[#allocation47_spill] sm:$0xff] %v10713_v26 }
 0xa8d   :  { %8427 = vtanh.f32 %v10542_v47 }
 0xa9a   :  { %v8428_v21 = vpop.eup %8427 }
 0xa9b   :  { %v10554_v58 = vmul.f32 %v8428_v21, %v8426_v49 }
 0xa9d   :  { %7945 = vmatmul.mubr.f32.vlgmr.msra.gmra.mxu1 %v10554_v58  ;;  %v3721_v1 = vmul.f32 %v10554_v58, %v10549_v57  ;;  %v3720_v33 = vmul.f32 %v10554_v58, %v10552_v0  ;;  %v3724_v37 = vmul.f32 %v10554_v58, %v10566_v60  ;;  %v3722_v15 = vmul.f32 %v10554_v58, %v10563_v3 }
 0xa9e   :  { %4208 = vmatprep.mubr.f32.mxu1 %v13075_v35  ;;  %v3726_v17 = vmul.f32 %v10554_v58, %v10576_v54  ;;  %v3723_v24 = vmul.f32 %v10554_v58, %v10573_v41  ;;  %v3725_v56 = vmul.f32 %v10554_v58, %v10583_v10  ;;  %v3727_v38 = vmul.f32 %v10554_v58, %v10588_v2 }
 0xa9f   :  { %3730 = vadd.xlane.f32.xlu1 %v3721_v1  ;;  %3728 = vadd.xlane.f32.xlu0 %v3720_v33 }
 0xaa3   :  { %3736 = vadd.xlane.f32.xlu1 %v3724_v37  ;;  %3732 = vadd.xlane.f32.xlu0 %v3722_v15 }
 0xaa7   :  { %3740 = vadd.xlane.f32.xlu1 %v3726_v17  ;;  %3734 = vadd.xlane.f32.xlu0 %v3723_v24 }
 0xaab   :  { %3738 = vadd.xlane.f32.xlu0 %v3725_v56 }
 0xaaf   :  { %3742 = vadd.xlane.f32.xlu0 %v3727_v38 }
 0xb28   :  { %v3729_v27 = vpop.xlane.xlu0 %3728  ;;  %v3731_v42 = vpop.xlane.xlu1 %3730 }
 0xb29   :  { %v3762_v44 = vrot.slane %v3731_v42, %v10618_v34  ;;  %v3758_v59 = vrot.slane %v3729_v27, %v10618_v34  ;;  %v10633_v27 = vld [vmem:[%s13117_s8] sm:$0xff] }
 0xb2a   :  { %13118 = vst [vmem:[#allocation43_spill] sm:$0xff] %v10633_v27  ;;  %vm3744_vm8 = vcmp.gt.f32.partialorder %v10633_v27, 0.0 }
 0xb2b   :  { %v3788_v33 = vsel %vm3787_vm1, %v3762_v44, %v3758_v59 }
 0xb2c   :  { %v3733_v52 = vpop.xlane.xlu0 %3732  ;;  %v3737_v21 = vpop.xlane.xlu1 %3736 }
 0xb2d   :  { %v3766_v49 = vrot.slane %v3733_v52, %v10618_v34  ;;  %v3774_v24 = vrot.slane %v3737_v21, %v10618_v34 }
 0xb2f   :  { %v3790_v15 = vsel %vm3789_vm2, %v3766_v49, %v3788_v33 }
 0xb30   :  { %v3735_v1 = vpop.xlane.xlu0 %3734  ;;  %v3741_v38 = vpop.xlane.xlu1 %3740 }
 0xb31   :  { %v3770_v37 = vrot.slane %v3735_v1, %v10618_v34  ;;  %v3782_v52 = vrot.slane %v3741_v38, %v10618_v34 }
 0xb33   :  { %v3792_v17 = vsel %vm3791_vm3, %v3770_v37, %v3790_v15 }
 0xb34   :  { %v3739_v56 = vpop.xlane.xlu0 %3738  ;;  %v3794_v51 = vsel %vm3793_vm4, %v3774_v24, %v3792_v17 }
 0xb35   :  { %v3778_v39 = vrot.slane %v3739_v56, %v10618_v34 }
 0xb37   :  { %v3796_v42 = vsel %vm3795_vm5, %v3778_v39, %v3794_v51 }
 0xb38   :  { %v3743_v44 = vpop.xlane.xlu0 %3742  ;;  %v3798_v49 = vsel %vm3797_vm6, %v3782_v52, %v3796_v42 }
 0xb39   :  { %v3786_v59 = vrot.slane %v3743_v44, %v10618_v34 }
 0xb3b   :  { %v3800_v21 = vsel %vm3799_vm7, %v3786_v59, %v3798_v49 }
 0xb3c   :  { %v3802_v1 = vsel %vm3744_vm8, -1e+30, %v3800_v21 }
 0xb3d   :  { %v3804_v33 = vsel %vm3803_vm9, %v3802_v1, -inf }
 0xb3e   :  { %v3805_v37 = vrot.slane %v3804_v33, 4 }
 0xb40   :  { %v3806_v15 = vmax.f32 %v3804_v33, %v3805_v37  ;;  %v10647_v33 = vld [vmem:[#allocation21 + $0x48] sm:$0xff]  ;;  %v10655_v37 = vld [vmem:[#allocation21 + $0x38] sm:$0xff] }
 0xb41   :  { %7960 = vmatpush3.msra.mxu0 %v10647_v33 }
 0xb42   :  { %v3807_v17 = vrot.slane %v3806_v15, 2  ;;  %7961 = vmatprep.subr.mxu0 %v13075_v35 }
 0xb44   :  { %v3808_v24 = vmax.f32 %v3806_v15, %v3807_v17  ;;  %v10658_v15 = vld [vmem:[#allocation21 + $0x30] sm:$0xff]  ;;  %v10666_v17 = vld [vmem:[#allocation21 + $0x20] sm:$0xff] }
 0xb46   :  { %v3809_v56 = vrot.slane %v3808_v24, 1 }
 0xb48   :  { %v3810_v38 = vmax.f32 %v3808_v24, %v3809_v56 }
 0xb4a   :  { %v3811_v39 = vsub.f32 %v3802_v1, %v3810_v38  ;;  %v10650_v1 = vld [vmem:[#allocation21 + $0x40] sm:$0xff]  ;;  %v10671_v38 = vsub.s32 4, %v13115_v25 }
 0xb4b   :  { %7962 = vmatpush3.msra.mxu0 %v10650_v1 }
 0xb4c   :  { %v3812_v51 = vmul.f32 1.442695, %v3811_v39  ;;  %7963 = vmatprep.subr.mxu0 %v13075_v35  ;;  %13119 = vst [vmem:[#allocation44_spill] sm:$0xff] %v10671_v38  ;;  %v10675_v39 = vld [vmem:[#allocation21 + $0x18] sm:$0xff] }
 0xb4d   :  { %7964 = vmatpush3.msra.mxu0 %v10655_v37 }
 0xb4e   :  { %8429 = vpow2.f32 %v3812_v51  ;;  %7965 = vmatprep.subr.mxu0 %v13075_v35 }
 0xb4f   :  { %7966 = vmatpush3.msra.mxu0 %v10658_v15 }
 0xb50   :  { %7967 = vmatprep.subr.mxu0 %v13075_v35 }
 0xb5b   :  { %v8430_v44 = vpop.eup %8429 }
 0xb5c   :  { %v3814_v42 = vsel %vm3803_vm9, %v8430_v44, 0.0 }
 0xb5d   :  { %v3815_v52 = vrot.slane %v3814_v42, 4  ;;  %v10645_v4 = vpop.f32.mrf.mxu1 }
 0xb5f   :  { %v3816_v59 = vadd.f32 %v3815_v52, %v3814_v42  ;;  %v7946_v49 = vpop.f32.mrf.mxu1  ;;  %v10681_v42 = vsub.s32 6, %v13115_v25  ;;  %v10684_v52 = vld [vmem:[#allocation21 + $0x10] sm:$0xff] }
 0xb61   :  { %v3817_v21 = vrot.slane %v3816_v59, 2  ;;  %13120 = vst [vmem:[#allocation45_spill] sm:$0xff] %v10681_v42 }
 0xb63   :  { %v3818_v5 = vadd.f32 %v3817_v21, %v3816_v59  ;;  %v10687_v59 = vld [vmem:[#allocation21 + $0x8] sm:$0xff] }
 0xb65   :  { %v3819_v43 = vrot.slane %v3818_v5, 1 }
 0xb67   :  { %v3820_v40 = vadd.f32 %v3819_v43, %v3818_v5  ;;  %v10663_v5 = vld [vmem:[#allocation21 + $0x28] sm:$0xff] }
 0xb68   :  { %7968 = vmatpush3.msra.mxu0 %v10663_v5 }
 0xb69   :  { %8431 = vrcp.f32 %v3820_v40  ;;  %7969 = vmatprep.subr.mxu0 %v13075_v35 }
 0xb6a   :  { %7970 = vmatpush3.msra.mxu0 %v10666_v17 }
 0xb6b   :  { %7971 = vmatprep.subr.mxu0 %v13075_v35 }
 0xb6c   :  { %7972 = vmatpush3.msra.mxu0 %v10675_v39 }
 0xb6d   :  { %7973 = vmatprep.subr.mxu0 %v13075_v35 }
 0xb6e   :  { %7974 = vmatpush3.msra.mxu0 %v10684_v52 }
 0xb6f   :  { %7975 = vmatprep.subr.mxu0 %v13075_v35 }
 0xb70   :  { %7976 = vmatpush3.msra.mxu0 %v10687_v59 }
 0xb71   :  { %7977 = vmatprep.subr.mxu0 %v13075_v35 }
 0xb76   :  { %v8432_v40 = vpop.eup %8431 }
 0xb77   :  { %v3822_v43 = vmul.f32 %v8432_v40, %v8430_v44  ;;  %v10693_v40 = vsub.s32 5, %v13115_v25  ;;  %v10727_v25 = vld [vmem:[#allocation18 + $0x180] sm:$0xff] }
 0xb79   :  { %v3833_v24 = vrot.slane %v3822_v43, %v13097_v13  ;;  %v3826_v56 = vrot.slane %v3822_v43, %v13096_v30  ;;  %v3854_v51 = vrot.slane %v3822_v43, %v10671_v38  ;;  %v3840_v44 = vrot.slane %v3822_v43, %v13104_v46  ;;  %13121 = vst [vmem:[#allocation46_spill] sm:$0xff] %v10693_v40 }
 0xb7a   :  { %v3868_v49 = vrot.slane %v3822_v43, %v10681_v42  ;;  %v3847_v21 = vrot.slane %v3822_v43, %v13105_v50  ;;  %v3861_v31 = vrot.slane %v3822_v43, %v10693_v40  ;;  %v3875_v6 = vrot.slane %v3822_v43, %v10713_v26  ;;  %v10740_v40 = vld [vmem:[#allocation18 + $0x140] sm:$0xff]  ;;  %v10743_v43 = vld [vmem:[#allocation18 + $0x128] sm:$0xff] }
 0xb7b   :  { %3835 = vbcast.lane.b32.xlu0 %v3833_v24, 256  ;;  %3828 = vbcast.lane.b32.xlu1 %v3826_v56, 256  ;;  %v10697_v24 = vld [vmem:[#allocation21] sm:$0xff]  ;;  %v10699_v56 = vld [vmem:[#allocation18 + $0x1e8] sm:$0xff]  ;;  %13126 = vst [vmem:[#allocation51_spill] sm:$0xff] %v10740_v40  ;;  %13127 = vst [vmem:[#allocation52_spill] sm:$0xff] %v10743_v43 }
 0xb7c   :  { %4144 = vmatprep.subr.mxu1 %v10699_v56  ;;  %7978 = vmatpush3.msra.mxu0 %v10697_v24  ;;  %v10746_v26 = vld [vmem:[#allocation18 + $0x120] sm:$0xff]  ;;  %v10749_v50 = vld [vmem:[#allocation18 + $0x108] sm:$0xff] }
 0xb7d   :  { %13128 = vst [vmem:[#allocation53_spill] sm:$0xff] %v10746_v26  ;;  %13129 = vst [vmem:[#allocation54_spill] sm:$0xff] %v10749_v50 }
 0xb7f   :  { %3856 = vbcast.lane.b32.xlu0 %v3854_v51, 256  ;;  %3842 = vbcast.lane.b32.xlu1 %v3840_v44, 256  ;;  %v10701_v51 = vld [vmem:[#allocation18 + $0x1e0] sm:$0xff]  ;;  %v10703_v44 = vld [vmem:[#allocation18 + $0x1f8] sm:$0xff] }
 0xb80   :  { %4145 = vmatpush1.msra.mxu1 %v10701_v51  ;;  %4215 = vmatprep.subr.mxu0 %v10703_v44 }
 0xb81   :  { %4146 = vmatprep.subr.mxu1 %v10705_v7 }
 0xb82   :  { %4147 = vmatpush1.msra.mxu1 %v10709_v9 }
 0xb83   :  { %3870 = vbcast.lane.b32.xlu0 %v3868_v49, 256  ;;  %3849 = vbcast.lane.b32.xlu1 %v3847_v21, 256  ;;  %v10717_v49 = vld [vmem:[#allocation18 + $0x1a8] sm:$0xff]  ;;  %v10721_v21 = vld [vmem:[#allocation18 + $0x1a0] sm:$0xff] }
 0xb84   :  { %4148 = vmatprep.subr.mxu1 %v10717_v49 }
 0xb85   :  { %4149 = vmatpush1.msra.mxu1 %v10721_v21 }
 0xb86   :  { %4150 = vmatprep.subr.mxu1 %v10724_v61 }
 0xb87   :  { %3863 = vbcast.lane.b32.xlu1 %v3861_v31, 256  ;;  %4151 = vmatpush1.msra.mxu1 %v10727_v25  ;;  %v10737_v31 = vld [vmem:[#allocation18 + $0x148] sm:$0xff] }
 0xb88   :  { %13125 = vst [vmem:[#allocation50_spill] sm:$0xff] %v10737_v31  ;;  %4152 = vmatprep.subr.mxu1 %v10731_v23 }
 0xb89   :  { %4153 = vmatpush1.msra.mxu1 %v10734_v20 }
 0xb8a   :  { %4154 = vmatprep.subr.mxu1 %v10737_v31 }
 0xb8b   :  { %3877 = vbcast.lane.b32.xlu1 %v3875_v6, 256  ;;  %4155 = vmatpush1.msra.mxu1 %v10740_v40  ;;  %v10752_v6 = vld [vmem:[#allocation18 + $0x100] sm:$0xff] }
 0xb8c   :  { %4156 = vmatprep.subr.mxu1 %v10743_v43  ;;  %13130 = vst [vmem:[#allocation60_spill] sm:$0xff] %v10752_v6 }
 0xb8d   :  { %4157 = vmatpush1.msra.mxu1 %v10746_v26 }
 0xb8e   :  { %4158 = vmatprep.subr.mxu1 %v10749_v50 }
 0xb8f   :  { %4159 = vmatpush1.msra.mxu1 %v10752_v6 }
 0xbed   :  { %v3836_v42 = vpop.permute.xlu0 %3835  ;;  %v3829_v46 = vpop.permute.xlu1 %3828 }
 0xbee   :  { %v3888_v38 = vmul.f32 %v3836_v42, %v13093_v14  ;;  %v3887_v30 = vmul.f32 %v3829_v46, %v13092_v45 }
 0xbf0   :  { %v3895_v2 = vadd.f32 %v3888_v38, %v3887_v30  ;;  %v10765_v38 = vld [vmem:[#allocation18 + $0x1f0] sm:$0xff] }
 0xbf1   :  { %v3843_v13 = vpop.permute.xlu1 %3842  ;;  %v3857_v34 = vpop.permute.xlu0 %3856  ;;  %13131 = vst [vmem:[#allocation62_spill] sm:$0xff] %v10765_v38 }
 0xbf2   :  { %v3889_v27 = vmul.f32 %v3843_v13, %v13094_v53  ;;  %v3891_v26 = vmul.f32 %v3857_v34, %v9944_v63  ;;  %v10769_v34 = vld [vmem:[#allocation18 + $0x1d0] sm:$0xff]  ;;  %v10905_v63 = vld [vmem:[#allocation20 + $0x1f8] sm:$0xff] }
 0xbf3   :  { %13133 = vst [vmem:[#allocation61_spill] sm:$0xff] %v10769_v34  ;;  %13164 = vst [vmem:[#allocation106_spill] sm:$0xff] %v10905_v63  ;;  %v10916_v53 = vld [vmem:[#allocation20 + $0x1f0] sm:$0xff] }
 0xbf4   :  { %v3896_v40 = vadd.f32 %v3895_v2, %v3889_v27  ;;  %v10767_v2 = vld [vmem:[#allocation18 + $0x1d8] sm:$0xff]  ;;  %v10794_v27 = vld [vmem:[#allocation18 + $0x150] sm:$0xff]  ;;  %13166 = vst [vmem:[#allocation108_spill] sm:$0xff] %v10916_v53 }
 0xbf5   :  { %v3850_v43 = vpop.permute.xlu1 %3849  ;;  %v3871_v20 = vpop.permute.xlu0 %3870  ;;  %13132 = vst [vmem:[#allocation63_spill] sm:$0xff] %v10767_v2  ;;  %13141 = vst [vmem:[#allocation81_spill] sm:$0xff] %v10794_v27 }
 0xbf6   :  { %v3890_v31 = vmul.f32 %v3850_v43, %v13095_v62  ;;  %v3893_v42 = vmul.f32 %v3871_v20, %v10068_v12  ;;  %v10776_v20 = vld [vmem:[#allocation18 + $0x1b0] sm:$0xff]  ;;  %v10803_v43 = vld [vmem:[#allocation18 + $0x118] sm:$0xff]  ;;  %v10914_v62 = vld [vmem:[#allocation20 + $0x1e0] sm:$0xff] }
 0xbf7   :  { %13135 = vst [vmem:[#allocation78_spill] sm:$0xff] %v10776_v20  ;;  %13144 = vst [vmem:[#allocation87_spill] sm:$0xff] %v10803_v43  ;;  %v10893_v12 = vld [vmem:[#allocation18 + $0x18] sm:$0xff] }
 0xbf8   :  { %v3897_v50 = vadd.f32 %v3896_v40, %v3890_v31  ;;  %v10797_v40 = vld [vmem:[#allocation18 + $0x138] sm:$0xff]  ;;  %v10800_v31 = vld [vmem:[#allocation18 + $0x130] sm:$0xff]  ;;  %13161 = vst [vmem:[#allocation103_spill] sm:$0xff] %v10893_v12  ;;  %13165 = vst [vmem:[#allocation107_spill] sm:$0xff] %v10914_v62 }
 0xbf9   :  { %v3864_v6 = vpop.permute.xlu1 %3863  ;;  %13142 = vst [vmem:[#allocation84_spill] sm:$0xff] %v10797_v40  ;;  %13143 = vst [vmem:[#allocation86_spill] sm:$0xff] %v10800_v31 }
 0xbfa   :  { %v3898_v10 = vadd.f32 %v3897_v50, %v3891_v26  ;;  %v3892_v23 = vmul.f32 %v3864_v6, %v10036_v55  ;;  %v10772_v26 = vld [vmem:[#allocation18 + $0x1b8] sm:$0xff]  ;;  %v10788_v50 = vld [vmem:[#allocation18 + $0x170] sm:$0xff] }
 0xbfb   :  { %13134 = vst [vmem:[#allocation76_spill] sm:$0xff] %v10772_v26  ;;  %13139 = vst [vmem:[#allocation82_spill] sm:$0xff] %v10788_v50  ;;  %v10806_v6 = vld [vmem:[#allocation18 + $0x110] sm:$0xff] }
 0xbfc   :  { %v3899_v46 = vadd.f32 %v3898_v10, %v3892_v23  ;;  %v10785_v23 = vld [vmem:[#allocation18 + $0x178] sm:$0xff]  ;;  %13145 = vst [vmem:[#allocation85_spill] sm:$0xff] %v10806_v6  ;;  %v10899_v55 = vld [vmem:[#allocation18 + $0x10] sm:$0xff] }
 0xbfd   :  { %v3878_v45 = vpop.permute.xlu1 %3877  ;;  %13138 = vst [vmem:[#allocation80_spill] sm:$0xff] %v10785_v23  ;;  %v10791_v10 = vld [vmem:[#allocation18 + $0x158] sm:$0xff]  ;;  %13163 = vst [vmem:[#allocation105_spill] sm:$0xff] %v10899_v55 }
 0xbfe   :  { %v3900_v14 = vadd.f32 %v3899_v46, %v3893_v42  ;;  %v3894_v13 = vmul.f32 %v3878_v45, %v10165_v32  ;;  %v10779_v45 = vld [vmem:[#allocation18 + $0x198] sm:$0xff]  ;;  %13140 = vst [vmem:[#allocation83_spill] sm:$0xff] %v10791_v10  ;;  %v10811_v42 = vld [vmem:[#allocation18 + $0xe8] sm:$0xff]  ;;  %v10887_v32 = vld [vmem:[#allocation18 + $0x30] sm:$0xff] }
 0xbff   :  { %13136 = vst [vmem:[#allocation79_spill] sm:$0xff] %v10779_v45  ;;  %v10813_v46 = vld [vmem:[#allocation18 + $0xf8] sm:$0xff]  ;;  %4160 = vmatprep.subr.mxu1 %v10811_v42  ;;  %13159 = vst [vmem:[#allocation101_spill] sm:$0xff] %v10887_v32 }
 0xc00   :  { %v3901_v30 = vadd.f32 %v3900_v14, %v3894_v13  ;;  %v10782_v14 = vld [vmem:[#allocation18 + $0x190] sm:$0xff]  ;;  %13146 = vst [vmem:[#allocation55_spill] sm:$0xff] %v10813_v46  ;;  %v10817_v13 = vld [vmem:[#allocation18 + $0xe0] sm:$0xff] }
 0xc01   :  { %13137 = vst [vmem:[#allocation77_spill] sm:$0xff] %v10782_v14  ;;  %4161 = vmatpush1.msra.mxu1 %v10817_v13 }
 0xc02   :  { %7980 = vmatmul.mubr.f32.vlgmr.msra.gmra.mxu0 %v3901_v30  ;;  %v10819_v30 = vld [vmem:[#allocation18 + $0xf0] sm:$0xff] }
 0xc03   :  { %4216 = vmatpush1.msra.mxu0 %v10765_v38  ;;  %4279 = vmatprep.mubr.f32.mxu0 %v13075_v35  ;;  %13147 = vst [vmem:[#allocation89_spill] sm:$0xff] %v10819_v30  ;;  %v10881_v38 = vld [vmem:[#allocation18 + $0x38] sm:$0xff] }
 0xc04   :  { %4217 = vmatprep.subr.mxu0 %v10767_v2  ;;  %v10875_v2 = vld [vmem:[#allocation18 + $0x50] sm:$0xff]  ;;  %13158 = vst [vmem:[#allocation100_spill] sm:$0xff] %v10881_v38 }
 0xc05   :  { %4218 = vmatpush1.msra.mxu0 %v10769_v34  ;;  %v10873_v34 = vld [vmem:[#allocation18 + $0x40] sm:$0xff]  ;;  %13157 = vst [vmem:[#allocation99_spill] sm:$0xff] %v10875_v2 }
 0xc06   :  { %4219 = vmatprep.subr.mxu0 %v10772_v26  ;;  %v10867_v26 = vld [vmem:[#allocation18 + $0x48] sm:$0xff] }
 0xc07   :  { %4220 = vmatpush1.msra.mxu0 %v10776_v20  ;;  %v10863_v20 = vld [vmem:[#allocation18 + $0x70] sm:$0xff] }
 0xc08   :  { %4221 = vmatprep.subr.mxu0 %v10779_v45  ;;  %v10857_v45 = vld [vmem:[#allocation18 + $0x78] sm:$0xff]  ;;  %13155 = vst [vmem:[#allocation97_spill] sm:$0xff] %v10863_v20 }
 0xc09   :  { %4222 = vmatpush1.msra.mxu0 %v10782_v14  ;;  %v10855_v14 = vld [vmem:[#allocation18 + $0x68] sm:$0xff]  ;;  %13154 = vst [vmem:[#allocation96_spill] sm:$0xff] %v10857_v45 }
 0xc0a   :  { %4223 = vmatprep.subr.mxu0 %v10785_v23  ;;  %v10849_v23 = vld [vmem:[#allocation18 + $0x80] sm:$0xff] }
 0xc0b   :  { %4224 = vmatpush1.msra.mxu0 %v10788_v50  ;;  %v10847_v50 = vld [vmem:[#allocation18 + $0x98] sm:$0xff] }
 0xc0c   :  { %4225 = vmatprep.subr.mxu0 %v10791_v10  ;;  %v10841_v10 = vld [vmem:[#allocation18 + $0xb0] sm:$0xff]  ;;  %13152 = vst [vmem:[#allocation94_spill] sm:$0xff] %v10847_v50 }
 0xc0d   :  { %4226 = vmatpush1.msra.mxu0 %v10794_v27  ;;  %v10837_v27 = vld [vmem:[#allocation18 + $0xb8] sm:$0xff]  ;;  %13151 = vst [vmem:[#allocation93_spill] sm:$0xff] %v10841_v10 }
 0xc0e   :  { %4227 = vmatprep.subr.mxu0 %v10797_v40  ;;  %v10831_v40 = vld [vmem:[#allocation18 + $0xd0] sm:$0xff]  ;;  %13150 = vst [vmem:[#allocation92_spill] sm:$0xff] %v10837_v27 }
 0xc0f   :  { %4228 = vmatpush1.msra.mxu0 %v10800_v31  ;;  %v10823_v31 = vld [vmem:[#allocation18 + $0xc8] sm:$0xff]  ;;  %13149 = vst [vmem:[#allocation91_spill] sm:$0xff] %v10831_v40 }
 0xc10   :  { %4229 = vmatprep.subr.mxu0 %v10803_v43  ;;  %v10825_v43 = vld [vmem:[#allocation18 + $0xd8] sm:$0xff]  ;;  %4162 = vmatprep.subr.mxu1 %v10823_v31 }
 0xc11   :  { %4230 = vmatpush1.msra.mxu0 %v10806_v6  ;;  %13148 = vst [vmem:[#allocation90_spill] sm:$0xff] %v10825_v43  ;;  %v10829_v6 = vld [vmem:[#allocation18 + $0xc0] sm:$0xff] }
 0xc12   :  { %4231 = vmatprep.subr.mxu0 %v10813_v46  ;;  %v10833_v46 = vld [vmem:[#allocation18 + $0xa8] sm:$0xff]  ;;  %4163 = vmatpush1.msra.mxu1 %v10829_v6 }
 0xc13   :  { %4232 = vmatpush1.msra.mxu0 %v10819_v30  ;;  %v10839_v30 = vld [vmem:[#allocation18 + $0xa0] sm:$0xff]  ;;  %4164 = vmatprep.subr.mxu1 %v10833_v46 }
 0xc14   :  { %4233 = vmatprep.subr.mxu0 %v10825_v43  ;;  %v10845_v43 = vld [vmem:[#allocation18 + $0x88] sm:$0xff]  ;;  %4165 = vmatpush1.msra.mxu1 %v10839_v30 }
 0xc15   :  { %4234 = vmatpush1.msra.mxu0 %v10831_v40  ;;  %v10853_v40 = vld [vmem:[#allocation18 + $0x90] sm:$0xff]  ;;  %4166 = vmatprep.subr.mxu1 %v10845_v43 }
 0xc16   :  { %4235 = vmatprep.subr.mxu0 %v10837_v27  ;;  %13153 = vst [vmem:[#allocation95_spill] sm:$0xff] %v10853_v40  ;;  %v10861_v27 = vld [vmem:[#allocation18 + $0x60] sm:$0xff]  ;;  %4167 = vmatpush1.msra.mxu1 %v10849_v23 }
 0xc17   :  { %4236 = vmatpush1.msra.mxu0 %v10841_v10  ;;  %v10869_v10 = vld [vmem:[#allocation18 + $0x58] sm:$0xff]  ;;  %4168 = vmatprep.subr.mxu1 %v10855_v14 }
 0xc18   :  { %4237 = vmatprep.subr.mxu0 %v10847_v50  ;;  %13156 = vst [vmem:[#allocation98_spill] sm:$0xff] %v10869_v10  ;;  %4169 = vmatpush1.msra.mxu1 %v10861_v27  ;;  %v10879_v50 = vld [vmem:[#allocation18 + $0x28] sm:$0xff] }
 0xc19   :  { %4238 = vmatpush1.msra.mxu0 %v10853_v40  ;;  %4170 = vmatprep.subr.mxu1 %v10867_v26  ;;  %v10885_v40 = vld [vmem:[#allocation18 + $0x20] sm:$0xff] }
 0xc1a   :  { %4239 = vmatprep.subr.mxu0 %v10857_v45  ;;  %4171 = vmatpush1.msra.mxu1 %v10873_v34  ;;  %v10891_v45 = vld [vmem:[#allocation18 + $0x8] sm:$0xff] }
 0xc1b   :  { %4240 = vmatpush1.msra.mxu0 %v10863_v20  ;;  %13160 = vst [vmem:[#allocation102_spill] sm:$0xff] %v10891_v45  ;;  %4172 = vmatprep.subr.mxu1 %v10879_v50  ;;  %v10897_v20 = vld [vmem:[#allocation18] sm:$0xff] }
 0xc1c   :  { %4241 = vmatprep.subr.mxu0 %v10869_v10  ;;  %13162 = vst [vmem:[#allocation104_spill] sm:$0xff] %v10897_v20  ;;  %4173 = vmatpush1.msra.mxu1 %v10885_v40  ;;  %v10903_v10 = vld [vmem:[#allocation20 + $0x1e8] sm:$0xff] }
 0xc1d   :  { %4242 = vmatpush1.msra.mxu0 %v10875_v2  ;;  %4174 = vmatprep.subr.mxu1 %v10891_v45 }
 0xc1e   :  { %4243 = vmatprep.subr.mxu0 %v10881_v38  ;;  %4175 = vmatpush1.msra.mxu1 %v10897_v20  ;;  %v10922_v20 = vld [vmem:[#allocation20 + $0x1d8] sm:$0xff] }
 0xc1f   :  { %4244 = vmatpush1.msra.mxu0 %v10887_v32  ;;  %4354 = vmatprep.subr.mxu1 %v10903_v10  ;;  %13169 = vst [vmem:[#allocation111_spill] sm:$0xff] %v10922_v20 }
 0xc20   :  { %4245 = vmatprep.subr.mxu0 %v10893_v12  ;;  %v10920_v12 = vld [vmem:[#allocation20 + $0x1c8] sm:$0xff] }
 0xc21   :  { %4246 = vmatpush1.msra.mxu0 %v10899_v55  ;;  %13168 = vst [vmem:[#allocation110_spill] sm:$0xff] %v10920_v12  ;;  %v10928_v55 = vld [vmem:[#allocation20 + $0x1d0] sm:$0xff] }
 0xc22   :  { %4425 = vmatprep.subr.mxu0 %v10905_v63  ;;  %v10926_v63 = vld [vmem:[#allocation20 + $0x1c0] sm:$0xff]  ;;  %13171 = vst [vmem:[#allocation113_spill] sm:$0xff] %v10928_v55 }
 0xc23   :  { %13170 = vst [vmem:[#allocation112_spill] sm:$0xff] %v10926_v63 }
 0xcc2   :  { %v4070_v38 = vpop.f32.mrf.mxu0 }
 0xcc3   :  { %v4071_v2 = vadd.f32 %v4070_v38, %v10645_v4  ;;  %v10934_v4 = vld [vmem:[#allocation20 + $0x1b8] sm:$0xff]  ;;  %v10938_v38 = vld [vmem:[#allocation20 + $0x1a0] sm:$0xff] }
 0xcc4   :  { %v7981_v32 = vpop.f32.mrf.mxu0  ;;  %13173 = vst [vmem:[#allocation115_spill] sm:$0xff] %v10934_v4  ;;  %13174 = vst [vmem:[#allocation116_spill] sm:$0xff] %v10938_v38 }
 0xcc5   :  { %8433 = vtanh.f32 %v4071_v2  ;;  %v10932_v32 = vld [vmem:[#allocation20 + $0x1a8] sm:$0xff]  ;;  %v10940_v2 = vld [vmem:[#allocation20 + $0x1b0] sm:$0xff] }
 0xcc6   :  { %13172 = vst [vmem:[#allocation114_spill] sm:$0xff] %v10932_v32  ;;  %13175 = vst [vmem:[#allocation117_spill] sm:$0xff] %v10940_v2 }
 0xcd2   :  { %v10918_v45 = vpop.eup %8433 }
 0xcd3   :  { %13167 = vst [vmem:[#allocation109_spill] sm:$0xff] %v10918_v45  ;;  %4209 = vmatmul.mubr.f32.vlgmr.msra.gmra.mxu1 %v10918_v45  ;;  %4280 = vmatmul.mubr.f32.vlgmr.msra.gmra.mxu0 %v10918_v45  ;;  %v10944_v45 = vld [vmem:[#allocation20 + $0x188] sm:$0xff] }
 0xcd4   :  { %4355 = vmatpush1.msra.mxu1 %v10914_v62  ;;  %4426 = vmatpush1.msra.mxu0 %v10916_v53  ;;  %13176 = vst [vmem:[#allocation118_spill] sm:$0xff] %v10944_v45  ;;  %v10946_v62 = vld [vmem:[#allocation20 + $0x198] sm:$0xff]  ;;  %v10950_v53 = vld [vmem:[#allocation20 + $0x180] sm:$0xff] }
 0xcd5   :  { %4356 = vmatprep.subr.mxu1 %v10920_v12  ;;  %4427 = vmatprep.subr.mxu0 %v10922_v20  ;;  %13177 = vst [vmem:[#allocation119_spill] sm:$0xff] %v10946_v62  ;;  %13178 = vst [vmem:[#allocation120_spill] sm:$0xff] %v10950_v53  ;;  %v10952_v12 = vld [vmem:[#allocation20 + $0x190] sm:$0xff]  ;;  %v10956_v20 = vld [vmem:[#allocation20 + $0x168] sm:$0xff] }
 0xcd6   :  { %4357 = vmatpush1.msra.mxu1 %v10926_v63  ;;  %4428 = vmatpush1.msra.mxu0 %v10928_v55  ;;  %13179 = vst [vmem:[#allocation121_spill] sm:$0xff] %v10952_v12  ;;  %13180 = vst [vmem:[#allocation122_spill] sm:$0xff] %v10956_v20  ;;  %v10958_v63 = vld [vmem:[#allocation20 + $0x178] sm:$0xff]  ;;  %v10962_v55 = vld [vmem:[#allocation20 + $0x160] sm:$0xff] }
 0xcd7   :  { %4358 = vmatprep.subr.mxu1 %v10932_v32  ;;  %4429 = vmatprep.subr.mxu0 %v10934_v4  ;;  %13181 = vst [vmem:[#allocation123_spill] sm:$0xff] %v10958_v63  ;;  %13182 = vst [vmem:[#allocation124_spill] sm:$0xff] %v10962_v55  ;;  %v10964_v32 = vld [vmem:[#allocation20 + $0x170] sm:$0xff]  ;;  %v10968_v4 = vld [vmem:[#allocation20 + $0x148] sm:$0xff] }
 0xcd8   :  { %4359 = vmatpush1.msra.mxu1 %v10938_v38  ;;  %4430 = vmatpush1.msra.mxu0 %v10940_v2  ;;  %13183 = vst [vmem:[#allocation125_spill] sm:$0xff] %v10964_v32  ;;  %13184 = vst [vmem:[#allocation126_spill] sm:$0xff] %v10968_v4  ;;  %v10970_v38 = vld [vmem:[#allocation20 + $0x158] sm:$0xff]  ;;  %v10974_v2 = vld [vmem:[#allocation20 + $0x140] sm:$0xff] }
 0xcd9   :  { %4360 = vmatprep.subr.mxu1 %v10944_v45  ;;  %4431 = vmatprep.subr.mxu0 %v10946_v62  ;;  %13185 = vst [vmem:[#allocation127_spill] sm:$0xff] %v10970_v38  ;;  %13186 = vst [vmem:[#allocation128_spill] sm:$0xff] %v10974_v2  ;;  %v10976_v45 = vld [vmem:[#allocation20 + $0x150] sm:$0xff]  ;;  %v10980_v62 = vld [vmem:[#allocation20 + $0x128] sm:$0xff] }
 0xcda   :  { %4361 = vmatpush1.msra.mxu1 %v10950_v53  ;;  %4432 = vmatpush1.msra.mxu0 %v10952_v12  ;;  %13187 = vst [vmem:[#allocation129_spill] sm:$0xff] %v10976_v45  ;;  %13188 = vst [vmem:[#allocation130_spill] sm:$0xff] %v10980_v62  ;;  %v10982_v53 = vld [vmem:[#allocation20 + $0x138] sm:$0xff]  ;;  %v10986_v12 = vld [vmem:[#allocation20 + $0x120] sm:$0xff] }
 0xcdb   :  { %4362 = vmatprep.subr.mxu1 %v10956_v20  ;;  %4433 = vmatprep.subr.mxu0 %v10958_v63  ;;  %13189 = vst [vmem:[#allocation131_spill] sm:$0xff] %v10982_v53  ;;  %13190 = vst [vmem:[#allocation132_spill] sm:$0xff] %v10986_v12  ;;  %v10988_v20 = vld [vmem:[#allocation20 + $0x130] sm:$0xff]  ;;  %v10992_v63 = vld [vmem:[#allocation20 + $0x108] sm:$0xff] }
 0xcdc   :  { %4363 = vmatpush1.msra.mxu1 %v10962_v55  ;;  %4434 = vmatpush1.msra.mxu0 %v10964_v32  ;;  %13191 = vst [vmem:[#allocation133_spill] sm:$0xff] %v10988_v20  ;;  %13192 = vst [vmem:[#allocation134_spill] sm:$0xff] %v10992_v63  ;;  %v10994_v55 = vld [vmem:[#allocation20 + $0x118] sm:$0xff]  ;;  %v10998_v32 = vld [vmem:[#allocation20 + $0x100] sm:$0xff] }
 0xcdd   :  { %4364 = vmatprep.subr.mxu1 %v10968_v4  ;;  %4435 = vmatprep.subr.mxu0 %v10970_v38  ;;  %13193 = vst [vmem:[#allocation135_spill] sm:$0xff] %v10994_v55  ;;  %13194 = vst [vmem:[#allocation136_spill] sm:$0xff] %v10998_v32  ;;  %v11000_v4 = vld [vmem:[#allocation20 + $0x110] sm:$0xff]  ;;  %v11004_v38 = vld [vmem:[#allocation20 + $0xe8] sm:$0xff] }
 0xcde   :  { %4365 = vmatpush1.msra.mxu1 %v10974_v2  ;;  %4436 = vmatpush1.msra.mxu0 %v10976_v45  ;;  %13195 = vst [vmem:[#allocation137_spill] sm:$0xff] %v11000_v4  ;;  %13196 = vst [vmem:[#allocation138_spill] sm:$0xff] %v11004_v38  ;;  %v11006_v2 = vld [vmem:[#allocation20 + $0xf8] sm:$0xff]  ;;  %v11010_v45 = vld [vmem:[#allocation20 + $0xe0] sm:$0xff] }
 0xcdf   :  { %4366 = vmatprep.subr.mxu1 %v10980_v62  ;;  %4437 = vmatprep.subr.mxu0 %v10982_v53  ;;  %13197 = vst [vmem:[#allocation139_spill] sm:$0xff] %v11006_v2  ;;  %13198 = vst [vmem:[#allocation140_spill] sm:$0xff] %v11010_v45  ;;  %v11012_v62 = vld [vmem:[#allocation20 + $0xf0] sm:$0xff]  ;;  %v11016_v53 = vld [vmem:[#allocation20 + $0xc8] sm:$0xff] }
 0xce0   :  { %4367 = vmatpush1.msra.mxu1 %v10986_v12  ;;  %4438 = vmatpush1.msra.mxu0 %v10988_v20  ;;  %13199 = vst [vmem:[#allocation141_spill] sm:$0xff] %v11012_v62  ;;  %13200 = vst [vmem:[#allocation142_spill] sm:$0xff] %v11016_v53  ;;  %v11018_v12 = vld [vmem:[#allocation20 + $0xd8] sm:$0xff]  ;;  %v11022_v20 = vld [vmem:[#allocation20 + $0xc0] sm:$0xff] }
 0xce1   :  { %4368 = vmatprep.subr.mxu1 %v10992_v63  ;;  %4439 = vmatprep.subr.mxu0 %v10994_v55  ;;  %13201 = vst [vmem:[#allocation143_spill] sm:$0xff] %v11018_v12  ;;  %13202 = vst [vmem:[#allocation144_spill] sm:$0xff] %v11022_v20  ;;  %v11024_v63 = vld [vmem:[#allocation20 + $0xd0] sm:$0xff]  ;;  %v11028_v55 = vld [vmem:[#allocation20 + $0xa8] sm:$0xff] }
 0xce2   :  { %4369 = vmatpush1.msra.mxu1 %v10998_v32  ;;  %4440 = vmatpush1.msra.mxu0 %v11000_v4  ;;  %13203 = vst [vmem:[#allocation145_spill] sm:$0xff] %v11024_v63  ;;  %13204 = vst [vmem:[#allocation146_spill] sm:$0xff] %v11028_v55  ;;  %v11030_v32 = vld [vmem:[#allocation20 + $0xb8] sm:$0xff]  ;;  %v11034_v4 = vld [vmem:[#allocation20 + $0xa0] sm:$0xff] }
 0xce3   :  { %4370 = vmatprep.subr.mxu1 %v11004_v38  ;;  %4441 = vmatprep.subr.mxu0 %v11006_v2  ;;  %13205 = vst [vmem:[#allocation147_spill] sm:$0xff] %v11030_v32  ;;  %13206 = vst [vmem:[#allocation148_spill] sm:$0xff] %v11034_v4  ;;  %v11036_v38 = vld [vmem:[#allocation20 + $0xb0] sm:$0xff]  ;;  %v11040_v2 = vld [vmem:[#allocation20 + $0x88] sm:$0xff] }
 0xce4   :  { %4371 = vmatpush1.msra.mxu1 %v11010_v45  ;;  %4442 = vmatpush1.msra.mxu0 %v11012_v62  ;;  %13207 = vst [vmem:[#allocation149_spill] sm:$0xff] %v11036_v38  ;;  %13208 = vst [vmem:[#allocation150_spill] sm:$0xff] %v11040_v2  ;;  %v11042_v45 = vld [vmem:[#allocation20 + $0x98] sm:$0xff]  ;;  %v11046_v62 = vld [vmem:[#allocation20 + $0x80] sm:$0xff] }
 0xce5   :  { %4372 = vmatprep.subr.mxu1 %v11016_v53  ;;  %4443 = vmatprep.subr.mxu0 %v11018_v12  ;;  %13209 = vst [vmem:[#allocation151_spill] sm:$0xff] %v11042_v45  ;;  %13210 = vst [vmem:[#allocation152_spill] sm:$0xff] %v11046_v62  ;;  %v11048_v53 = vld [vmem:[#allocation20 + $0x90] sm:$0xff]  ;;  %v11052_v12 = vld [vmem:[#allocation20 + $0x68] sm:$0xff] }
 0xce6   :  { %4373 = vmatpush1.msra.mxu1 %v11022_v20  ;;  %4444 = vmatpush1.msra.mxu0 %v11024_v63  ;;  %13211 = vst [vmem:[#allocation153_spill] sm:$0xff] %v11048_v53  ;;  %13212 = vst [vmem:[#allocation154_spill] sm:$0xff] %v11052_v12  ;;  %v11054_v20 = vld [vmem:[#allocation20 + $0x78] sm:$0xff]  ;;  %v11058_v63 = vld [vmem:[#allocation20 + $0x60] sm:$0xff] }
 0xce7   :  { %4374 = vmatprep.subr.mxu1 %v11028_v55  ;;  %4445 = vmatprep.subr.mxu0 %v11030_v32  ;;  %13213 = vst [vmem:[#allocation155_spill] sm:$0xff] %v11054_v20  ;;  %13214 = vst [vmem:[#allocation156_spill] sm:$0xff] %v11058_v63  ;;  %v11060_v55 = vld [vmem:[#allocation20 + $0x70] sm:$0xff]  ;;  %v11064_v32 = vld [vmem:[#allocation20 + $0x48] sm:$0xff] }
 0xce8   :  { %4375 = vmatpush1.msra.mxu1 %v11034_v4  ;;  %4446 = vmatpush1.msra.mxu0 %v11036_v38  ;;  %13215 = vst [vmem:[#allocation157_spill] sm:$0xff] %v11060_v55  ;;  %v11066_v4 = vld [vmem:[#allocation20 + $0x58] sm:$0xff]  ;;  %v11070_v38 = vld [vmem:[#allocation20 + $0x40] sm:$0xff] }
 0xce9   :  { %4376 = vmatprep.subr.mxu1 %v11040_v2  ;;  %4447 = vmatprep.subr.mxu0 %v11042_v45  ;;  %13216 = vst [vmem:[#allocation158_spill] sm:$0xff] %v11066_v4  ;;  %v11072_v2 = vld [vmem:[#allocation20 + $0x50] sm:$0xff]  ;;  %v11076_v45 = vld [vmem:[#allocation20 + $0x28] sm:$0xff] }
 0xcea   :  { %4377 = vmatpush1.msra.mxu1 %v11046_v62  ;;  %4448 = vmatpush1.msra.mxu0 %v11048_v53  ;;  %v11078_v62 = vld [vmem:[#allocation20 + $0x38] sm:$0xff]  ;;  %v11082_v53 = vld [vmem:[#allocation20 + $0x20] sm:$0xff] }
 0xceb   :  { %4378 = vmatprep.subr.mxu1 %v11052_v12  ;;  %4449 = vmatprep.subr.mxu0 %v11054_v20  ;;  %v11084_v12 = vld [vmem:[#allocation20 + $0x30] sm:$0xff]  ;;  %v11088_v20 = vld [vmem:[#allocation20 + $0x8] sm:$0xff] }
 0xcec   :  { %4379 = vmatpush1.msra.mxu1 %v11058_v63  ;;  %4450 = vmatpush1.msra.mxu0 %v11060_v55  ;;  %v11090_v63 = vld [vmem:[#allocation20 + $0x18] sm:$0xff]  ;;  %v11094_v55 = vld [vmem:[#allocation20] sm:$0xff] }
 0xced   :  { %4380 = vmatprep.subr.mxu1 %v11064_v32  ;;  %4451 = vmatprep.subr.mxu0 %v11066_v4  ;;  %v11098_v4 = vld [vmem:[#allocation20 + $0x10] sm:$0xff] }
 0xcee   :  { %4381 = vmatpush1.msra.mxu1 %v11070_v38  ;;  %4452 = vmatpush1.msra.mxu0 %v11072_v2 }
 0xcef   :  { %4382 = vmatprep.subr.mxu1 %v11076_v45  ;;  %4453 = vmatprep.subr.mxu0 %v11078_v62 }
 0xcf0   :  { %4383 = vmatpush1.msra.mxu1 %v11082_v53  ;;  %4454 = vmatpush1.msra.mxu0 %v11084_v12 }
 0xcf1   :  { %4384 = vmatprep.subr.mxu1 %v11088_v20  ;;  %4455 = vmatprep.subr.mxu0 %v11090_v63 }
 0xcf2   :  { %4385 = vmatpush1.msra.mxu1 %v11094_v55  ;;  %4418 = vmatprep.mubr.f32.mxu1 %v13075_v35 }
 0xcf3   :  { %4456 = vmatpush1.msra.mxu0 %v11098_v4  ;;  %4489 = vmatprep.mubr.f32.mxu0 %v13075_v35 }
 0xcf4   :  { %4419 = vmatmul.mubr.f32.vlgmr.msra.gmra.mxu1 %v10554_v58  ;;  %4490 = vmatmul.mubr.f32.vlgmr.msra.gmra.mxu0 %v10554_v58  ;;  %v11146_v58 = vld [vmem:[#allocation23 + $0x78] sm:$0xff] }
 0xcf5   :  { %7982 = vmatprep.subr.mxu1 %v13075_v35  ;;  %8014 = vmatprep.mubr.msk.f32.mxu1 %vm8827_vm0, %v13075_v35  ;;  %13217 = vst [vmem:[#allocation159_spill] sm:$0xff] %v11146_v58 }
 0xcf6   :  { %8017 = vmatprep.subr.mxu0 %v13075_v35  ;;  %8049 = vmatprep.mubr.msk.f32.mxu0 %vm8827_vm0, %v13075_v35 }
 0xcf7   :  { %8018 = vmatpush3.msra.mxu0 %v10592_v11  ;;  %7983 = vmatpush3.msra.mxu1 %v11146_v58  ;;  %v11150_v11 = vld [vmem:[#allocation23 + $0x70] sm:$0xff] }
 0xcf8   :  { %8019 = vmatprep.subr.mxu0 %v13075_v35  ;;  %7984 = vmatprep.subr.mxu1 %v13075_v35  ;;  %13218 = vst [vmem:[#allocation160_spill] sm:$0xff] %v11150_v11 }
 0xcf9   :  { %8020 = vmatpush3.msra.mxu0 %v10594_v29  ;;  %7985 = vmatpush3.msra.mxu1 %v11150_v11  ;;  %v11154_v29 = vld [vmem:[#allocation23 + $0x68] sm:$0xff] }
 0xcfa   :  { %8021 = vmatprep.subr.mxu0 %v13075_v35  ;;  %7986 = vmatprep.subr.mxu1 %v13075_v35  ;;  %13219 = vst [vmem:[#allocation161_spill] sm:$0xff] %v11154_v29 }
 0xcfb   :  { %8022 = vmatpush3.msra.mxu0 %v10598_v19  ;;  %7987 = vmatpush3.msra.mxu1 %v11154_v29  ;;  %v11158_v19 = vld [vmem:[#allocation23 + $0x60] sm:$0xff] }
 0xcfc   :  { %8023 = vmatprep.subr.mxu0 %v13075_v35  ;;  %7988 = vmatprep.subr.mxu1 %v13075_v35  ;;  %13220 = vst [vmem:[#allocation162_spill] sm:$0xff] %v11158_v19 }
 0xcfd   :  { %8024 = vmatpush3.msra.mxu0 %v10602_v28  ;;  %7989 = vmatpush3.msra.mxu1 %v11158_v19  ;;  %v11162_v28 = vld [vmem:[#allocation23 + $0x58] sm:$0xff] }
 0xcfe   :  { %8025 = vmatprep.subr.mxu0 %v13075_v35  ;;  %7990 = vmatprep.subr.mxu1 %v13075_v35  ;;  %13221 = vst [vmem:[#allocation163_spill] sm:$0xff] %v11162_v28 }
 0xcff   :  { %8026 = vmatpush3.msra.mxu0 %v10606_v18  ;;  %7991 = vmatpush3.msra.mxu1 %v11162_v28  ;;  %v11166_v18 = vld [vmem:[#allocation23 + $0x50] sm:$0xff] }
 0xd00   :  { %8027 = vmatprep.subr.mxu0 %v13075_v35  ;;  %7992 = vmatprep.subr.mxu1 %v13075_v35  ;;  %13222 = vst [vmem:[#allocation164_spill] sm:$0xff] %v11166_v18 }
 0xd01   :  { %8028 = vmatpush3.msra.mxu0 %v10610_v22  ;;  %7993 = vmatpush3.msra.mxu1 %v11166_v18  ;;  %v11170_v22 = vld [vmem:[#allocation23 + $0x48] sm:$0xff] }
 0xd02   :  { %8029 = vmatprep.subr.mxu0 %v13075_v35  ;;  %7994 = vmatprep.subr.mxu1 %v13075_v35  ;;  %13223 = vst [vmem:[#allocation165_spill] sm:$0xff] %v11170_v22 }
 0xd03   :  { %8030 = vmatpush3.msra.mxu0 %v10647_v33  ;;  %7995 = vmatpush3.msra.mxu1 %v11170_v22  ;;  %v11174_v33 = vld [vmem:[#allocation23 + $0x40] sm:$0xff] }
 0xd04   :  { %8031 = vmatprep.subr.mxu0 %v13075_v35  ;;  %7996 = vmatprep.subr.mxu1 %v13075_v35  ;;  %13224 = vst [vmem:[#allocation166_spill] sm:$0xff] %v11174_v33 }
 0xd05   :  { %8032 = vmatpush3.msra.mxu0 %v10650_v1  ;;  %7997 = vmatpush3.msra.mxu1 %v11174_v33  ;;  %v11178_v1 = vld [vmem:[#allocation23 + $0x38] sm:$0xff] }
 0xd06   :  { %8033 = vmatprep.subr.mxu0 %v13075_v35  ;;  %7998 = vmatprep.subr.mxu1 %v13075_v35  ;;  %13225 = vst [vmem:[#allocation167_spill] sm:$0xff] %v11178_v1 }
 0xd07   :  { %8034 = vmatpush3.msra.mxu0 %v10655_v37  ;;  %7999 = vmatpush3.msra.mxu1 %v11178_v1  ;;  %v11182_v37 = vld [vmem:[#allocation23 + $0x30] sm:$0xff] }
 0xd08   :  { %8035 = vmatprep.subr.mxu0 %v13075_v35  ;;  %8000 = vmatprep.subr.mxu1 %v13075_v35  ;;  %13226 = vst [vmem:[#allocation168_spill] sm:$0xff] %v11182_v37 }
 0xd09   :  { %8036 = vmatpush3.msra.mxu0 %v10658_v15  ;;  %8001 = vmatpush3.msra.mxu1 %v11182_v37  ;;  %v11186_v15 = vld [vmem:[#allocation23 + $0x28] sm:$0xff] }
 0xd0a   :  { %8037 = vmatprep.subr.mxu0 %v13075_v35  ;;  %8002 = vmatprep.subr.mxu1 %v13075_v35  ;;  %13227 = vst [vmem:[#allocation169_spill] sm:$0xff] %v11186_v15 }
 0xd0b   :  { %8038 = vmatpush3.msra.mxu0 %v10663_v5  ;;  %8003 = vmatpush3.msra.mxu1 %v11186_v15  ;;  %v11190_v5 = vld [vmem:[#allocation23 + $0x20] sm:$0xff] }
 0xd0c   :  { %8039 = vmatprep.subr.mxu0 %v13075_v35  ;;  %8004 = vmatprep.subr.mxu1 %v13075_v35  ;;  %13228 = vst [vmem:[#allocation170_spill] sm:$0xff] %v11190_v5 }
 0xd0d   :  { %8040 = vmatpush3.msra.mxu0 %v10666_v17  ;;  %8005 = vmatpush3.msra.mxu1 %v11190_v5  ;;  %v11194_v17 = vld [vmem:[#allocation23 + $0x18] sm:$0xff] }
 0xd0e   :  { %8041 = vmatprep.subr.mxu0 %v13075_v35  ;;  %8006 = vmatprep.subr.mxu1 %v13075_v35  ;;  %13229 = vst [vmem:[#allocation171_spill] sm:$0xff] %v11194_v17 }
 0xd0f   :  { %8042 = vmatpush3.msra.mxu0 %v10675_v39  ;;  %8007 = vmatpush3.msra.mxu1 %v11194_v17  ;;  %v11198_v39 = vld [vmem:[#allocation23 + $0x10] sm:$0xff] }
 0xd10   :  { %8043 = vmatprep.subr.mxu0 %v13075_v35  ;;  %8008 = vmatprep.subr.mxu1 %v13075_v35  ;;  %13230 = vst [vmem:[#allocation172_spill] sm:$0xff] %v11198_v39 }
 0xd11   :  { %8044 = vmatpush3.msra.mxu0 %v10684_v52  ;;  %8009 = vmatpush3.msra.mxu1 %v11198_v39  ;;  %v11202_v52 = vld [vmem:[#allocation23 + $0x8] sm:$0xff] }
 0xd12   :  { %8045 = vmatprep.subr.mxu0 %v13075_v35  ;;  %8010 = vmatprep.subr.mxu1 %v13075_v35  ;;  %13231 = vst [vmem:[#allocation173_spill] sm:$0xff] %v11202_v52 }
 0xd13   :  { %8046 = vmatpush3.msra.mxu0 %v10687_v59  ;;  %8011 = vmatpush3.msra.mxu1 %v11202_v52  ;;  %v11205_v59 = vld [vmem:[#allocation23] sm:$0xff] }
 0xd14   :  { %8047 = vmatprep.subr.mxu0 %v13075_v35  ;;  %13232 = vst [vmem:[#allocation174_spill] sm:$0xff] %v11205_v59  ;;  %8012 = vmatprep.subr.mxu1 %v13075_v35 }
 0xd15   :  { %8048 = vmatpush3.msra.mxu0 %v10697_v24  ;;  %8013 = vmatpush3.msra.mxu1 %v11205_v59 }
 0xd16   :  { %5016 = vmatprep.subr.mxu0 %v10703_v44  ;;  %4945 = vmatprep.subr.mxu1 %v10699_v56 }
 0xd93   :  { %v4210_v24 = vpop.f32.mrf.mxu1  ;;  %v4281_v44 = vpop.f32.mrf.mxu0 }
 0xd94   :  { %v4286_v5 = vadd.f32 %v4210_v24, %v10449_v8  ;;  %v4288_v8 = vadd.f32 %v4281_v44, %v10495_v36  ;;  %v13233_v44 = vld [vmem:[#allocation48_spill] sm:$0xff] }
 0xd95   :  { %v4212_v17 = vpop.f32.mrf.mxu1  ;;  %v4283_v37 = vpop.f32.mrf.mxu0 }
 0xd96   :  { %v4287_v15 = vadd.f32 %v4212_v17, %v10454_v16  ;;  %v4289_v56 = vadd.f32 %v4283_v37, %v10498_v48 }
 0xdb4   :  { %v4420_v39 = vpop.f32.mrf.mxu1  ;;  %v4491_v22 = vpop.f32.mrf.mxu0 }
 0xdb5   :  { %v4496_v1 = vadd.f32 %v4420_v39, %v4286_v5  ;;  %v4498_v24 = vadd.f32 %v4491_v22, %v4288_v8  ;;  %v13237_v8 = vld [vmem:[#allocation51_spill] sm:$0xff] }
 0xdb6   :  { %v4422_v33 = vpop.f32.mrf.mxu1  ;;  %v4493_v29 = vpop.f32.mrf.mxu0 }
 0xdb7   :  { %v4500_v52 = vsub.f32 0.0, %v4496_v1  ;;  %v4497_v18 = vadd.f32 %v4422_v33, %v4287_v15  ;;  %v4499_v11 = vadd.f32 %v4493_v29, %v4289_v56  ;;  %v13235_v56 = vld [vmem:[#allocation49_spill] sm:$0xff] }
 0xdb9   :  { %v4501_v28 = vmul.f32 1.442695, %v4500_v52  ;;  %v4506_v19 = vsub.f32 0.0, %v4497_v18  ;;  %v4513_v58 = vsub.f32 0.0, %v4499_v11 }
 0xdbb   :  { %8435 = vpow2.f32 %v4501_v28  ;;  %v4507_v59 = vmul.f32 1.442695, %v4506_v19  ;;  %v4514_v16 = vmul.f32 1.442695, %v4513_v58 }
 0xdbd   :  { %8437 = vpow2.f32 %v4507_v59 }
 0xdbe   :  { %8439 = vtanh.f32 %v4498_v24  ;;  %v13238_v24 = vld [vmem:[#allocation52_spill] sm:$0xff] }
 0xdbf   :  { %8441 = vpow2.f32 %v4514_v16  ;;  %v13239_v16 = vld [vmem:[#allocation41_spill] sm:$0xff] }
 0xdc8   :  { %v8436_v17 = vpop.eup %8435 }
 0xdc9   :  { %v4503_v5 = vadd.f32 1.0, %v8436_v17  ;;  %v13241_v17 = vld [vmem:[#allocation54_spill] sm:$0xff] }
 0xdca   :  { %v8438_v1 = vpop.eup %8437 }
 0xdcb   :  { %8443 = vrcp.f32 %v4503_v5  ;;  %v4509_v33 = vadd.f32 1.0, %v8438_v1  ;;  %v8440_v28 = vpop.eup %8439  ;;  %v13242_v5 = vld [vmem:[#allocation60_spill] sm:$0xff] }
 0xdcc   :  { %v8442_v19 = vpop.eup %8441 }
 0xdcd   :  { %8445 = vrcp.f32 %v4509_v33  ;;  %v4516_v37 = vadd.f32 1.0, %v8442_v19 }
 0xdcf   :  { %8447 = vrcp.f32 %v4516_v37 }
 0xdd8   :  { %v8444_v18 = vpop.eup %8443 }
 0xdd9   :  { %v4520_v15 = vmul.f32 %v8444_v18, %v8440_v28 }
 0xdda   :  { %v8446_v48 = vpop.eup %8445 }
 0xddb   :  { %v4519_v11 = vmul.f32 %v8446_v48, %v10542_v47 }
 0xddc   :  { %v8448_v36 = vpop.eup %8447 }
 0xddd   :  { %v11215_v29 = vadd.f32 %v4520_v15, %v4519_v11 }
 0xddf   :  { %8449 = vtanh.f32 %v11215_v29 }
 0xdec   :  { %v8450_v58 = vpop.eup %8449 }
 0xded   :  { %v11218_v22 = vmul.f32 %v8450_v58, %v8448_v36 }
 0xdef   :  { %8015 = vmatmul.mubr.f32.vlgmr.msra.gmra.mxu1 %v11218_v22  ;;  %v4533_v39 = vmul.f32 %v11218_v22, %v10549_v57  ;;  %v4532_v52 = vmul.f32 %v11218_v22, %v10552_v0  ;;  %v4536_v47 = vmul.f32 %v11218_v22, %v10566_v60  ;;  %v4534_v59 = vmul.f32 %v11218_v22, %v10563_v3 }
 0xdf0   :  { %4946 = vmatpush1.msra.mxu1 %v10701_v51  ;;  %5009 = vmatprep.mubr.f32.mxu1 %v13075_v35  ;;  %v4538_v51 = vmul.f32 %v11218_v22, %v10576_v54 }
 0xdf1   :  { %4542 = vadd.xlane.f32.xlu1 %v4533_v39  ;;  %4540 = vadd.xlane.f32.xlu0 %v4532_v52 }
 0xdf2   :  { %4947 = vmatprep.subr.mxu1 %v10705_v7  ;;  %v4535_v7 = vmul.f32 %v11218_v22, %v10573_v41 }
 0xdf3   :  { %4948 = vmatpush1.msra.mxu1 %v10709_v9  ;;  %v13234_v9 = vld [vmem:[#allocation40_spill] sm:$0xff] }
 0xdf4   :  { %4949 = vmatprep.subr.mxu1 %v10717_v49  ;;  %v4537_v49 = vmul.f32 %v11218_v22, %v13234_v9 }
 0xdf5   :  { %4548 = vadd.xlane.f32.xlu1 %v4536_v47  ;;  %4544 = vadd.xlane.f32.xlu0 %v4534_v59 }
 0xdf6   :  { %4950 = vmatpush1.msra.mxu1 %v10721_v21  ;;  %v13236_v21 = vld [vmem:[#allocation50_spill] sm:$0xff] }
 0xdf7   :  { %4951 = vmatprep.subr.mxu1 %v10724_v61  ;;  %v4539_v61 = vmul.f32 %v11218_v22, %v13239_v16 }
 0xdf8   :  { %4952 = vmatpush1.msra.mxu1 %v10727_v25  ;;  %v13240_v25 = vld [vmem:[#allocation53_spill] sm:$0xff] }
 0xdf9   :  { %4552 = vadd.xlane.f32.xlu1 %v4538_v51  ;;  %4546 = vadd.xlane.f32.xlu0 %v4535_v7 }
 0xdfa   :  { %4953 = vmatprep.subr.mxu1 %v13233_v44 }
 0xdfb   :  { %4954 = vmatpush1.msra.mxu1 %v13235_v56 }
 0xdfc   :  { %4955 = vmatprep.subr.mxu1 %v13236_v21 }
 0xdfd   :  { %4550 = vadd.xlane.f32.xlu0 %v4537_v49  ;;  %4956 = vmatpush1.msra.mxu1 %v13237_v8 }
 0xdfe   :  { %4957 = vmatprep.subr.mxu1 %v13238_v24 }
 0xdff   :  { %4958 = vmatpush1.msra.mxu1 %v13240_v25 }
 0xe00   :  { %4959 = vmatprep.subr.mxu1 %v13241_v17 }
 0xe01   :  { %4554 = vadd.xlane.f32.xlu0 %v4539_v61  ;;  %4960 = vmatpush1.msra.mxu1 %v13242_v5 }
 0xe02   :  { %4961 = vmatprep.subr.mxu1 %v10811_v42 }
 0xe03   :  { %4962 = vmatpush1.msra.mxu1 %v10817_v13 }
 0xe04   :  { %4963 = vmatprep.subr.mxu1 %v10823_v31  ;;  %v13243_v31 = vld [vmem:[#allocation102_spill] sm:$0xff] }
 0xe05   :  { %4964 = vmatpush1.msra.mxu1 %v10829_v6  ;;  %v13244_v6 = vld [vmem:[#allocation104_spill] sm:$0xff] }
 0xe06   :  { %4965 = vmatprep.subr.mxu1 %v10833_v46 }
 0xe07   :  { %4966 = vmatpush1.msra.mxu1 %v10839_v30 }
 0xe08   :  { %4967 = vmatprep.subr.mxu1 %v10845_v43 }
 0xe09   :  { %4968 = vmatpush1.msra.mxu1 %v10849_v23 }
 0xe0a   :  { %4969 = vmatprep.subr.mxu1 %v10855_v14  ;;  %v13245_v14 = vld [vmem:[#allocation42_spill] sm:$0xff] }
 0xe0b   :  { %4970 = vmatpush1.msra.mxu1 %v10861_v27 }
 0xe0c   :  { %4971 = vmatprep.subr.mxu1 %v10867_v26 }
 0xe0d   :  { %4972 = vmatpush1.msra.mxu1 %v10873_v34 }
 0xe0e   :  { %4973 = vmatprep.subr.mxu1 %v10879_v50 }
 0xe0f   :  { %4974 = vmatpush1.msra.mxu1 %v10885_v40 }
 0xe10   :  { %4975 = vmatprep.subr.mxu1 %v13243_v31 }
 0xe11   :  { %4976 = vmatpush1.msra.mxu1 %v13244_v6 }
 0xe12   :  { %5155 = vmatprep.subr.mxu1 %v10903_v10 }
 0xe7a   :  { %v4541_v43 = vpop.xlane.xlu0 %4540  ;;  %v4543_v23 = vpop.xlane.xlu1 %4542 }
 0xe7b   :  { %v4571_v46 = vrot.slane %v4543_v23, %v13245_v14  ;;  %v4567_v27 = vrot.slane %v4541_v43, %v13245_v14 }
 0xe7d   :  { %v4596_v50 = vsel %vm3787_vm1, %v4571_v46, %v4567_v27 }
 0xe7e   :  { %v4545_v42 = vpop.xlane.xlu0 %4544  ;;  %v4549_v34 = vpop.xlane.xlu1 %4548 }
 0xe7f   :  { %v4575_v26 = vrot.slane %v4545_v42, %v13245_v14  ;;  %v4583_v10 = vrot.slane %v4549_v34, %v13245_v14 }
 0xe81   :  { %v4597_v30 = vsel %vm3789_vm2, %v4575_v26, %v4596_v50  ;;  %v13247_v26 = vld [vmem:[#allocation58_spill] sm:$0xff] }
 0xe82   :  { %v4547_v13 = vpop.xlane.xlu0 %4546  ;;  %v4553_v28 = vpop.xlane.xlu1 %4552 }
 0xe83   :  { %v4579_v40 = vrot.slane %v4547_v13, %v13245_v14  ;;  %v4591_v48 = vrot.slane %v4553_v28, %v13245_v14  ;;  %v13248_v13 = vld [vmem:[#allocation56_spill] sm:$0xff] }
 0xe85   :  { %v4598_v1 = vsel %vm3791_vm3, %v4579_v40, %v4597_v30  ;;  %v13249_v40 = vld [vmem:[#allocation44_spill] sm:$0xff] }
 0xe86   :  { %v4551_v33 = vpop.xlane.xlu0 %4550  ;;  %v4599_v18 = vsel %vm3793_vm4, %v4583_v10, %v4598_v1  ;;  %v13250_v1 = vld [vmem:[#allocation57_spill] sm:$0xff] }
 0xe87   :  { %v4587_v19 = vrot.slane %v4551_v33, %v13245_v14  ;;  %v13251_v33 = vld [vmem:[#allocation45_spill] sm:$0xff] }
 0xe89   :  { %v4600_v15 = vsel %vm3795_vm5, %v4587_v19, %v4599_v18  ;;  %v13252_v19 = vld [vmem:[#allocation59_spill] sm:$0xff] }
 0xe8a   :  { %v4555_v37 = vpop.xlane.xlu0 %4554  ;;  %v4601_v36 = vsel %vm3797_vm6, %v4591_v48, %v4600_v15  ;;  %v13253_v15 = vld [vmem:[#allocation46_spill] sm:$0xff] }
 0xe8b   :  { %v4595_v11 = vrot.slane %v4555_v37, %v13245_v14  ;;  %v13254_v37 = vld [vmem:[#allocation47_spill] sm:$0xff] }
 0xe8d   :  { %v4602_v58 = vsel %vm3799_vm7, %v4595_v11, %v4601_v36 }
 0xe8e   :  { %v4604_v52 = vsel %vm3744_vm8, -1e+30, %v4602_v58 }
 0xe8f   :  { %v4605_v47 = vsel %vm3803_vm9, %v4604_v52, -inf }
 0xe90   :  { %v4606_v59 = vrot.slane %v4605_v47, 4 }
 0xe92   :  { %v4607_v51 = vmax.f32 %v4605_v47, %v4606_v59  ;;  %v13256_v59 = vld [vmem:[#allocation88_spill] sm:$0xff] }
 0xe94   :  { %v4608_v7 = vrot.slane %v4607_v51, 2 }
 0xe96   :  { %v4609_v44 = vmax.f32 %v4607_v51, %v4608_v7 }
 0xe98   :  { %v4610_v49 = vrot.slane %v4609_v44, 1 }
 0xe9a   :  { %v4611_v56 = vmax.f32 %v4609_v44, %v4610_v49  ;;  %v13257_v44 = vld [vmem:[#allocation64_spill] sm:$0xff] }
 0xe9c   :  { %v4612_v21 = vsub.f32 %v4604_v52, %v4611_v56  ;;  %v13255_v52 = vld [vmem:[#allocation33_spill] sm:$0xff] }
 0xe9e   :  { %v4613_v8 = vmul.f32 1.442695, %v4612_v21 }
 0xea0   :  { %8451 = vpow2.f32 %v4613_v8 }
 0xead   :  { %v8452_v24 = vpop.eup %8451 }
 0xeae   :  { %v4615_v61 = vsel %vm3803_vm9, %v8452_v24, 0.0 }
 0xeaf   :  { %v4616_v25 = vrot.slane %v4615_v61, 4  ;;  %v11289_v17 = vpop.f32.mrf.mxu1 }
 0xeb1   :  { %v4617_v5 = vadd.f32 %v4616_v25, %v4615_v61  ;;  %v8016_v31 = vpop.f32.mrf.mxu1  ;;  %v13258_v61 = vld [vmem:[#allocation66_spill] sm:$0xff] }
 0xeb3   :  { %v4618_v6 = vrot.slane %v4617_v5, 2 }
 0xeb5   :  { %v4619_v43 = vadd.f32 %v4618_v6, %v4617_v5  ;;  %v13259_v5 = vld [vmem:[#allocation67_spill] sm:$0xff] }
 0xeb7   :  { %v4620_v23 = vrot.slane %v4619_v43, 1 }
 0xeb9   :  { %v4621_v42 = vadd.f32 %v4620_v23, %v4619_v43 }
 0xebb   :  { %8453 = vrcp.f32 %v4621_v42 }
 0xec8   :  { %v8454_v46 = vpop.eup %8453 }
 0xec9   :  { %v4623_v27 = vmul.f32 %v8454_v46, %v8452_v24  ;;  %v13260_v46 = vld [vmem:[#allocation65_spill] sm:$0xff] }
 0xecb   :  { %v4634_v34 = vrot.slane %v4623_v27, %v13247_v26  ;;  %v4627_v50 = vrot.slane %v4623_v27, %v13248_v13  ;;  %v4655_v30 = vrot.slane %v4623_v27, %v13249_v40  ;;  %v4641_v10 = vrot.slane %v4623_v27, %v13250_v1 }
 0xecc   :  { %v4669_v28 = vrot.slane %v4623_v27, %v13251_v33  ;;  %v4648_v18 = vrot.slane %v4623_v27, %v13252_v19  ;;  %v4662_v48 = vrot.slane %v4623_v27, %v13253_v15  ;;  %v4676_v11 = vrot.slane %v4623_v27, %v13254_v37 }
 0xecd   :  { %4636 = vbcast.lane.b32.xlu0 %v4634_v34, 256  ;;  %4629 = vbcast.lane.b32.xlu1 %v4627_v50, 256  ;;  %v13261_v34 = vld [vmem:[#allocation68_spill] sm:$0xff] }
 0xed1   :  { %4657 = vbcast.lane.b32.xlu0 %v4655_v30, 256  ;;  %4643 = vbcast.lane.b32.xlu1 %v4641_v10, 256 }
 0xed5   :  { %4671 = vbcast.lane.b32.xlu0 %v4669_v28, 256  ;;  %4650 = vbcast.lane.b32.xlu1 %v4648_v18, 256  ;;  %v13262_v18 = vld [vmem:[#allocation70_spill] sm:$0xff] }
 0xed9   :  { %4664 = vbcast.lane.b32.xlu1 %v4662_v48, 256 }
 0xedd   :  { %4678 = vbcast.lane.b32.xlu1 %v4676_v11, 256 }
 0xf3f   :  { %v4637_v36 = vpop.permute.xlu0 %4636  ;;  %v4630_v58 = vpop.permute.xlu1 %4629 }
 0xf40   :  { %v4689_v47 = vmul.f32 %v4637_v36, %v13255_v52  ;;  %v4688_v51 = vmul.f32 %v4630_v58, %v13256_v59  ;;  %v13263_v36 = vld [vmem:[#allocation62_spill] sm:$0xff]  ;;  %v13264_v58 = vld [vmem:[#allocation63_spill] sm:$0xff] }
 0xf42   :  { %v4696_v21 = vadd.f32 %v4689_v47, %v4688_v51  ;;  %v13265_v47 = vld [vmem:[#allocation61_spill] sm:$0xff]  ;;  %v13266_v51 = vld [vmem:[#allocation76_spill] sm:$0xff] }
 0xf43   :  { %v4644_v7 = vpop.permute.xlu1 %4643  ;;  %v4658_v56 = vpop.permute.xlu0 %4657 }
 0xf44   :  { %v4690_v49 = vmul.f32 %v4644_v7, %v13257_v44  ;;  %v4692_v31 = vmul.f32 %v4658_v56, %v13259_v5  ;;  %v13267_v7 = vld [vmem:[#allocation78_spill] sm:$0xff]  ;;  %v13269_v56 = vld [vmem:[#allocation77_spill] sm:$0xff] }
 0xf46   :  { %v4697_v24 = vadd.f32 %v4696_v21, %v4690_v49  ;;  %v13268_v49 = vld [vmem:[#allocation79_spill] sm:$0xff]  ;;  %v13270_v21 = vld [vmem:[#allocation80_spill] sm:$0xff] }
 0xf47   :  { %v4651_v8 = vpop.permute.xlu1 %4650  ;;  %v4672_v43 = vpop.permute.xlu0 %4671 }
 0xf48   :  { %v4691_v25 = vmul.f32 %v4651_v8, %v13258_v61  ;;  %v4694_v50 = vmul.f32 %v4672_v43, %v13261_v34  ;;  %v13271_v8 = vld [vmem:[#allocation82_spill] sm:$0xff]  ;;  %v13276_v43 = vld [vmem:[#allocation87_spill] sm:$0xff] }
 0xf4a   :  { %v4698_v6 = vadd.f32 %v4697_v24, %v4691_v25  ;;  %v13272_v24 = vld [vmem:[#allocation83_spill] sm:$0xff]  ;;  %v13273_v25 = vld [vmem:[#allocation81_spill] sm:$0xff] }
 0xf4b   :  { %v4665_v23 = vpop.permute.xlu1 %4664 }
 0xf4c   :  { %v4699_v42 = vadd.f32 %v4698_v6, %v4692_v31  ;;  %v4693_v27 = vmul.f32 %v4665_v23, %v13260_v46  ;;  %v13274_v31 = vld [vmem:[#allocation84_spill] sm:$0xff]  ;;  %v13275_v6 = vld [vmem:[#allocation86_spill] sm:$0xff]  ;;  %v13277_v23 = vld [vmem:[#allocation85_spill] sm:$0xff] }
 0xf4e   :  { %v4700_v30 = vadd.f32 %v4699_v42, %v4693_v27  ;;  %v13278_v42 = vld [vmem:[#allocation55_spill] sm:$0xff]  ;;  %v13279_v27 = vld [vmem:[#allocation89_spill] sm:$0xff] }
 0xf4f   :  { %v4679_v10 = vpop.permute.xlu1 %4678 }
 0xf50   :  { %v4701_v28 = vadd.f32 %v4700_v30, %v4694_v50  ;;  %v4695_v48 = vmul.f32 %v4679_v10, %v13262_v18  ;;  %v13280_v50 = vld [vmem:[#allocation90_spill] sm:$0xff]  ;;  %v13281_v30 = vld [vmem:[#allocation91_spill] sm:$0xff]  ;;  %v13282_v10 = vld [vmem:[#allocation92_spill] sm:$0xff] }
 0xf52   :  { %v4702_v11 = vadd.f32 %v4701_v28, %v4695_v48  ;;  %v13283_v28 = vld [vmem:[#allocation93_spill] sm:$0xff]  ;;  %v13284_v48 = vld [vmem:[#allocation94_spill] sm:$0xff] }
 0xf54   :  { %8050 = vmatmul.mubr.f32.vlgmr.msra.gmra.mxu0 %v4702_v11  ;;  %v13285_v11 = vld [vmem:[#allocation95_spill] sm:$0xff] }
 0xf55   :  { %5017 = vmatpush1.msra.mxu0 %v13263_v36  ;;  %5080 = vmatprep.mubr.f32.mxu0 %v13075_v35  ;;  %v13286_v36 = vld [vmem:[#allocation96_spill] sm:$0xff] }
 0xf56   :  { %5018 = vmatprep.subr.mxu0 %v13264_v58  ;;  %v13287_v58 = vld [vmem:[#allocation97_spill] sm:$0xff] }
 0xf57   :  { %5019 = vmatpush1.msra.mxu0 %v13265_v47  ;;  %v13288_v47 = vld [vmem:[#allocation98_spill] sm:$0xff] }
 0xf58   :  { %5020 = vmatprep.subr.mxu0 %v13266_v51  ;;  %v13289_v51 = vld [vmem:[#allocation99_spill] sm:$0xff] }
 0xf59   :  { %5021 = vmatpush1.msra.mxu0 %v13267_v7  ;;  %v13290_v7 = vld [vmem:[#allocation100_spill] sm:$0xff] }
 0xf5a   :  { %5022 = vmatprep.subr.mxu0 %v13268_v49  ;;  %v13291_v49 = vld [vmem:[#allocation101_spill] sm:$0xff] }
 0xf5b   :  { %5023 = vmatpush1.msra.mxu0 %v13269_v56  ;;  %v13292_v56 = vld [vmem:[#allocation103_spill] sm:$0xff] }
 0xf5c   :  { %5024 = vmatprep.subr.mxu0 %v13270_v21  ;;  %v13293_v21 = vld [vmem:[#allocation105_spill] sm:$0xff] }
 0xf5d   :  { %5025 = vmatpush1.msra.mxu0 %v13271_v8  ;;  %v13294_v8 = vld [vmem:[#allocation106_spill] sm:$0xff] }
 0xf5e   :  { %5026 = vmatprep.subr.mxu0 %v13272_v24 }
 0xf5f   :  { %5027 = vmatpush1.msra.mxu0 %v13273_v25 }
 0xf60   :  { %5028 = vmatprep.subr.mxu0 %v13274_v31 }
 0xf61   :  { %5029 = vmatpush1.msra.mxu0 %v13275_v6 }
 0xf62   :  { %5030 = vmatprep.subr.mxu0 %v13276_v43  ;;  %v13296_v43 = vld [vmem:[#allocation107_spill] sm:$0xff] }
 0xf63   :  { %5031 = vmatpush1.msra.mxu0 %v13277_v23  ;;  %v13297_v23 = vld [vmem:[#allocation108_spill] sm:$0xff] }
 0xf64   :  { %5032 = vmatprep.subr.mxu0 %v13278_v42  ;;  %v13298_v42 = vld [vmem:[#allocation110_spill] sm:$0xff] }
 0xf65   :  { %5033 = vmatpush1.msra.mxu0 %v13279_v27  ;;  %v13299_v27 = vld [vmem:[#allocation111_spill] sm:$0xff] }
 0xf66   :  { %5034 = vmatprep.subr.mxu0 %v13280_v50  ;;  %v13300_v50 = vld [vmem:[#allocation112_spill] sm:$0xff] }
 0xf67   :  { %5035 = vmatpush1.msra.mxu0 %v13281_v30  ;;  %v13301_v30 = vld [vmem:[#allocation113_spill] sm:$0xff] }
 0xf68   :  { %5036 = vmatprep.subr.mxu0 %v13282_v10  ;;  %v13303_v10 = vld [vmem:[#allocation115_spill] sm:$0xff] }
 0xf69   :  { %5037 = vmatpush1.msra.mxu0 %v13283_v28  ;;  %v13304_v28 = vld [vmem:[#allocation116_spill] sm:$0xff] }
 0xf6a   :  { %5038 = vmatprep.subr.mxu0 %v13284_v48  ;;  %v13305_v48 = vld [vmem:[#allocation117_spill] sm:$0xff] }
 0xf6b   :  { %5039 = vmatpush1.msra.mxu0 %v13285_v11  ;;  %v13306_v11 = vld [vmem:[#allocation118_spill] sm:$0xff] }
 0xf6c   :  { %5040 = vmatprep.subr.mxu0 %v13286_v36  ;;  %v13307_v36 = vld [vmem:[#allocation119_spill] sm:$0xff] }
 0xf6d   :  { %5041 = vmatpush1.msra.mxu0 %v13287_v58  ;;  %v13308_v58 = vld [vmem:[#allocation120_spill] sm:$0xff] }
 0xf6e   :  { %5042 = vmatprep.subr.mxu0 %v13288_v47  ;;  %v13309_v47 = vld [vmem:[#allocation121_spill] sm:$0xff] }
 0xf6f   :  { %5043 = vmatpush1.msra.mxu0 %v13289_v51  ;;  %v13310_v51 = vld [vmem:[#allocation122_spill] sm:$0xff] }
 0xf70   :  { %5044 = vmatprep.subr.mxu0 %v13290_v7  ;;  %v13311_v7 = vld [vmem:[#allocation123_spill] sm:$0xff] }
 0xf71   :  { %5045 = vmatpush1.msra.mxu0 %v13291_v49  ;;  %v13312_v49 = vld [vmem:[#allocation124_spill] sm:$0xff] }
 0xf72   :  { %5046 = vmatprep.subr.mxu0 %v13292_v56  ;;  %v13313_v56 = vld [vmem:[#allocation125_spill] sm:$0xff] }
 0xf73   :  { %5047 = vmatpush1.msra.mxu0 %v13293_v21  ;;  %v13314_v21 = vld [vmem:[#allocation126_spill] sm:$0xff] }
 0xf74   :  { %5226 = vmatprep.subr.mxu0 %v13294_v8  ;;  %v13315_v8 = vld [vmem:[#allocation127_spill] sm:$0xff] }
0x1014   :  { %v4871_v24 = vpop.f32.mrf.mxu0 }
0x1015   :  { %v4872_v25 = vadd.f32 %v4871_v24, %v11289_v17  ;;  %v13302_v17 = vld [vmem:[#allocation114_spill] sm:$0xff]  ;;  %v13316_v24 = vld [vmem:[#allocation128_spill] sm:$0xff] }
0x1016   :  { %v8051_v31 = vpop.f32.mrf.mxu0 }
0x1017   :  { %8455 = vtanh.f32 %v4872_v25  ;;  %v13317_v25 = vld [vmem:[#allocation129_spill] sm:$0xff]  ;;  %v13318_v31 = vld [vmem:[#allocation130_spill] sm:$0xff] }
0x1024   :  { %v11341_v6 = vpop.eup %8455 }
0x1025   :  { %13295 = vst [vmem:[#allocation48_spill] sm:$0xff] %v11341_v6  ;;  %5010 = vmatmul.mubr.f32.vlgmr.msra.gmra.mxu1 %v11341_v6  ;;  %5081 = vmatmul.mubr.f32.vlgmr.msra.gmra.mxu0 %v11341_v6 }
0x1026   :  { %5156 = vmatpush1.msra.mxu1 %v13296_v43  ;;  %5227 = vmatpush1.msra.mxu0 %v13297_v23  ;;  %v13319_v43 = vld [vmem:[#allocation131_spill] sm:$0xff]  ;;  %v13320_v23 = vld [vmem:[#allocation132_spill] sm:$0xff] }
0x1027   :  { %5157 = vmatprep.subr.mxu1 %v13298_v42  ;;  %5228 = vmatprep.subr.mxu0 %v13299_v27  ;;  %v13321_v42 = vld [vmem:[#allocation133_spill] sm:$0xff]  ;;  %v13322_v27 = vld [vmem:[#allocation134_spill] sm:$0xff] }
0x1028   :  { %5158 = vmatpush1.msra.mxu1 %v13300_v50  ;;  %5229 = vmatpush1.msra.mxu0 %v13301_v30  ;;  %v13323_v50 = vld [vmem:[#allocation135_spill] sm:$0xff]  ;;  %v13324_v30 = vld [vmem:[#allocation136_spill] sm:$0xff] }
0x1029   :  { %5159 = vmatprep.subr.mxu1 %v13302_v17  ;;  %5230 = vmatprep.subr.mxu0 %v13303_v10  ;;  %v13325_v17 = vld [vmem:[#allocation137_spill] sm:$0xff]  ;;  %v13326_v10 = vld [vmem:[#allocation138_spill] sm:$0xff] }
0x102a   :  { %5160 = vmatpush1.msra.mxu1 %v13304_v28  ;;  %5231 = vmatpush1.msra.mxu0 %v13305_v48  ;;  %v13327_v28 = vld [vmem:[#allocation139_spill] sm:$0xff]  ;;  %v13328_v48 = vld [vmem:[#allocation140_spill] sm:$0xff] }
0x102b   :  { %5161 = vmatprep.subr.mxu1 %v13306_v11  ;;  %5232 = vmatprep.subr.mxu0 %v13307_v36  ;;  %v13329_v11 = vld [vmem:[#allocation141_spill] sm:$0xff]  ;;  %v13330_v36 = vld [vmem:[#allocation142_spill] sm:$0xff] }
0x102c   :  { %5162 = vmatpush1.msra.mxu1 %v13308_v58  ;;  %5233 = vmatpush1.msra.mxu0 %v13309_v47  ;;  %v13331_v58 = vld [vmem:[#allocation143_spill] sm:$0xff]  ;;  %v13332_v47 = vld [vmem:[#allocation144_spill] sm:$0xff] }
0x102d   :  { %5163 = vmatprep.subr.mxu1 %v13310_v51  ;;  %5234 = vmatprep.subr.mxu0 %v13311_v7  ;;  %v13333_v51 = vld [vmem:[#allocation145_spill] sm:$0xff]  ;;  %v13334_v7 = vld [vmem:[#allocation146_spill] sm:$0xff] }
0x102e   :  { %5164 = vmatpush1.msra.mxu1 %v13312_v49  ;;  %5235 = vmatpush1.msra.mxu0 %v13313_v56  ;;  %v13335_v49 = vld [vmem:[#allocation147_spill] sm:$0xff]  ;;  %v13336_v56 = vld [vmem:[#allocation148_spill] sm:$0xff] }
0x102f   :  { %5165 = vmatprep.subr.mxu1 %v13314_v21  ;;  %5236 = vmatprep.subr.mxu0 %v13315_v8  ;;  %v13337_v21 = vld [vmem:[#allocation149_spill] sm:$0xff]  ;;  %v13338_v8 = vld [vmem:[#allocation150_spill] sm:$0xff] }
0x1030   :  { %5166 = vmatpush1.msra.mxu1 %v13316_v24  ;;  %5237 = vmatpush1.msra.mxu0 %v13317_v25  ;;  %v13339_v24 = vld [vmem:[#allocation151_spill] sm:$0xff]  ;;  %v13340_v25 = vld [vmem:[#allocation152_spill] sm:$0xff] }
0x1031   :  { %5167 = vmatprep.subr.mxu1 %v13318_v31  ;;  %5238 = vmatprep.subr.mxu0 %v13319_v43  ;;  %v13341_v31 = vld [vmem:[#allocation153_spill] sm:$0xff]  ;;  %v13342_v43 = vld [vmem:[#allocation154_spill] sm:$0xff] }
0x1032   :  { %5168 = vmatpush1.msra.mxu1 %v13320_v23  ;;  %5239 = vmatpush1.msra.mxu0 %v13321_v42  ;;  %v13343_v23 = vld [vmem:[#allocation155_spill] sm:$0xff]  ;;  %v13344_v42 = vld [vmem:[#allocation156_spill] sm:$0xff] }
0x1033   :  { %5169 = vmatprep.subr.mxu1 %v13322_v27  ;;  %5240 = vmatprep.subr.mxu0 %v13323_v50  ;;  %v13345_v27 = vld [vmem:[#allocation157_spill] sm:$0xff]  ;;  %v13346_v50 = vld [vmem:[#allocation158_spill] sm:$0xff] }
0x1034   :  { %5170 = vmatpush1.msra.mxu1 %v13324_v30  ;;  %5241 = vmatpush1.msra.mxu0 %v13325_v17  ;;  %v13359_v30 = vld [vmem:[#allocation171_spill] sm:$0xff]  ;;  %v13360_v17 = vld [vmem:[#allocation172_spill] sm:$0xff] }
0x1035   :  { %5171 = vmatprep.subr.mxu1 %v13326_v10  ;;  %5242 = vmatprep.subr.mxu0 %v13327_v28  ;;  %v13361_v10 = vld [vmem:[#allocation173_spill] sm:$0xff]  ;;  %v13362_v28 = vld [vmem:[#allocation174_spill] sm:$0xff] }
0x1036   :  { %5172 = vmatpush1.msra.mxu1 %v13328_v48  ;;  %5243 = vmatpush1.msra.mxu0 %v13329_v11 }
0x1037   :  { %5173 = vmatprep.subr.mxu1 %v13330_v36  ;;  %5244 = vmatprep.subr.mxu0 %v13331_v58  ;;  %v13363_v58 = vld [vmem:[#allocation71_spill] sm:$0xff] }
0x1038   :  { %5174 = vmatpush1.msra.mxu1 %v13332_v47  ;;  %5245 = vmatpush1.msra.mxu0 %v13333_v51 }
0x1039   :  { %5175 = vmatprep.subr.mxu1 %v13334_v7  ;;  %5246 = vmatprep.subr.mxu0 %v13335_v49  ;;  %v13364_v7 = vld [vmem:[#allocation69_spill] sm:$0xff] }
0x103a   :  { %5176 = vmatpush1.msra.mxu1 %v13336_v56  ;;  %5247 = vmatpush1.msra.mxu0 %v13337_v21 }
0x103b   :  { %5177 = vmatprep.subr.mxu1 %v13338_v8  ;;  %5248 = vmatprep.subr.mxu0 %v13339_v24 }
0x103c   :  { %5178 = vmatpush1.msra.mxu1 %v13340_v25  ;;  %5249 = vmatpush1.msra.mxu0 %v13341_v31 }
0x103d   :  { %5179 = vmatprep.subr.mxu1 %v13342_v43  ;;  %5250 = vmatprep.subr.mxu0 %v13343_v23 }
0x103e   :  { %5180 = vmatpush1.msra.mxu1 %v13344_v42  ;;  %5251 = vmatpush1.msra.mxu0 %v13345_v27 }
0x103f   :  { %5181 = vmatprep.subr.mxu1 %v11064_v32  ;;  %5252 = vmatprep.subr.mxu0 %v13346_v50  ;;  %v13354_v32 = vld [vmem:[#allocation166_spill] sm:$0xff]  ;;  %v13365_v50 = vld [vmem:[#allocation73_spill] sm:$0xff] }
0x1040   :  { %5182 = vmatpush1.msra.mxu1 %v11070_v38  ;;  %5253 = vmatpush1.msra.mxu0 %v11072_v2  ;;  %v13356_v38 = vld [vmem:[#allocation168_spill] sm:$0xff]  ;;  %v13357_v2 = vld [vmem:[#allocation169_spill] sm:$0xff] }
0x1041   :  { %5183 = vmatprep.subr.mxu1 %v11076_v45  ;;  %5254 = vmatprep.subr.mxu0 %v11078_v62  ;;  %v13351_v62 = vld [vmem:[#allocation163_spill] sm:$0xff]  ;;  %v13353_v45 = vld [vmem:[#allocation165_spill] sm:$0xff] }
0x1042   :  { %5184 = vmatpush1.msra.mxu1 %v11082_v53  ;;  %5255 = vmatpush1.msra.mxu0 %v11084_v12  ;;  %v13347_v12 = vld [vmem:[#allocation159_spill] sm:$0xff]  ;;  %v13350_v53 = vld [vmem:[#allocation162_spill] sm:$0xff] }
0x1043   :  { %5185 = vmatprep.subr.mxu1 %v11088_v20  ;;  %5256 = vmatprep.subr.mxu0 %v11090_v63  ;;  %v13348_v63 = vld [vmem:[#allocation160_spill] sm:$0xff] }
0x1044   :  { %5186 = vmatpush1.msra.mxu1 %v11094_v55  ;;  %5219 = vmatprep.mubr.f32.mxu1 %v13075_v35  ;;  %v13349_v55 = vld [vmem:[#allocation161_spill] sm:$0xff]  ;;  %v13352_v20 = vld [vmem:[#allocation164_spill] sm:$0xff] }
0x1045   :  { %5257 = vmatpush1.msra.mxu0 %v11098_v4  ;;  %5290 = vmatprep.mubr.f32.mxu0 %v13075_v35  ;;  %v13355_v4 = vld [vmem:[#allocation167_spill] sm:$0xff] }
0x1046   :  { %5220 = vmatmul.mubr.f32.vlgmr.msra.gmra.mxu1 %v11218_v22  ;;  %5291 = vmatmul.mubr.f32.vlgmr.msra.gmra.mxu0 %v11218_v22  ;;  %v13358_v22 = vld [vmem:[#allocation170_spill] sm:$0xff] }
0x1047   :  { %8052 = vmatprep.subr.mxu1 %v13075_v35  ;;  %8084 = vmatprep.mubr.msk.f32.mxu1 %vm8827_vm0, %v13075_v35 }
0x1048   :  { %8053 = vmatpush3.msra.mxu1 %v13347_v12  ;;  %8087 = vmatprep.subr.mxu0 %v13075_v35 }
0x1049   :  { %8054 = vmatprep.subr.mxu1 %v13075_v35  ;;  %8119 = vmatprep.mubr.msk.f32.mxu0 %vm8827_vm0, %v13075_v35 }
0x104a   :  { %8055 = vmatpush3.msra.mxu1 %v13348_v63 }
0x104b   :  { %8056 = vmatprep.subr.mxu1 %v13075_v35 }
0x104c   :  { %8057 = vmatpush3.msra.mxu1 %v13349_v55 }
0x104d   :  { %8058 = vmatprep.subr.mxu1 %v13075_v35 }
0x104e   :  { %8059 = vmatpush3.msra.mxu1 %v13350_v53  ;;  %v13366_v53 = vld [vmem:[#allocation75_spill] sm:$0xff] }
0x104f   :  { %8060 = vmatprep.subr.mxu1 %v13075_v35 }
0x1050   :  { %8061 = vmatpush3.msra.mxu1 %v13351_v62 }
0x1051   :  { %8062 = vmatprep.subr.mxu1 %v13075_v35 }
0x1052   :  { %8063 = vmatpush3.msra.mxu1 %v13352_v20 }
0x1053   :  { %8064 = vmatprep.subr.mxu1 %v13075_v35 }
0x1054   :  { %8065 = vmatpush3.msra.mxu1 %v13353_v45 }
0x1055   :  { %8066 = vmatprep.subr.mxu1 %v13075_v35 }
0x1056   :  { %8067 = vmatpush3.msra.mxu1 %v13354_v32 }
0x1057   :  { %8068 = vmatprep.subr.mxu1 %v13075_v35 }
0x1058   :  { %8069 = vmatpush3.msra.mxu1 %v13355_v4 }
0x1059   :  { %8070 = vmatprep.subr.mxu1 %v13075_v35 }
0x105a   :  { %8071 = vmatpush3.msra.mxu1 %v13356_v38 }
0x105b   :  { %8072 = vmatprep.subr.mxu1 %v13075_v35 }
0x105c   :  { %8073 = vmatpush3.msra.mxu1 %v13357_v2 }
0x105d   :  { %8074 = vmatprep.subr.mxu1 %v13075_v35 }
0x105e   :  { %8075 = vmatpush3.msra.mxu1 %v13358_v22 }
0x105f   :  { %8076 = vmatprep.subr.mxu1 %v13075_v35 }
0x1060   :  { %8077 = vmatpush3.msra.mxu1 %v13359_v30 }
0x1061   :  { %8078 = vmatprep.subr.mxu1 %v13075_v35 }
0x1062   :  { %8079 = vmatpush3.msra.mxu1 %v13360_v17 }
0x1063   :  { %8080 = vmatprep.subr.mxu1 %v13075_v35 }
0x1064   :  { %8081 = vmatpush3.msra.mxu1 %v13361_v10 }
0x1065   :  { %8082 = vmatprep.subr.mxu1 %v13075_v35 }
0x1066   :  { %8083 = vmatpush3.msra.mxu1 %v13362_v28 }
0x10e5   :  { %v5011_v48 = vpop.f32.mrf.mxu1  ;;  %v5082_v11 = vpop.f32.mrf.mxu0 }
0x10e6   :  { %v5087_v47 = vadd.f32 %v5011_v48, %v13363_v58  ;;  %v5089_v62 = vadd.f32 %v5082_v11, %v13366_v53 }
0x10e7   :  { %v5013_v36 = vpop.f32.mrf.mxu1  ;;  %v5084_v56 = vpop.f32.mrf.mxu0 }
0x10e8   :  { %v5088_v49 = vadd.f32 %v5013_v36, %v13364_v7  ;;  %v5090_v12 = vadd.f32 %v5084_v56, %v13365_v50  ;;  %v11494_v50 = vld [vmem:[#allocation21 + $0x50] sm:$0xff] }
0x1106   :  { %v5221_v51 = vpop.f32.mrf.mxu1  ;;  %v5292_v25 = vpop.f32.mrf.mxu0 }
0x1107   :  { %v5297_v21 = vadd.f32 %v5221_v51, %v5087_v47  ;;  %v5299_v20 = vadd.f32 %v5292_v25, %v5089_v62 }
0x1108   :  { %v5223_v8 = vpop.f32.mrf.mxu1  ;;  %v5294_v27 = vpop.f32.mrf.mxu0 }
0x1109   :  { %v5301_v24 = vsub.f32 0.0, %v5297_v21  ;;  %v5298_v31 = vadd.f32 %v5223_v8, %v5088_v49  ;;  %v5300_v63 = vadd.f32 %v5294_v27, %v5090_v12  ;;  %v11490_v27 = vld [vmem:[#allocation21 + $0x58] sm:$0xff] }
0x110b   :  { %v5302_v43 = vmul.f32 1.442695, %v5301_v24  ;;  %v5307_v23 = vsub.f32 0.0, %v5298_v31  ;;  %v5314_v55 = vsub.f32 0.0, %v5300_v63  ;;  %v11476_v31 = vld [vmem:[#allocation21 + $0x78] sm:$0xff] }
0x110c   :  { %8088 = vmatpush3.msra.mxu0 %v11476_v31 }
0x110d   :  { %8457 = vpow2.f32 %v5302_v43  ;;  %v5308_v42 = vmul.f32 1.442695, %v5307_v23  ;;  %v5315_v45 = vmul.f32 1.442695, %v5314_v55  ;;  %v11478_v43 = vld [vmem:[#allocation21 + $0x70] sm:$0xff]  ;;  %8089 = vmatprep.subr.mxu0 %v13075_v35  ;;  %v11482_v23 = vld [vmem:[#allocation21 + $0x68] sm:$0xff] }
0x110e   :  { %8090 = vmatpush3.msra.mxu0 %v11478_v43 }
0x110f   :  { %8459 = vpow2.f32 %v5308_v42  ;;  %8091 = vmatprep.subr.mxu0 %v13075_v35  ;;  %v11486_v42 = vld [vmem:[#allocation21 + $0x60] sm:$0xff] }
0x1110   :  { %8461 = vtanh.f32 %v5299_v20  ;;  %8092 = vmatpush3.msra.mxu0 %v11482_v23 }
0x1111   :  { %8463 = vpow2.f32 %v5315_v45  ;;  %8093 = vmatprep.subr.mxu0 %v13075_v35 }
0x1112   :  { %8094 = vmatpush3.msra.mxu0 %v11486_v42 }
0x1113   :  { %8095 = vmatprep.subr.mxu0 %v13075_v35 }
0x1114   :  { %8096 = vmatpush3.msra.mxu0 %v11490_v27 }
0x1115   :  { %8097 = vmatprep.subr.mxu0 %v13075_v35 }
0x1116   :  { %8098 = vmatpush3.msra.mxu0 %v11494_v50 }
0x1117   :  { %8099 = vmatprep.subr.mxu0 %v13075_v35 }
0x111a   :  { %v8458_v32 = vpop.eup %8457 }
0x111b   :  { %v5304_v4 = vadd.f32 1.0, %v8458_v32 }
0x111c   :  { %v8460_v38 = vpop.eup %8459 }
0x111d   :  { %8465 = vrcp.f32 %v5304_v4  ;;  %v5310_v2 = vadd.f32 1.0, %v8460_v38  ;;  %v8462_v22 = vpop.eup %8461 }
0x111e   :  { %v8464_v30 = vpop.eup %8463 }
0x111f   :  { %8467 = vrcp.f32 %v5310_v2  ;;  %v5317_v48 = vadd.f32 1.0, %v8464_v30 }
0x1121   :  { %8469 = vrcp.f32 %v5317_v48 }
0x112a   :  { %v8466_v17 = vpop.eup %8465 }
0x112b   :  { %v5321_v10 = vmul.f32 %v8466_v17, %v8462_v22 }
0x112c   :  { %v8468_v28 = vpop.eup %8467 }
0x112d   :  { %v5320_v36 = vmul.f32 %v8468_v28, %v11215_v29 }
0x112e   :  { %v8470_v11 = vpop.eup %8469 }
0x112f   :  { %v11453_v58 = vadd.f32 %v5321_v10, %v5320_v36 }
0x1131   :  { %8471 = vtanh.f32 %v11453_v58 }
0x113e   :  { %v8472_v47 = vpop.eup %8471 }
0x113f   :  { %v11456_v51 = vmul.f32 %v8472_v47, %v8470_v11 }
0x1141   :  { %8085 = vmatmul.mubr.f32.vlgmr.msra.gmra.mxu1 %v11456_v51  ;;  %v5334_v7 = vmul.f32 %v11456_v51, %v10549_v57  ;;  %v5333_v49 = vmul.f32 %v11456_v51, %v10552_v0  ;;  %v5337_v29 = vmul.f32 %v11456_v51, %v10566_v60  ;;  %v5335_v56 = vmul.f32 %v11456_v51, %v10563_v3 }
0x1142   :  { %5810 = vmatprep.mubr.f32.mxu1 %v13075_v35  ;;  %v5339_v21 = vmul.f32 %v11456_v51, %v10576_v54  ;;  %v5336_v8 = vmul.f32 %v11456_v51, %v10573_v41  ;;  %v5338_v24 = vmul.f32 %v11456_v51, %v13234_v9  ;;  %v5340_v25 = vmul.f32 %v11456_v51, %v13239_v16 }
0x1143   :  { %5343 = vadd.xlane.f32.xlu1 %v5334_v7  ;;  %5341 = vadd.xlane.f32.xlu0 %v5333_v49 }
0x1147   :  { %5349 = vadd.xlane.f32.xlu1 %v5337_v29  ;;  %5345 = vadd.xlane.f32.xlu0 %v5335_v56 }
0x114b   :  { %5353 = vadd.xlane.f32.xlu1 %v5339_v21  ;;  %5347 = vadd.xlane.f32.xlu0 %v5336_v8 }
0x114f   :  { %5351 = vadd.xlane.f32.xlu0 %v5338_v24 }
0x1153   :  { %5355 = vadd.xlane.f32.xlu0 %v5340_v25 }
0x11cc   :  { %v5342_v12 = vpop.xlane.xlu0 %5341  ;;  %v5344_v63 = vpop.xlane.xlu1 %5343 }
0x11cd   :  { %v5372_v53 = vrot.slane %v5344_v63, %v13245_v14  ;;  %v5368_v62 = vrot.slane %v5342_v12, %v13245_v14 }
0x11cf   :  { %v5397_v4 = vsel %vm3787_vm1, %v5372_v53, %v5368_v62 }
0x11d0   :  { %v5346_v55 = vpop.xlane.xlu0 %5345  ;;  %v5350_v45 = vpop.xlane.xlu1 %5349 }
0x11d1   :  { %v5376_v20 = vrot.slane %v5346_v55, %v13245_v14  ;;  %v5384_v30 = vrot.slane %v5350_v45, %v13245_v14 }
0x11d3   :  { %v5398_v2 = vsel %vm3789_vm2, %v5376_v20, %v5397_v4 }
0x11d4   :  { %v5348_v32 = vpop.xlane.xlu0 %5347  ;;  %v5354_v10 = vpop.xlane.xlu1 %5353 }
0x11d5   :  { %v5380_v38 = vrot.slane %v5348_v32, %v13245_v14  ;;  %v5392_v11 = vrot.slane %v5354_v10, %v13245_v14 }
0x11d7   :  { %v5399_v22 = vsel %vm3791_vm3, %v5380_v38, %v5398_v2 }
0x11d8   :  { %v5352_v17 = vpop.xlane.xlu0 %5351  ;;  %v5400_v48 = vsel %vm3793_vm4, %v5384_v30, %v5399_v22 }
0x11d9   :  { %v5388_v28 = vrot.slane %v5352_v17, %v13245_v14 }
0x11db   :  { %v5401_v36 = vsel %vm3795_vm5, %v5388_v28, %v5400_v48  ;;  %v11521_v28 = vld [vmem:[#allocation21 + $0x48] sm:$0xff]  ;;  %v11524_v48 = vld [vmem:[#allocation21 + $0x40] sm:$0xff] }
0x11dc   :  { %v5356_v47 = vpop.xlane.xlu0 %5355  ;;  %v5402_v49 = vsel %vm3797_vm6, %v5392_v11, %v5401_v36  ;;  %8100 = vmatpush3.msra.mxu0 %v11521_v28  ;;  %v11529_v36 = vld [vmem:[#allocation21 + $0x38] sm:$0xff]  ;;  %v11532_v11 = vld [vmem:[#allocation21 + $0x30] sm:$0xff] }
0x11dd   :  { %v5396_v7 = vrot.slane %v5356_v47, %v13245_v14  ;;  %8101 = vmatprep.subr.mxu0 %v13075_v35 }
0x11de   :  { %8102 = vmatpush3.msra.mxu0 %v11524_v48 }
0x11df   :  { %v5403_v29 = vsel %vm3799_vm7, %v5396_v7, %v5402_v49  ;;  %8103 = vmatprep.subr.mxu0 %v13075_v35  ;;  %v11537_v49 = vld [vmem:[#allocation21 + $0x28] sm:$0xff] }
0x11e0   :  { %v5405_v56 = vsel %vm3744_vm8, -1e+30, %v5403_v29  ;;  %8104 = vmatpush3.msra.mxu0 %v11529_v36  ;;  %v11540_v29 = vld [vmem:[#allocation21 + $0x20] sm:$0xff] }
0x11e1   :  { %v5406_v21 = vsel %vm3803_vm9, %v5405_v56, -inf  ;;  %8105 = vmatprep.subr.mxu0 %v13075_v35 }
0x11e2   :  { %v5407_v8 = vrot.slane %v5406_v21, 4  ;;  %8106 = vmatpush3.msra.mxu0 %v11532_v11 }
0x11e3   :  { %8107 = vmatprep.subr.mxu0 %v13075_v35 }
0x11e4   :  { %v5408_v24 = vmax.f32 %v5406_v21, %v5407_v8  ;;  %8108 = vmatpush3.msra.mxu0 %v11537_v49  ;;  %v11546_v8 = vld [vmem:[#allocation21 + $0x18] sm:$0xff] }
0x11e5   :  { %8109 = vmatprep.subr.mxu0 %v13075_v35 }
0x11e6   :  { %v5409_v25 = vrot.slane %v5408_v24, 2  ;;  %8110 = vmatpush3.msra.mxu0 %v11540_v29 }
0x11e7   :  { %8111 = vmatprep.subr.mxu0 %v13075_v35 }
0x11e8   :  { %v5410_v12 = vmax.f32 %v5408_v24, %v5409_v25  ;;  %8112 = vmatpush3.msra.mxu0 %v11546_v8 }
0x11e9   :  { %8113 = vmatprep.subr.mxu0 %v13075_v35 }
0x11ea   :  { %v5411_v63 = vrot.slane %v5410_v12, 1 }
0x11ec   :  { %v5412_v55 = vmax.f32 %v5410_v12, %v5411_v63  ;;  %v11552_v12 = vld [vmem:[#allocation21 + $0x10] sm:$0xff]  ;;  %v11555_v63 = vld [vmem:[#allocation21 + $0x8] sm:$0xff] }
0x11ed   :  { %8114 = vmatpush3.msra.mxu0 %v11552_v12 }
0x11ee   :  { %v5413_v53 = vsub.f32 %v5405_v56, %v5412_v55  ;;  %8115 = vmatprep.subr.mxu0 %v13075_v35 }
0x11ef   :  { %8116 = vmatpush3.msra.mxu0 %v11555_v63 }
0x11f0   :  { %v5414_v62 = vmul.f32 1.442695, %v5413_v53  ;;  %8117 = vmatprep.subr.mxu0 %v13075_v35 }
0x11f2   :  { %8473 = vpow2.f32 %v5414_v62  ;;  %v11562_v62 = vld [vmem:[#allocation21] sm:$0xff] }
0x11f3   :  { %8118 = vmatpush3.msra.mxu0 %v11562_v62 }
0x11ff   :  { %v8474_v20 = vpop.eup %8473 }
0x1200   :  { %v5416_v45 = vsel %vm3803_vm9, %v8474_v20, 0.0 }
0x1201   :  { %v5417_v32 = vrot.slane %v5416_v45, 4  ;;  %v11519_v4 = vpop.f32.mrf.mxu1 }
0x1203   :  { %v5418_v38 = vadd.f32 %v5417_v32, %v5416_v45  ;;  %v8086_v2 = vpop.f32.mrf.mxu1  ;;  %v11566_v45 = vld [vmem:[#allocation18 + $0x1e0] sm:$0xff]  ;;  %v11568_v32 = vld [vmem:[#allocation18 + $0x1f8] sm:$0xff] }
0x1204   :  { %v11574_v2 = vld [vmem:[#allocation18 + $0x1c0] sm:$0xff]  ;;  %5817 = vmatprep.subr.mxu0 %v11568_v32 }
0x1205   :  { %v5419_v22 = vrot.slane %v5418_v38, 2 }
0x1207   :  { %v5420_v30 = vadd.f32 %v5419_v22, %v5418_v38  ;;  %v11570_v38 = vld [vmem:[#allocation18 + $0x1c8] sm:$0xff] }
0x1209   :  { %v5421_v17 = vrot.slane %v5420_v30, 1 }
0x120b   :  { %v5422_v10 = vadd.f32 %v5421_v17, %v5420_v30  ;;  %v11579_v30 = vld [vmem:[#allocation18 + $0x1a8] sm:$0xff]  ;;  %v11583_v17 = vld [vmem:[#allocation18 + $0x1a0] sm:$0xff] }
0x120d   :  { %8475 = vrcp.f32 %v5422_v10  ;;  %v11586_v10 = vld [vmem:[#allocation18 + $0x188] sm:$0xff] }
0x121a   :  { %v8476_v47 = vpop.eup %8475 }
0x121b   :  { %v5424_v7 = vmul.f32 %v8476_v47, %v8474_v20  ;;  %v11564_v20 = vld [vmem:[#allocation18 + $0x1e8] sm:$0xff]  ;;  %v11589_v47 = vld [vmem:[#allocation18 + $0x180] sm:$0xff] }
0x121c   :  { %5746 = vmatprep.subr.mxu1 %v11564_v20 }
0x121d   :  { %v5435_v56 = vrot.slane %v5424_v7, %v13247_v26  ;;  %v5428_v21 = vrot.slane %v5424_v7, %v13248_v13  ;;  %v5456_v24 = vrot.slane %v5424_v7, %v13249_v40  ;;  %v5442_v25 = vrot.slane %v5424_v7, %v13250_v1  ;;  %5747 = vmatpush1.msra.mxu1 %v11566_v45 }
0x121e   :  { %v5470_v55 = vrot.slane %v5424_v7, %v13251_v33  ;;  %v5449_v53 = vrot.slane %v5424_v7, %v13252_v19  ;;  %v5463_v22 = vrot.slane %v5424_v7, %v13253_v15  ;;  %5748 = vmatprep.subr.mxu1 %v11570_v38 }
0x121f   :  { %5437 = vbcast.lane.b32.xlu0 %v5435_v56, 256  ;;  %5430 = vbcast.lane.b32.xlu1 %v5428_v21, 256  ;;  %v5477_v56 = vrot.slane %v5424_v7, %v13254_v37  ;;  %v11593_v21 = vld [vmem:[#allocation18 + $0x168] sm:$0xff] }
0x1220   :  { %5749 = vmatpush1.msra.mxu1 %v11574_v2  ;;  %v11605_v7 = vld [vmem:[#allocation18 + $0x128] sm:$0xff] }
0x1221   :  { %5750 = vmatprep.subr.mxu1 %v11579_v30  ;;  %13368 = vst [vmem:[#allocation49_spill] sm:$0xff] %v11605_v7 }
0x1222   :  { %5751 = vmatpush1.msra.mxu1 %v11583_v17 }
0x1223   :  { %5458 = vbcast.lane.b32.xlu0 %v5456_v24, 256  ;;  %5444 = vbcast.lane.b32.xlu1 %v5442_v25, 256  ;;  %v11596_v24 = vld [vmem:[#allocation18 + $0x160] sm:$0xff]  ;;  %v11599_v25 = vld [vmem:[#allocation18 + $0x148] sm:$0xff] }
0x1224   :  { %5752 = vmatprep.subr.mxu1 %v11586_v10 }
0x1225   :  { %5753 = vmatpush1.msra.mxu1 %v11589_v47 }
0x1226   :  { %5754 = vmatprep.subr.mxu1 %v11593_v21 }
0x1227   :  { %5472 = vbcast.lane.b32.xlu0 %v5470_v55, 256  ;;  %5451 = vbcast.lane.b32.xlu1 %v5449_v53, 256  ;;  %v11602_v55 = vld [vmem:[#allocation18 + $0x140] sm:$0xff] }
0x1228   :  { %13367 = vst [vmem:[#allocation40_spill] sm:$0xff] %v11602_v55  ;;  %5755 = vmatpush1.msra.mxu1 %v11596_v24  ;;  %v11608_v53 = vld [vmem:[#allocation18 + $0x120] sm:$0xff] }
0x1229   :  { %5756 = vmatprep.subr.mxu1 %v11599_v25  ;;  %13369 = vst [vmem:[#allocation50_spill] sm:$0xff] %v11608_v53 }
0x122a   :  { %5757 = vmatpush1.msra.mxu1 %v11602_v55 }
0x122b   :  { %5465 = vbcast.lane.b32.xlu1 %v5463_v22, 256  ;;  %v11611_v22 = vld [vmem:[#allocation18 + $0x108] sm:$0xff]  ;;  %5758 = vmatprep.subr.mxu1 %v11605_v7 }
0x122c   :  { %13370 = vst [vmem:[#allocation51_spill] sm:$0xff] %v11611_v22  ;;  %5759 = vmatpush1.msra.mxu1 %v11608_v53 }
0x122d   :  { %5760 = vmatprep.subr.mxu1 %v11611_v22 }
0x122f   :  { %5479 = vbcast.lane.b32.xlu1 %v5477_v56, 256  ;;  %v11614_v56 = vld [vmem:[#allocation18 + $0x100] sm:$0xff] }
0x1230   :  { %13371 = vst [vmem:[#allocation52_spill] sm:$0xff] %v11614_v56  ;;  %5761 = vmatpush1.msra.mxu1 %v11614_v56 }
0x1291   :  { %v5438_v6 = vpop.permute.xlu0 %5437  ;;  %v5431_v37 = vpop.permute.xlu1 %5430 }
0x1292   :  { %v5490_v15 = vmul.f32 %v5438_v6, %v13255_v52  ;;  %v5489_v19 = vmul.f32 %v5431_v37, %v13256_v59 }
0x1294   :  { %v5497_v13 = vadd.f32 %v5490_v15, %v5489_v19  ;;  %v11627_v15 = vld [vmem:[#allocation18 + $0x1f0] sm:$0xff] }
0x1295   :  { %v5445_v33 = vpop.permute.xlu1 %5444  ;;  %v5459_v40 = vpop.permute.xlu0 %5458  ;;  %13372 = vst [vmem:[#allocation53_spill] sm:$0xff] %v11627_v15 }
0x1296   :  { %v5491_v1 = vmul.f32 %v5445_v33, %v13257_v44  ;;  %v5493_v53 = vmul.f32 %v5459_v40, %v13259_v5  ;;  %v11644_v40 = vld [vmem:[#allocation18 + $0x190] sm:$0xff]  ;;  %v11767_v5 = vld [vmem:[#allocation20 + $0x1f8] sm:$0xff] }
0x1297   :  { %13378 = vst [vmem:[#allocation63_spill] sm:$0xff] %v11644_v40  ;;  %13405 = vst [vmem:[#allocation101_spill] sm:$0xff] %v11767_v5  ;;  %v11778_v44 = vld [vmem:[#allocation20 + $0x1f0] sm:$0xff] }
0x1298   :  { %v5498_v39 = vadd.f32 %v5497_v13, %v5491_v1  ;;  %v11629_v13 = vld [vmem:[#allocation18 + $0x1d8] sm:$0xff]  ;;  %13407 = vst [vmem:[#allocation105_spill] sm:$0xff] %v11778_v44 }
0x1299   :  { %v5452_v26 = vpop.permute.xlu1 %5451  ;;  %v5473_v16 = vpop.permute.xlu0 %5472  ;;  %13373 = vst [vmem:[#allocation54_spill] sm:$0xff] %v11629_v13  ;;  %v11647_v1 = vld [vmem:[#allocation18 + $0x178] sm:$0xff] }
0x129a   :  { %v5492_v14 = vmul.f32 %v5452_v26, %v13258_v61  ;;  %v5495_v6 = vmul.f32 %v5473_v16, %v13261_v34  ;;  %v11631_v26 = vld [vmem:[#allocation18 + $0x1d0] sm:$0xff]  ;;  %13379 = vst [vmem:[#allocation61_spill] sm:$0xff] %v11647_v1  ;;  %v11755_v34 = vld [vmem:[#allocation18 + $0x18] sm:$0xff]  ;;  %v11776_v61 = vld [vmem:[#allocation20 + $0x1e0] sm:$0xff] }
0x129b   :  { %13374 = vst [vmem:[#allocation60_spill] sm:$0xff] %v11631_v26  ;;  %v11638_v16 = vld [vmem:[#allocation18 + $0x1b0] sm:$0xff]  ;;  %13402 = vst [vmem:[#allocation98_spill] sm:$0xff] %v11755_v34 }
0x129c   :  { %v5499_v22 = vadd.f32 %v5498_v39, %v5492_v14  ;;  %v11634_v14 = vld [vmem:[#allocation18 + $0x1b8] sm:$0xff]  ;;  %13376 = vst [vmem:[#allocation104_spill] sm:$0xff] %v11638_v16  ;;  %13406 = vst [vmem:[#allocation103_spill] sm:$0xff] %v11776_v61 }
0x129d   :  { %v5466_v56 = vpop.permute.xlu1 %5465  ;;  %13375 = vst [vmem:[#allocation102_spill] sm:$0xff] %v11634_v14  ;;  %v11641_v39 = vld [vmem:[#allocation18 + $0x198] sm:$0xff] }
0x129e   :  { %v5500_v7 = vadd.f32 %v5499_v22, %v5493_v53  ;;  %v5494_v55 = vmul.f32 %v5466_v56, %v13260_v46  ;;  %13377 = vst [vmem:[#allocation62_spill] sm:$0xff] %v11641_v39  ;;  %v11662_v53 = vld [vmem:[#allocation18 + $0x130] sm:$0xff]  ;;  %v11665_v22 = vld [vmem:[#allocation18 + $0x118] sm:$0xff] }
0x129f   :  { %13384 = vst [vmem:[#allocation80_spill] sm:$0xff] %v11662_v53  ;;  %13385 = vst [vmem:[#allocation82_spill] sm:$0xff] %v11665_v22  ;;  %v11668_v56 = vld [vmem:[#allocation18 + $0x110] sm:$0xff] }
0x12a0   :  { %v5501_v37 = vadd.f32 %v5500_v7, %v5494_v55  ;;  %v11656_v55 = vld [vmem:[#allocation18 + $0x150] sm:$0xff]  ;;  %v11659_v7 = vld [vmem:[#allocation18 + $0x138] sm:$0xff]  ;;  %13386 = vst [vmem:[#allocation83_spill] sm:$0xff] %v11668_v56 }
0x12a1   :  { %v5480_v59 = vpop.permute.xlu1 %5479  ;;  %13382 = vst [vmem:[#allocation79_spill] sm:$0xff] %v11656_v55  ;;  %13383 = vst [vmem:[#allocation77_spill] sm:$0xff] %v11659_v7  ;;  %v11761_v46 = vld [vmem:[#allocation18 + $0x10] sm:$0xff] }
0x12a2   :  { %v5502_v52 = vadd.f32 %v5501_v37, %v5495_v6  ;;  %v5496_v33 = vmul.f32 %v5480_v59, %v13262_v18  ;;  %v11653_v59 = vld [vmem:[#allocation18 + $0x158] sm:$0xff]  ;;  %v11673_v6 = vld [vmem:[#allocation18 + $0xe8] sm:$0xff]  ;;  %v11749_v18 = vld [vmem:[#allocation18 + $0x30] sm:$0xff]  ;;  %13404 = vst [vmem:[#allocation100_spill] sm:$0xff] %v11761_v46 }
0x12a3   :  { %13381 = vst [vmem:[#allocation78_spill] sm:$0xff] %v11653_v59  ;;  %v11675_v37 = vld [vmem:[#allocation18 + $0xf8] sm:$0xff]  ;;  %5762 = vmatprep.subr.mxu1 %v11673_v6  ;;  %13400 = vst [vmem:[#allocation96_spill] sm:$0xff] %v11749_v18 }
0x12a4   :  { %v5503_v19 = vadd.f32 %v5502_v52, %v5496_v33  ;;  %v11650_v52 = vld [vmem:[#allocation18 + $0x170] sm:$0xff]  ;;  %13387 = vst [vmem:[#allocation81_spill] sm:$0xff] %v11675_v37  ;;  %v11679_v33 = vld [vmem:[#allocation18 + $0xe0] sm:$0xff] }
0x12a5   :  { %13380 = vst [vmem:[#allocation76_spill] sm:$0xff] %v11650_v52  ;;  %5763 = vmatpush1.msra.mxu1 %v11679_v33 }
0x12a6   :  { %8120 = vmatmul.mubr.f32.vlgmr.msra.gmra.mxu0 %v5503_v19  ;;  %v11681_v19 = vld [vmem:[#allocation18 + $0xf0] sm:$0xff] }
0x12a7   :  { %5818 = vmatpush1.msra.mxu0 %v11627_v15  ;;  %5881 = vmatprep.mubr.f32.mxu0 %v13075_v35  ;;  %13388 = vst [vmem:[#allocation84_spill] sm:$0xff] %v11681_v19  ;;  %v11743_v15 = vld [vmem:[#allocation18 + $0x38] sm:$0xff] }
0x12a8   :  { %5819 = vmatprep.subr.mxu0 %v11629_v13  ;;  %v11737_v13 = vld [vmem:[#allocation18 + $0x50] sm:$0xff]  ;;  %13399 = vst [vmem:[#allocation95_spill] sm:$0xff] %v11743_v15 }
0x12a9   :  { %5820 = vmatpush1.msra.mxu0 %v11631_v26  ;;  %v11735_v26 = vld [vmem:[#allocation18 + $0x40] sm:$0xff]  ;;  %13398 = vst [vmem:[#allocation94_spill] sm:$0xff] %v11737_v13 }
0x12aa   :  { %5821 = vmatprep.subr.mxu0 %v11634_v14  ;;  %v11729_v14 = vld [vmem:[#allocation18 + $0x48] sm:$0xff] }
0x12ab   :  { %5822 = vmatpush1.msra.mxu0 %v11638_v16  ;;  %v11725_v16 = vld [vmem:[#allocation18 + $0x70] sm:$0xff] }
0x12ac   :  { %5823 = vmatprep.subr.mxu0 %v11641_v39  ;;  %v11719_v39 = vld [vmem:[#allocation18 + $0x78] sm:$0xff]  ;;  %13396 = vst [vmem:[#allocation92_spill] sm:$0xff] %v11725_v16 }
0x12ad   :  { %5824 = vmatpush1.msra.mxu0 %v11644_v40  ;;  %v11717_v40 = vld [vmem:[#allocation18 + $0x68] sm:$0xff]  ;;  %13395 = vst [vmem:[#allocation91_spill] sm:$0xff] %v11719_v39 }
0x12ae   :  { %5825 = vmatprep.subr.mxu0 %v11647_v1  ;;  %v11711_v1 = vld [vmem:[#allocation18 + $0x80] sm:$0xff] }
0x12af   :  { %5826 = vmatpush1.msra.mxu0 %v11650_v52  ;;  %v11709_v52 = vld [vmem:[#allocation18 + $0x98] sm:$0xff] }
0x12b0   :  { %5827 = vmatprep.subr.mxu0 %v11653_v59  ;;  %v11703_v59 = vld [vmem:[#allocation18 + $0xb0] sm:$0xff]  ;;  %13393 = vst [vmem:[#allocation89_spill] sm:$0xff] %v11709_v52 }
0x12b1   :  { %5828 = vmatpush1.msra.mxu0 %v11656_v55  ;;  %v11699_v55 = vld [vmem:[#allocation18 + $0xb8] sm:$0xff]  ;;  %13392 = vst [vmem:[#allocation55_spill] sm:$0xff] %v11703_v59 }
0x12b2   :  { %5829 = vmatprep.subr.mxu0 %v11659_v7  ;;  %v11693_v7 = vld [vmem:[#allocation18 + $0xd0] sm:$0xff]  ;;  %13391 = vst [vmem:[#allocation85_spill] sm:$0xff] %v11699_v55 }
0x12b3   :  { %5830 = vmatpush1.msra.mxu0 %v11662_v53  ;;  %v11685_v53 = vld [vmem:[#allocation18 + $0xc8] sm:$0xff]  ;;  %13390 = vst [vmem:[#allocation87_spill] sm:$0xff] %v11693_v7 }
0x12b4   :  { %5831 = vmatprep.subr.mxu0 %v11665_v22  ;;  %v11687_v22 = vld [vmem:[#allocation18 + $0xd8] sm:$0xff]  ;;  %5764 = vmatprep.subr.mxu1 %v11685_v53 }
0x12b5   :  { %5832 = vmatpush1.msra.mxu0 %v11668_v56  ;;  %13389 = vst [vmem:[#allocation86_spill] sm:$0xff] %v11687_v22  ;;  %v11691_v56 = vld [vmem:[#allocation18 + $0xc0] sm:$0xff] }
0x12b6   :  { %5833 = vmatprep.subr.mxu0 %v11675_v37  ;;  %v11695_v37 = vld [vmem:[#allocation18 + $0xa8] sm:$0xff]  ;;  %5765 = vmatpush1.msra.mxu1 %v11691_v56 }
0x12b7   :  { %5834 = vmatpush1.msra.mxu0 %v11681_v19  ;;  %v11701_v19 = vld [vmem:[#allocation18 + $0xa0] sm:$0xff]  ;;  %5766 = vmatprep.subr.mxu1 %v11695_v37 }
0x12b8   :  { %5835 = vmatprep.subr.mxu0 %v11687_v22  ;;  %v11707_v22 = vld [vmem:[#allocation18 + $0x88] sm:$0xff]  ;;  %5767 = vmatpush1.msra.mxu1 %v11701_v19 }
0x12b9   :  { %5836 = vmatpush1.msra.mxu0 %v11693_v7  ;;  %v11715_v7 = vld [vmem:[#allocation18 + $0x90] sm:$0xff]  ;;  %5768 = vmatprep.subr.mxu1 %v11707_v22 }
0x12ba   :  { %5837 = vmatprep.subr.mxu0 %v11699_v55  ;;  %13394 = vst [vmem:[#allocation90_spill] sm:$0xff] %v11715_v7  ;;  %v11723_v55 = vld [vmem:[#allocation18 + $0x60] sm:$0xff]  ;;  %5769 = vmatpush1.msra.mxu1 %v11711_v1 }
0x12bb   :  { %5838 = vmatpush1.msra.mxu0 %v11703_v59  ;;  %v11731_v59 = vld [vmem:[#allocation18 + $0x58] sm:$0xff]  ;;  %5770 = vmatprep.subr.mxu1 %v11717_v40 }
0x12bc   :  { %5839 = vmatprep.subr.mxu0 %v11709_v52  ;;  %13397 = vst [vmem:[#allocation93_spill] sm:$0xff] %v11731_v59  ;;  %5771 = vmatpush1.msra.mxu1 %v11723_v55  ;;  %v11741_v52 = vld [vmem:[#allocation18 + $0x28] sm:$0xff] }
0x12bd   :  { %5840 = vmatpush1.msra.mxu0 %v11715_v7  ;;  %5772 = vmatprep.subr.mxu1 %v11729_v14  ;;  %v11747_v7 = vld [vmem:[#allocation18 + $0x20] sm:$0xff] }
0x12be   :  { %5841 = vmatprep.subr.mxu0 %v11719_v39  ;;  %5773 = vmatpush1.msra.mxu1 %v11735_v26  ;;  %v11753_v39 = vld [vmem:[#allocation18 + $0x8] sm:$0xff] }
0x12bf   :  { %5842 = vmatpush1.msra.mxu0 %v11725_v16  ;;  %13401 = vst [vmem:[#allocation97_spill] sm:$0xff] %v11753_v39  ;;  %5774 = vmatprep.subr.mxu1 %v11741_v52  ;;  %v11759_v16 = vld [vmem:[#allocation18] sm:$0xff] }
0x12c0   :  { %5843 = vmatprep.subr.mxu0 %v11731_v59  ;;  %13403 = vst [vmem:[#allocation99_spill] sm:$0xff] %v11759_v16  ;;  %5775 = vmatpush1.msra.mxu1 %v11747_v7  ;;  %v11765_v59 = vld [vmem:[#allocation20 + $0x1e8] sm:$0xff] }
0x12c1   :  { %5844 = vmatpush1.msra.mxu0 %v11737_v13  ;;  %5776 = vmatprep.subr.mxu1 %v11753_v39 }
0x12c2   :  { %5845 = vmatprep.subr.mxu0 %v11743_v15  ;;  %5777 = vmatpush1.msra.mxu1 %v11759_v16  ;;  %v11784_v16 = vld [vmem:[#allocation20 + $0x1d8] sm:$0xff] }
0x12c3   :  { %5846 = vmatpush1.msra.mxu0 %v11749_v18  ;;  %5956 = vmatprep.subr.mxu1 %v11765_v59  ;;  %13410 = vst [vmem:[#allocation108_spill] sm:$0xff] %v11784_v16 }
0x12c4   :  { %5847 = vmatprep.subr.mxu0 %v11755_v34  ;;  %v11782_v34 = vld [vmem:[#allocation20 + $0x1c8] sm:$0xff] }
0x12c5   :  { %5848 = vmatpush1.msra.mxu0 %v11761_v46  ;;  %13409 = vst [vmem:[#allocation107_spill] sm:$0xff] %v11782_v34  ;;  %v11790_v46 = vld [vmem:[#allocation20 + $0x1d0] sm:$0xff] }
0x12c6   :  { %6027 = vmatprep.subr.mxu0 %v11767_v5  ;;  %v11788_v5 = vld [vmem:[#allocation20 + $0x1c0] sm:$0xff]  ;;  %13412 = vst [vmem:[#allocation111_spill] sm:$0xff] %v11790_v46 }
0x12c7   :  { %13411 = vst [vmem:[#allocation110_spill] sm:$0xff] %v11788_v5 }
0x1366   :  { %v5672_v15 = vpop.f32.mrf.mxu0 }
0x1367   :  { %v5673_v13 = vadd.f32 %v5672_v15, %v11519_v4  ;;  %v11796_v4 = vld [vmem:[#allocation20 + $0x1b8] sm:$0xff]  ;;  %v11800_v15 = vld [vmem:[#allocation20 + $0x1a0] sm:$0xff] }
0x1368   :  { %v8121_v18 = vpop.f32.mrf.mxu0  ;;  %13414 = vst [vmem:[#allocation113_spill] sm:$0xff] %v11796_v4  ;;  %13415 = vst [vmem:[#allocation114_spill] sm:$0xff] %v11800_v15 }
0x1369   :  { %8477 = vtanh.f32 %v5673_v13  ;;  %v11794_v18 = vld [vmem:[#allocation20 + $0x1a8] sm:$0xff]  ;;  %v11802_v13 = vld [vmem:[#allocation20 + $0x1b0] sm:$0xff] }
0x136a   :  { %13413 = vst [vmem:[#allocation112_spill] sm:$0xff] %v11794_v18  ;;  %13416 = vst [vmem:[#allocation115_spill] sm:$0xff] %v11802_v13 }
0x1376   :  { %v11780_v39 = vpop.eup %8477 }
0x1377   :  { %13408 = vst [vmem:[#allocation106_spill] sm:$0xff] %v11780_v39  ;;  %5811 = vmatmul.mubr.f32.vlgmr.msra.gmra.mxu1 %v11780_v39  ;;  %5882 = vmatmul.mubr.f32.vlgmr.msra.gmra.mxu0 %v11780_v39  ;;  %v11806_v39 = vld [vmem:[#allocation20 + $0x188] sm:$0xff] }
0x1378   :  { %5957 = vmatpush1.msra.mxu1 %v11776_v61  ;;  %6028 = vmatpush1.msra.mxu0 %v11778_v44  ;;  %13417 = vst [vmem:[#allocation116_spill] sm:$0xff] %v11806_v39  ;;  %v11808_v61 = vld [vmem:[#allocation20 + $0x198] sm:$0xff]  ;;  %v11812_v44 = vld [vmem:[#allocation20 + $0x180] sm:$0xff] }
0x1379   :  { %5958 = vmatprep.subr.mxu1 %v11782_v34  ;;  %6029 = vmatprep.subr.mxu0 %v11784_v16  ;;  %13418 = vst [vmem:[#allocation117_spill] sm:$0xff] %v11808_v61  ;;  %13419 = vst [vmem:[#allocation118_spill] sm:$0xff] %v11812_v44  ;;  %v11814_v34 = vld [vmem:[#allocation20 + $0x190] sm:$0xff]  ;;  %v11818_v16 = vld [vmem:[#allocation20 + $0x168] sm:$0xff] }
0x137a   :  { %5959 = vmatpush1.msra.mxu1 %v11788_v5  ;;  %6030 = vmatpush1.msra.mxu0 %v11790_v46  ;;  %13420 = vst [vmem:[#allocation119_spill] sm:$0xff] %v11814_v34  ;;  %13421 = vst [vmem:[#allocation120_spill] sm:$0xff] %v11818_v16  ;;  %v11820_v5 = vld [vmem:[#allocation20 + $0x178] sm:$0xff]  ;;  %v11824_v46 = vld [vmem:[#allocation20 + $0x160] sm:$0xff] }
0x137b   :  { %5960 = vmatprep.subr.mxu1 %v11794_v18  ;;  %6031 = vmatprep.subr.mxu0 %v11796_v4  ;;  %13422 = vst [vmem:[#allocation121_spill] sm:$0xff] %v11820_v5  ;;  %13423 = vst [vmem:[#allocation122_spill] sm:$0xff] %v11824_v46  ;;  %v11826_v18 = vld [vmem:[#allocation20 + $0x170] sm:$0xff]  ;;  %v11830_v4 = vld [vmem:[#allocation20 + $0x148] sm:$0xff] }
0x137c   :  { %5961 = vmatpush1.msra.mxu1 %v11800_v15  ;;  %6032 = vmatpush1.msra.mxu0 %v11802_v13  ;;  %13424 = vst [vmem:[#allocation123_spill] sm:$0xff] %v11826_v18  ;;  %13425 = vst [vmem:[#allocation124_spill] sm:$0xff] %v11830_v4  ;;  %v11832_v15 = vld [vmem:[#allocation20 + $0x158] sm:$0xff]  ;;  %v11836_v13 = vld [vmem:[#allocation20 + $0x140] sm:$0xff] }
0x137d   :  { %5962 = vmatprep.subr.mxu1 %v11806_v39  ;;  %6033 = vmatprep.subr.mxu0 %v11808_v61  ;;  %13426 = vst [vmem:[#allocation125_spill] sm:$0xff] %v11832_v15  ;;  %13427 = vst [vmem:[#allocation126_spill] sm:$0xff] %v11836_v13  ;;  %v11838_v39 = vld [vmem:[#allocation20 + $0x150] sm:$0xff]  ;;  %v11842_v61 = vld [vmem:[#allocation20 + $0x128] sm:$0xff] }
0x137e   :  { %5963 = vmatpush1.msra.mxu1 %v11812_v44  ;;  %6034 = vmatpush1.msra.mxu0 %v11814_v34  ;;  %13428 = vst [vmem:[#allocation127_spill] sm:$0xff] %v11838_v39  ;;  %13429 = vst [vmem:[#allocation128_spill] sm:$0xff] %v11842_v61  ;;  %v11844_v44 = vld [vmem:[#allocation20 + $0x138] sm:$0xff]  ;;  %v11848_v34 = vld [vmem:[#allocation20 + $0x120] sm:$0xff] }
0x137f   :  { %5964 = vmatprep.subr.mxu1 %v11818_v16  ;;  %6035 = vmatprep.subr.mxu0 %v11820_v5  ;;  %13430 = vst [vmem:[#allocation129_spill] sm:$0xff] %v11844_v44  ;;  %13431 = vst [vmem:[#allocation130_spill] sm:$0xff] %v11848_v34  ;;  %v11850_v16 = vld [vmem:[#allocation20 + $0x130] sm:$0xff]  ;;  %v11854_v5 = vld [vmem:[#allocation20 + $0x108] sm:$0xff] }
0x1380   :  { %5965 = vmatpush1.msra.mxu1 %v11824_v46  ;;  %6036 = vmatpush1.msra.mxu0 %v11826_v18  ;;  %13432 = vst [vmem:[#allocation131_spill] sm:$0xff] %v11850_v16  ;;  %13433 = vst [vmem:[#allocation132_spill] sm:$0xff] %v11854_v5  ;;  %v11856_v46 = vld [vmem:[#allocation20 + $0x118] sm:$0xff]  ;;  %v11860_v18 = vld [vmem:[#allocation20 + $0x100] sm:$0xff] }
0x1381   :  { %5966 = vmatprep.subr.mxu1 %v11830_v4  ;;  %6037 = vmatprep.subr.mxu0 %v11832_v15  ;;  %13434 = vst [vmem:[#allocation133_spill] sm:$0xff] %v11856_v46  ;;  %13435 = vst [vmem:[#allocation134_spill] sm:$0xff] %v11860_v18  ;;  %v11862_v4 = vld [vmem:[#allocation20 + $0x110] sm:$0xff]  ;;  %v11866_v15 = vld [vmem:[#allocation20 + $0xe8] sm:$0xff] }
0x1382   :  { %5967 = vmatpush1.msra.mxu1 %v11836_v13  ;;  %6038 = vmatpush1.msra.mxu0 %v11838_v39  ;;  %13436 = vst [vmem:[#allocation135_spill] sm:$0xff] %v11862_v4  ;;  %13437 = vst [vmem:[#allocation136_spill] sm:$0xff] %v11866_v15  ;;  %v11868_v13 = vld [vmem:[#allocation20 + $0xf8] sm:$0xff]  ;;  %v11872_v39 = vld [vmem:[#allocation20 + $0xe0] sm:$0xff] }
0x1383   :  { %5968 = vmatprep.subr.mxu1 %v11842_v61  ;;  %6039 = vmatprep.subr.mxu0 %v11844_v44  ;;  %13438 = vst [vmem:[#allocation137_spill] sm:$0xff] %v11868_v13  ;;  %13439 = vst [vmem:[#allocation138_spill] sm:$0xff] %v11872_v39  ;;  %v11874_v61 = vld [vmem:[#allocation20 + $0xf0] sm:$0xff]  ;;  %v11878_v44 = vld [vmem:[#allocation20 + $0xc8] sm:$0xff] }
0x1384   :  { %5969 = vmatpush1.msra.mxu1 %v11848_v34  ;;  %6040 = vmatpush1.msra.mxu0 %v11850_v16  ;;  %13440 = vst [vmem:[#allocation139_spill] sm:$0xff] %v11874_v61  ;;  %13441 = vst [vmem:[#allocation140_spill] sm:$0xff] %v11878_v44  ;;  %v11880_v34 = vld [vmem:[#allocation20 + $0xd8] sm:$0xff]  ;;  %v11884_v16 = vld [vmem:[#allocation20 + $0xc0] sm:$0xff] }
0x1385   :  { %5970 = vmatprep.subr.mxu1 %v11854_v5  ;;  %6041 = vmatprep.subr.mxu0 %v11856_v46  ;;  %13442 = vst [vmem:[#allocation141_spill] sm:$0xff] %v11880_v34  ;;  %13443 = vst [vmem:[#allocation142_spill] sm:$0xff] %v11884_v16  ;;  %v11886_v5 = vld [vmem:[#allocation20 + $0xd0] sm:$0xff]  ;;  %v11890_v46 = vld [vmem:[#allocation20 + $0xa8] sm:$0xff] }
0x1386   :  { %5971 = vmatpush1.msra.mxu1 %v11860_v18  ;;  %6042 = vmatpush1.msra.mxu0 %v11862_v4  ;;  %13444 = vst [vmem:[#allocation143_spill] sm:$0xff] %v11886_v5  ;;  %13445 = vst [vmem:[#allocation144_spill] sm:$0xff] %v11890_v46  ;;  %v11892_v18 = vld [vmem:[#allocation20 + $0xb8] sm:$0xff]  ;;  %v11896_v4 = vld [vmem:[#allocation20 + $0xa0] sm:$0xff] }
0x1387   :  { %5972 = vmatprep.subr.mxu1 %v11866_v15  ;;  %6043 = vmatprep.subr.mxu0 %v11868_v13  ;;  %13446 = vst [vmem:[#allocation145_spill] sm:$0xff] %v11892_v18  ;;  %13447 = vst [vmem:[#allocation146_spill] sm:$0xff] %v11896_v4  ;;  %v11898_v15 = vld [vmem:[#allocation20 + $0xb0] sm:$0xff]  ;;  %v11902_v13 = vld [vmem:[#allocation20 + $0x88] sm:$0xff] }
0x1388   :  { %5973 = vmatpush1.msra.mxu1 %v11872_v39  ;;  %6044 = vmatpush1.msra.mxu0 %v11874_v61  ;;  %13448 = vst [vmem:[#allocation147_spill] sm:$0xff] %v11898_v15  ;;  %13449 = vst [vmem:[#allocation148_spill] sm:$0xff] %v11902_v13  ;;  %v11904_v39 = vld [vmem:[#allocation20 + $0x98] sm:$0xff]  ;;  %v11908_v61 = vld [vmem:[#allocation20 + $0x80] sm:$0xff] }
0x1389   :  { %5974 = vmatprep.subr.mxu1 %v11878_v44  ;;  %6045 = vmatprep.subr.mxu0 %v11880_v34  ;;  %13450 = vst [vmem:[#allocation149_spill] sm:$0xff] %v11904_v39  ;;  %13451 = vst [vmem:[#allocation150_spill] sm:$0xff] %v11908_v61  ;;  %v11910_v44 = vld [vmem:[#allocation20 + $0x90] sm:$0xff]  ;;  %v11914_v34 = vld [vmem:[#allocation20 + $0x68] sm:$0xff] }
0x138a   :  { %5975 = vmatpush1.msra.mxu1 %v11884_v16  ;;  %6046 = vmatpush1.msra.mxu0 %v11886_v5  ;;  %13452 = vst [vmem:[#allocation151_spill] sm:$0xff] %v11910_v44  ;;  %13453 = vst [vmem:[#allocation152_spill] sm:$0xff] %v11914_v34  ;;  %v11916_v16 = vld [vmem:[#allocation20 + $0x78] sm:$0xff]  ;;  %v11920_v5 = vld [vmem:[#allocation20 + $0x60] sm:$0xff] }
0x138b   :  { %5976 = vmatprep.subr.mxu1 %v11890_v46  ;;  %6047 = vmatprep.subr.mxu0 %v11892_v18  ;;  %13454 = vst [vmem:[#allocation153_spill] sm:$0xff] %v11916_v16  ;;  %13455 = vst [vmem:[#allocation154_spill] sm:$0xff] %v11920_v5  ;;  %v11922_v46 = vld [vmem:[#allocation20 + $0x70] sm:$0xff]  ;;  %v11926_v18 = vld [vmem:[#allocation20 + $0x48] sm:$0xff] }
0x138c   :  { %5977 = vmatpush1.msra.mxu1 %v11896_v4  ;;  %6048 = vmatpush1.msra.mxu0 %v11898_v15  ;;  %13456 = vst [vmem:[#allocation155_spill] sm:$0xff] %v11922_v46  ;;  %v11928_v4 = vld [vmem:[#allocation20 + $0x58] sm:$0xff]  ;;  %v11932_v15 = vld [vmem:[#allocation20 + $0x40] sm:$0xff] }
0x138d   :  { %5978 = vmatprep.subr.mxu1 %v11902_v13  ;;  %6049 = vmatprep.subr.mxu0 %v11904_v39  ;;  %13457 = vst [vmem:[#allocation156_spill] sm:$0xff] %v11928_v4  ;;  %v11934_v13 = vld [vmem:[#allocation20 + $0x50] sm:$0xff]  ;;  %v11938_v39 = vld [vmem:[#allocation20 + $0x28] sm:$0xff] }
0x138e   :  { %5979 = vmatpush1.msra.mxu1 %v11908_v61  ;;  %6050 = vmatpush1.msra.mxu0 %v11910_v44  ;;  %v11940_v61 = vld [vmem:[#allocation20 + $0x38] sm:$0xff]  ;;  %v11944_v44 = vld [vmem:[#allocation20 + $0x20] sm:$0xff] }
0x138f   :  { %5980 = vmatprep.subr.mxu1 %v11914_v34  ;;  %6051 = vmatprep.subr.mxu0 %v11916_v16  ;;  %v11946_v34 = vld [vmem:[#allocation20 + $0x30] sm:$0xff]  ;;  %v11950_v16 = vld [vmem:[#allocation20 + $0x8] sm:$0xff] }
0x1390   :  { %5981 = vmatpush1.msra.mxu1 %v11920_v5  ;;  %6052 = vmatpush1.msra.mxu0 %v11922_v46  ;;  %13458 = vst [vmem:[#allocation157_spill] sm:$0xff] %v11950_v16  ;;  %v11952_v5 = vld [vmem:[#allocation20 + $0x18] sm:$0xff]  ;;  %v11956_v46 = vld [vmem:[#allocation20] sm:$0xff] }
0x1391   :  { %5982 = vmatprep.subr.mxu1 %v11926_v18  ;;  %6053 = vmatprep.subr.mxu0 %v11928_v4  ;;  %13459 = vst [vmem:[#allocation158_spill] sm:$0xff] %v11952_v5  ;;  %13460 = vst [vmem:[#allocation159_spill] sm:$0xff] %v11956_v46  ;;  %v11960_v4 = vld [vmem:[#allocation20 + $0x10] sm:$0xff] }
0x1392   :  { %5983 = vmatpush1.msra.mxu1 %v11932_v15  ;;  %6054 = vmatpush1.msra.mxu0 %v11934_v13  ;;  %13461 = vst [vmem:[#allocation160_spill] sm:$0xff] %v11960_v4 }
0x1393   :  { %5984 = vmatprep.subr.mxu1 %v11938_v39  ;;  %6055 = vmatprep.subr.mxu0 %v11940_v61 }
0x1394   :  { %5985 = vmatpush1.msra.mxu1 %v11944_v44  ;;  %6056 = vmatpush1.msra.mxu0 %v11946_v34 }
0x1395   :  { %5986 = vmatprep.subr.mxu1 %v11950_v16  ;;  %6057 = vmatprep.subr.mxu0 %v11952_v5 }
0x1396   :  { %5987 = vmatpush1.msra.mxu1 %v11956_v46  ;;  %6020 = vmatprep.mubr.f32.mxu1 %v13075_v35 }
0x1397   :  { %6058 = vmatpush1.msra.mxu0 %v11960_v4  ;;  %6091 = vmatprep.mubr.f32.mxu0 %v13075_v35 }
0x1398   :  { %6021 = vmatmul.mubr.f32.vlgmr.msra.gmra.mxu1 %v11456_v51  ;;  %6092 = vmatmul.mubr.f32.vlgmr.msra.gmra.mxu0 %v11456_v51  ;;  %v12008_v51 = vld [vmem:[#allocation23 + $0x78] sm:$0xff] }
0x1399   :  { %8122 = vmatprep.subr.mxu1 %v13075_v35  ;;  %8154 = vmatprep.mubr.msk.f32.mxu1 %vm8827_vm0, %v13075_v35  ;;  %13462 = vst [vmem:[#allocation161_spill] sm:$0xff] %v12008_v51 }
0x139a   :  { %8157 = vmatprep.subr.mxu0 %v13075_v35  ;;  %8189 = vmatprep.mubr.msk.f32.mxu0 %vm8827_vm0, %v13075_v35 }
0x139b   :  { %8158 = vmatpush3.msra.mxu0 %v11476_v31  ;;  %8123 = vmatpush3.msra.mxu1 %v12008_v51  ;;  %v12012_v31 = vld [vmem:[#allocation23 + $0x70] sm:$0xff] }
0x139c   :  { %8159 = vmatprep.subr.mxu0 %v13075_v35  ;;  %8124 = vmatprep.subr.mxu1 %v13075_v35  ;;  %13463 = vst [vmem:[#allocation162_spill] sm:$0xff] %v12012_v31 }
0x139d   :  { %8160 = vmatpush3.msra.mxu0 %v11478_v43  ;;  %8125 = vmatpush3.msra.mxu1 %v12012_v31  ;;  %v12016_v43 = vld [vmem:[#allocation23 + $0x68] sm:$0xff] }
0x139e   :  { %8161 = vmatprep.subr.mxu0 %v13075_v35  ;;  %8126 = vmatprep.subr.mxu1 %v13075_v35  ;;  %13464 = vst [vmem:[#allocation163_spill] sm:$0xff] %v12016_v43 }
0x139f   :  { %8162 = vmatpush3.msra.mxu0 %v11482_v23  ;;  %8127 = vmatpush3.msra.mxu1 %v12016_v43  ;;  %v12020_v23 = vld [vmem:[#allocation23 + $0x60] sm:$0xff] }
0x13a0   :  { %8163 = vmatprep.subr.mxu0 %v13075_v35  ;;  %8128 = vmatprep.subr.mxu1 %v13075_v35  ;;  %13465 = vst [vmem:[#allocation164_spill] sm:$0xff] %v12020_v23 }
0x13a1   :  { %8164 = vmatpush3.msra.mxu0 %v11486_v42  ;;  %8129 = vmatpush3.msra.mxu1 %v12020_v23  ;;  %v12024_v42 = vld [vmem:[#allocation23 + $0x58] sm:$0xff] }
0x13a2   :  { %8165 = vmatprep.subr.mxu0 %v13075_v35  ;;  %8130 = vmatprep.subr.mxu1 %v13075_v35  ;;  %13466 = vst [vmem:[#allocation165_spill] sm:$0xff] %v12024_v42 }
0x13a3   :  { %8166 = vmatpush3.msra.mxu0 %v11490_v27  ;;  %8131 = vmatpush3.msra.mxu1 %v12024_v42  ;;  %v12028_v27 = vld [vmem:[#allocation23 + $0x50] sm:$0xff] }
0x13a4   :  { %8167 = vmatprep.subr.mxu0 %v13075_v35  ;;  %8132 = vmatprep.subr.mxu1 %v13075_v35  ;;  %13467 = vst [vmem:[#allocation166_spill] sm:$0xff] %v12028_v27 }
0x13a5   :  { %8168 = vmatpush3.msra.mxu0 %v11494_v50  ;;  %8133 = vmatpush3.msra.mxu1 %v12028_v27  ;;  %v12032_v50 = vld [vmem:[#allocation23 + $0x48] sm:$0xff] }
0x13a6   :  { %8169 = vmatprep.subr.mxu0 %v13075_v35  ;;  %8134 = vmatprep.subr.mxu1 %v13075_v35  ;;  %13468 = vst [vmem:[#allocation167_spill] sm:$0xff] %v12032_v50 }
0x13a7   :  { %8170 = vmatpush3.msra.mxu0 %v11521_v28  ;;  %8135 = vmatpush3.msra.mxu1 %v12032_v50  ;;  %v12036_v28 = vld [vmem:[#allocation23 + $0x40] sm:$0xff] }
0x13a8   :  { %8171 = vmatprep.subr.mxu0 %v13075_v35  ;;  %8136 = vmatprep.subr.mxu1 %v13075_v35  ;;  %13469 = vst [vmem:[#allocation168_spill] sm:$0xff] %v12036_v28 }
0x13a9   :  { %8172 = vmatpush3.msra.mxu0 %v11524_v48  ;;  %8137 = vmatpush3.msra.mxu1 %v12036_v28  ;;  %v12040_v48 = vld [vmem:[#allocation23 + $0x38] sm:$0xff] }
0x13aa   :  { %8173 = vmatprep.subr.mxu0 %v13075_v35  ;;  %8138 = vmatprep.subr.mxu1 %v13075_v35  ;;  %13470 = vst [vmem:[#allocation169_spill] sm:$0xff] %v12040_v48 }
0x13ab   :  { %8174 = vmatpush3.msra.mxu0 %v11529_v36  ;;  %8139 = vmatpush3.msra.mxu1 %v12040_v48  ;;  %v12044_v36 = vld [vmem:[#allocation23 + $0x30] sm:$0xff] }
0x13ac   :  { %8175 = vmatprep.subr.mxu0 %v13075_v35  ;;  %8140 = vmatprep.subr.mxu1 %v13075_v35  ;;  %13471 = vst [vmem:[#allocation170_spill] sm:$0xff] %v12044_v36 }
0x13ad   :  { %8176 = vmatpush3.msra.mxu0 %v11532_v11  ;;  %8141 = vmatpush3.msra.mxu1 %v12044_v36  ;;  %v12048_v11 = vld [vmem:[#allocation23 + $0x28] sm:$0xff]  ;;  %v13479_v36 = vld [vmem:[#allocation35_spill] sm:$0xff] }
0x13ae   :  { %8177 = vmatprep.subr.mxu0 %v13075_v35  ;;  %8142 = vmatprep.subr.mxu1 %v13075_v35  ;;  %13472 = vst [vmem:[#allocation171_spill] sm:$0xff] %v12048_v11 }
0x13af   :  { %8178 = vmatpush3.msra.mxu0 %v11537_v49  ;;  %8143 = vmatpush3.msra.mxu1 %v12048_v11  ;;  %v12052_v49 = vld [vmem:[#allocation23 + $0x20] sm:$0xff] }
0x13b0   :  { %8179 = vmatprep.subr.mxu0 %v13075_v35  ;;  %8144 = vmatprep.subr.mxu1 %v13075_v35  ;;  %13473 = vst [vmem:[#allocation172_spill] sm:$0xff] %v12052_v49 }
0x13b1   :  { %8180 = vmatpush3.msra.mxu0 %v11540_v29  ;;  %8145 = vmatpush3.msra.mxu1 %v12052_v49  ;;  %v12056_v29 = vld [vmem:[#allocation23 + $0x18] sm:$0xff]  ;;  %v13478_v49 = vld [vmem:[#allocation34_spill] sm:$0xff] }
0x13b2   :  { %8181 = vmatprep.subr.mxu0 %v13075_v35  ;;  %8146 = vmatprep.subr.mxu1 %v13075_v35  ;;  %13474 = vst [vmem:[#allocation173_spill] sm:$0xff] %v12056_v29 }
0x13b3   :  { %8182 = vmatpush3.msra.mxu0 %v11546_v8  ;;  %8147 = vmatpush3.msra.mxu1 %v12056_v29  ;;  %v12060_v8 = vld [vmem:[#allocation23 + $0x10] sm:$0xff] }
0x13b4   :  { %8183 = vmatprep.subr.mxu0 %v13075_v35  ;;  %8148 = vmatprep.subr.mxu1 %v13075_v35  ;;  %13475 = vst [vmem:[#allocation174_spill] sm:$0xff] %v12060_v8 }
0x13b5   :  { %8184 = vmatpush3.msra.mxu0 %v11552_v12  ;;  %8149 = vmatpush3.msra.mxu1 %v12060_v8  ;;  %v12064_v12 = vld [vmem:[#allocation23 + $0x8] sm:$0xff] }
0x13b6   :  { %8185 = vmatprep.subr.mxu0 %v13075_v35  ;;  %8150 = vmatprep.subr.mxu1 %v13075_v35  ;;  %13476 = vst [vmem:[#allocation71_spill] sm:$0xff] %v12064_v12 }
0x13b7   :  { %8186 = vmatpush3.msra.mxu0 %v11555_v63  ;;  %8151 = vmatpush3.msra.mxu1 %v12064_v12  ;;  %v12067_v63 = vld [vmem:[#allocation23] sm:$0xff] }
0x13b8   :  { %8187 = vmatprep.subr.mxu0 %v13075_v35  ;;  %13477 = vst [vmem:[#allocation69_spill] sm:$0xff] %v12067_v63  ;;  %8152 = vmatprep.subr.mxu1 %v13075_v35 }
0x13b9   :  { %8188 = vmatpush3.msra.mxu0 %v11562_v62  ;;  %8153 = vmatpush3.msra.mxu1 %v12067_v63 }
0x13ba   :  { %6618 = vmatprep.subr.mxu0 %v11568_v32  ;;  %6547 = vmatprep.subr.mxu1 %v11564_v20  ;;  %v13480_v20 = vld [vmem:[#allocation37_spill] sm:$0xff] }
0x1437   :  { %v5812_v62 = vpop.f32.mrf.mxu1  ;;  %v5883_v32 = vpop.f32.mrf.mxu0 }
0x1438   :  { %v5888_v11 = vadd.f32 %v5812_v62, %v13478_v49  ;;  %v13481_v49 = vld [vmem:[#allocation36_spill] sm:$0xff] }
0x1439   :  { %v5814_v29 = vpop.f32.mrf.mxu1  ;;  %v5885_v28 = vpop.f32.mrf.mxu0  ;;  %v5890_v62 = vadd.f32 %v5883_v32, %v13481_v49  ;;  %v13484_v32 = vld [vmem:[#allocation41_spill] sm:$0xff] }
0x143a   :  { %v5889_v48 = vadd.f32 %v5814_v29, %v13479_v36  ;;  %v5891_v4 = vadd.f32 %v5885_v28, %v13480_v20  ;;  %v13486_v20 = vld [vmem:[#allocation51_spill] sm:$0xff] }
0x1458   :  { %v6022_v8 = vpop.f32.mrf.mxu1  ;;  %v6093_v42 = vpop.f32.mrf.mxu0 }
0x1459   :  { %v6098_v50 = vadd.f32 %v6022_v8, %v5888_v11  ;;  %v6100_v16 = vadd.f32 %v6093_v42, %v5890_v62 }
0x145a   :  { %v6024_v27 = vpop.f32.mrf.mxu1  ;;  %v6095_v51 = vpop.f32.mrf.mxu0 }
0x145b   :  { %v6102_v12 = vsub.f32 0.0, %v6098_v50  ;;  %v6099_v23 = vadd.f32 %v6024_v27, %v5889_v48  ;;  %v6101_v46 = vadd.f32 %v6095_v51, %v5891_v4 }
0x145d   :  { %v6103_v43 = vmul.f32 1.442695, %v6102_v12  ;;  %v6108_v31 = vsub.f32 0.0, %v6099_v23  ;;  %v6115_v5 = vsub.f32 0.0, %v6101_v46 }
0x145f   :  { %8479 = vpow2.f32 %v6103_v43  ;;  %v6109_v63 = vmul.f32 1.442695, %v6108_v31  ;;  %v6116_v36 = vmul.f32 1.442695, %v6115_v5 }
0x1461   :  { %8481 = vpow2.f32 %v6109_v63 }
0x1462   :  { %8483 = vtanh.f32 %v6100_v16 }
0x1463   :  { %8485 = vpow2.f32 %v6116_v36 }
0x146c   :  { %v8480_v29 = vpop.eup %8479 }
0x146d   :  { %v6105_v11 = vadd.f32 1.0, %v8480_v29 }
0x146e   :  { %v8482_v50 = vpop.eup %8481 }
0x146f   :  { %8487 = vrcp.f32 %v6105_v11  ;;  %v6111_v27 = vadd.f32 1.0, %v8482_v50  ;;  %v8484_v43 = vpop.eup %8483 }
0x1470   :  { %v8486_v31 = vpop.eup %8485 }
0x1471   :  { %8489 = vrcp.f32 %v6111_v27  ;;  %v6118_v8 = vadd.f32 1.0, %v8486_v31 }
0x1473   :  { %8491 = vrcp.f32 %v6118_v8 }
0x147c   :  { %v8488_v23 = vpop.eup %8487 }
0x147d   :  { %v6122_v48 = vmul.f32 %v8488_v23, %v8484_v43 }
0x147e   :  { %v8490_v28 = vpop.eup %8489 }
0x147f   :  { %v6121_v46 = vmul.f32 %v8490_v28, %v11453_v58 }
0x1480   :  { %v8492_v5 = vpop.eup %8491 }
0x1481   :  { %v12077_v4 = vadd.f32 %v6122_v48, %v6121_v46 }
0x1483   :  { %8493 = vtanh.f32 %v12077_v4 }
0x1490   :  { %v8494_v16 = vpop.eup %8493 }
0x1491   :  { %v12080_v51 = vmul.f32 %v8494_v16, %v8492_v5 }
0x1493   :  { %8155 = vmatmul.mubr.f32.vlgmr.msra.gmra.mxu1 %v12080_v51  ;;  %v6135_v42 = vmul.f32 %v12080_v51, %v10549_v57  ;;  %v6134_v12 = vmul.f32 %v12080_v51, %v10552_v0  ;;  %v6138_v58 = vmul.f32 %v12080_v51, %v10566_v60  ;;  %v6136_v63 = vmul.f32 %v12080_v51, %v10563_v3 }
0x1494   :  { %6548 = vmatpush1.msra.mxu1 %v11566_v45  ;;  %6611 = vmatprep.mubr.f32.mxu1 %v13075_v35  ;;  %v6140_v45 = vmul.f32 %v12080_v51, %v10576_v54 }
0x1495   :  { %6144 = vadd.xlane.f32.xlu1 %v6135_v42  ;;  %6142 = vadd.xlane.f32.xlu0 %v6134_v12 }
0x1496   :  { %6549 = vmatprep.subr.mxu1 %v11570_v38  ;;  %v6137_v38 = vmul.f32 %v12080_v51, %v10573_v41 }
0x1497   :  { %6550 = vmatpush1.msra.mxu1 %v11574_v2  ;;  %v6139_v2 = vmul.f32 %v12080_v51, %v13234_v9 }
0x1498   :  { %6551 = vmatprep.subr.mxu1 %v11579_v30  ;;  %v13482_v30 = vld [vmem:[#allocation40_spill] sm:$0xff] }
0x1499   :  { %6150 = vadd.xlane.f32.xlu1 %v6138_v58  ;;  %6146 = vadd.xlane.f32.xlu0 %v6136_v63 }
0x149a   :  { %6552 = vmatpush1.msra.mxu1 %v11583_v17  ;;  %v13483_v17 = vld [vmem:[#allocation49_spill] sm:$0xff] }
0x149b   :  { %6553 = vmatprep.subr.mxu1 %v11586_v10  ;;  %v6141_v10 = vmul.f32 %v12080_v51, %v13484_v32 }
0x149c   :  { %6554 = vmatpush1.msra.mxu1 %v11589_v47  ;;  %v13485_v47 = vld [vmem:[#allocation50_spill] sm:$0xff] }
0x149d   :  { %6154 = vadd.xlane.f32.xlu1 %v6140_v45  ;;  %6148 = vadd.xlane.f32.xlu0 %v6137_v38 }
0x149e   :  { %6555 = vmatprep.subr.mxu1 %v11593_v21  ;;  %v13487_v21 = vld [vmem:[#allocation52_spill] sm:$0xff] }
0x149f   :  { %6556 = vmatpush1.msra.mxu1 %v11596_v24  ;;  %v13488_v24 = vld [vmem:[#allocation97_spill] sm:$0xff] }
0x14a0   :  { %6557 = vmatprep.subr.mxu1 %v11599_v25  ;;  %v13489_v25 = vld [vmem:[#allocation99_spill] sm:$0xff] }
0x14a1   :  { %6152 = vadd.xlane.f32.xlu0 %v6139_v2  ;;  %6558 = vmatpush1.msra.mxu1 %v13482_v30 }
0x14a2   :  { %6559 = vmatprep.subr.mxu1 %v13483_v17 }
0x14a3   :  { %6560 = vmatpush1.msra.mxu1 %v13485_v47 }
0x14a4   :  { %6561 = vmatprep.subr.mxu1 %v13486_v20 }
0x14a5   :  { %6156 = vadd.xlane.f32.xlu0 %v6141_v10  ;;  %6562 = vmatpush1.msra.mxu1 %v13487_v21 }
0x14a6   :  { %6563 = vmatprep.subr.mxu1 %v11673_v6 }
0x14a7   :  { %6564 = vmatpush1.msra.mxu1 %v11679_v33 }
0x14a8   :  { %6565 = vmatprep.subr.mxu1 %v11685_v53 }
0x14a9   :  { %6566 = vmatpush1.msra.mxu1 %v11691_v56 }
0x14aa   :  { %6567 = vmatprep.subr.mxu1 %v11695_v37 }
0x14ab   :  { %6568 = vmatpush1.msra.mxu1 %v11701_v19 }
0x14ac   :  { %6569 = vmatprep.subr.mxu1 %v11707_v22 }
0x14ad   :  { %6570 = vmatpush1.msra.mxu1 %v11711_v1 }
0x14ae   :  { %6571 = vmatprep.subr.mxu1 %v11717_v40  ;;  %v13490_v40 = vld [vmem:[#allocation42_spill] sm:$0xff] }
0x14af   :  { %6572 = vmatpush1.msra.mxu1 %v11723_v55 }
0x14b0   :  { %6573 = vmatprep.subr.mxu1 %v11729_v14 }
0x14b1   :  { %6574 = vmatpush1.msra.mxu1 %v11735_v26 }
0x14b2   :  { %6575 = vmatprep.subr.mxu1 %v11741_v52 }
0x14b3   :  { %6576 = vmatpush1.msra.mxu1 %v11747_v7 }
0x14b4   :  { %6577 = vmatprep.subr.mxu1 %v13488_v24 }
0x14b5   :  { %6578 = vmatpush1.msra.mxu1 %v13489_v25 }
0x14b6   :  { %6757 = vmatprep.subr.mxu1 %v11765_v59 }
0x151e   :  { %v6143_v53 = vpop.xlane.xlu0 %6142  ;;  %v6145_v1 = vpop.xlane.xlu1 %6144 }
0x151f   :  { %v6173_v56 = vrot.slane %v6145_v1, %v13490_v40  ;;  %v6169_v55 = vrot.slane %v6143_v53, %v13490_v40  ;;  %v13492_v1 = vld [vmem:[#allocation58_spill] sm:$0xff] }
0x1521   :  { %v6198_v52 = vsel %vm3787_vm1, %v6173_v56, %v6169_v55  ;;  %v13493_v56 = vld [vmem:[#allocation56_spill] sm:$0xff] }
0x1522   :  { %v6147_v22 = vpop.xlane.xlu0 %6146  ;;  %v6151_v26 = vpop.xlane.xlu1 %6150 }
0x1523   :  { %v6177_v14 = vrot.slane %v6147_v22, %v13490_v40  ;;  %v6185_v59 = vrot.slane %v6151_v26, %v13490_v40 }
0x1525   :  { %v6199_v37 = vsel %vm3789_vm2, %v6177_v14, %v6198_v52  ;;  %v13494_v14 = vld [vmem:[#allocation44_spill] sm:$0xff] }
0x1526   :  { %v6149_v6 = vpop.xlane.xlu0 %6148  ;;  %v6155_v49 = vpop.xlane.xlu1 %6154 }
0x1527   :  { %v6181_v7 = vrot.slane %v6149_v6, %v13490_v40  ;;  %v6193_v11 = vrot.slane %v6155_v49, %v13490_v40  ;;  %v13495_v6 = vld [vmem:[#allocation57_spill] sm:$0xff] }
0x1529   :  { %v6200_v33 = vsel %vm3791_vm3, %v6181_v7, %v6199_v37  ;;  %v13496_v7 = vld [vmem:[#allocation45_spill] sm:$0xff] }
0x152a   :  { %v6153_v19 = vpop.xlane.xlu0 %6152  ;;  %v6201_v36 = vsel %vm3793_vm4, %v6185_v59, %v6200_v33  ;;  %v13497_v33 = vld [vmem:[#allocation59_spill] sm:$0xff] }
0x152b   :  { %v6189_v62 = vrot.slane %v6153_v19, %v13490_v40  ;;  %v13498_v19 = vld [vmem:[#allocation46_spill] sm:$0xff] }
0x152d   :  { %v6202_v29 = vsel %vm3795_vm5, %v6189_v62, %v6201_v36  ;;  %v13499_v62 = vld [vmem:[#allocation47_spill] sm:$0xff] }
0x152e   :  { %v6157_v50 = vpop.xlane.xlu0 %6156  ;;  %v6203_v43 = vsel %vm3797_vm6, %v6193_v11, %v6202_v29 }
0x152f   :  { %v6197_v27 = vrot.slane %v6157_v50, %v13490_v40  ;;  %v13500_v50 = vld [vmem:[#allocation33_spill] sm:$0xff] }
0x1531   :  { %v6204_v31 = vsel %vm3799_vm7, %v6197_v27, %v6203_v43  ;;  %v13501_v43 = vld [vmem:[#allocation88_spill] sm:$0xff] }
0x1532   :  { %v6206_v48 = vsel %vm3744_vm8, -1e+30, %v6204_v31 }
0x1533   :  { %v6207_v28 = vsel %vm3803_vm9, %v6206_v48, -inf }
0x1534   :  { %v6208_v8 = vrot.slane %v6207_v28, 4 }
0x1536   :  { %v6209_v46 = vmax.f32 %v6207_v28, %v6208_v8  ;;  %v13502_v28 = vld [vmem:[#allocation64_spill] sm:$0xff] }
0x1538   :  { %v6210_v5 = vrot.slane %v6209_v46, 2 }
0x153a   :  { %v6211_v16 = vmax.f32 %v6209_v46, %v6210_v5 }
0x153c   :  { %v6212_v42 = vrot.slane %v6211_v16, 1 }
0x153e   :  { %v6213_v12 = vmax.f32 %v6211_v16, %v6212_v42 }
0x1540   :  { %v6214_v58 = vsub.f32 %v6206_v48, %v6213_v12  ;;  %v13503_v12 = vld [vmem:[#allocation66_spill] sm:$0xff] }
0x1542   :  { %v6215_v63 = vmul.f32 1.442695, %v6214_v58 }
0x1544   :  { %8495 = vpow2.f32 %v6215_v63  ;;  %v13504_v63 = vld [vmem:[#allocation67_spill] sm:$0xff] }
0x1551   :  { %v8496_v45 = vpop.eup %8495 }
0x1552   :  { %v6217_v38 = vsel %vm3803_vm9, %v8496_v45, 0.0 }
0x1553   :  { %v6218_v2 = vrot.slane %v6217_v38, 4  ;;  %v12151_v30 = vpop.f32.mrf.mxu1 }
0x1555   :  { %v6219_v17 = vadd.f32 %v6218_v2, %v6217_v38  ;;  %v8156_v10 = vpop.f32.mrf.mxu1 }
0x1557   :  { %v6220_v47 = vrot.slane %v6219_v17, 2 }
0x1559   :  { %v6221_v20 = vadd.f32 %v6220_v47, %v6219_v17  ;;  %v13505_v47 = vld [vmem:[#allocation65_spill] sm:$0xff] }
0x155b   :  { %v6222_v21 = vrot.slane %v6221_v20, 1 }
0x155d   :  { %v6223_v24 = vadd.f32 %v6222_v21, %v6221_v20  ;;  %v13506_v21 = vld [vmem:[#allocation68_spill] sm:$0xff] }
0x155f   :  { %8497 = vrcp.f32 %v6223_v24 }
0x156c   :  { %v8498_v25 = vpop.eup %8497 }
0x156d   :  { %v6225_v53 = vmul.f32 %v8498_v25, %v8496_v45 }
0x156f   :  { %v6236_v22 = vrot.slane %v6225_v53, %v13492_v1  ;;  %v6229_v55 = vrot.slane %v6225_v53, %v13493_v56  ;;  %v6257_v26 = vrot.slane %v6225_v53, %v13494_v14  ;;  %v6243_v52 = vrot.slane %v6225_v53, %v13495_v6 }
0x1570   :  { %v6271_v37 = vrot.slane %v6225_v53, %v13496_v7  ;;  %v6250_v59 = vrot.slane %v6225_v53, %v13497_v33  ;;  %v6264_v49 = vrot.slane %v6225_v53, %v13498_v19  ;;  %v6278_v36 = vrot.slane %v6225_v53, %v13499_v62 }
0x1571   :  { %6238 = vbcast.lane.b32.xlu0 %v6236_v22, 256  ;;  %6231 = vbcast.lane.b32.xlu1 %v6229_v55, 256  ;;  %v13507_v55 = vld [vmem:[#allocation70_spill] sm:$0xff] }
0x1575   :  { %6259 = vbcast.lane.b32.xlu0 %v6257_v26, 256  ;;  %6245 = vbcast.lane.b32.xlu1 %v6243_v52, 256 }
0x1579   :  { %6273 = vbcast.lane.b32.xlu0 %v6271_v37, 256  ;;  %6252 = vbcast.lane.b32.xlu1 %v6250_v59, 256  ;;  %v13508_v37 = vld [vmem:[#allocation53_spill] sm:$0xff]  ;;  %v13509_v59 = vld [vmem:[#allocation54_spill] sm:$0xff] }
0x157d   :  { %6266 = vbcast.lane.b32.xlu1 %v6264_v49, 256  ;;  %v13510_v49 = vld [vmem:[#allocation60_spill] sm:$0xff] }
0x1581   :  { %6280 = vbcast.lane.b32.xlu1 %v6278_v36, 256  ;;  %v13511_v36 = vld [vmem:[#allocation102_spill] sm:$0xff] }
0x15e3   :  { %v6239_v29 = vpop.permute.xlu0 %6238  ;;  %v6232_v11 = vpop.permute.xlu1 %6231 }
0x15e4   :  { %v6291_v27 = vmul.f32 %v6239_v29, %v13500_v50  ;;  %v6290_v31 = vmul.f32 %v6232_v11, %v13501_v43  ;;  %v13512_v29 = vld [vmem:[#allocation104_spill] sm:$0xff]  ;;  %v13513_v11 = vld [vmem:[#allocation62_spill] sm:$0xff] }
0x15e6   :  { %v6298_v5 = vadd.f32 %v6291_v27, %v6290_v31  ;;  %v13514_v27 = vld [vmem:[#allocation63_spill] sm:$0xff]  ;;  %v13515_v31 = vld [vmem:[#allocation61_spill] sm:$0xff] }
0x15e7   :  { %v6246_v48 = vpop.permute.xlu1 %6245  ;;  %v6260_v46 = vpop.permute.xlu0 %6259 }
0x15e8   :  { %v6292_v8 = vmul.f32 %v6246_v48, %v13502_v28  ;;  %v6294_v45 = vmul.f32 %v6260_v46, %v13504_v63  ;;  %v13516_v48 = vld [vmem:[#allocation76_spill] sm:$0xff]  ;;  %v13518_v46 = vld [vmem:[#allocation79_spill] sm:$0xff] }
0x15ea   :  { %v6299_v42 = vadd.f32 %v6298_v5, %v6292_v8  ;;  %v13517_v8 = vld [vmem:[#allocation78_spill] sm:$0xff]  ;;  %v13519_v5 = vld [vmem:[#allocation77_spill] sm:$0xff] }
0x15eb   :  { %v6253_v16 = vpop.permute.xlu1 %6252  ;;  %v6274_v2 = vpop.permute.xlu0 %6273 }
0x15ec   :  { %v6293_v58 = vmul.f32 %v6253_v16, %v13503_v12  ;;  %v6296_v24 = vmul.f32 %v6274_v2, %v13506_v21  ;;  %v13520_v16 = vld [vmem:[#allocation80_spill] sm:$0xff]  ;;  %v13525_v2 = vld [vmem:[#allocation86_spill] sm:$0xff] }
0x15ee   :  { %v6300_v38 = vadd.f32 %v6299_v42, %v6293_v58  ;;  %v13521_v42 = vld [vmem:[#allocation82_spill] sm:$0xff]  ;;  %v13522_v58 = vld [vmem:[#allocation83_spill] sm:$0xff] }
0x15ef   :  { %v6267_v17 = vpop.permute.xlu1 %6266 }
0x15f0   :  { %v6301_v10 = vadd.f32 %v6300_v38, %v6294_v45  ;;  %v6295_v20 = vmul.f32 %v6267_v17, %v13505_v47  ;;  %v13523_v45 = vld [vmem:[#allocation81_spill] sm:$0xff]  ;;  %v13524_v38 = vld [vmem:[#allocation84_spill] sm:$0xff]  ;;  %v13526_v17 = vld [vmem:[#allocation87_spill] sm:$0xff] }
0x15f2   :  { %v6302_v25 = vadd.f32 %v6301_v10, %v6295_v20  ;;  %v13527_v10 = vld [vmem:[#allocation85_spill] sm:$0xff]  ;;  %v13528_v20 = vld [vmem:[#allocation55_spill] sm:$0xff] }
0x15f3   :  { %v6281_v53 = vpop.permute.xlu1 %6280 }
0x15f4   :  { %v6303_v22 = vadd.f32 %v6302_v25, %v6296_v24  ;;  %v6297_v26 = vmul.f32 %v6281_v53, %v13507_v55  ;;  %v13529_v24 = vld [vmem:[#allocation89_spill] sm:$0xff]  ;;  %v13530_v25 = vld [vmem:[#allocation90_spill] sm:$0xff]  ;;  %v13531_v53 = vld [vmem:[#allocation91_spill] sm:$0xff] }
0x15f6   :  { %v6304_v52 = vadd.f32 %v6303_v22, %v6297_v26  ;;  %v13532_v22 = vld [vmem:[#allocation92_spill] sm:$0xff]  ;;  %v13533_v26 = vld [vmem:[#allocation93_spill] sm:$0xff] }
0x15f8   :  { %8190 = vmatmul.mubr.f32.vlgmr.msra.gmra.mxu0 %v6304_v52  ;;  %v13534_v52 = vld [vmem:[#allocation94_spill] sm:$0xff] }
0x15f9   :  { %6619 = vmatpush1.msra.mxu0 %v13508_v37  ;;  %6682 = vmatprep.mubr.f32.mxu0 %v13075_v35  ;;  %v13535_v37 = vld [vmem:[#allocation95_spill] sm:$0xff] }
0x15fa   :  { %6620 = vmatprep.subr.mxu0 %v13509_v59  ;;  %v13536_v59 = vld [vmem:[#allocation96_spill] sm:$0xff] }
0x15fb   :  { %6621 = vmatpush1.msra.mxu0 %v13510_v49  ;;  %v13537_v49 = vld [vmem:[#allocation98_spill] sm:$0xff] }
0x15fc   :  { %6622 = vmatprep.subr.mxu0 %v13511_v36  ;;  %v13538_v36 = vld [vmem:[#allocation100_spill] sm:$0xff] }
0x15fd   :  { %6623 = vmatpush1.msra.mxu0 %v13512_v29  ;;  %v13539_v29 = vld [vmem:[#allocation101_spill] sm:$0xff] }
0x15fe   :  { %6624 = vmatprep.subr.mxu0 %v13513_v11 }
0x15ff   :  { %6625 = vmatpush1.msra.mxu0 %v13514_v27 }
0x1600   :  { %6626 = vmatprep.subr.mxu0 %v13515_v31 }
0x1601   :  { %6627 = vmatpush1.msra.mxu0 %v13516_v48 }
0x1602   :  { %6628 = vmatprep.subr.mxu0 %v13517_v8  ;;  %v13540_v8 = vld [vmem:[#allocation103_spill] sm:$0xff] }
0x1603   :  { %6629 = vmatpush1.msra.mxu0 %v13518_v46  ;;  %v13541_v46 = vld [vmem:[#allocation105_spill] sm:$0xff] }
0x1604   :  { %6630 = vmatprep.subr.mxu0 %v13519_v5  ;;  %v13542_v5 = vld [vmem:[#allocation107_spill] sm:$0xff] }
0x1605   :  { %6631 = vmatpush1.msra.mxu0 %v13520_v16  ;;  %v13543_v16 = vld [vmem:[#allocation108_spill] sm:$0xff] }
0x1606   :  { %6632 = vmatprep.subr.mxu0 %v13521_v42  ;;  %v13544_v42 = vld [vmem:[#allocation110_spill] sm:$0xff] }
0x1607   :  { %6633 = vmatpush1.msra.mxu0 %v13522_v58  ;;  %v13545_v58 = vld [vmem:[#allocation111_spill] sm:$0xff] }
0x1608   :  { %6634 = vmatprep.subr.mxu0 %v13523_v45  ;;  %v13547_v45 = vld [vmem:[#allocation113_spill] sm:$0xff] }
0x1609   :  { %6635 = vmatpush1.msra.mxu0 %v13524_v38  ;;  %v13548_v38 = vld [vmem:[#allocation114_spill] sm:$0xff] }
0x160a   :  { %6636 = vmatprep.subr.mxu0 %v13525_v2  ;;  %v13549_v2 = vld [vmem:[#allocation115_spill] sm:$0xff] }
0x160b   :  { %6637 = vmatpush1.msra.mxu0 %v13526_v17  ;;  %v13550_v17 = vld [vmem:[#allocation116_spill] sm:$0xff] }
0x160c   :  { %6638 = vmatprep.subr.mxu0 %v13527_v10  ;;  %v13551_v10 = vld [vmem:[#allocation117_spill] sm:$0xff] }
0x160d   :  { %6639 = vmatpush1.msra.mxu0 %v13528_v20  ;;  %v13552_v20 = vld [vmem:[#allocation118_spill] sm:$0xff] }
0x160e   :  { %6640 = vmatprep.subr.mxu0 %v13529_v24  ;;  %v13553_v24 = vld [vmem:[#allocation119_spill] sm:$0xff] }
0x160f   :  { %6641 = vmatpush1.msra.mxu0 %v13530_v25  ;;  %v13554_v25 = vld [vmem:[#allocation120_spill] sm:$0xff] }
0x1610   :  { %6642 = vmatprep.subr.mxu0 %v13531_v53  ;;  %v13555_v53 = vld [vmem:[#allocation121_spill] sm:$0xff] }
0x1611   :  { %6643 = vmatpush1.msra.mxu0 %v13532_v22  ;;  %v13556_v22 = vld [vmem:[#allocation122_spill] sm:$0xff] }
0x1612   :  { %6644 = vmatprep.subr.mxu0 %v13533_v26  ;;  %v13557_v26 = vld [vmem:[#allocation123_spill] sm:$0xff] }
0x1613   :  { %6645 = vmatpush1.msra.mxu0 %v13534_v52  ;;  %v13558_v52 = vld [vmem:[#allocation124_spill] sm:$0xff] }
0x1614   :  { %6646 = vmatprep.subr.mxu0 %v13535_v37  ;;  %v13559_v37 = vld [vmem:[#allocation125_spill] sm:$0xff] }
0x1615   :  { %6647 = vmatpush1.msra.mxu0 %v13536_v59  ;;  %v13560_v59 = vld [vmem:[#allocation126_spill] sm:$0xff] }
0x1616   :  { %6648 = vmatprep.subr.mxu0 %v13537_v49  ;;  %v13561_v49 = vld [vmem:[#allocation127_spill] sm:$0xff] }
0x1617   :  { %6649 = vmatpush1.msra.mxu0 %v13538_v36  ;;  %v13562_v36 = vld [vmem:[#allocation128_spill] sm:$0xff] }
0x1618   :  { %6828 = vmatprep.subr.mxu0 %v13539_v29  ;;  %v13563_v29 = vld [vmem:[#allocation129_spill] sm:$0xff] }
0x16b8   :  { %v6473_v11 = vpop.f32.mrf.mxu0 }
0x16b9   :  { %v6474_v27 = vadd.f32 %v6473_v11, %v12151_v30  ;;  %v13546_v30 = vld [vmem:[#allocation112_spill] sm:$0xff]  ;;  %v13564_v11 = vld [vmem:[#allocation130_spill] sm:$0xff] }
0x16ba   :  { %v8191_v31 = vpop.f32.mrf.mxu0 }
0x16bb   :  { %8499 = vtanh.f32 %v6474_v27  ;;  %v13565_v27 = vld [vmem:[#allocation131_spill] sm:$0xff]  ;;  %v13566_v31 = vld [vmem:[#allocation132_spill] sm:$0xff] }
0x16c8   :  { %v12203_v48 = vpop.eup %8499 }
0x16c9   :  { %6612 = vmatmul.mubr.f32.vlgmr.msra.gmra.mxu1 %v12203_v48  ;;  %6683 = vmatmul.mubr.f32.vlgmr.msra.gmra.mxu0 %v12203_v48 }
0x16ca   :  { %6758 = vmatpush1.msra.mxu1 %v13540_v8  ;;  %6829 = vmatpush1.msra.mxu0 %v13541_v46  ;;  %v13567_v8 = vld [vmem:[#allocation133_spill] sm:$0xff]  ;;  %v13568_v46 = vld [vmem:[#allocation134_spill] sm:$0xff] }
0x16cb   :  { %6759 = vmatprep.subr.mxu1 %v13542_v5  ;;  %6830 = vmatprep.subr.mxu0 %v13543_v16  ;;  %v13569_v5 = vld [vmem:[#allocation135_spill] sm:$0xff]  ;;  %v13570_v16 = vld [vmem:[#allocation136_spill] sm:$0xff] }
0x16cc   :  { %6760 = vmatpush1.msra.mxu1 %v13544_v42  ;;  %6831 = vmatpush1.msra.mxu0 %v13545_v58  ;;  %v13571_v42 = vld [vmem:[#allocation137_spill] sm:$0xff]  ;;  %v13572_v58 = vld [vmem:[#allocation138_spill] sm:$0xff] }
0x16cd   :  { %6761 = vmatprep.subr.mxu1 %v13546_v30  ;;  %6832 = vmatprep.subr.mxu0 %v13547_v45  ;;  %v13573_v30 = vld [vmem:[#allocation139_spill] sm:$0xff]  ;;  %v13574_v45 = vld [vmem:[#allocation140_spill] sm:$0xff] }
0x16ce   :  { %6762 = vmatpush1.msra.mxu1 %v13548_v38  ;;  %6833 = vmatpush1.msra.mxu0 %v13549_v2  ;;  %v13575_v38 = vld [vmem:[#allocation141_spill] sm:$0xff]  ;;  %v13576_v2 = vld [vmem:[#allocation142_spill] sm:$0xff] }
0x16cf   :  { %6763 = vmatprep.subr.mxu1 %v13550_v17  ;;  %6834 = vmatprep.subr.mxu0 %v13551_v10  ;;  %v13577_v17 = vld [vmem:[#allocation143_spill] sm:$0xff]  ;;  %v13578_v10 = vld [vmem:[#allocation144_spill] sm:$0xff] }
0x16d0   :  { %6764 = vmatpush1.msra.mxu1 %v13552_v20  ;;  %6835 = vmatpush1.msra.mxu0 %v13553_v24  ;;  %v13579_v20 = vld [vmem:[#allocation145_spill] sm:$0xff]  ;;  %v13580_v24 = vld [vmem:[#allocation146_spill] sm:$0xff] }
0x16d1   :  { %6765 = vmatprep.subr.mxu1 %v13554_v25  ;;  %6836 = vmatprep.subr.mxu0 %v13555_v53  ;;  %v13581_v25 = vld [vmem:[#allocation147_spill] sm:$0xff]  ;;  %v13582_v53 = vld [vmem:[#allocation148_spill] sm:$0xff] }
0x16d2   :  { %6766 = vmatpush1.msra.mxu1 %v13556_v22  ;;  %6837 = vmatpush1.msra.mxu0 %v13557_v26  ;;  %v13583_v22 = vld [vmem:[#allocation149_spill] sm:$0xff]  ;;  %v13584_v26 = vld [vmem:[#allocation150_spill] sm:$0xff] }
0x16d3   :  { %6767 = vmatprep.subr.mxu1 %v13558_v52  ;;  %6838 = vmatprep.subr.mxu0 %v13559_v37  ;;  %v13585_v52 = vld [vmem:[#allocation151_spill] sm:$0xff]  ;;  %v13586_v37 = vld [vmem:[#allocation152_spill] sm:$0xff] }
0x16d4   :  { %6768 = vmatpush1.msra.mxu1 %v13560_v59  ;;  %6839 = vmatpush1.msra.mxu0 %v13561_v49  ;;  %v13587_v59 = vld [vmem:[#allocation153_spill] sm:$0xff]  ;;  %v13588_v49 = vld [vmem:[#allocation154_spill] sm:$0xff] }
0x16d5   :  { %6769 = vmatprep.subr.mxu1 %v13562_v36  ;;  %6840 = vmatprep.subr.mxu0 %v13563_v29  ;;  %v13589_v36 = vld [vmem:[#allocation155_spill] sm:$0xff]  ;;  %v13590_v29 = vld [vmem:[#allocation156_spill] sm:$0xff] }
0x16d6   :  { %6770 = vmatpush1.msra.mxu1 %v13564_v11  ;;  %6841 = vmatpush1.msra.mxu0 %v13565_v27  ;;  %v13591_v11 = vld [vmem:[#allocation157_spill] sm:$0xff]  ;;  %v13592_v27 = vld [vmem:[#allocation158_spill] sm:$0xff] }
0x16d7   :  { %6771 = vmatprep.subr.mxu1 %v13566_v31  ;;  %6842 = vmatprep.subr.mxu0 %v13567_v8  ;;  %v13593_v31 = vld [vmem:[#allocation159_spill] sm:$0xff]  ;;  %v13602_v8 = vld [vmem:[#allocation168_spill] sm:$0xff] }
0x16d8   :  { %6772 = vmatpush1.msra.mxu1 %v13568_v46  ;;  %6843 = vmatpush1.msra.mxu0 %v13569_v5  ;;  %v13603_v46 = vld [vmem:[#allocation169_spill] sm:$0xff]  ;;  %v13604_v5 = vld [vmem:[#allocation170_spill] sm:$0xff] }
0x16d9   :  { %6773 = vmatprep.subr.mxu1 %v13570_v16  ;;  %6844 = vmatprep.subr.mxu0 %v13571_v42  ;;  %v13605_v16 = vld [vmem:[#allocation171_spill] sm:$0xff]  ;;  %v13606_v42 = vld [vmem:[#allocation172_spill] sm:$0xff] }
0x16da   :  { %6774 = vmatpush1.msra.mxu1 %v13572_v58  ;;  %6845 = vmatpush1.msra.mxu0 %v13573_v30  ;;  %v13607_v58 = vld [vmem:[#allocation173_spill] sm:$0xff]  ;;  %v13608_v30 = vld [vmem:[#allocation174_spill] sm:$0xff] }
0x16db   :  { %6775 = vmatprep.subr.mxu1 %v13574_v45  ;;  %6846 = vmatprep.subr.mxu0 %v13575_v38  ;;  %v13609_v45 = vld [vmem:[#allocation71_spill] sm:$0xff]  ;;  %v13610_v38 = vld [vmem:[#allocation69_spill] sm:$0xff] }
0x16dc   :  { %6776 = vmatpush1.msra.mxu1 %v13576_v2  ;;  %6847 = vmatpush1.msra.mxu0 %v13577_v17  ;;  %v7316_v2 = vld [vmem:[#allocation24 + $0xf8] sm:$0xff] }
0x16dd   :  { %6777 = vmatprep.subr.mxu1 %v13578_v10  ;;  %6848 = vmatprep.subr.mxu0 %v13579_v20 }
0x16de   :  { %6778 = vmatpush1.msra.mxu1 %v13580_v24  ;;  %6849 = vmatpush1.msra.mxu0 %v13581_v25  ;;  %v13611_v24 = vld [vmem:[#allocation72_spill] sm:$0xff] }
0x16df   :  { %6779 = vmatprep.subr.mxu1 %v13582_v53  ;;  %6850 = vmatprep.subr.mxu0 %v13583_v22  ;;  %v13612_v22 = vld [vmem:[#allocation74_spill] sm:$0xff] }
0x16e0   :  { %6780 = vmatpush1.msra.mxu1 %v13584_v26  ;;  %6851 = vmatpush1.msra.mxu0 %v13585_v52 }
0x16e1   :  { %6781 = vmatprep.subr.mxu1 %v13586_v37  ;;  %6852 = vmatprep.subr.mxu0 %v13587_v59 }
0x16e2   :  { %6782 = vmatpush1.msra.mxu1 %v13588_v49  ;;  %6853 = vmatpush1.msra.mxu0 %v13589_v36 }
0x16e3   :  { %6783 = vmatprep.subr.mxu1 %v11926_v18  ;;  %6854 = vmatprep.subr.mxu0 %v13590_v29  ;;  %v13594_v18 = vld [vmem:[#allocation160_spill] sm:$0xff] }
0x16e4   :  { %6784 = vmatpush1.msra.mxu1 %v11932_v15  ;;  %6855 = vmatpush1.msra.mxu0 %v11934_v13  ;;  %v13599_v15 = vld [vmem:[#allocation165_spill] sm:$0xff]  ;;  %v13600_v13 = vld [vmem:[#allocation166_spill] sm:$0xff] }
0x16e5   :  { %6785 = vmatprep.subr.mxu1 %v11938_v39  ;;  %6856 = vmatprep.subr.mxu0 %v11940_v61  ;;  %v13596_v61 = vld [vmem:[#allocation162_spill] sm:$0xff]  ;;  %v13598_v39 = vld [vmem:[#allocation164_spill] sm:$0xff] }
0x16e6   :  { %6786 = vmatpush1.msra.mxu1 %v11944_v44  ;;  %6857 = vmatpush1.msra.mxu0 %v11946_v34  ;;  %v13595_v44 = vld [vmem:[#allocation161_spill] sm:$0xff]  ;;  %v13597_v34 = vld [vmem:[#allocation163_spill] sm:$0xff] }
0x16e7   :  { %6787 = vmatprep.subr.mxu1 %v13591_v11  ;;  %6858 = vmatprep.subr.mxu0 %v13592_v27 }
0x16e8   :  { %6788 = vmatpush1.msra.mxu1 %v13593_v31  ;;  %6821 = vmatprep.mubr.f32.mxu1 %v13075_v35 }
0x16e9   :  { %6859 = vmatpush1.msra.mxu0 %v13594_v18  ;;  %6892 = vmatprep.mubr.f32.mxu0 %v13075_v35 }
0x16ea   :  { %6822 = vmatmul.mubr.f32.vlgmr.msra.gmra.mxu1 %v12080_v51  ;;  %6893 = vmatmul.mubr.f32.vlgmr.msra.gmra.mxu0 %v12080_v51  ;;  %v13601_v51 = vld [vmem:[#allocation167_spill] sm:$0xff] }
0x16eb   :  { %8192 = vmatprep.subr.mxu1 %v13075_v35  ;;  %8224 = vmatprep.mubr.msk.f32.mxu1 %vm8827_vm0, %v13075_v35 }
0x16ec   :  { %8193 = vmatpush3.msra.mxu1 %v13595_v44  ;;  %8227 = vmatprep.subr.mxu0 %v13075_v35  ;;  %v13613_v44 = vld [vmem:[#allocation39_spill] sm:$0xff] }
0x16ed   :  { %8194 = vmatprep.subr.mxu1 %v13075_v35  ;;  %8259 = vmatprep.mubr.msk.f32.mxu0 %vm8827_vm0, %v13075_v35 }
0x16ee   :  { %8195 = vmatpush3.msra.mxu1 %v13596_v61 }
0x16ef   :  { %8196 = vmatprep.subr.mxu1 %v13075_v35 }
0x16f0   :  { %8197 = vmatpush3.msra.mxu1 %v13597_v34 }
0x16f1   :  { %8198 = vmatprep.subr.mxu1 %v13075_v35 }
0x16f2   :  { %8199 = vmatpush3.msra.mxu1 %v13598_v39 }
0x16f3   :  { %8200 = vmatprep.subr.mxu1 %v13075_v35 }
0x16f4   :  { %8201 = vmatpush3.msra.mxu1 %v13599_v15  ;;  %v13614_v15 = vld [vmem:[#allocation38_spill] sm:$0xff] }
0x16f5   :  { %8202 = vmatprep.subr.mxu1 %v13075_v35 }
0x16f6   :  { %8203 = vmatpush3.msra.mxu1 %v13600_v13 }
0x16f7   :  { %8204 = vmatprep.subr.mxu1 %v13075_v35 }
0x16f8   :  { %8205 = vmatpush3.msra.mxu1 %v13601_v51 }
0x16f9   :  { %8206 = vmatprep.subr.mxu1 %v13075_v35 }
0x16fa   :  { %8207 = vmatpush3.msra.mxu1 %v13602_v8 }
0x16fb   :  { %8208 = vmatprep.subr.mxu1 %v13075_v35 }
0x16fc   :  { %8209 = vmatpush3.msra.mxu1 %v13603_v46 }
0x16fd   :  { %8210 = vmatprep.subr.mxu1 %v13075_v35 }
0x16fe   :  { %8211 = vmatpush3.msra.mxu1 %v13604_v5 }
0x16ff   :  { %8212 = vmatprep.subr.mxu1 %v13075_v35 }
0x1700   :  { %8213 = vmatpush3.msra.mxu1 %v13605_v16 }
0x1701   :  { %8214 = vmatprep.subr.mxu1 %v13075_v35 }
0x1702   :  { %8215 = vmatpush3.msra.mxu1 %v13606_v42 }
0x1703   :  { %8216 = vmatprep.subr.mxu1 %v13075_v35 }
0x1704   :  { %8217 = vmatpush3.msra.mxu1 %v13607_v58 }
0x1705   :  { %8218 = vmatprep.subr.mxu1 %v13075_v35 }
0x1706   :  { %8219 = vmatpush3.msra.mxu1 %v13608_v30 }
0x1707   :  { %8220 = vmatprep.subr.mxu1 %v13075_v35 }
0x1708   :  { %8221 = vmatpush3.msra.mxu1 %v13609_v45 }
0x1709   :  { %8222 = vmatprep.subr.mxu1 %v13075_v35 }
0x170a   :  { %8223 = vmatpush3.msra.mxu1 %v13610_v38 }
0x170b   :  { %7329 = vmatprep.subr.mxu1 %v7316_v2 }
0x1789   :  { %v6613_v17 = vpop.f32.mrf.mxu1  ;;  %v6684_v10 = vpop.f32.mrf.mxu0 }
0x178a   :  { %v6689_v25 = vadd.f32 %v6613_v17, %v13611_v24  ;;  %v6691_v13 = vadd.f32 %v6684_v10, %v13614_v15 }
0x178b   :  { %v6615_v20 = vpop.f32.mrf.mxu1  ;;  %v6686_v52 = vpop.f32.mrf.mxu0 }
0x178c   :  { %v6690_v26 = vadd.f32 %v6615_v20, %v13612_v22  ;;  %v6692_v61 = vadd.f32 %v6686_v52, %v13613_v44  ;;  %v7315_v22 = vld [vmem:[#allocation24 + $0xf0] sm:$0xff]  ;;  %v7313_v52 = vld [vmem:[#allocation24 + $0xe0] sm:$0xff] }
0x17aa   :  { %v6823_v53 = vpop.f32.mrf.mxu1  ;;  %v6894_v36 = vpop.f32.mrf.mxu0 }
0x17ab   :  { %v6899_v37 = vadd.f32 %v6823_v53, %v6689_v25  ;;  %v6901_v51 = vadd.f32 %v6894_v36, %v6691_v13  ;;  %v7311_v36 = vld [vmem:[#allocation24 + $0xd0] sm:$0xff]  ;;  %v7300_v13 = vld [vmem:[#allocation24 + $0x78] sm:$0xff] }
0x17ac   :  { %v6825_v59 = vpop.f32.mrf.mxu1  ;;  %v6896_v18 = vpop.f32.mrf.mxu0 }
0x17ad   :  { %v6903_v49 = vsub.f32 0.0, %v6899_v37  ;;  %v6900_v29 = vadd.f32 %v6825_v59, %v6690_v26  ;;  %v6902_v34 = vadd.f32 %v6896_v18, %v6692_v61  ;;  %v7314_v26 = vld [vmem:[#allocation24 + $0xe8] sm:$0xff]  ;;  %v7305_v18 = vld [vmem:[#allocation24 + $0xa0] sm:$0xff] }
0x17af   :  { %v6904_v11 = vmul.f32 1.442695, %v6903_v49  ;;  %v6909_v27 = vsub.f32 0.0, %v6900_v29  ;;  %v6916_v39 = vsub.f32 0.0, %v6902_v34  ;;  %v7312_v49 = vld [vmem:[#allocation24 + $0xd8] sm:$0xff]  ;;  %v7309_v29 = vld [vmem:[#allocation24 + $0xc0] sm:$0xff] }
0x17b0   :  { %v7303_v34 = vld [vmem:[#allocation24 + $0x90] sm:$0xff] }
0x17b1   :  { %8501 = vpow2.f32 %v6904_v11  ;;  %v6910_v31 = vmul.f32 1.442695, %v6909_v27  ;;  %v6917_v8 = vmul.f32 1.442695, %v6916_v39  ;;  %v7301_v39 = vld [vmem:[#allocation24 + $0x80] sm:$0xff] }
0x17b3   :  { %8503 = vpow2.f32 %v6910_v31  ;;  %v7306_v31 = vld [vmem:[#allocation24 + $0xa8] sm:$0xff] }
0x17b4   :  { %8505 = vtanh.f32 %v6901_v51  ;;  %v7299_v51 = vld [vmem:[#allocation24 + $0x70] sm:$0xff] }
0x17b5   :  { %8507 = vpow2.f32 %v6917_v8 }
0x17be   :  { %v8502_v46 = vpop.eup %8501 }
0x17bf   :  { %v6906_v5 = vadd.f32 1.0, %v8502_v46  ;;  %v7296_v46 = vld [vmem:[#allocation24 + $0x58] sm:$0xff] }
0x17c0   :  { %v8504_v16 = vpop.eup %8503 }
0x17c1   :  { %8509 = vrcp.f32 %v6906_v5  ;;  %v6912_v42 = vadd.f32 1.0, %v8504_v16  ;;  %v8506_v58 = vpop.eup %8505  ;;  %v7295_v5 = vld [vmem:[#allocation24 + $0x50] sm:$0xff]  ;;  %v7294_v16 = vld [vmem:[#allocation24 + $0x48] sm:$0xff] }
0x17c2   :  { %v8508_v30 = vpop.eup %8507 }
0x17c3   :  { %8511 = vrcp.f32 %v6912_v42  ;;  %v6919_v17 = vadd.f32 1.0, %v8508_v30  ;;  %v7293_v42 = vld [vmem:[#allocation24 + $0x40] sm:$0xff]  ;;  %v7290_v30 = vld [vmem:[#allocation24 + $0x28] sm:$0xff] }
0x17c5   :  { %8513 = vrcp.f32 %v6919_v17  ;;  %v7285_v17 = vld [vmem:[#allocation24] sm:$0xff] }
0x17ce   :  { %v8510_v45 = vpop.eup %8509 }
0x17cf   :  { %v6923_v38 = vmul.f32 %v8510_v45, %v8506_v58  ;;  %v7291_v58 = vld [vmem:[#allocation24 + $0x30] sm:$0xff]  ;;  %v7289_v45 = vld [vmem:[#allocation24 + $0x20] sm:$0xff] }
0x17d0   :  { %v8512_v2 = vpop.eup %8511 }
0x17d1   :  { %v6922_v20 = vmul.f32 %v8512_v2, %v12077_v4  ;;  %v7310_v4 = vld [vmem:[#allocation24 + $0xc8] sm:$0xff] }
0x17d2   :  { %v8514_v10 = vpop.eup %8513  ;;  %v7286_v2 = vld [vmem:[#allocation24 + $0x8] sm:$0xff] }
0x17d3   :  { %v6924_v24 = vadd.f32 %v6923_v38, %v6922_v20  ;;  %v7288_v38 = vld [vmem:[#allocation24 + $0x18] sm:$0xff]  ;;  %v13615_v20 = vld [vmem:[#allocation109_spill] sm:$0xff] }
0x17d5   :  { %8515 = vtanh.f32 %v6924_v24  ;;  %v13616_v24 = vld [vmem:[#allocation48_spill] sm:$0xff] }
0x17e2   :  { %v8516_v25 = vpop.eup %8515 }
0x17e3   :  { %v6926_v53 = vmul.f32 %v8516_v25, %v8514_v10  ;;  %v13617_v10 = vld [vmem:[#allocation106_spill] sm:$0xff] }
0x17e5   :  { %8225 = vmatmul.mubr.f32.vlgmr.msra.gmra.mxu1 %v6926_v53  ;;  %v6936_v37 = vmul.f32 %v6926_v53, %v10549_v57  ;;  %v6935_v59 = vmul.f32 %v6926_v53, %v10552_v0  ;;  %v6939_v11 = vmul.f32 %v6926_v53, %v10566_v60  ;;  %v6937_v27 = vmul.f32 %v6926_v53, %v10563_v3  ;;  %v7308_v57 = vld [vmem:[#allocation24 + $0xb8] sm:$0xff]  ;;  %v7307_v0 = vld [vmem:[#allocation24 + $0xb0] sm:$0xff]  ;;  %v7302_v3 = vld [vmem:[#allocation24 + $0x88] sm:$0xff] }
0x17e6   :  { %7330 = vmatpush1.msra.mxu1 %v7315_v22  ;;  %7393 = vmatprep.mubr.f32.mxu1 %v13075_v35  ;;  %v6941_v44 = vmul.f32 %v6926_v53, %v10576_v54  ;;  %v6938_v61 = vmul.f32 %v6926_v53, %v10573_v41  ;;  %v7304_v60 = vld [vmem:[#allocation24 + $0x98] sm:$0xff]  ;;  %v6940_v15 = vmul.f32 %v6926_v53, %v13234_v9  ;;  %v7298_v54 = vld [vmem:[#allocation24 + $0x68] sm:$0xff]  ;;  %v7297_v41 = vld [vmem:[#allocation24 + $0x60] sm:$0xff] }
0x17e7   :  { %7331 = vmatprep.subr.mxu1 %v7314_v26  ;;  %6945 = vadd.xlane.f32.xlu1 %v6936_v37  ;;  %v6942_v8 = vmul.f32 %v6926_v53, %v13484_v32  ;;  %v7292_v9 = vld [vmem:[#allocation24 + $0x38] sm:$0xff]  ;;  %v7287_v32 = vld [vmem:[#allocation24 + $0x10] sm:$0xff] }
0x17e8   :  { %7332 = vmatpush1.msra.mxu1 %v7313_v52  ;;  %6943 = vadd.xlane.f32.xlu0 %v6935_v59 }
0x17e9   :  { %7333 = vmatprep.subr.mxu1 %v7312_v49  ;;  %v7121_v49 = vld [vmem:[#allocation21 + $0x78] sm:$0xff] }
0x17ea   :  { %7334 = vmatpush1.msra.mxu1 %v7311_v36  ;;  %v7120_v36 = vld [vmem:[#allocation21 + $0x70] sm:$0xff]  ;;  %8228 = vmatpush3.msra.mxu0 %v7121_v49 }
0x17eb   :  { %7335 = vmatprep.subr.mxu1 %v7310_v4  ;;  %6951 = vadd.xlane.f32.xlu1 %v6939_v11  ;;  %v7119_v11 = vld [vmem:[#allocation21 + $0x68] sm:$0xff] }
0x17ec   :  { %7336 = vmatpush1.msra.mxu1 %v7309_v29  ;;  %6947 = vadd.xlane.f32.xlu0 %v6937_v27 }
0x17ed   :  { %7337 = vmatprep.subr.mxu1 %v7308_v57  ;;  %8229 = vmatprep.subr.mxu0 %v13075_v35 }
0x17ee   :  { %7338 = vmatpush1.msra.mxu1 %v7307_v0  ;;  %8230 = vmatpush3.msra.mxu0 %v7120_v36  ;;  %v7118_v0 = vld [vmem:[#allocation21 + $0x60] sm:$0xff]  ;;  %v7111_v36 = vld [vmem:[#allocation21 + $0x28] sm:$0xff] }
0x17ef   :  { %7339 = vmatprep.subr.mxu1 %v7306_v31  ;;  %6955 = vadd.xlane.f32.xlu1 %v6941_v44 }
0x17f0   :  { %7340 = vmatpush1.msra.mxu1 %v7305_v18  ;;  %6949 = vadd.xlane.f32.xlu0 %v6938_v61 }
0x17f1   :  { %7341 = vmatprep.subr.mxu1 %v7304_v60  ;;  %8231 = vmatprep.subr.mxu0 %v13075_v35  ;;  %v7117_v60 = vld [vmem:[#allocation21 + $0x58] sm:$0xff] }
0x17f2   :  { %7342 = vmatpush1.msra.mxu1 %v7303_v34  ;;  %8232 = vmatpush3.msra.mxu0 %v7119_v11  ;;  %v7109_v11 = vld [vmem:[#allocation21 + $0x18] sm:$0xff] }
0x17f3   :  { %7343 = vmatprep.subr.mxu1 %v7302_v3  ;;  %8233 = vmatprep.subr.mxu0 %v13075_v35 }
0x17f4   :  { %7344 = vmatpush1.msra.mxu1 %v7301_v39  ;;  %6953 = vadd.xlane.f32.xlu0 %v6940_v15  ;;  %v7116_v39 = vld [vmem:[#allocation21 + $0x50] sm:$0xff] }
0x17f5   :  { %7345 = vmatprep.subr.mxu1 %v7300_v13  ;;  %8234 = vmatpush3.msra.mxu0 %v7118_v0  ;;  %v7108_v0 = vld [vmem:[#allocation21 + $0x10] sm:$0xff] }
0x17f6   :  { %7346 = vmatpush1.msra.mxu1 %v7299_v51  ;;  %8235 = vmatprep.subr.mxu0 %v13075_v35 }
0x17f7   :  { %7347 = vmatprep.subr.mxu1 %v7298_v54  ;;  %8236 = vmatpush3.msra.mxu0 %v7117_v60 }
0x17f8   :  { %7348 = vmatpush1.msra.mxu1 %v7297_v41  ;;  %6957 = vadd.xlane.f32.xlu0 %v6942_v8 }
0x17f9   :  { %7349 = vmatprep.subr.mxu1 %v7296_v46  ;;  %8237 = vmatprep.subr.mxu0 %v13075_v35 }
0x17fa   :  { %7350 = vmatpush1.msra.mxu1 %v7295_v5  ;;  %8238 = vmatpush3.msra.mxu0 %v7116_v39  ;;  %v7317_v39 = vld [vmem:[%s12485_s18] sm:$0x3] }
0x17fb   :  { %7351 = vmatprep.subr.mxu1 %v7294_v16  ;;  %8239 = vmatprep.subr.mxu0 %v13075_v35 }
0x17fc   :  { %7352 = vmatpush1.msra.mxu1 %v7293_v42 }
0x17fd   :  { %7353 = vmatprep.subr.mxu1 %v7292_v9 }
0x17fe   :  { %7354 = vmatpush1.msra.mxu1 %v7291_v58 }
0x17ff   :  { %7355 = vmatprep.subr.mxu1 %v7290_v30 }
0x1800   :  { %7356 = vmatpush1.msra.mxu1 %v7289_v45 }
0x1801   :  { %7357 = vmatprep.subr.mxu1 %v7288_v38 }
0x1802   :  { %7358 = vmatpush1.msra.mxu1 %v7287_v32 }
0x1803   :  { %7359 = vmatprep.subr.mxu1 %v7286_v2 }
0x1804   :  { %7360 = vmatpush1.msra.mxu1 %v7285_v17 }
0x1805   :  { %7394 = vmatmul.mubr.f32.vlgmr.msra.gmra.mxu1 %v13615_v20 }
0x1806   :  { %7399 = vmatprep.mubr.f32.mxu1 %v13075_v35 }
0x1809   :  { %7400 = vmatmul.mubr.f32.gmra.mxu1 %v13616_v24 }
0x180a   :  { %7405 = vmatprep.mubr.f32.mxu1 %v13075_v35 }
0x180d   :  { %7406 = vmatmul.mubr.f32.gmra.mxu1 %v13617_v10 }
0x180e   :  { %7411 = vmatprep.mubr.f32.mxu1 %v13075_v35 }
0x1811   :  { %7412 = vmatmul.mubr.f32.gmra.mxu1 %v12203_v48 }
0x1812   :  { %7417 = vmatprep.mubr.f32.mxu1 %v13075_v35 }
0x1870   :  { %v6946_v53 = vpop.xlane.xlu1 %6945 }
0x1871   :  { %v6944_v25 = vpop.xlane.xlu0 %6943  ;;  %v6974_v26 = vrot.slane %v6946_v53, %v13490_v40 }
0x1872   :  { %v6970_v52 = vrot.slane %v6944_v25, %v13490_v40 }
0x1874   :  { %v6952_v59 = vpop.xlane.xlu1 %6951  ;;  %v6999_v29 = vsel %vm3787_vm1, %v6974_v26, %v6970_v52  ;;  %v7114_v26 = vld [vmem:[#allocation21 + $0x40] sm:$0xff]  ;;  %v7113_v52 = vld [vmem:[#allocation21 + $0x38] sm:$0xff] }
0x1875   :  { %v6948_v22 = vpop.xlane.xlu0 %6947  ;;  %v6986_v31 = vrot.slane %v6952_v59, %v13490_v40 }
0x1876   :  { %v6978_v37 = vrot.slane %v6948_v22, %v13490_v40  ;;  %v7115_v22 = vld [vmem:[#allocation21 + $0x48] sm:$0xff] }
0x1877   :  { %8240 = vmatpush3.msra.mxu0 %v7115_v22 }
0x1878   :  { %v7000_v27 = vsel %vm3789_vm2, %v6978_v37, %v6999_v29  ;;  %v6956_v44 = vpop.xlane.xlu1 %6955  ;;  %8241 = vmatprep.subr.mxu0 %v13075_v35  ;;  %v7112_v37 = vld [vmem:[#allocation21 + $0x30] sm:$0xff] }
0x1879   :  { %v6950_v4 = vpop.xlane.xlu0 %6949  ;;  %v6994_v15 = vrot.slane %v6956_v44, %v13490_v40  ;;  %8242 = vmatpush3.msra.mxu0 %v7114_v26 }
0x187a   :  { %v6982_v48 = vrot.slane %v6950_v4, %v13490_v40  ;;  %8243 = vmatprep.subr.mxu0 %v13075_v35  ;;  %v7110_v4 = vld [vmem:[#allocation21 + $0x20] sm:$0xff] }
0x187b   :  { %8244 = vmatpush3.msra.mxu0 %v7113_v52 }
0x187c   :  { %v7001_v57 = vsel %vm3791_vm3, %v6982_v48, %v7000_v27  ;;  %8245 = vmatprep.subr.mxu0 %v13075_v35 }
0x187d   :  { %v6954_v18 = vpop.xlane.xlu0 %6953  ;;  %v7002_v34 = vsel %vm3793_vm4, %v6986_v31, %v7001_v57  ;;  %8246 = vmatpush3.msra.mxu0 %v7112_v37  ;;  %v7107_v31 = vld [vmem:[#allocation21 + $0x8] sm:$0xff] }
0x187e   :  { %v6990_v61 = vrot.slane %v6954_v18, %v13490_v40  ;;  %8247 = vmatprep.subr.mxu0 %v13075_v35 }
0x187f   :  { %8248 = vmatpush3.msra.mxu0 %v7111_v36 }
0x1880   :  { %v7003_v3 = vsel %vm3795_vm5, %v6990_v61, %v7002_v34  ;;  %8249 = vmatprep.subr.mxu0 %v13075_v35  ;;  %v7106_v61 = vld [vmem:[#allocation21] sm:$0xff] }
0x1881   :  { %v6958_v13 = vpop.xlane.xlu0 %6957  ;;  %v7004_v54 = vsel %vm3797_vm6, %v6994_v15, %v7003_v3  ;;  %8250 = vmatpush3.msra.mxu0 %v7110_v4  ;;  %v12380_v15 = vrot.slane %v7317_v39, %v13492_v1 }
0x1882   :  { %v6998_v51 = vrot.slane %v6958_v13, %v13490_v40  ;;  %8251 = vmatprep.subr.mxu0 %v13075_v35  ;;  %v12383_v13 = vrot.slane %v7317_v39, %v13493_v56 }
0x1883   :  { %8252 = vmatpush3.msra.mxu0 %v7109_v11 }
0x1884   :  { %v7005_v41 = vsel %vm3799_vm7, %v6998_v51, %v7004_v54  ;;  %8253 = vmatprep.subr.mxu0 %v13075_v35 }
0x1885   :  { %v7007_v8 = vsel %vm3744_vm8, -1e+30, %v7005_v41  ;;  %8254 = vmatpush3.msra.mxu0 %v7108_v0 }
0x1886   :  { %v7008_v46 = vsel %vm3803_vm9, %v7007_v8, -inf  ;;  %8255 = vmatprep.subr.mxu0 %v13075_v35 }
0x1887   :  { %v7009_v5 = vrot.slane %v7008_v46, 4  ;;  %8256 = vmatpush3.msra.mxu0 %v7107_v31 }
0x1888   :  { %8257 = vmatprep.subr.mxu0 %v13075_v35 }
0x1889   :  { %v7010_v16 = vmax.f32 %v7008_v46, %v7009_v5  ;;  %8258 = vmatpush3.msra.mxu0 %v7106_v61 }
0x188b   :  { %v7011_v42 = vrot.slane %v7010_v16, 2 }
0x188d   :  { %v7012_v9 = vmax.f32 %v7010_v16, %v7011_v42 }
0x188f   :  { %v7013_v58 = vrot.slane %v7012_v9, 1 }
0x1891   :  { %v7014_v40 = vmax.f32 %v7012_v9, %v7013_v58 }
0x1893   :  { %v7015_v30 = vsub.f32 %v7007_v8, %v7014_v40 }
0x1895   :  { %v7016_v45 = vmul.f32 1.442695, %v7015_v30 }
0x1897   :  { %8517 = vpow2.f32 %v7016_v45 }
0x18a4   :  { %v8518_v38 = vpop.eup %8517 }
0x18a5   :  { %v7018_v32 = vsel %vm3803_vm9, %v8518_v38, 0.0  ;;  %v12357_v2 = vpop.f32.mrf.mxu1 }
0x18a6   :  { %v7019_v17 = vrot.slane %v7018_v32, 4 }
0x18a7   :  { %v8226_v20 = vpop.f32.mrf.mxu1 }
0x18a8   :  { %v7020_v23 = vadd.f32 %v7019_v17, %v7018_v32 }
0x18aa   :  { %v7021_v24 = vrot.slane %v7020_v23, 2 }
0x18ac   :  { %v7022_v10 = vadd.f32 %v7021_v24, %v7020_v23 }
0x18ae   :  { %v7023_v25 = vrot.slane %v7022_v10, 1 }
0x18b0   :  { %v7024_v53 = vadd.f32 %v7023_v25, %v7022_v10 }
0x18b2   :  { %8519 = vrcp.f32 %v7024_v53 }
0x18bf   :  { %v8520_v59 = vpop.eup %8519 }
0x18c0   :  { %v7026_v49 = vmul.f32 %v8520_v59, %v8518_v38 }
0x18c2   :  { %v7037_v29 = vrot.slane %v7026_v49, %v13492_v1  ;;  %v7030_v48 = vrot.slane %v7026_v49, %v13493_v56  ;;  %v7058_v27 = vrot.slane %v7026_v49, %v13494_v14  ;;  %v7044_v57 = vrot.slane %v7026_v49, %v13495_v6 }
0x18c3   :  { %v7072_v18 = vrot.slane %v7026_v49, %v13496_v7  ;;  %v7051_v44 = vrot.slane %v7026_v49, %v13497_v33  ;;  %v7065_v6 = vrot.slane %v7026_v49, %v13498_v19  ;;  %v7079_v34 = vrot.slane %v7026_v49, %v13499_v62 }
0x18c4   :  { %7039 = vbcast.lane.b32.xlu0 %v7037_v29, 256  ;;  %7032 = vbcast.lane.b32.xlu1 %v7030_v48, 256 }
0x18c5   :  { %v7395_v14 = vpop.f32.mrf.mxu1 }
0x18c6   :  { %v12389_v62 = vadd.f32 %v7395_v14, %v12383_v13 }
0x18c7   :  { %v7397_v60 = vpop.f32.mrf.mxu1 }
0x18c8   :  { %7060 = vbcast.lane.b32.xlu0 %v7058_v27, 256  ;;  %7046 = vbcast.lane.b32.xlu1 %v7044_v57, 256  ;;  %v12386_v19 = vadd.f32 %v7397_v60, %v12380_v15 }
0x18c9   :  { %v7401_v7 = vpop.f32.mrf.mxu1 }
0x18ca   :  { %v7424_v41 = vmax.f32 %v12389_v62, %v12386_v19  ;;  %v12413_v9 = vadd.f32 %v7401_v7, %v12383_v13 }
0x18cb   :  { %v7403_v3 = vpop.f32.mrf.mxu1 }
0x18cc   :  { %7074 = vbcast.lane.b32.xlu0 %v7072_v18, 256  ;;  %7053 = vbcast.lane.b32.xlu1 %v7051_v44, 256  ;;  %v12410_v42 = vadd.f32 %v7403_v3, %v12380_v15 }
0x18cd   :  { %v7407_v33 = vpop.f32.mrf.mxu1 }
0x18ce   :  { %v12397_v1 = vadd.f32 %v7407_v33, %v12383_v13  ;;  %v7427_v58 = vmax.f32 %v12413_v9, %v12410_v42 }
0x18cf   :  { %v7409_v35 = vpop.f32.mrf.mxu1 }
0x18d0   :  { %7067 = vbcast.lane.b32.xlu1 %v7065_v6, 256  ;;  %v12392_v54 = vadd.f32 %v7409_v35, %v12380_v15 }
0x18d1   :  { %v7413_v51 = vpop.f32.mrf.mxu1 }
0x18d2   :  { %v7430_v46 = vmax.f32 %v12397_v1, %v12392_v54  ;;  %v12405_v5 = vadd.f32 %v7413_v51, %v12383_v13 }
0x18d3   :  { %v7415_v8 = vpop.f32.mrf.mxu1 }
0x18d4   :  { %7081 = vbcast.lane.b32.xlu1 %v7079_v34, 256  ;;  %v12400_v56 = vadd.f32 %v7415_v8, %v12380_v15 }
0x18d6   :  { %v7433_v16 = vmax.f32 %v12405_v5, %v12400_v56 }
0x18eb   :  { %7425 = vmax.xlane.f32.xlu0 %v7424_v41 }
0x18ef   :  { %7431 = vmax.xlane.f32.xlu0 %v7430_v46 }
0x18f3   :  { %7434 = vmax.xlane.f32.xlu0 %v7433_v16 }
0x18f8   :  { %7428 = vmax.xlane.f32.xlu1 %v7427_v58 }
0x1936   :  { %v7040_v40 = vpop.permute.xlu0 %7039  ;;  %v7033_v30 = vpop.permute.xlu1 %7032 }
0x1937   :  { %v7092_v45 = vmul.f32 %v7040_v40, %v13500_v50  ;;  %v7091_v38 = vmul.f32 %v7033_v30, %v13501_v43 }
0x1939   :  { %v7099_v23 = vadd.f32 %v7092_v45, %v7091_v38 }
0x193a   :  { %v7047_v32 = vpop.permute.xlu1 %7046  ;;  %v7061_v20 = vpop.permute.xlu0 %7060 }
0x193b   :  { %v7093_v17 = vmul.f32 %v7047_v32, %v13502_v28  ;;  %v7095_v53 = vmul.f32 %v7061_v20, %v13504_v63 }
0x193d   :  { %v7100_v10 = vadd.f32 %v7099_v23, %v7093_v17 }
0x193e   :  { %v7054_v24 = vpop.permute.xlu1 %7053  ;;  %v7075_v26 = vpop.permute.xlu0 %7074 }
0x193f   :  { %v7094_v25 = vmul.f32 %v7054_v24, %v13503_v12  ;;  %v7097_v50 = vmul.f32 %v7075_v26, %v13506_v21 }
0x1941   :  { %v7101_v22 = vadd.f32 %v7100_v10, %v7094_v25 }
0x1942   :  { %v7068_v52 = vpop.permute.xlu1 %7067 }
0x1943   :  { %v7102_v37 = vadd.f32 %v7101_v22, %v7095_v53  ;;  %v7096_v59 = vmul.f32 %v7068_v52, %v13505_v47 }
0x1945   :  { %v7103_v43 = vadd.f32 %v7102_v37, %v7096_v59 }
0x1946   :  { %v7082_v49 = vpop.permute.xlu1 %7081 }
0x1947   :  { %v7104_v36 = vadd.f32 %v7103_v43, %v7097_v50  ;;  %v7098_v28 = vmul.f32 %v7082_v49, %v13507_v55  ;;  %v7509_v43 = vld [vmem:[#allocation9] sm:$0xff]  ;;  %v7510_v49 = vld [vmem:[#allocation9 + $0x8] sm:$0xff] }
0x1949   :  { %v7105_v4 = vadd.f32 %v7104_v36, %v7098_v28 }
0x194b   :  { %8260 = vmatmul.mubr.f32.vlgmr.msra.gmra.mxu0 %v7105_v4 }
0x1974   :  { %v7426_v29 = vpop.xlane.xlu0 %7425 }
0x1975   :  { %v7439_v12 = vsub.f32 %v12389_v62, %v7426_v29  ;;  %v7440_v63 = vsub.f32 %v12386_v19, %v7426_v29 }
0x1977   :  { %v7449_v48 = vmul.f32 1.442695, %v7439_v12  ;;  %v7451_v11 = vmul.f32 1.442695, %v7440_v63  ;;  %v7513_v12 = vld [vmem:[#allocation9 + $0x20] sm:$0xff]  ;;  %v7514_v63 = vld [vmem:[#allocation9 + $0x28] sm:$0xff] }
0x1978   :  { %v7432_v27 = vpop.xlane.xlu0 %7431 }
0x1979   :  { %8521 = vpow2.f32 %v7449_v48  ;;  %v7443_v47 = vsub.f32 %v12397_v1, %v7432_v27  ;;  %v7444_v21 = vsub.f32 %v12392_v54, %v7432_v27 }
0x197a   :  { %8523 = vpow2.f32 %v7451_v11 }
0x197b   :  { %v7457_v57 = vmul.f32 1.442695, %v7443_v47  ;;  %v7459_v0 = vmul.f32 1.442695, %v7444_v21 }
0x197c   :  { %v12430_v3 = vpop.xlane.xlu0 %7434 }
0x197d   :  { %8525 = vpow2.f32 %v7457_v57  ;;  %v7446_v8 = vsub.f32 %v12400_v56, %v12430_v3 }
0x197e   :  { %8527 = vpow2.f32 %v7459_v0 }
0x197f   :  { %v7463_v40 = vmul.f32 1.442695, %v7446_v8 }
0x1981   :  { %v12432_v39 = vpop.xlane.xlu1 %7428 }
0x1982   :  { %v7441_v35 = vsub.f32 %v12413_v9, %v12432_v39  ;;  %v7442_v51 = vsub.f32 %v12410_v42, %v12432_v39 }
0x1984   :  { %v7453_v46 = vmul.f32 1.442695, %v7441_v35  ;;  %v7455_v16 = vmul.f32 1.442695, %v7442_v51 }
0x1986   :  { %v8522_v55 = vpop.eup %8521 }
0x1987   :  { %v8524_v31 = vpop.eup %8523 }
0x1988   :  { %v7469_v18 = vadd.f32 %v8524_v31, %v8522_v55 }
0x198a   :  { %v8526_v44 = vpop.eup %8525  ;;  %7470 = vadd.xlane.f32.xlu0 %v7469_v18 }
0x198b   :  { %v8528_v61 = vpop.eup %8527 }
0x198c   :  { %v7475_v14 = vadd.f32 %v8528_v61, %v8526_v44 }
0x198e   :  { %7476 = vadd.xlane.f32.xlu0 %v7475_v14 }
0x1a0b   :  { %v7274_v6 = vpop.f32.mrf.mxu0 }
0x1a0c   :  { %v7275_v60 = vadd.f32 %v7274_v6, %v12357_v2  ;;  %v7445_v2 = vsub.f32 %v12405_v5, %v12430_v3 }
0x1a0d   :  { %v8261_v34 = vpop.f32.mrf.mxu0 }
0x1a0e   :  { %8529 = vtanh.f32 %v7275_v60  ;;  %v7461_v58 = vmul.f32 1.442695, %v7445_v2  ;;  %v7511_v34 = vld [vmem:[#allocation9 + $0x10] sm:$0xff]  ;;  %v7516_v2 = vld [vmem:[#allocation9 + $0x38] sm:$0xff] }
0x1a13   :  { %v7471_v33 = vpop.xlane.xlu0 %7470 }
0x1a14   :  { %8531 = vlog2.f32 %v7471_v33 }
0x1a17   :  { %v7477_v41 = vpop.xlane.xlu0 %7476 }
0x1a18   :  { %8533 = vlog2.f32 %v7477_v41  ;;  %v7515_v41 = vld [vmem:[#allocation9 + $0x30] sm:$0xff] }
0x1a19   :  { %8535 = vpow2.f32 %v7453_v46 }
0x1a1a   :  { %8537 = vpow2.f32 %v7455_v16 }
0x1a1b   :  { %v8530_v7 = vpop.eup %8529  ;;  %8539 = vpow2.f32 %v7461_v58 }
0x1a1c   :  { %7418 = vmatmul.mubr.f32.gmra.mxu1 %v8530_v7  ;;  %8541 = vpow2.f32 %v7463_v40  ;;  %v7512_v7 = vld [vmem:[#allocation9 + $0x18] sm:$0xff] }
0x1a21   :  { %v8532_v30 = vpop.eup %8531 }
0x1a22   :  { %v7485_v38 = vmul.f32 0.6931472, %v8532_v30 }
0x1a24   :  { %v7494_v10 = vadd.f32 %v7485_v38, %v7426_v29 }
0x1a25   :  { %v8534_v32 = vpop.eup %8533 }
0x1a26   :  { %v8536_v24 = vpop.eup %8535  ;;  %v7489_v25 = vmul.f32 0.6931472, %v8534_v32  ;;  %v7499_v50 = vsub.f32 %v12389_v62, %v7494_v10 }
0x1a27   :  { %v8538_v22 = vpop.eup %8537 }
0x1a28   :  { %v8540_v26 = vpop.eup %8539  ;;  %v7496_v37 = vadd.f32 %v7489_v25, %v7432_v27  ;;  %v7472_v59 = vadd.f32 %v8538_v22, %v8536_v24  ;;  %v7519_v36 = vmul.f32 %v7509_v43, %v7499_v50 }
0x1a29   :  { %v8542_v52 = vpop.eup %8541 }
0x1a2a   :  { %v7503_v4 = vsub.f32 %v12397_v1, %v7496_v37  ;;  %v7504_v29 = vsub.f32 %v12392_v54, %v7496_v37 }
0x1a2c   :  { %v7523_v11 = vmul.f32 %v7513_v12, %v7503_v4  ;;  %v7524_v27 = vmul.f32 %v7514_v63, %v7504_v29 }
0x1a2e   :  { %v7535_v62 = vadd.f32 %v7524_v27, %v7523_v11 }
0x1adc   :  { %v7419_v45 = vpop.f32.mrf.mxu1 }
0x1add   :  { %v12443_v20 = vadd.f32 %v7419_v45, %v12383_v13  ;;  %v7500_v13 = vsub.f32 %v12386_v19, %v7494_v10 }
0x1ade   :  { %v7421_v17 = vpop.f32.mrf.mxu1 }
0x1adf   :  { %v12446_v23 = vadd.f32 %v7421_v17, %v12380_v15  ;;  %v7478_v15 = vadd.f32 %v8542_v52, %v8540_v26  ;;  %v7520_v28 = vmul.f32 %v7510_v49, %v7500_v13  ;;  %v7518_v17 = vld [vmem:[#allocation9 + $0x48] sm:$0xff] }
0x1ae1   :  { %v7436_v53 = vmax.f32 %v12443_v20, %v12446_v23  ;;  %v7529_v48 = vadd.f32 %v7520_v28, %v7519_v36 }
0x1ae3   :  { %7437 = vmax.xlane.f32.xlu1 %v7436_v53 }
0x1ae7   :  { %7473 = vadd.xlane.f32.xlu1 %v7472_v59 }
0x1aeb   :  { %7479 = vadd.xlane.f32.xlu1 %v7478_v15 }
0x1aef   :  { %7530 = vadd.xlane.f32.xlu1 %v7529_v48 }
0x1af3   :  { %7536 = vadd.xlane.f32.xlu1 %v7535_v62 }
0x1b6c   :  { %v7438_v19 = vpop.xlane.xlu1 %7437 }
0x1b6d   :  { %v7447_v47 = vsub.f32 %v12443_v20, %v7438_v19  ;;  %v7448_v21 = vsub.f32 %v12446_v23, %v7438_v19 }
0x1b6f   :  { %v7465_v57 = vmul.f32 1.442695, %v7447_v47  ;;  %v7467_v0 = vmul.f32 1.442695, %v7448_v21 }
0x1b70   :  { %v7474_v55 = vpop.xlane.xlu1 %7473 }
0x1b71   :  { %8543 = vpow2.f32 %v7465_v57 }
0x1b72   :  { %8545 = vpow2.f32 %v7467_v0 }
0x1b73   :  { %8547 = vlog2.f32 %v7474_v55 }
0x1b74   :  { %v7480_v54 = vpop.xlane.xlu1 %7479 }
0x1b75   :  { %8549 = vlog2.f32 %v7480_v54 }
0x1b78   :  { %v7531_v53 = vpop.xlane.xlu1 %7530 }
0x1b7c   :  { %v7537_v52 = vpop.xlane.xlu1 %7536 }
0x1b7e   :  { %v8544_v1 = vpop.eup %8543 }
0x1b7f   :  { %v8546_v31 = vpop.eup %8545 }
0x1b80   :  { %v8548_v18 = vpop.eup %8547  ;;  %v7481_v44 = vadd.f32 %v8546_v31, %v8544_v1 }
0x1b81   :  { %v7487_v61 = vmul.f32 0.6931472, %v8548_v18 }
0x1b82   :  { %v8550_v14 = vpop.eup %8549  ;;  %7482 = vadd.xlane.f32.xlu0 %v7481_v44 }
0x1b83   :  { %v7495_v6 = vadd.f32 %v7487_v61, %v12432_v39  ;;  %v7491_v60 = vmul.f32 0.6931472, %v8550_v14 }
0x1b85   :  { %v7497_v33 = vadd.f32 %v7491_v60, %v12430_v3  ;;  %v7501_v35 = vsub.f32 %v12413_v9, %v7495_v6  ;;  %v7502_v51 = vsub.f32 %v12410_v42, %v7495_v6  ;;  %v7517_v42 = vld [vmem:[#allocation9 + $0x40] sm:$0xff] }
0x1b87   :  { %v7521_v8 = vmul.f32 %v7511_v34, %v7501_v35  ;;  %v7522_v46 = vmul.f32 %v7512_v7, %v7502_v51  ;;  %v7505_v16 = vsub.f32 %v12405_v5, %v7497_v33  ;;  %v7506_v58 = vsub.f32 %v12400_v56, %v7497_v33 }
0x1b89   :  { %v7532_v40 = vadd.f32 %v7522_v46, %v7521_v8  ;;  %v7525_v30 = vmul.f32 %v7515_v41, %v7505_v16  ;;  %v7526_v39 = vmul.f32 %v7516_v2, %v7506_v58 }
0x1b8b   :  { %7533 = vadd.xlane.f32.xlu0 %v7532_v40  ;;  %v7538_v45 = vadd.f32 %v7526_v39, %v7525_v30 }
0x1b8f   :  { %7539 = vadd.xlane.f32.xlu0 %v7538_v45 }
0x1c0b   :  { %v7483_v38 = vpop.xlane.xlu0 %7482 }
0x1c0c   :  { %8551 = vlog2.f32 %v7483_v38 }
0x1c14   :  { %v7534_v22 = vpop.xlane.xlu0 %7533 }
0x1c15   :  { %v7545_v26 = vadd.f32 %v7534_v22, %v7531_v53 }
0x1c17   :  { %v7546_v37 = vadd.f32 %v7545_v26, %v7537_v52 }
0x1c18   :  { %v7540_v59 = vpop.xlane.xlu0 %7539 }
0x1c19   :  { %v8552_v3 = vpop.eup %8551  ;;  %v7547_v50 = vadd.f32 %v7546_v37, %v7540_v59 }
0x1c1a   :  { %v7493_v9 = vmul.f32 0.6931472, %v8552_v3 }
0x1c1c   :  { %v7498_v32 = vadd.f32 %v7493_v9, %v7438_v19 }
0x1c1e   :  { %v7507_v24 = vsub.f32 %v12443_v20, %v7498_v32  ;;  %v7508_v10 = vsub.f32 %v12446_v23, %v7498_v32 }
0x1c20   :  { %v7527_v5 = vmul.f32 %v7517_v42, %v7507_v24  ;;  %v7528_v25 = vmul.f32 %v7518_v17, %v7508_v10 }
0x1c22   :  { %v7541_v56 = vadd.f32 %v7528_v25, %v7527_v5 }
0x1c24   :  { %7542 = vadd.xlane.f32.xlu1 %v7541_v56 }
0x1cad   :  { %v7543_v13 = vpop.xlane.xlu1 %7542 }
0x1cae   :  { %v7548_v43 = vadd.f32 %v7547_v50, %v7543_v13 }
0x1cb0   :  { %7550 = vst.msk [vmem:[%s12486_s19] sm:$0xff] %vm7549_vm10, %v7548_v43 }
0x1cb1   :  { %7555 = vsyncpa [#allocation8], 1 }
0x1cb2   :  { %7556 = vsyncpa [#allocation10], 1 }
0x1cb3   :  { %7557 = vsyncpa [#allocation13], 1 }
0x1cb4   :  { %7558 = vsyncpa [#allocation16], 1 }
0x1cb5   :  { %7559 = vsyncpa [#allocation19], 1 }
0x1cb6   :  { %7560 = vsyncpa [#allocation22], 1 }
0x1cb7   :  { %7561 = vsyncpa [#allocation25], 1 }

</bundles_post_ra>
